<compile_context>
chip_gen: v5e
topology: v5e:2x2
jax: 0.10.0
libtpu: 0.0.40
codegen_flags: <defaults>
</compile_context>

<pallas_src>
import functools
import math

import jax
import jax.numpy as jnp
from jax.experimental import pallas as pl
from jax.experimental.pallas import tpu as pltpu


# ----------------------------------------------------------------------------
# Per-generation VMEM budget
# ----------------------------------------------------------------------------

def _vmem_capacity_bytes():
    try:
        return int(pltpu.get_tpu_info().vmem_capacity_bytes)
    except Exception:
        return 64 * 1024 * 1024          # conservative (v7x-sized) fallback


_VMEM_CAP = _vmem_capacity_bytes()
_VMEM_LIMIT = min((_VMEM_CAP * 3) // 4, 100 * 1024 * 1024)
_FF_MAX_TILE = 256 if _VMEM_CAP <= (64 * 1024 * 1024) else 1024


def _round_up(n, k):
    return ((n + k - 1) // k) * k


# ----------------------------------------------------------------------------
# Pallas kernels
# ----------------------------------------------------------------------------

def _mha_resid_ln_kernel(q_ref, kv_ref,
                         wq_ref, bq_ref, wkv_ref, bkv_ref, wo_ref,
                         g_ref, b_ref, mask_ref, pad_ref,
                         o_ref, *, nhead):
    """Fused MHA (+ residual add + LayerNorm) for one (modality, batch) cell.

    q_ref/kv_ref : (1, L, D) f32     (residual == q source in this module)
    wq_ref       : (D, D)  bf16      (pre-transposed: y = x @ W^T)
    bq_ref       : (1, D)  f32
    wkv_ref      : (D, 2D) bf16      fused [Wk | Wv]
    bkv_ref      : (1, 2D) f32
    wo_ref       : (D, D)  bf16      out-projection (bias=False)
    g_ref/b_ref  : (1, D)  f32       LayerNorm gamma/beta
    mask_ref     : (L, L)  f32       additive attention mask
    pad_ref      : (1, 1, L) f32     0/1 pad mask row for this batch
    o_ref        : (1, L, D) f32
    """
    L, D = q_ref.shape[1], q_ref.shape[2]
    hd = D // nhead
    scale = 1.0 / math.sqrt(hd)
    cd = wq_ref.dtype                     # bf16 compute dtype for MXU operands

    xq = q_ref[0]                         # (L, D) f32 — also the residual
    xkv = kv_ref[0]                       # (L, D) f32

    Q = jnp.dot(xq.astype(cd), wq_ref[...],
                preferred_element_type=jnp.float32) + bq_ref[...]
    KV = jnp.dot(xkv.astype(cd), wkv_ref[...],
                 preferred_element_type=jnp.float32) + bkv_ref[...]
    K = KV[:, :D]
    V = KV[:, D:]

    bias = mask_ref[...] + pad_ref[0]     # (L, L) + (1, L) -> (L, L)

    # Per-head attention; head context is accumulated directly into the
    # out-projection (no lane-axis concatenate, single (L, D) live value).
    attn_out = jnp.zeros((L, D), jnp.float32)
    for h in range(nhead):                # static unroll
        lo = h * hd
        qh = Q[:, lo:lo + hd]
        kh = K[:, lo:lo + hd]
        vh = V[:, lo:lo + hd]
        # contract head_dim directly (no .T / XLU transpose)
        s = jax.lax.dot_general(qh, kh, (((1,), (1,)), ((), ())),
                                preferred_element_type=jnp.float32) * scale
        s = s + bias
        s = s - jnp.max(s, axis=-1, keepdims=True)
        p = jnp.exp(s)
        p = p * pl.reciprocal(jnp.sum(p, axis=-1, keepdims=True), approx=True)
        ctx = jnp.dot(p.astype(cd), vh.astype(cd),
                      preferred_element_type=jnp.float32)          # (L, hd)
        attn_out = attn_out + jnp.dot(ctx.astype(cd), wo_ref[lo:lo + hd, :],
                                      preferred_element_type=jnp.float32)

    # residual add + LayerNorm (eps = 1e-5, PyTorch default), all in f32
    y = xq + attn_out
    mu = jnp.mean(y, axis=-1, keepdims=True)
    var = jnp.mean((y - mu) ** 2, axis=-1, keepdims=True)
    o_ref[0] = (y - mu) * jax.lax.rsqrt(var + 1e-5) * g_ref[...] + b_ref[...]


def _ff_kernel(x_ref, w1_ref, b1_ref, w2_ref, b2_ref, o_ref):
    """Fused FeedForward: relu(x @ W1^T + b1) @ W2^T + b2 (dropout = identity)."""
    cd = w1_ref.dtype
    h = jnp.dot(x_ref[...].astype(cd), w1_ref[...],
                preferred_element_type=jnp.float32) + b1_ref[...]
    h = jnp.maximum(h, 0.0)
    o_ref[...] = jnp.dot(h.astype(cd), w2_ref[...],
                         preferred_element_type=jnp.float32) + b2_ref[...]


# ----------------------------------------------------------------------------
# Pallas wrappers
# ----------------------------------------------------------------------------

def _resident_spec(arr, use_buffered):
    """BlockSpec for a weight block indexed only by the modality grid axis."""
    nd = arr.ndim
    kw = {"pipeline_mode": pl.Buffered(1)} if use_buffered else {}
    return pl.BlockSpec((None,) + tuple(arr.shape[1:]),
                        lambda m, i: (m,) + (0,) * (nd - 1), **kw)


def fused_mha_resid_ln(bundle, q_src, kv_src, attn_mask, pad3, nhead,
                       use_buffered):
    """softmax-MHA(q_src, kv_src, kv_src) -> +q_src residual -> LayerNorm.

    q_src/kv_src: (M, B, L, D) stacked modalities; bundle holds (M, ...) weights.
    """
    mha = bundle["mha"]
    M, B, L, D = q_src.shape

    act_spec = pl.BlockSpec((None, 1, L, D), lambda m, b: (m, b, 0, 0))
    mask_kw = {"pipeline_mode": pl.Buffered(1)} if use_buffered else {}
    mask_spec = pl.BlockSpec((L, L), lambda m, b: (0, 0), **mask_kw)
    pad_spec = pl.BlockSpec((1, 1, L), lambda m, b: (b, 0, 0))
    wspec = lambda a: _resident_spec(a, use_buffered)

    kernel = functools.partial(_mha_resid_ln_kernel, nhead=nhead)
    return pl.pallas_call(
        kernel,
        grid=(M, B),
        in_specs=[
            act_spec, act_spec,
            wspec(mha["wq"]), wspec(mha["bq"]),
            wspec(mha["wkv"]), wspec(mha["bkv"]),
            wspec(mha["wo"]),
            wspec(bundle["g"]), wspec(bundle["b"]),
            mask_spec, pad_spec,
        ],
        out_specs=act_spec,
        out_shape=jax.ShapeDtypeStruct((M, B, L, D), jnp.float32),
        compiler_params=pltpu.CompilerParams(
            dimension_semantics=("parallel", "parallel"),
            vmem_limit_bytes=_VMEM_LIMIT),
    )(q_src, kv_src,
      mha["wq"], mha["bq"], mha["wkv"], mha["bkv"], mha["wo"],
      bundle["g"], bundle["b"], attn_mask, pad3)


def fused_feedforward(ff, X, use_buffered):
    """Fused FeedForward over stacked modalities X: (M, B, L, D)."""
    M, B, L, D = X.shape
    N = B * L
    d_ff = ff["w1"].shape[-1]

    tile = min(_FF_MAX_TILE, _round_up(N, 8))
    n_pad = _round_up(N, tile)
    x = X.reshape(M, N, D)
    if n_pad != N:                        # hardened grid: pad instead of one giant block
        x = jnp.pad(x, ((0, 0), (0, n_pad - N), (0, 0)))

    row_spec = pl.BlockSpec((None, tile, D), lambda m, i: (m, i, 0))
    wspec = lambda a: _resident_spec(a, use_buffered)

    y = pl.pallas_call(
        _ff_kernel,
        grid=(M, n_pad // tile),
        in_specs=[row_spec, wspec(ff["w1"]), wspec(ff["b1"]),
                  wspec(ff["w2"]), wspec(ff["b2"])],
        out_specs=row_spec,
        out_shape=jax.ShapeDtypeStruct((M, n_pad, D), jnp.float32),
        compiler_params=pltpu.CompilerParams(
            dimension_semantics=("parallel", "parallel"),
            vmem_limit_bytes=_VMEM_LIMIT),
    )(x, ff["w1"], ff["b1"], ff["w2"], ff["b2"])
    return y[:, :N].reshape(M, B, L, D)


def trimodal_block_forward(prep, T, A, attn_mask, pad_mask, *,
                           nhead, tri_modal_idx=False, use_buffered=True):
    pad3 = pad_mask.astype(jnp.bool_).astype(jnp.float32)[:, None, :]   # (B,1,L)

    # self-attention + residual + norm1 for both modalities in ONE call
    X = jnp.stack([T, A])                                               # (2,B,L,D)
    X = fused_mha_resid_ln(prep["sa"], X, X, attn_mask, pad3, nhead, use_buffered)

    if tri_modal_idx:
        # cross attention: T attends to A, then A attends to the *updated* T
        # (sequential dependency -> two separate M=1 calls)
        Tq = X[0:1]
        Aq = X[1:2]
        Tn = fused_mha_resid_ln(prep["ca_t"], Tq, Aq, attn_mask, pad3,
                                nhead, use_buffered)
        An = fused_mha_resid_ln(prep["ca_a"], Aq, Tn, attn_mask, pad3,
                                nhead, use_buffered)
        X = jnp.concatenate([Tn, An], axis=0)

    X = fused_feedforward(prep["ff"], X, use_buffered)
    return X[0], X[1]


# ----------------------------------------------------------------------------
# Parameter prep: stack modalities, fuse K/V weights, pre-cast to bf16 (once)
# ----------------------------------------------------------------------------

def prepare_params(raw):
    cd = jnp.bfloat16

    def prep_mha(ps):
        return dict(
            wq=jnp.stack([p["wq_t"] for p in ps]).astype(cd),                      # (M,D,D)
            bq=jnp.stack([p["bq"][None, :] for p in ps]),                          # (M,1,D)
            wkv=jnp.stack([jnp.concatenate([p["wk_t"], p["wv_t"]], axis=1)
                           for p in ps]).astype(cd),                               # (M,D,2D)
            bkv=jnp.stack([jnp.concatenate([p["bk"], p["bv"]])[None, :]
                           for p in ps]),                                          # (M,1,2D)
            wo=jnp.stack([p["wo_t"] for p in ps]).astype(cd),                      # (M,D,D)
        )

    def prep_ln(gs, bs):
        return (jnp.stack([g[None, :] for g in gs]),
                jnp.stack([b[None, :] for b in bs]))

    def prep_ff(ps):
        return dict(
            w1=jnp.stack([p["w1_t"] for p in ps]).astype(cd),
            b1=jnp.stack([p["b1"][None, :] for p in ps]),
            w2=jnp.stack([p["w2_t"] for p in ps]).astype(cd),
            b2=jnp.stack([p["b2"][None, :] for p in ps]),
        )

    sa_g, sa_b = prep_ln([raw["norm1_time_g"], raw["norm1_act_g"]],
                         [raw["norm1_time_b"], raw["norm1_act_b"]])
    ct_g, ct_b = prep_ln([raw["norm2_time_g"]], [raw["norm2_time_b"]])
    ca_g, ca_b = prep_ln([raw["norm2_act_g"]], [raw["norm2_act_b"]])

    return dict(
        sa=dict(mha=prep_mha([raw["sa_time"], raw["sa_act"]]), g=sa_g, b=sa_b),
        ca_t=dict(mha=prep_mha([raw["ca_time_from_act"]]), g=ct_g, b=ct_b),
        ca_a=dict(mha=prep_mha([raw["ca_act_from_time"]]), g=ca_g, b=ca_b),
        ff=prep_ff([raw["ff_time"], raw["ff_act"]]),
    )


# ----------------------------------------------------------------------------
# Pure-JAX f32 reference (for correctness check only)
# ----------------------------------------------------------------------------

def _ref_mha(p, q_in, k_in, v_in, attn_mask, pad01, nhead):
    B, L, D = q_in.shape
    hd = D // nhead
    Q = q_in @ p["wq_t"] + p["bq"]
    K = k_in @ p["wk_t"] + p["bk"]
    V = v_in @ p["wv_t"] + p["bv"]
    Qh = Q.reshape(B, L, nhead, hd).transpose(0, 2, 1, 3)
    Kh = K.reshape(B, L, nhead, hd).transpose(0, 2, 1, 3)
    Vh = V.reshape(B, L, nhead, hd).transpose(0, 2, 1, 3)
    s = jnp.einsum("bhld,bhmd->bhlm", Qh, Kh) / math.sqrt(hd)
    s = s + attn_mask[None, None] + pad01[:, None, None, :]
    pattn = jax.nn.softmax(s, axis=-1)
    ctx = jnp.einsum("bhlm,bhmd->bhld", pattn, Vh)
    ctx = ctx.transpose(0, 2, 1, 3).reshape(B, L, D)
    return ctx @ p["wo_t"]


def _ref_ln(resid, x, g, b):
    y = resid + x
    mu = jnp.mean(y, -1, keepdims=True)
    var = jnp.mean((y - mu) ** 2, -1, keepdims=True)
    return (y - mu) / jnp.sqrt(var + 1e-5) * g + b


def _ref_ff(p, x):
    h = jnp.maximum(x @ p["w1_t"] + p["b1"], 0.0)
    return h @ p["w2_t"] + p["b2"]


def _ref_trimodal(raw, T, A, attn_mask, pad_mask, nhead, tri_modal_idx):
    pad01 = pad_mask.astype(jnp.bool_).astype(jnp.float32)
    T = _ref_ln(T, _ref_mha(raw["sa_time"], T, T, T, attn_mask, pad01, nhead),
                raw["norm1_time_g"], raw["norm1_time_b"])
    A = _ref_ln(A, _ref_mha(raw["sa_act"], A, A, A, attn_mask, pad01, nhead),
                raw["norm1_act_g"], raw["norm1_act_b"])
    if tri_modal_idx:
        Tc = _ref_mha(raw["ca_time_from_act"], T, A, A, attn_mask, pad01, nhead)
        T2 = _ref_ln(T, Tc, raw["norm2_time_g"], raw["norm2_time_b"])
        Ac = _ref_mha(raw["ca_act_from_time"], A, T2, T2, attn_mask, pad01, nhead)
        A = _ref_ln(A, Ac, raw["norm2_act_g"], raw["norm2_act_b"])
        T = T2
    return _ref_ff(raw["ff_time"], T), _ref_ff(raw["ff_act"], A)


# ----------------------------------------------------------------------------
# Deterministic parameter init (raw f32, PyTorch-like layout with W^T stored)
# ----------------------------------------------------------------------------

def _init_mha(key, D):
    ks = jax.random.split(key, 7)
    s = 0.02
    return dict(
        wq_t=jax.random.normal(ks[0], (D, D), jnp.float32) * s,
        bq=jax.random.normal(ks[1], (D,), jnp.float32) * s,
        wk_t=jax.random.normal(ks[2], (D, D), jnp.float32) * s,
        bk=jax.random.normal(ks[3], (D,), jnp.float32) * s,
        wv_t=jax.random.normal(ks[4], (D, D), jnp.float32) * s,
        bv=jax.random.normal(ks[5], (D,), jnp.float32) * s,
        wo_t=jax.random.normal(ks[6], (D, D), jnp.float32) * s,
    )


def _init_ff(key, D, d_ff):
    ks = jax.random.split(key, 4)
    s = 0.02
    return dict(
        w1_t=jax.random.normal(ks[0], (D, d_ff), jnp.float32) * s,
        b1=jax.random.normal(ks[1], (d_ff,), jnp.float32) * s,
        w2_t=jax.random.normal(ks[2], (d_ff, D), jnp.float32) * s,
        b2=jax.random.normal(ks[3], (D,), jnp.float32) * s,
    )


def init_trimodal_params(key, D, d_ff):
    ks = jax.random.split(key, 7)
    params = dict(
        sa_time=_init_mha(ks[0], D),
        sa_act=_init_mha(ks[1], D),
        ca_time_from_act=_init_mha(ks[2], D),
        ca_act_from_time=_init_mha(ks[3], D),
        ff_time=_init_ff(ks[4], D, d_ff),
        ff_act=_init_ff(ks[5], D, d_ff),
    )
    for name, kk in zip(["norm1_time", "norm1_act", "norm2_time", "norm2_act"],
                        jax.random.split(ks[6], 4)):
        kg, kb = jax.random.split(kk)
        params[name + "_g"] = (jnp.ones((D,), jnp.float32)
                               + 0.01 * jax.random.normal(kg, (D,)))
        params[name + "_b"] = 0.01 * jax.random.normal(kb, (D,))
    return params


# ----------------------------------------------------------------------------
# Main
# ----------------------------------------------------------------------------

if __name__ == "__main__":
    B, L, D, H, d_ff = 2, 8, 32, 4, 64
    tri_modal_idx = True

    key = jax.random.PRNGKey(0)
    k_par, k_T, k_A, k_pad = jax.random.split(key, 4)

    raw = init_trimodal_params(k_par, D, d_ff)
    prep = prepare_params(raw)
    T = jax.random.normal(k_T, (B, L, D), jnp.float32)
    A = jax.random.normal(k_A, (B, L, D), jnp.float32)

    # causal additive attention mask (0 / -1e9)
    causal = jnp.tril(jnp.ones((L, L), jnp.float32))
    attn_mask = jnp.where(causal == 1.0, 0.0, -1e9).astype(jnp.float32)
    # pad_mask: arbitrary 0/1 float pattern (the module casts it to bool and
    # adds it as 0./1. to the attention scores)
    pad_mask = (jax.random.uniform(k_pad, (B, L)) > 0.5).astype(jnp.float32)

    fwd = jax.jit(trimodal_block_forward,
                  static_argnames=("nhead", "tri_modal_idx", "use_buffered"))
    try:
        T_out, A_out = fwd(prep, T, A, attn_mask, pad_mask, nhead=H,
                           tri_modal_idx=tri_modal_idx, use_buffered=True)
        T_out, A_out = jax.block_until_ready((T_out, A_out))
    except Exception:
        # Fallback if this JAX/Mosaic build rejects pipeline_mode=pl.Buffered(1)
        T_out, A_out = fwd(prep, T, A, attn_mask, pad_mask, nhead=H,
                           tri_modal_idx=tri_modal_idx, use_buffered=False)
        T_out, A_out = jax.block_until_ready((T_out, A_out))

    # correctness check against pure-JAX f32 reference (bf16 MXU operands and
    # the approx softmax reciprocal in the kernel loosen the tolerance)
    T_ref, A_ref = _ref_trimodal(raw, T, A, attn_mask, pad_mask, H,
                                 tri_modal_idx)
    assert jnp.allclose(T_out, T_ref, atol=1e-2, rtol=2e-2), "T mismatch"
    assert jnp.allclose(A_out, A_ref, atol=1e-2, rtol=2e-2), "A mismatch"

    print("KERNEL_OK")
</pallas_src>

<mosaic_0001>
module attributes {stable_mosaic.version = 11 : i64} {
  func.func @_mha_resid_ln_kernel(%arg0: i32, %arg1: i32, %arg2: memref<1x1x8x32xf32, #tpu.memory_space<vmem>>, %arg3: memref<1x1x8x32xf32, #tpu.memory_space<vmem>>, %arg4: memref<1x32x32xbf16, #tpu.memory_space<vmem>>, %arg5: memref<1x1x32xf32, #tpu.memory_space<vmem>>, %arg6: memref<1x32x64xbf16, #tpu.memory_space<vmem>>, %arg7: memref<1x1x64xf32, #tpu.memory_space<vmem>>, %arg8: memref<1x32x32xbf16, #tpu.memory_space<vmem>>, %arg9: memref<1x1x32xf32, #tpu.memory_space<vmem>>, %arg10: memref<1x1x32xf32, #tpu.memory_space<vmem>>, %arg11: memref<8x8xf32, #tpu.memory_space<vmem>>, %arg12: memref<1x1x8xf32, #tpu.memory_space<vmem>>, %arg13: memref<1x1x8x32xf32, #tpu.memory_space<vmem>>) attributes {dimension_semantics = [#tpu.dimension_semantics<parallel>, #tpu.dimension_semantics<parallel>], iteration_bounds = array<i64: 2, 2>, scalar_prefetch = 0 : i64, scratch_operands = 0 : i64, tpu.core_type = #tpu.core_type<tc>, window_params = [{transform_indices = @transform_0, window_bounds = array<i64: 1, 1, 8, 32>}, {transform_indices = @transform_1, window_bounds = array<i64: 1, 1, 8, 32>}, {pipeline_mode = #tpu.pipeline_mode<synchronous>, transform_indices = @transform_2, window_bounds = array<i64: 1, 32, 32>}, {pipeline_mode = #tpu.pipeline_mode<synchronous>, transform_indices = @transform_3, window_bounds = array<i64: 1, 1, 32>}, {pipeline_mode = #tpu.pipeline_mode<synchronous>, transform_indices = @transform_4, window_bounds = array<i64: 1, 32, 64>}, {pipeline_mode = #tpu.pipeline_mode<synchronous>, transform_indices = @transform_5, window_bounds = array<i64: 1, 1, 64>}, {pipeline_mode = #tpu.pipeline_mode<synchronous>, transform_indices = @transform_6, window_bounds = array<i64: 1, 32, 32>}, {pipeline_mode = #tpu.pipeline_mode<synchronous>, transform_indices = @transform_7, window_bounds = array<i64: 1, 1, 32>}, {pipeline_mode = #tpu.pipeline_mode<synchronous>, transform_indices = @transform_8, window_bounds = array<i64: 1, 1, 32>}, {pipeline_mode = #tpu.pipeline_mode<synchronous>, transform_indices = @transform_9, window_bounds = array<i64: 8, 8>}, {transform_indices = @transform_10, window_bounds = array<i64: 1, 1, 8>}, {transform_indices = @transform_11, window_bounds = array<i64: 1, 1, 8, 32>}]} {
    %c0 = arith.constant 0 : index
    %c0_0 = arith.constant 0 : index
    %c0_1 = arith.constant 0 : index
    %c0_2 = arith.constant 0 : index
    %0 = vector.load %arg2[%c0, %c0_0, %c0_1, %c0_2] : memref<1x1x8x32xf32, #tpu.memory_space<vmem>>, vector<1x1x8x32xf32>
    %1 = vector.shape_cast %0 : vector<1x1x8x32xf32> to vector<8x32xf32>
    %c0_3 = arith.constant 0 : index
    %c0_4 = arith.constant 0 : index
    %c0_5 = arith.constant 0 : index
    %c0_6 = arith.constant 0 : index
    %2 = vector.load %arg3[%c0_3, %c0_4, %c0_5, %c0_6] : memref<1x1x8x32xf32, #tpu.memory_space<vmem>>, vector<1x1x8x32xf32>
    %3 = vector.shape_cast %2 : vector<1x1x8x32xf32> to vector<8x32xf32>
    %4 = arith.truncf %1 : vector<8x32xf32> to vector<8x32xbf16>
    %c0_7 = arith.constant 0 : index
    %c0_8 = arith.constant 0 : index
    %c0_9 = arith.constant 0 : index
    %5 = vector.load %arg4[%c0_7, %c0_8, %c0_9] : memref<1x32x32xbf16, #tpu.memory_space<vmem>>, vector<1x32x32xbf16>
    %6 = vector.shape_cast %5 : vector<1x32x32xbf16> to vector<32x32xbf16>
    %cst = arith.constant dense<0.000000e+00> : vector<8x32xf32>
    %7 = tpu.matmul %4, %6, %cst {dimension_numbers = #tpu.dot_dimension_numbers<[1], [0], [0], [1], [0, 0, 1, 1], [], []>} : vector<8x32xbf16>, vector<32x32xbf16>, vector<8x32xf32> -> vector<8x32xf32>
    %c0_10 = arith.constant 0 : index
    %c0_11 = arith.constant 0 : index
    %c0_12 = arith.constant 0 : index
    %8 = vector.load %arg5[%c0_10, %c0_11, %c0_12] : memref<1x1x32xf32, #tpu.memory_space<vmem>>, vector<1x1x32xf32>
    %9 = vector.shape_cast %8 : vector<1x1x32xf32> to vector<1x32xf32>
    %10 = vector.broadcast %9 : vector<1x32xf32> to vector<8x32xf32>
    %11 = arith.addf %7, %10 : vector<8x32xf32>
    %12 = arith.truncf %3 : vector<8x32xf32> to vector<8x32xbf16>
    %c0_13 = arith.constant 0 : index
    %c0_14 = arith.constant 0 : index
    %c0_15 = arith.constant 0 : index
    %13 = vector.load %arg6[%c0_13, %c0_14, %c0_15] : memref<1x32x64xbf16, #tpu.memory_space<vmem>>, vector<1x32x64xbf16>
    %14 = vector.shape_cast %13 : vector<1x32x64xbf16> to vector<32x64xbf16>
    %cst_16 = arith.constant dense<0.000000e+00> : vector<8x64xf32>
    %15 = tpu.matmul %12, %14, %cst_16 {dimension_numbers = #tpu.dot_dimension_numbers<[1], [0], [0], [1], [0, 0, 1, 1], [], []>} : vector<8x32xbf16>, vector<32x64xbf16>, vector<8x64xf32> -> vector<8x64xf32>
    %c0_17 = arith.constant 0 : index
    %c0_18 = arith.constant 0 : index
    %c0_19 = arith.constant 0 : index
    %16 = vector.load %arg7[%c0_17, %c0_18, %c0_19] : memref<1x1x64xf32, #tpu.memory_space<vmem>>, vector<1x1x64xf32>
    %17 = vector.shape_cast %16 : vector<1x1x64xf32> to vector<1x64xf32>
    %18 = vector.broadcast %17 : vector<1x64xf32> to vector<8x64xf32>
    %19 = arith.addf %15, %18 : vector<8x64xf32>
    %20 = vector.extract_strided_slice %19 {offsets = [0, 0], sizes = [8, 32], strides = [1, 1]} : vector<8x64xf32> to vector<8x32xf32>
    %21 = vector.extract_strided_slice %19 {offsets = [0, 32], sizes = [8, 32], strides = [1, 1]} : vector<8x64xf32> to vector<8x32xf32>
    %c0_20 = arith.constant 0 : index
    %c0_21 = arith.constant 0 : index
    %22 = vector.load %arg11[%c0_20, %c0_21] : memref<8x8xf32, #tpu.memory_space<vmem>>, vector<8x8xf32>
    %c0_22 = arith.constant 0 : index
    %c0_23 = arith.constant 0 : index
    %c0_24 = arith.constant 0 : index
    %23 = vector.load %arg12[%c0_22, %c0_23, %c0_24] : memref<1x1x8xf32, #tpu.memory_space<vmem>>, vector<1x1x8xf32>
    %24 = vector.shape_cast %23 : vector<1x1x8xf32> to vector<1x8xf32>
    %25 = vector.broadcast %24 : vector<1x8xf32> to vector<8x8xf32>
    %26 = arith.addf %22, %25 : vector<8x8xf32>
    %cst_25 = arith.constant 0.000000e+00 : f32
    %27 = vector.broadcast %cst_25 : f32 to vector<8x32xf32>
    %28 = vector.extract_strided_slice %11 {offsets = [0, 0], sizes = [8, 8], strides = [1, 1]} : vector<8x32xf32> to vector<8x8xf32>
    %29 = vector.extract_strided_slice %20 {offsets = [0, 0], sizes = [8, 8], strides = [1, 1]} : vector<8x32xf32> to vector<8x8xf32>
    %30 = vector.extract_strided_slice %21 {offsets = [0, 0], sizes = [8, 8], strides = [1, 1]} : vector<8x32xf32> to vector<8x8xf32>
    %cst_26 = arith.constant dense<0.000000e+00> : vector<8x8xf32>
    %31 = tpu.matmul %28, %29, %cst_26 {dimension_numbers = #tpu.dot_dimension_numbers<[1], [1], [0], [0], [0, 0, 1, 0], [], []>} : vector<8x8xf32>, vector<8x8xf32>, vector<8x8xf32> -> vector<8x8xf32>
    %cst_27 = arith.constant 0.353553385 : f32
    %32 = vector.broadcast %cst_27 : f32 to vector<8x8xf32>
    %33 = arith.mulf %31, %32 : vector<8x8xf32>
    %34 = arith.addf %33, %26 : vector<8x8xf32>
    %cst_28 = arith.constant dense<0xFF800000> : vector<8xf32>
    %35 = vector.multi_reduction <maximumf>, %34, %cst_28 [1] : vector<8x8xf32> to vector<8xf32>
    %36 = vector.shape_cast %35 : vector<8xf32> to vector<8x1xf32>
    %37 = vector.broadcast %36 : vector<8x1xf32> to vector<8x8xf32>
    %38 = arith.subf %34, %37 : vector<8x8xf32>
    %39 = math.exp %38 : vector<8x8xf32>
    %cst_29 = arith.constant dense<0.000000e+00> : vector<8xf32>
    %40 = vector.multi_reduction <add>, %39, %cst_29 [1] : vector<8x8xf32> to vector<8xf32>
    %41 = vector.shape_cast %40 : vector<8xf32> to vector<8x1xf32>
    %42 = tpu.reciprocal %41 {approx = true} : vector<8x1xf32> -> vector<8x1xf32>
    %43 = vector.broadcast %42 : vector<8x1xf32> to vector<8x8xf32>
    %44 = arith.mulf %39, %43 : vector<8x8xf32>
    %45 = arith.truncf %44 : vector<8x8xf32> to vector<8x8xbf16>
    %46 = arith.truncf %30 : vector<8x8xf32> to vector<8x8xbf16>
    %cst_30 = arith.constant dense<0.000000e+00> : vector<8x8xf32>
    %47 = tpu.matmul %45, %46, %cst_30 {dimension_numbers = #tpu.dot_dimension_numbers<[1], [0], [0], [1], [0, 0, 1, 1], [], []>} : vector<8x8xbf16>, vector<8x8xbf16>, vector<8x8xf32> -> vector<8x8xf32>
    %48 = arith.truncf %47 : vector<8x8xf32> to vector<8x8xbf16>
    %c0_31 = arith.constant 0 : index
    %c0_32 = arith.constant 0 : index
    %c0_33 = arith.constant 0 : index
    %49 = vector.load %arg8[%c0_31, %c0_32, %c0_33] : memref<1x32x32xbf16, #tpu.memory_space<vmem>>, vector<1x8x32xbf16>
    %50 = vector.shape_cast %49 : vector<1x8x32xbf16> to vector<8x32xbf16>
    %cst_34 = arith.constant dense<0.000000e+00> : vector<8x32xf32>
    %51 = tpu.matmul %48, %50, %cst_34 {dimension_numbers = #tpu.dot_dimension_numbers<[1], [0], [0], [1], [0, 0, 1, 1], [], []>} : vector<8x8xbf16>, vector<8x32xbf16>, vector<8x32xf32> -> vector<8x32xf32>
    %52 = arith.addf %27, %51 : vector<8x32xf32>
    %53 = vector.extract_strided_slice %11 {offsets = [0, 8], sizes = [8, 8], strides = [1, 1]} : vector<8x32xf32> to vector<8x8xf32>
    %54 = vector.extract_strided_slice %20 {offsets = [0, 8], sizes = [8, 8], strides = [1, 1]} : vector<8x32xf32> to vector<8x8xf32>
    %55 = vector.extract_strided_slice %21 {offsets = [0, 8], sizes = [8, 8], strides = [1, 1]} : vector<8x32xf32> to vector<8x8xf32>
    %cst_35 = arith.constant dense<0.000000e+00> : vector<8x8xf32>
    %56 = tpu.matmul %53, %54, %cst_35 {dimension_numbers = #tpu.dot_dimension_numbers<[1], [1], [0], [0], [0, 0, 1, 0], [], []>} : vector<8x8xf32>, vector<8x8xf32>, vector<8x8xf32> -> vector<8x8xf32>
    %cst_36 = arith.constant 0.353553385 : f32
    %57 = vector.broadcast %cst_36 : f32 to vector<8x8xf32>
    %58 = arith.mulf %56, %57 : vector<8x8xf32>
    %59 = arith.addf %58, %26 : vector<8x8xf32>
    %cst_37 = arith.constant dense<0xFF800000> : vector<8xf32>
    %60 = vector.multi_reduction <maximumf>, %59, %cst_37 [1] : vector<8x8xf32> to vector<8xf32>
    %61 = vector.shape_cast %60 : vector<8xf32> to vector<8x1xf32>
    %62 = vector.broadcast %61 : vector<8x1xf32> to vector<8x8xf32>
    %63 = arith.subf %59, %62 : vector<8x8xf32>
    %64 = math.exp %63 : vector<8x8xf32>
    %cst_38 = arith.constant dense<0.000000e+00> : vector<8xf32>
    %65 = vector.multi_reduction <add>, %64, %cst_38 [1] : vector<8x8xf32> to vector<8xf32>
    %66 = vector.shape_cast %65 : vector<8xf32> to vector<8x1xf32>
    %67 = tpu.reciprocal %66 {approx = true} : vector<8x1xf32> -> vector<8x1xf32>
    %68 = vector.broadcast %67 : vector<8x1xf32> to vector<8x8xf32>
    %69 = arith.mulf %64, %68 : vector<8x8xf32>
    %70 = arith.truncf %69 : vector<8x8xf32> to vector<8x8xbf16>
    %71 = arith.truncf %55 : vector<8x8xf32> to vector<8x8xbf16>
    %cst_39 = arith.constant dense<0.000000e+00> : vector<8x8xf32>
    %72 = tpu.matmul %70, %71, %cst_39 {dimension_numbers = #tpu.dot_dimension_numbers<[1], [0], [0], [1], [0, 0, 1, 1], [], []>} : vector<8x8xbf16>, vector<8x8xbf16>, vector<8x8xf32> -> vector<8x8xf32>
    %73 = arith.truncf %72 : vector<8x8xf32> to vector<8x8xbf16>
    %c0_40 = arith.constant 0 : index
    %c8 = arith.constant 8 : index
    %c0_41 = arith.constant 0 : index
    %74 = vector.load %arg8[%c0_40, %c8, %c0_41] : memref<1x32x32xbf16, #tpu.memory_space<vmem>>, vector<1x8x32xbf16>
    %75 = vector.shape_cast %74 : vector<1x8x32xbf16> to vector<8x32xbf16>
    %cst_42 = arith.constant dense<0.000000e+00> : vector<8x32xf32>
    %76 = tpu.matmul %73, %75, %cst_42 {dimension_numbers = #tpu.dot_dimension_numbers<[1], [0], [0], [1], [0, 0, 1, 1], [], []>} : vector<8x8xbf16>, vector<8x32xbf16>, vector<8x32xf32> -> vector<8x32xf32>
    %77 = arith.addf %52, %76 : vector<8x32xf32>
    %78 = vector.extract_strided_slice %11 {offsets = [0, 16], sizes = [8, 8], strides = [1, 1]} : vector<8x32xf32> to vector<8x8xf32>
    %79 = vector.extract_strided_slice %20 {offsets = [0, 16], sizes = [8, 8], strides = [1, 1]} : vector<8x32xf32> to vector<8x8xf32>
    %80 = vector.extract_strided_slice %21 {offsets = [0, 16], sizes = [8, 8], strides = [1, 1]} : vector<8x32xf32> to vector<8x8xf32>
    %cst_43 = arith.constant dense<0.000000e+00> : vector<8x8xf32>
    %81 = tpu.matmul %78, %79, %cst_43 {dimension_numbers = #tpu.dot_dimension_numbers<[1], [1], [0], [0], [0, 0, 1, 0], [], []>} : vector<8x8xf32>, vector<8x8xf32>, vector<8x8xf32> -> vector<8x8xf32>
    %cst_44 = arith.constant 0.353553385 : f32
    %82 = vector.broadcast %cst_44 : f32 to vector<8x8xf32>
    %83 = arith.mulf %81, %82 : vector<8x8xf32>
    %84 = arith.addf %83, %26 : vector<8x8xf32>
    %cst_45 = arith.constant dense<0xFF800000> : vector<8xf32>
    %85 = vector.multi_reduction <maximumf>, %84, %cst_45 [1] : vector<8x8xf32> to vector<8xf32>
    %86 = vector.shape_cast %85 : vector<8xf32> to vector<8x1xf32>
    %87 = vector.broadcast %86 : vector<8x1xf32> to vector<8x8xf32>
    %88 = arith.subf %84, %87 : vector<8x8xf32>
    %89 = math.exp %88 : vector<8x8xf32>
    %cst_46 = arith.constant dense<0.000000e+00> : vector<8xf32>
    %90 = vector.multi_reduction <add>, %89, %cst_46 [1] : vector<8x8xf32> to vector<8xf32>
    %91 = vector.shape_cast %90 : vector<8xf32> to vector<8x1xf32>
    %92 = tpu.reciprocal %91 {approx = true} : vector<8x1xf32> -> vector<8x1xf32>
    %93 = vector.broadcast %92 : vector<8x1xf32> to vector<8x8xf32>
    %94 = arith.mulf %89, %93 : vector<8x8xf32>
    %95 = arith.truncf %94 : vector<8x8xf32> to vector<8x8xbf16>
    %96 = arith.truncf %80 : vector<8x8xf32> to vector<8x8xbf16>
    %cst_47 = arith.constant dense<0.000000e+00> : vector<8x8xf32>
    %97 = tpu.matmul %95, %96, %cst_47 {dimension_numbers = #tpu.dot_dimension_numbers<[1], [0], [0], [1], [0, 0, 1, 1], [], []>} : vector<8x8xbf16>, vector<8x8xbf16>, vector<8x8xf32> -> vector<8x8xf32>
    %98 = arith.truncf %97 : vector<8x8xf32> to vector<8x8xbf16>
    %c0_48 = arith.constant 0 : index
    %c16 = arith.constant 16 : index
    %c0_49 = arith.constant 0 : index
    %99 = vector.load %arg8[%c0_48, %c16, %c0_49] : memref<1x32x32xbf16, #tpu.memory_space<vmem>>, vector<1x8x32xbf16>
    %100 = vector.shape_cast %99 : vector<1x8x32xbf16> to vector<8x32xbf16>
    %cst_50 = arith.constant dense<0.000000e+00> : vector<8x32xf32>
    %101 = tpu.matmul %98, %100, %cst_50 {dimension_numbers = #tpu.dot_dimension_numbers<[1], [0], [0], [1], [0, 0, 1, 1], [], []>} : vector<8x8xbf16>, vector<8x32xbf16>, vector<8x32xf32> -> vector<8x32xf32>
    %102 = arith.addf %77, %101 : vector<8x32xf32>
    %103 = vector.extract_strided_slice %11 {offsets = [0, 24], sizes = [8, 8], strides = [1, 1]} : vector<8x32xf32> to vector<8x8xf32>
    %104 = vector.extract_strided_slice %20 {offsets = [0, 24], sizes = [8, 8], strides = [1, 1]} : vector<8x32xf32> to vector<8x8xf32>
    %105 = vector.extract_strided_slice %21 {offsets = [0, 24], sizes = [8, 8], strides = [1, 1]} : vector<8x32xf32> to vector<8x8xf32>
    %cst_51 = arith.constant dense<0.000000e+00> : vector<8x8xf32>
    %106 = tpu.matmul %103, %104, %cst_51 {dimension_numbers = #tpu.dot_dimension_numbers<[1], [1], [0], [0], [0, 0, 1, 0], [], []>} : vector<8x8xf32>, vector<8x8xf32>, vector<8x8xf32> -> vector<8x8xf32>
    %cst_52 = arith.constant 0.353553385 : f32
    %107 = vector.broadcast %cst_52 : f32 to vector<8x8xf32>
    %108 = arith.mulf %106, %107 : vector<8x8xf32>
    %109 = arith.addf %108, %26 : vector<8x8xf32>
    %cst_53 = arith.constant dense<0xFF800000> : vector<8xf32>
    %110 = vector.multi_reduction <maximumf>, %109, %cst_53 [1] : vector<8x8xf32> to vector<8xf32>
    %111 = vector.shape_cast %110 : vector<8xf32> to vector<8x1xf32>
    %112 = vector.broadcast %111 : vector<8x1xf32> to vector<8x8xf32>
    %113 = arith.subf %109, %112 : vector<8x8xf32>
    %114 = math.exp %113 : vector<8x8xf32>
    %cst_54 = arith.constant dense<0.000000e+00> : vector<8xf32>
    %115 = vector.multi_reduction <add>, %114, %cst_54 [1] : vector<8x8xf32> to vector<8xf32>
    %116 = vector.shape_cast %115 : vector<8xf32> to vector<8x1xf32>
    %117 = tpu.reciprocal %116 {approx = true} : vector<8x1xf32> -> vector<8x1xf32>
    %118 = vector.broadcast %117 : vector<8x1xf32> to vector<8x8xf32>
    %119 = arith.mulf %114, %118 : vector<8x8xf32>
    %120 = arith.truncf %119 : vector<8x8xf32> to vector<8x8xbf16>
    %121 = arith.truncf %105 : vector<8x8xf32> to vector<8x8xbf16>
    %cst_55 = arith.constant dense<0.000000e+00> : vector<8x8xf32>
    %122 = tpu.matmul %120, %121, %cst_55 {dimension_numbers = #tpu.dot_dimension_numbers<[1], [0], [0], [1], [0, 0, 1, 1], [], []>} : vector<8x8xbf16>, vector<8x8xbf16>, vector<8x8xf32> -> vector<8x8xf32>
    %123 = arith.truncf %122 : vector<8x8xf32> to vector<8x8xbf16>
    %c0_56 = arith.constant 0 : index
    %c24 = arith.constant 24 : index
    %c0_57 = arith.constant 0 : index
    %124 = vector.load %arg8[%c0_56, %c24, %c0_57] : memref<1x32x32xbf16, #tpu.memory_space<vmem>>, vector<1x8x32xbf16>
    %125 = vector.shape_cast %124 : vector<1x8x32xbf16> to vector<8x32xbf16>
    %cst_58 = arith.constant dense<0.000000e+00> : vector<8x32xf32>
    %126 = tpu.matmul %123, %125, %cst_58 {dimension_numbers = #tpu.dot_dimension_numbers<[1], [0], [0], [1], [0, 0, 1, 1], [], []>} : vector<8x8xbf16>, vector<8x32xbf16>, vector<8x32xf32> -> vector<8x32xf32>
    %127 = arith.addf %102, %126 : vector<8x32xf32>
    %128 = arith.addf %1, %127 : vector<8x32xf32>
    %cst_59 = arith.constant dense<0.000000e+00> : vector<8xf32>
    %129 = vector.multi_reduction <add>, %128, %cst_59 [1] : vector<8x32xf32> to vector<8xf32>
    %130 = vector.shape_cast %129 : vector<8xf32> to vector<8x1xf32>
    %cst_60 = arith.constant 3.200000e+01 : f32
    %131 = vector.broadcast %cst_60 : f32 to vector<8x1xf32>
    %132 = arith.divf %130, %131 : vector<8x1xf32>
    %133 = vector.broadcast %132 : vector<8x1xf32> to vector<8x32xf32>
    %134 = arith.subf %128, %133 : vector<8x32xf32>
    %135 = arith.mulf %134, %134 : vector<8x32xf32>
    %cst_61 = arith.constant dense<0.000000e+00> : vector<8xf32>
    %136 = vector.multi_reduction <add>, %135, %cst_61 [1] : vector<8x32xf32> to vector<8xf32>
    %137 = vector.shape_cast %136 : vector<8xf32> to vector<8x1xf32>
    %cst_62 = arith.constant 3.200000e+01 : f32
    %138 = vector.broadcast %cst_62 : f32 to vector<8x1xf32>
    %139 = arith.divf %137, %138 : vector<8x1xf32>
    %140 = vector.broadcast %132 : vector<8x1xf32> to vector<8x32xf32>
    %141 = arith.subf %128, %140 : vector<8x32xf32>
    %cst_63 = arith.constant 9.99999974E-6 : f32
    %142 = vector.broadcast %cst_63 : f32 to vector<8x1xf32>
    %143 = arith.addf %139, %142 : vector<8x1xf32>
    %144 = math.rsqrt %143 : vector<8x1xf32>
    %145 = vector.broadcast %144 : vector<8x1xf32> to vector<8x32xf32>
    %146 = arith.mulf %141, %145 : vector<8x32xf32>
    %c0_64 = arith.constant 0 : index
    %c0_65 = arith.constant 0 : index
    %c0_66 = arith.constant 0 : index
    %147 = vector.load %arg9[%c0_64, %c0_65, %c0_66] : memref<1x1x32xf32, #tpu.memory_space<vmem>>, vector<1x1x32xf32>
    %148 = vector.shape_cast %147 : vector<1x1x32xf32> to vector<1x32xf32>
    %149 = vector.broadcast %148 : vector<1x32xf32> to vector<8x32xf32>
    %150 = arith.mulf %146, %149 : vector<8x32xf32>
    %c0_67 = arith.constant 0 : index
    %c0_68 = arith.constant 0 : index
    %c0_69 = arith.constant 0 : index
    %151 = vector.load %arg10[%c0_67, %c0_68, %c0_69] : memref<1x1x32xf32, #tpu.memory_space<vmem>>, vector<1x1x32xf32>
    %152 = vector.shape_cast %151 : vector<1x1x32xf32> to vector<1x32xf32>
    %153 = vector.broadcast %152 : vector<1x32xf32> to vector<8x32xf32>
    %154 = arith.addf %150, %153 : vector<8x32xf32>
    %c0_70 = arith.constant 0 : index
    %c0_71 = arith.constant 0 : index
    %c0_72 = arith.constant 0 : index
    %c0_73 = arith.constant 0 : index
    %155 = vector.load %arg13[%c0_70, %c0_71, %c0_72, %c0_73] : memref<1x1x8x32xf32, #tpu.memory_space<vmem>>, vector<1x1x8x32xf32>
    %156 = vector.shape_cast %155 : vector<1x1x8x32xf32> to vector<8x32xf32>
    %157 = vector.shape_cast %154 : vector<8x32xf32> to vector<1x1x8x32xf32>
    tpu.vector_store %arg13[%c0_70, %c0_71, %c0_72, %c0_73], %157 {strides = array<i32>} : memref<1x1x8x32xf32, #tpu.memory_space<vmem>>, vector<1x1x8x32xf32>,
    return
  }
  func.func @transform_0(%arg0: i32, %arg1: i32) -> (i32, i32, i32, i32) {
    %c0_i32 = arith.constant 0 : i32
    %c0_i32_0 = arith.constant 0 : i32
    %c0_i32_1 = arith.constant 0 : i32
    return %arg0, %arg1, %c0_i32, %c0_i32_0 : i32, i32, i32, i32
  }
  func.func @transform_1(%arg0: i32, %arg1: i32) -> (i32, i32, i32, i32) {
    %c0_i32 = arith.constant 0 : i32
    %c0_i32_0 = arith.constant 0 : i32
    %c0_i32_1 = arith.constant 0 : i32
    return %arg0, %arg1, %c0_i32, %c0_i32_0 : i32, i32, i32, i32
  }
  func.func @transform_2(%arg0: i32, %arg1: i32) -> (i32, i32, i32) {
    %c0_i32 = arith.constant 0 : i32
    %c0_i32_0 = arith.constant 0 : i32
    %c0_i32_1 = arith.constant 0 : i32
    return %arg0, %c0_i32, %c0_i32_0 : i32, i32, i32
  }
  func.func @transform_3(%arg0: i32, %arg1: i32) -> (i32, i32, i32) {
    %c0_i32 = arith.constant 0 : i32
    %c0_i32_0 = arith.constant 0 : i32
    %c0_i32_1 = arith.constant 0 : i32
    return %arg0, %c0_i32, %c0_i32_0 : i32, i32, i32
  }
  func.func @transform_4(%arg0: i32, %arg1: i32) -> (i32, i32, i32) {
    %c0_i32 = arith.constant 0 : i32
    %c0_i32_0 = arith.constant 0 : i32
    %c0_i32_1 = arith.constant 0 : i32
    return %arg0, %c0_i32, %c0_i32_0 : i32, i32, i32
  }
  func.func @transform_5(%arg0: i32, %arg1: i32) -> (i32, i32, i32) {
    %c0_i32 = arith.constant 0 : i32
    %c0_i32_0 = arith.constant 0 : i32
    %c0_i32_1 = arith.constant 0 : i32
    return %arg0, %c0_i32, %c0_i32_0 : i32, i32, i32
  }
  func.func @transform_6(%arg0: i32, %arg1: i32) -> (i32, i32, i32) {
    %c0_i32 = arith.constant 0 : i32
    %c0_i32_0 = arith.constant 0 : i32
    %c0_i32_1 = arith.constant 0 : i32
    return %arg0, %c0_i32, %c0_i32_0 : i32, i32, i32
  }
  func.func @transform_7(%arg0: i32, %arg1: i32) -> (i32, i32, i32) {
    %c0_i32 = arith.constant 0 : i32
    %c0_i32_0 = arith.constant 0 : i32
    %c0_i32_1 = arith.constant 0 : i32
    return %arg0, %c0_i32, %c0_i32_0 : i32, i32, i32
  }
  func.func @transform_8(%arg0: i32, %arg1: i32) -> (i32, i32, i32) {
    %c0_i32 = arith.constant 0 : i32
    %c0_i32_0 = arith.constant 0 : i32
    %c0_i32_1 = arith.constant 0 : i32
    return %arg0, %c0_i32, %c0_i32_0 : i32, i32, i32
  }
  func.func @transform_9(%arg0: i32, %arg1: i32) -> (i32, i32) {
    %c0_i32 = arith.constant 0 : i32
    %c0_i32_0 = arith.constant 0 : i32
    %c0_i32_1 = arith.constant 0 : i32
    return %c0_i32, %c0_i32_0 : i32, i32
  }
  func.func @transform_10(%arg0: i32, %arg1: i32) -> (i32, i32, i32) {
    %c0_i32 = arith.constant 0 : i32
    %c0_i32_0 = arith.constant 0 : i32
    %c0_i32_1 = arith.constant 0 : i32
    return %arg1, %c0_i32, %c0_i32_0 : i32, i32, i32
  }
  func.func @transform_11(%arg0: i32, %arg1: i32) -> (i32, i32, i32, i32) {
    %c0_i32 = arith.constant 0 : i32
    %c0_i32_0 = arith.constant 0 : i32
    %c0_i32_1 = arith.constant 0 : i32
    return %arg0, %arg1, %c0_i32, %c0_i32_0 : i32, i32, i32, i32
  }
}

module attributes {stable_mosaic.version = 11 : i64} {
  func.func @_mha_resid_ln_kernel(%arg0: i32, %arg1: i32, %arg2: memref<1x1x8x32xf32, #tpu.memory_space<vmem>>, %arg3: memref<1x1x8x32xf32, #tpu.memory_space<vmem>>, %arg4: memref<1x32x32xbf16, #tpu.memory_space<vmem>>, %arg5: memref<1x1x32xf32, #tpu.memory_space<vmem>>, %arg6: memref<1x32x64xbf16, #tpu.memory_space<vmem>>, %arg7: memref<1x1x64xf32, #tpu.memory_space<vmem>>, %arg8: memref<1x32x32xbf16, #tpu.memory_space<vmem>>, %arg9: memref<1x1x32xf32, #tpu.memory_space<vmem>>, %arg10: memref<1x1x32xf32, #tpu.memory_space<vmem>>, %arg11: memref<8x8xf32, #tpu.memory_space<vmem>>, %arg12: memref<1x1x8xf32, #tpu.memory_space<vmem>>, %arg13: memref<1x1x8x32xf32, #tpu.memory_space<vmem>>) attributes {dimension_semantics = [#tpu.dimension_semantics<parallel>, #tpu.dimension_semantics<parallel>], iteration_bounds = array<i64: 1, 2>, scalar_prefetch = 0 : i64, scratch_operands = 0 : i64, tpu.core_type = #tpu.core_type<tc>, window_params = [{transform_indices = @transform_0, window_bounds = array<i64: 1, 1, 8, 32>}, {transform_indices = @transform_1, window_bounds = array<i64: 1, 1, 8, 32>}, {pipeline_mode = #tpu.pipeline_mode<synchronous>, transform_indices = @transform_2, window_bounds = array<i64: 1, 32, 32>}, {pipeline_mode = #tpu.pipeline_mode<synchronous>, transform_indices = @transform_3, window_bounds = array<i64: 1, 1, 32>}, {pipeline_mode = #tpu.pipeline_mode<synchronous>, transform_indices = @transform_4, window_bounds = array<i64: 1, 32, 64>}, {pipeline_mode = #tpu.pipeline_mode<synchronous>, transform_indices = @transform_5, window_bounds = array<i64: 1, 1, 64>}, {pipeline_mode = #tpu.pipeline_mode<synchronous>, transform_indices = @transform_6, window_bounds = array<i64: 1, 32, 32>}, {pipeline_mode = #tpu.pipeline_mode<synchronous>, transform_indices = @transform_7, window_bounds = array<i64: 1, 1, 32>}, {pipeline_mode = #tpu.pipeline_mode<synchronous>, transform_indices = @transform_8, window_bounds = array<i64: 1, 1, 32>}, {pipeline_mode = #tpu.pipeline_mode<synchronous>, transform_indices = @transform_9, window_bounds = array<i64: 8, 8>}, {transform_indices = @transform_10, window_bounds = array<i64: 1, 1, 8>}, {transform_indices = @transform_11, window_bounds = array<i64: 1, 1, 8, 32>}]} {
    %c0 = arith.constant 0 : index
    %c0_0 = arith.constant 0 : index
    %c0_1 = arith.constant 0 : index
    %c0_2 = arith.constant 0 : index
    %0 = vector.load %arg2[%c0, %c0_0, %c0_1, %c0_2] : memref<1x1x8x32xf32, #tpu.memory_space<vmem>>, vector<1x1x8x32xf32>
    %1 = vector.shape_cast %0 : vector<1x1x8x32xf32> to vector<8x32xf32>
    %c0_3 = arith.constant 0 : index
    %c0_4 = arith.constant 0 : index
    %c0_5 = arith.constant 0 : index
    %c0_6 = arith.constant 0 : index
    %2 = vector.load %arg3[%c0_3, %c0_4, %c0_5, %c0_6] : memref<1x1x8x32xf32, #tpu.memory_space<vmem>>, vector<1x1x8x32xf32>
    %3 = vector.shape_cast %2 : vector<1x1x8x32xf32> to vector<8x32xf32>
    %4 = arith.truncf %1 : vector<8x32xf32> to vector<8x32xbf16>
    %c0_7 = arith.constant 0 : index
    %c0_8 = arith.constant 0 : index
    %c0_9 = arith.constant 0 : index
    %5 = vector.load %arg4[%c0_7, %c0_8, %c0_9] : memref<1x32x32xbf16, #tpu.memory_space<vmem>>, vector<1x32x32xbf16>
    %6 = vector.shape_cast %5 : vector<1x32x32xbf16> to vector<32x32xbf16>
    %cst = arith.constant dense<0.000000e+00> : vector<8x32xf32>
    %7 = tpu.matmul %4, %6, %cst {dimension_numbers = #tpu.dot_dimension_numbers<[1], [0], [0], [1], [0, 0, 1, 1], [], []>} : vector<8x32xbf16>, vector<32x32xbf16>, vector<8x32xf32> -> vector<8x32xf32>
    %c0_10 = arith.constant 0 : index
    %c0_11 = arith.constant 0 : index
    %c0_12 = arith.constant 0 : index
    %8 = vector.load %arg5[%c0_10, %c0_11, %c0_12] : memref<1x1x32xf32, #tpu.memory_space<vmem>>, vector<1x1x32xf32>
    %9 = vector.shape_cast %8 : vector<1x1x32xf32> to vector<1x32xf32>
    %10 = vector.broadcast %9 : vector<1x32xf32> to vector<8x32xf32>
    %11 = arith.addf %7, %10 : vector<8x32xf32>
    %12 = arith.truncf %3 : vector<8x32xf32> to vector<8x32xbf16>
    %c0_13 = arith.constant 0 : index
    %c0_14 = arith.constant 0 : index
    %c0_15 = arith.constant 0 : index
    %13 = vector.load %arg6[%c0_13, %c0_14, %c0_15] : memref<1x32x64xbf16, #tpu.memory_space<vmem>>, vector<1x32x64xbf16>
    %14 = vector.shape_cast %13 : vector<1x32x64xbf16> to vector<32x64xbf16>
    %cst_16 = arith.constant dense<0.000000e+00> : vector<8x64xf32>
    %15 = tpu.matmul %12, %14, %cst_16 {dimension_numbers = #tpu.dot_dimension_numbers<[1], [0], [0], [1], [0, 0, 1, 1], [], []>} : vector<8x32xbf16>, vector<32x64xbf16>, vector<8x64xf32> -> vector<8x64xf32>
    %c0_17 = arith.constant 0 : index
    %c0_18 = arith.constant 0 : index
    %c0_19 = arith.constant 0 : index
    %16 = vector.load %arg7[%c0_17, %c0_18, %c0_19] : memref<1x1x64xf32, #tpu.memory_space<vmem>>, vector<1x1x64xf32>
    %17 = vector.shape_cast %16 : vector<1x1x64xf32> to vector<1x64xf32>
    %18 = vector.broadcast %17 : vector<1x64xf32> to vector<8x64xf32>
    %19 = arith.addf %15, %18 : vector<8x64xf32>
    %20 = vector.extract_strided_slice %19 {offsets = [0, 0], sizes = [8, 32], strides = [1, 1]} : vector<8x64xf32> to vector<8x32xf32>
    %21 = vector.extract_strided_slice %19 {offsets = [0, 32], sizes = [8, 32], strides = [1, 1]} : vector<8x64xf32> to vector<8x32xf32>
    %c0_20 = arith.constant 0 : index
    %c0_21 = arith.constant 0 : index
    %22 = vector.load %arg11[%c0_20, %c0_21] : memref<8x8xf32, #tpu.memory_space<vmem>>, vector<8x8xf32>
    %c0_22 = arith.constant 0 : index
    %c0_23 = arith.constant 0 : index
    %c0_24 = arith.constant 0 : index
    %23 = vector.load %arg12[%c0_22, %c0_23, %c0_24] : memref<1x1x8xf32, #tpu.memory_space<vmem>>, vector<1x1x8xf32>
    %24 = vector.shape_cast %23 : vector<1x1x8xf32> to vector<1x8xf32>
    %25 = vector.broadcast %24 : vector<1x8xf32> to vector<8x8xf32>
    %26 = arith.addf %22, %25 : vector<8x8xf32>
    %cst_25 = arith.constant 0.000000e+00 : f32
    %27 = vector.broadcast %cst_25 : f32 to vector<8x32xf32>
    %28 = vector.extract_strided_slice %11 {offsets = [0, 0], sizes = [8, 8], strides = [1, 1]} : vector<8x32xf32> to vector<8x8xf32>
    %29 = vector.extract_strided_slice %20 {offsets = [0, 0], sizes = [8, 8], strides = [1, 1]} : vector<8x32xf32> to vector<8x8xf32>
    %30 = vector.extract_strided_slice %21 {offsets = [0, 0], sizes = [8, 8], strides = [1, 1]} : vector<8x32xf32> to vector<8x8xf32>
    %cst_26 = arith.constant dense<0.000000e+00> : vector<8x8xf32>
    %31 = tpu.matmul %28, %29, %cst_26 {dimension_numbers = #tpu.dot_dimension_numbers<[1], [1], [0], [0], [0, 0, 1, 0], [], []>} : vector<8x8xf32>, vector<8x8xf32>, vector<8x8xf32> -> vector<8x8xf32>
    %cst_27 = arith.constant 0.353553385 : f32
    %32 = vector.broadcast %cst_27 : f32 to vector<8x8xf32>
    %33 = arith.mulf %31, %32 : vector<8x8xf32>
    %34 = arith.addf %33, %26 : vector<8x8xf32>
    %cst_28 = arith.constant dense<0xFF800000> : vector<8xf32>
    %35 = vector.multi_reduction <maximumf>, %34, %cst_28 [1] : vector<8x8xf32> to vector<8xf32>
    %36 = vector.shape_cast %35 : vector<8xf32> to vector<8x1xf32>
    %37 = vector.broadcast %36 : vector<8x1xf32> to vector<8x8xf32>
    %38 = arith.subf %34, %37 : vector<8x8xf32>
    %39 = math.exp %38 : vector<8x8xf32>
    %cst_29 = arith.constant dense<0.000000e+00> : vector<8xf32>
    %40 = vector.multi_reduction <add>, %39, %cst_29 [1] : vector<8x8xf32> to vector<8xf32>
    %41 = vector.shape_cast %40 : vector<8xf32> to vector<8x1xf32>
    %42 = tpu.reciprocal %41 {approx = true} : vector<8x1xf32> -> vector<8x1xf32>
    %43 = vector.broadcast %42 : vector<8x1xf32> to vector<8x8xf32>
    %44 = arith.mulf %39, %43 : vector<8x8xf32>
    %45 = arith.truncf %44 : vector<8x8xf32> to vector<8x8xbf16>
    %46 = arith.truncf %30 : vector<8x8xf32> to vector<8x8xbf16>
    %cst_30 = arith.constant dense<0.000000e+00> : vector<8x8xf32>
    %47 = tpu.matmul %45, %46, %cst_30 {dimension_numbers = #tpu.dot_dimension_numbers<[1], [0], [0], [1], [0, 0, 1, 1], [], []>} : vector<8x8xbf16>, vector<8x8xbf16>, vector<8x8xf32> -> vector<8x8xf32>
    %48 = arith.truncf %47 : vector<8x8xf32> to vector<8x8xbf16>
    %c0_31 = arith.constant 0 : index
    %c0_32 = arith.constant 0 : index
    %c0_33 = arith.constant 0 : index
    %49 = vector.load %arg8[%c0_31, %c0_32, %c0_33] : memref<1x32x32xbf16, #tpu.memory_space<vmem>>, vector<1x8x32xbf16>
    %50 = vector.shape_cast %49 : vector<1x8x32xbf16> to vector<8x32xbf16>
    %cst_34 = arith.constant dense<0.000000e+00> : vector<8x32xf32>
    %51 = tpu.matmul %48, %50, %cst_34 {dimension_numbers = #tpu.dot_dimension_numbers<[1], [0], [0], [1], [0, 0, 1, 1], [], []>} : vector<8x8xbf16>, vector<8x32xbf16>, vector<8x32xf32> -> vector<8x32xf32>
    %52 = arith.addf %27, %51 : vector<8x32xf32>
    %53 = vector.extract_strided_slice %11 {offsets = [0, 8], sizes = [8, 8], strides = [1, 1]} : vector<8x32xf32> to vector<8x8xf32>
    %54 = vector.extract_strided_slice %20 {offsets = [0, 8], sizes = [8, 8], strides = [1, 1]} : vector<8x32xf32> to vector<8x8xf32>
    %55 = vector.extract_strided_slice %21 {offsets = [0, 8], sizes = [8, 8], strides = [1, 1]} : vector<8x32xf32> to vector<8x8xf32>
    %cst_35 = arith.constant dense<0.000000e+00> : vector<8x8xf32>
    %56 = tpu.matmul %53, %54, %cst_35 {dimension_numbers = #tpu.dot_dimension_numbers<[1], [1], [0], [0], [0, 0, 1, 0], [], []>} : vector<8x8xf32>, vector<8x8xf32>, vector<8x8xf32> -> vector<8x8xf32>
    %cst_36 = arith.constant 0.353553385 : f32
    %57 = vector.broadcast %cst_36 : f32 to vector<8x8xf32>
    %58 = arith.mulf %56, %57 : vector<8x8xf32>
    %59 = arith.addf %58, %26 : vector<8x8xf32>
    %cst_37 = arith.constant dense<0xFF800000> : vector<8xf32>
    %60 = vector.multi_reduction <maximumf>, %59, %cst_37 [1] : vector<8x8xf32> to vector<8xf32>
    %61 = vector.shape_cast %60 : vector<8xf32> to vector<8x1xf32>
    %62 = vector.broadcast %61 : vector<8x1xf32> to vector<8x8xf32>
    %63 = arith.subf %59, %62 : vector<8x8xf32>
    %64 = math.exp %63 : vector<8x8xf32>
    %cst_38 = arith.constant dense<0.000000e+00> : vector<8xf32>
    %65 = vector.multi_reduction <add>, %64, %cst_38 [1] : vector<8x8xf32> to vector<8xf32>
    %66 = vector.shape_cast %65 : vector<8xf32> to vector<8x1xf32>
    %67 = tpu.reciprocal %66 {approx = true} : vector<8x1xf32> -> vector<8x1xf32>
    %68 = vector.broadcast %67 : vector<8x1xf32> to vector<8x8xf32>
    %69 = arith.mulf %64, %68 : vector<8x8xf32>
    %70 = arith.truncf %69 : vector<8x8xf32> to vector<8x8xbf16>
    %71 = arith.truncf %55 : vector<8x8xf32> to vector<8x8xbf16>
    %cst_39 = arith.constant dense<0.000000e+00> : vector<8x8xf32>
    %72 = tpu.matmul %70, %71, %cst_39 {dimension_numbers = #tpu.dot_dimension_numbers<[1], [0], [0], [1], [0, 0, 1, 1], [], []>} : vector<8x8xbf16>, vector<8x8xbf16>, vector<8x8xf32> -> vector<8x8xf32>
    %73 = arith.truncf %72 : vector<8x8xf32> to vector<8x8xbf16>
    %c0_40 = arith.constant 0 : index
    %c8 = arith.constant 8 : index
    %c0_41 = arith.constant 0 : index
    %74 = vector.load %arg8[%c0_40, %c8, %c0_41] : memref<1x32x32xbf16, #tpu.memory_space<vmem>>, vector<1x8x32xbf16>
    %75 = vector.shape_cast %74 : vector<1x8x32xbf16> to vector<8x32xbf16>
    %cst_42 = arith.constant dense<0.000000e+00> : vector<8x32xf32>
    %76 = tpu.matmul %73, %75, %cst_42 {dimension_numbers = #tpu.dot_dimension_numbers<[1], [0], [0], [1], [0, 0, 1, 1], [], []>} : vector<8x8xbf16>, vector<8x32xbf16>, vector<8x32xf32> -> vector<8x32xf32>
    %77 = arith.addf %52, %76 : vector<8x32xf32>
    %78 = vector.extract_strided_slice %11 {offsets = [0, 16], sizes = [8, 8], strides = [1, 1]} : vector<8x32xf32> to vector<8x8xf32>
    %79 = vector.extract_strided_slice %20 {offsets = [0, 16], sizes = [8, 8], strides = [1, 1]} : vector<8x32xf32> to vector<8x8xf32>
    %80 = vector.extract_strided_slice %21 {offsets = [0, 16], sizes = [8, 8], strides = [1, 1]} : vector<8x32xf32> to vector<8x8xf32>
    %cst_43 = arith.constant dense<0.000000e+00> : vector<8x8xf32>
    %81 = tpu.matmul %78, %79, %cst_43 {dimension_numbers = #tpu.dot_dimension_numbers<[1], [1], [0], [0], [0, 0, 1, 0], [], []>} : vector<8x8xf32>, vector<8x8xf32>, vector<8x8xf32> -> vector<8x8xf32>
    %cst_44 = arith.constant 0.353553385 : f32
    %82 = vector.broadcast %cst_44 : f32 to vector<8x8xf32>
    %83 = arith.mulf %81, %82 : vector<8x8xf32>
    %84 = arith.addf %83, %26 : vector<8x8xf32>
    %cst_45 = arith.constant dense<0xFF800000> : vector<8xf32>
    %85 = vector.multi_reduction <maximumf>, %84, %cst_45 [1] : vector<8x8xf32> to vector<8xf32>
    %86 = vector.shape_cast %85 : vector<8xf32> to vector<8x1xf32>
    %87 = vector.broadcast %86 : vector<8x1xf32> to vector<8x8xf32>
    %88 = arith.subf %84, %87 : vector<8x8xf32>
    %89 = math.exp %88 : vector<8x8xf32>
    %cst_46 = arith.constant dense<0.000000e+00> : vector<8xf32>
    %90 = vector.multi_reduction <add>, %89, %cst_46 [1] : vector<8x8xf32> to vector<8xf32>
    %91 = vector.shape_cast %90 : vector<8xf32> to vector<8x1xf32>
    %92 = tpu.reciprocal %91 {approx = true} : vector<8x1xf32> -> vector<8x1xf32>
    %93 = vector.broadcast %92 : vector<8x1xf32> to vector<8x8xf32>
    %94 = arith.mulf %89, %93 : vector<8x8xf32>
    %95 = arith.truncf %94 : vector<8x8xf32> to vector<8x8xbf16>
    %96 = arith.truncf %80 : vector<8x8xf32> to vector<8x8xbf16>
    %cst_47 = arith.constant dense<0.000000e+00> : vector<8x8xf32>
    %97 = tpu.matmul %95, %96, %cst_47 {dimension_numbers = #tpu.dot_dimension_numbers<[1], [0], [0], [1], [0, 0, 1, 1], [], []>} : vector<8x8xbf16>, vector<8x8xbf16>, vector<8x8xf32> -> vector<8x8xf32>
    %98 = arith.truncf %97 : vector<8x8xf32> to vector<8x8xbf16>
    %c0_48 = arith.constant 0 : index
    %c16 = arith.constant 16 : index
    %c0_49 = arith.constant 0 : index
    %99 = vector.load %arg8[%c0_48, %c16, %c0_49] : memref<1x32x32xbf16, #tpu.memory_space<vmem>>, vector<1x8x32xbf16>
    %100 = vector.shape_cast %99 : vector<1x8x32xbf16> to vector<8x32xbf16>
    %cst_50 = arith.constant dense<0.000000e+00> : vector<8x32xf32>
    %101 = tpu.matmul %98, %100, %cst_50 {dimension_numbers = #tpu.dot_dimension_numbers<[1], [0], [0], [1], [0, 0, 1, 1], [], []>} : vector<8x8xbf16>, vector<8x32xbf16>, vector<8x32xf32> -> vector<8x32xf32>
    %102 = arith.addf %77, %101 : vector<8x32xf32>
    %103 = vector.extract_strided_slice %11 {offsets = [0, 24], sizes = [8, 8], strides = [1, 1]} : vector<8x32xf32> to vector<8x8xf32>
    %104 = vector.extract_strided_slice %20 {offsets = [0, 24], sizes = [8, 8], strides = [1, 1]} : vector<8x32xf32> to vector<8x8xf32>
    %105 = vector.extract_strided_slice %21 {offsets = [0, 24], sizes = [8, 8], strides = [1, 1]} : vector<8x32xf32> to vector<8x8xf32>
    %cst_51 = arith.constant dense<0.000000e+00> : vector<8x8xf32>
    %106 = tpu.matmul %103, %104, %cst_51 {dimension_numbers = #tpu.dot_dimension_numbers<[1], [1], [0], [0], [0, 0, 1, 0], [], []>} : vector<8x8xf32>, vector<8x8xf32>, vector<8x8xf32> -> vector<8x8xf32>
    %cst_52 = arith.constant 0.353553385 : f32
    %107 = vector.broadcast %cst_52 : f32 to vector<8x8xf32>
    %108 = arith.mulf %106, %107 : vector<8x8xf32>
    %109 = arith.addf %108, %26 : vector<8x8xf32>
    %cst_53 = arith.constant dense<0xFF800000> : vector<8xf32>
    %110 = vector.multi_reduction <maximumf>, %109, %cst_53 [1] : vector<8x8xf32> to vector<8xf32>
    %111 = vector.shape_cast %110 : vector<8xf32> to vector<8x1xf32>
    %112 = vector.broadcast %111 : vector<8x1xf32> to vector<8x8xf32>
    %113 = arith.subf %109, %112 : vector<8x8xf32>
    %114 = math.exp %113 : vector<8x8xf32>
    %cst_54 = arith.constant dense<0.000000e+00> : vector<8xf32>
    %115 = vector.multi_reduction <add>, %114, %cst_54 [1] : vector<8x8xf32> to vector<8xf32>
    %116 = vector.shape_cast %115 : vector<8xf32> to vector<8x1xf32>
    %117 = tpu.reciprocal %116 {approx = true} : vector<8x1xf32> -> vector<8x1xf32>
    %118 = vector.broadcast %117 : vector<8x1xf32> to vector<8x8xf32>
    %119 = arith.mulf %114, %118 : vector<8x8xf32>
    %120 = arith.truncf %119 : vector<8x8xf32> to vector<8x8xbf16>
    %121 = arith.truncf %105 : vector<8x8xf32> to vector<8x8xbf16>
    %cst_55 = arith.constant dense<0.000000e+00> : vector<8x8xf32>
    %122 = tpu.matmul %120, %121, %cst_55 {dimension_numbers = #tpu.dot_dimension_numbers<[1], [0], [0], [1], [0, 0, 1, 1], [], []>} : vector<8x8xbf16>, vector<8x8xbf16>, vector<8x8xf32> -> vector<8x8xf32>
    %123 = arith.truncf %122 : vector<8x8xf32> to vector<8x8xbf16>
    %c0_56 = arith.constant 0 : index
    %c24 = arith.constant 24 : index
    %c0_57 = arith.constant 0 : index
    %124 = vector.load %arg8[%c0_56, %c24, %c0_57] : memref<1x32x32xbf16, #tpu.memory_space<vmem>>, vector<1x8x32xbf16>
    %125 = vector.shape_cast %124 : vector<1x8x32xbf16> to vector<8x32xbf16>
    %cst_58 = arith.constant dense<0.000000e+00> : vector<8x32xf32>
    %126 = tpu.matmul %123, %125, %cst_58 {dimension_numbers = #tpu.dot_dimension_numbers<[1], [0], [0], [1], [0, 0, 1, 1], [], []>} : vector<8x8xbf16>, vector<8x32xbf16>, vector<8x32xf32> -> vector<8x32xf32>
    %127 = arith.addf %102, %126 : vector<8x32xf32>
    %128 = arith.addf %1, %127 : vector<8x32xf32>
    %cst_59 = arith.constant dense<0.000000e+00> : vector<8xf32>
    %129 = vector.multi_reduction <add>, %128, %cst_59 [1] : vector<8x32xf32> to vector<8xf32>
    %130 = vector.shape_cast %129 : vector<8xf32> to vector<8x1xf32>
    %cst_60 = arith.constant 3.200000e+01 : f32
    %131 = vector.broadcast %cst_60 : f32 to vector<8x1xf32>
    %132 = arith.divf %130, %131 : vector<8x1xf32>
    %133 = vector.broadcast %132 : vector<8x1xf32> to vector<8x32xf32>
    %134 = arith.subf %128, %133 : vector<8x32xf32>
    %135 = arith.mulf %134, %134 : vector<8x32xf32>
    %cst_61 = arith.constant dense<0.000000e+00> : vector<8xf32>
    %136 = vector.multi_reduction <add>, %135, %cst_61 [1] : vector<8x32xf32> to vector<8xf32>
    %137 = vector.shape_cast %136 : vector<8xf32> to vector<8x1xf32>
    %cst_62 = arith.constant 3.200000e+01 : f32
    %138 = vector.broadcast %cst_62 : f32 to vector<8x1xf32>
    %139 = arith.divf %137, %138 : vector<8x1xf32>
    %140 = vector.broadcast %132 : vector<8x1xf32> to vector<8x32xf32>
    %141 = arith.subf %128, %140 : vector<8x32xf32>
    %cst_63 = arith.constant 9.99999974E-6 : f32
    %142 = vector.broadcast %cst_63 : f32 to vector<8x1xf32>
    %143 = arith.addf %139, %142 : vector<8x1xf32>
    %144 = math.rsqrt %143 : vector<8x1xf32>
    %145 = vector.broadcast %144 : vector<8x1xf32> to vector<8x32xf32>
    %146 = arith.mulf %141, %145 : vector<8x32xf32>
    %c0_64 = arith.constant 0 : index
    %c0_65 = arith.constant 0 : index
    %c0_66 = arith.constant 0 : index
    %147 = vector.load %arg9[%c0_64, %c0_65, %c0_66] : memref<1x1x32xf32, #tpu.memory_space<vmem>>, vector<1x1x32xf32>
    %148 = vector.shape_cast %147 : vector<1x1x32xf32> to vector<1x32xf32>
    %149 = vector.broadcast %148 : vector<1x32xf32> to vector<8x32xf32>
    %150 = arith.mulf %146, %149 : vector<8x32xf32>
    %c0_67 = arith.constant 0 : index
    %c0_68 = arith.constant 0 : index
    %c0_69 = arith.constant 0 : index
    %151 = vector.load %arg10[%c0_67, %c0_68, %c0_69] : memref<1x1x32xf32, #tpu.memory_space<vmem>>, vector<1x1x32xf32>
    %152 = vector.shape_cast %151 : vector<1x1x32xf32> to vector<1x32xf32>
    %153 = vector.broadcast %152 : vector<1x32xf32> to vector<8x32xf32>
    %154 = arith.addf %150, %153 : vector<8x32xf32>
    %c0_70 = arith.constant 0 : index
    %c0_71 = arith.constant 0 : index
    %c0_72 = arith.constant 0 : index
    %c0_73 = arith.constant 0 : index
    %155 = vector.load %arg13[%c0_70, %c0_71, %c0_72, %c0_73] : memref<1x1x8x32xf32, #tpu.memory_space<vmem>>, vector<1x1x8x32xf32>
    %156 = vector.shape_cast %155 : vector<1x1x8x32xf32> to vector<8x32xf32>
    %157 = vector.shape_cast %154 : vector<8x32xf32> to vector<1x1x8x32xf32>
    tpu.vector_store %arg13[%c0_70, %c0_71, %c0_72, %c0_73], %157 {strides = array<i32>} : memref<1x1x8x32xf32, #tpu.memory_space<vmem>>, vector<1x1x8x32xf32>,
    return
  }
  func.func @transform_0(%arg0: i32, %arg1: i32) -> (i32, i32, i32, i32) {
    %c0_i32 = arith.constant 0 : i32
    %c0_i32_0 = arith.constant 0 : i32
    %c0_i32_1 = arith.constant 0 : i32
    return %arg0, %arg1, %c0_i32, %c0_i32_0 : i32, i32, i32, i32
  }
  func.func @transform_1(%arg0: i32, %arg1: i32) -> (i32, i32, i32, i32) {
    %c0_i32 = arith.constant 0 : i32
    %c0_i32_0 = arith.constant 0 : i32
    %c0_i32_1 = arith.constant 0 : i32
    return %arg0, %arg1, %c0_i32, %c0_i32_0 : i32, i32, i32, i32
  }
  func.func @transform_2(%arg0: i32, %arg1: i32) -> (i32, i32, i32) {
    %c0_i32 = arith.constant 0 : i32
    %c0_i32_0 = arith.constant 0 : i32
    %c0_i32_1 = arith.constant 0 : i32
    return %arg0, %c0_i32, %c0_i32_0 : i32, i32, i32
  }
  func.func @transform_3(%arg0: i32, %arg1: i32) -> (i32, i32, i32) {
    %c0_i32 = arith.constant 0 : i32
    %c0_i32_0 = arith.constant 0 : i32
    %c0_i32_1 = arith.constant 0 : i32
    return %arg0, %c0_i32, %c0_i32_0 : i32, i32, i32
  }
  func.func @transform_4(%arg0: i32, %arg1: i32) -> (i32, i32, i32) {
    %c0_i32 = arith.constant 0 : i32
    %c0_i32_0 = arith.constant 0 : i32
    %c0_i32_1 = arith.constant 0 : i32
    return %arg0, %c0_i32, %c0_i32_0 : i32, i32, i32
  }
  func.func @transform_5(%arg0: i32, %arg1: i32) -> (i32, i32, i32) {
    %c0_i32 = arith.constant 0 : i32
    %c0_i32_0 = arith.constant 0 : i32
    %c0_i32_1 = arith.constant 0 : i32
    return %arg0, %c0_i32, %c0_i32_0 : i32, i32, i32
  }
  func.func @transform_6(%arg0: i32, %arg1: i32) -> (i32, i32, i32) {
    %c0_i32 = arith.constant 0 : i32
    %c0_i32_0 = arith.constant 0 : i32
    %c0_i32_1 = arith.constant 0 : i32
    return %arg0, %c0_i32, %c0_i32_0 : i32, i32, i32
  }
  func.func @transform_7(%arg0: i32, %arg1: i32) -> (i32, i32, i32) {
    %c0_i32 = arith.constant 0 : i32
    %c0_i32_0 = arith.constant 0 : i32
    %c0_i32_1 = arith.constant 0 : i32
    return %arg0, %c0_i32, %c0_i32_0 : i32, i32, i32
  }
  func.func @transform_8(%arg0: i32, %arg1: i32) -> (i32, i32, i32) {
    %c0_i32 = arith.constant 0 : i32
    %c0_i32_0 = arith.constant 0 : i32
    %c0_i32_1 = arith.constant 0 : i32
    return %arg0, %c0_i32, %c0_i32_0 : i32, i32, i32
  }
  func.func @transform_9(%arg0: i32, %arg1: i32) -> (i32, i32) {
    %c0_i32 = arith.constant 0 : i32
    %c0_i32_0 = arith.constant 0 : i32
    %c0_i32_1 = arith.constant 0 : i32
    return %c0_i32, %c0_i32_0 : i32, i32
  }
  func.func @transform_10(%arg0: i32, %arg1: i32) -> (i32, i32, i32) {
    %c0_i32 = arith.constant 0 : i32
    %c0_i32_0 = arith.constant 0 : i32
    %c0_i32_1 = arith.constant 0 : i32
    return %arg1, %c0_i32, %c0_i32_0 : i32, i32, i32
  }
  func.func @transform_11(%arg0: i32, %arg1: i32) -> (i32, i32, i32, i32) {
    %c0_i32 = arith.constant 0 : i32
    %c0_i32_0 = arith.constant 0 : i32
    %c0_i32_1 = arith.constant 0 : i32
    return %arg0, %arg1, %c0_i32, %c0_i32_0 : i32, i32, i32, i32
  }
}

module attributes {stable_mosaic.version = 11 : i64} {
  func.func @_mha_resid_ln_kernel(%arg0: i32, %arg1: i32, %arg2: memref<1x1x8x32xf32, #tpu.memory_space<vmem>>, %arg3: memref<1x1x8x32xf32, #tpu.memory_space<vmem>>, %arg4: memref<1x32x32xbf16, #tpu.memory_space<vmem>>, %arg5: memref<1x1x32xf32, #tpu.memory_space<vmem>>, %arg6: memref<1x32x64xbf16, #tpu.memory_space<vmem>>, %arg7: memref<1x1x64xf32, #tpu.memory_space<vmem>>, %arg8: memref<1x32x32xbf16, #tpu.memory_space<vmem>>, %arg9: memref<1x1x32xf32, #tpu.memory_space<vmem>>, %arg10: memref<1x1x32xf32, #tpu.memory_space<vmem>>, %arg11: memref<8x8xf32, #tpu.memory_space<vmem>>, %arg12: memref<1x1x8xf32, #tpu.memory_space<vmem>>, %arg13: memref<1x1x8x32xf32, #tpu.memory_space<vmem>>) attributes {dimension_semantics = [#tpu.dimension_semantics<parallel>, #tpu.dimension_semantics<parallel>], iteration_bounds = array<i64: 1, 2>, scalar_prefetch = 0 : i64, scratch_operands = 0 : i64, tpu.core_type = #tpu.core_type<tc>, window_params = [{transform_indices = @transform_0, window_bounds = array<i64: 1, 1, 8, 32>}, {transform_indices = @transform_1, window_bounds = array<i64: 1, 1, 8, 32>}, {pipeline_mode = #tpu.pipeline_mode<synchronous>, transform_indices = @transform_2, window_bounds = array<i64: 1, 32, 32>}, {pipeline_mode = #tpu.pipeline_mode<synchronous>, transform_indices = @transform_3, window_bounds = array<i64: 1, 1, 32>}, {pipeline_mode = #tpu.pipeline_mode<synchronous>, transform_indices = @transform_4, window_bounds = array<i64: 1, 32, 64>}, {pipeline_mode = #tpu.pipeline_mode<synchronous>, transform_indices = @transform_5, window_bounds = array<i64: 1, 1, 64>}, {pipeline_mode = #tpu.pipeline_mode<synchronous>, transform_indices = @transform_6, window_bounds = array<i64: 1, 32, 32>}, {pipeline_mode = #tpu.pipeline_mode<synchronous>, transform_indices = @transform_7, window_bounds = array<i64: 1, 1, 32>}, {pipeline_mode = #tpu.pipeline_mode<synchronous>, transform_indices = @transform_8, window_bounds = array<i64: 1, 1, 32>}, {pipeline_mode = #tpu.pipeline_mode<synchronous>, transform_indices = @transform_9, window_bounds = array<i64: 8, 8>}, {transform_indices = @transform_10, window_bounds = array<i64: 1, 1, 8>}, {transform_indices = @transform_11, window_bounds = array<i64: 1, 1, 8, 32>}]} {
    %c0 = arith.constant 0 : index
    %c0_0 = arith.constant 0 : index
    %c0_1 = arith.constant 0 : index
    %c0_2 = arith.constant 0 : index
    %0 = vector.load %arg2[%c0, %c0_0, %c0_1, %c0_2] : memref<1x1x8x32xf32, #tpu.memory_space<vmem>>, vector<1x1x8x32xf32>
    %1 = vector.shape_cast %0 : vector<1x1x8x32xf32> to vector<8x32xf32>
    %c0_3 = arith.constant 0 : index
    %c0_4 = arith.constant 0 : index
    %c0_5 = arith.constant 0 : index
    %c0_6 = arith.constant 0 : index
    %2 = vector.load %arg3[%c0_3, %c0_4, %c0_5, %c0_6] : memref<1x1x8x32xf32, #tpu.memory_space<vmem>>, vector<1x1x8x32xf32>
    %3 = vector.shape_cast %2 : vector<1x1x8x32xf32> to vector<8x32xf32>
    %4 = arith.truncf %1 : vector<8x32xf32> to vector<8x32xbf16>
    %c0_7 = arith.constant 0 : index
    %c0_8 = arith.constant 0 : index
    %c0_9 = arith.constant 0 : index
    %5 = vector.load %arg4[%c0_7, %c0_8, %c0_9] : memref<1x32x32xbf16, #tpu.memory_space<vmem>>, vector<1x32x32xbf16>
    %6 = vector.shape_cast %5 : vector<1x32x32xbf16> to vector<32x32xbf16>
    %cst = arith.constant dense<0.000000e+00> : vector<8x32xf32>
    %7 = tpu.matmul %4, %6, %cst {dimension_numbers = #tpu.dot_dimension_numbers<[1], [0], [0], [1], [0, 0, 1, 1], [], []>} : vector<8x32xbf16>, vector<32x32xbf16>, vector<8x32xf32> -> vector<8x32xf32>
    %c0_10 = arith.constant 0 : index
    %c0_11 = arith.constant 0 : index
    %c0_12 = arith.constant 0 : index
    %8 = vector.load %arg5[%c0_10, %c0_11, %c0_12] : memref<1x1x32xf32, #tpu.memory_space<vmem>>, vector<1x1x32xf32>
    %9 = vector.shape_cast %8 : vector<1x1x32xf32> to vector<1x32xf32>
    %10 = vector.broadcast %9 : vector<1x32xf32> to vector<8x32xf32>
    %11 = arith.addf %7, %10 : vector<8x32xf32>
    %12 = arith.truncf %3 : vector<8x32xf32> to vector<8x32xbf16>
    %c0_13 = arith.constant 0 : index
    %c0_14 = arith.constant 0 : index
    %c0_15 = arith.constant 0 : index
    %13 = vector.load %arg6[%c0_13, %c0_14, %c0_15] : memref<1x32x64xbf16, #tpu.memory_space<vmem>>, vector<1x32x64xbf16>
    %14 = vector.shape_cast %13 : vector<1x32x64xbf16> to vector<32x64xbf16>
    %cst_16 = arith.constant dense<0.000000e+00> : vector<8x64xf32>
    %15 = tpu.matmul %12, %14, %cst_16 {dimension_numbers = #tpu.dot_dimension_numbers<[1], [0], [0], [1], [0, 0, 1, 1], [], []>} : vector<8x32xbf16>, vector<32x64xbf16>, vector<8x64xf32> -> vector<8x64xf32>
    %c0_17 = arith.constant 0 : index
    %c0_18 = arith.constant 0 : index
    %c0_19 = arith.constant 0 : index
    %16 = vector.load %arg7[%c0_17, %c0_18, %c0_19] : memref<1x1x64xf32, #tpu.memory_space<vmem>>, vector<1x1x64xf32>
    %17 = vector.shape_cast %16 : vector<1x1x64xf32> to vector<1x64xf32>
    %18 = vector.broadcast %17 : vector<1x64xf32> to vector<8x64xf32>
    %19 = arith.addf %15, %18 : vector<8x64xf32>
    %20 = vector.extract_strided_slice %19 {offsets = [0, 0], sizes = [8, 32], strides = [1, 1]} : vector<8x64xf32> to vector<8x32xf32>
    %21 = vector.extract_strided_slice %19 {offsets = [0, 32], sizes = [8, 32], strides = [1, 1]} : vector<8x64xf32> to vector<8x32xf32>
    %c0_20 = arith.constant 0 : index
    %c0_21 = arith.constant 0 : index
    %22 = vector.load %arg11[%c0_20, %c0_21] : memref<8x8xf32, #tpu.memory_space<vmem>>, vector<8x8xf32>
    %c0_22 = arith.constant 0 : index
    %c0_23 = arith.constant 0 : index
    %c0_24 = arith.constant 0 : index
    %23 = vector.load %arg12[%c0_22, %c0_23, %c0_24] : memref<1x1x8xf32, #tpu.memory_space<vmem>>, vector<1x1x8xf32>
    %24 = vector.shape_cast %23 : vector<1x1x8xf32> to vector<1x8xf32>
    %25 = vector.broadcast %24 : vector<1x8xf32> to vector<8x8xf32>
    %26 = arith.addf %22, %25 : vector<8x8xf32>
    %cst_25 = arith.constant 0.000000e+00 : f32
    %27 = vector.broadcast %cst_25 : f32 to vector<8x32xf32>
    %28 = vector.extract_strided_slice %11 {offsets = [0, 0], sizes = [8, 8], strides = [1, 1]} : vector<8x32xf32> to vector<8x8xf32>
    %29 = vector.extract_strided_slice %20 {offsets = [0, 0], sizes = [8, 8], strides = [1, 1]} : vector<8x32xf32> to vector<8x8xf32>
    %30 = vector.extract_strided_slice %21 {offsets = [0, 0], sizes = [8, 8], strides = [1, 1]} : vector<8x32xf32> to vector<8x8xf32>
    %cst_26 = arith.constant dense<0.000000e+00> : vector<8x8xf32>
    %31 = tpu.matmul %28, %29, %cst_26 {dimension_numbers = #tpu.dot_dimension_numbers<[1], [1], [0], [0], [0, 0, 1, 0], [], []>} : vector<8x8xf32>, vector<8x8xf32>, vector<8x8xf32> -> vector<8x8xf32>
    %cst_27 = arith.constant 0.353553385 : f32
    %32 = vector.broadcast %cst_27 : f32 to vector<8x8xf32>
    %33 = arith.mulf %31, %32 : vector<8x8xf32>
    %34 = arith.addf %33, %26 : vector<8x8xf32>
    %cst_28 = arith.constant dense<0xFF800000> : vector<8xf32>
    %35 = vector.multi_reduction <maximumf>, %34, %cst_28 [1] : vector<8x8xf32> to vector<8xf32>
    %36 = vector.shape_cast %35 : vector<8xf32> to vector<8x1xf32>
    %37 = vector.broadcast %36 : vector<8x1xf32> to vector<8x8xf32>
    %38 = arith.subf %34, %37 : vector<8x8xf32>
    %39 = math.exp %38 : vector<8x8xf32>
    %cst_29 = arith.constant dense<0.000000e+00> : vector<8xf32>
    %40 = vector.multi_reduction <add>, %39, %cst_29 [1] : vector<8x8xf32> to vector<8xf32>
    %41 = vector.shape_cast %40 : vector<8xf32> to vector<8x1xf32>
    %42 = tpu.reciprocal %41 {approx = true} : vector<8x1xf32> -> vector<8x1xf32>
    %43 = vector.broadcast %42 : vector<8x1xf32> to vector<8x8xf32>
    %44 = arith.mulf %39, %43 : vector<8x8xf32>
    %45 = arith.truncf %44 : vector<8x8xf32> to vector<8x8xbf16>
    %46 = arith.truncf %30 : vector<8x8xf32> to vector<8x8xbf16>
    %cst_30 = arith.constant dense<0.000000e+00> : vector<8x8xf32>
    %47 = tpu.matmul %45, %46, %cst_30 {dimension_numbers = #tpu.dot_dimension_numbers<[1], [0], [0], [1], [0, 0, 1, 1], [], []>} : vector<8x8xbf16>, vector<8x8xbf16>, vector<8x8xf32> -> vector<8x8xf32>
    %48 = arith.truncf %47 : vector<8x8xf32> to vector<8x8xbf16>
    %c0_31 = arith.constant 0 : index
    %c0_32 = arith.constant 0 : index
    %c0_33 = arith.constant 0 : index
    %49 = vector.load %arg8[%c0_31, %c0_32, %c0_33] : memref<1x32x32xbf16, #tpu.memory_space<vmem>>, vector<1x8x32xbf16>
    %50 = vector.shape_cast %49 : vector<1x8x32xbf16> to vector<8x32xbf16>
    %cst_34 = arith.constant dense<0.000000e+00> : vector<8x32xf32>
    %51 = tpu.matmul %48, %50, %cst_34 {dimension_numbers = #tpu.dot_dimension_numbers<[1], [0], [0], [1], [0, 0, 1, 1], [], []>} : vector<8x8xbf16>, vector<8x32xbf16>, vector<8x32xf32> -> vector<8x32xf32>
    %52 = arith.addf %27, %51 : vector<8x32xf32>
    %53 = vector.extract_strided_slice %11 {offsets = [0, 8], sizes = [8, 8], strides = [1, 1]} : vector<8x32xf32> to vector<8x8xf32>
    %54 = vector.extract_strided_slice %20 {offsets = [0, 8], sizes = [8, 8], strides = [1, 1]} : vector<8x32xf32> to vector<8x8xf32>
    %55 = vector.extract_strided_slice %21 {offsets = [0, 8], sizes = [8, 8], strides = [1, 1]} : vector<8x32xf32> to vector<8x8xf32>
    %cst_35 = arith.constant dense<0.000000e+00> : vector<8x8xf32>
    %56 = tpu.matmul %53, %54, %cst_35 {dimension_numbers = #tpu.dot_dimension_numbers<[1], [1], [0], [0], [0, 0, 1, 0], [], []>} : vector<8x8xf32>, vector<8x8xf32>, vector<8x8xf32> -> vector<8x8xf32>
    %cst_36 = arith.constant 0.353553385 : f32
    %57 = vector.broadcast %cst_36 : f32 to vector<8x8xf32>
    %58 = arith.mulf %56, %57 : vector<8x8xf32>
    %59 = arith.addf %58, %26 : vector<8x8xf32>
    %cst_37 = arith.constant dense<0xFF800000> : vector<8xf32>
    %60 = vector.multi_reduction <maximumf>, %59, %cst_37 [1] : vector<8x8xf32> to vector<8xf32>
    %61 = vector.shape_cast %60 : vector<8xf32> to vector<8x1xf32>
    %62 = vector.broadcast %61 : vector<8x1xf32> to vector<8x8xf32>
    %63 = arith.subf %59, %62 : vector<8x8xf32>
    %64 = math.exp %63 : vector<8x8xf32>
    %cst_38 = arith.constant dense<0.000000e+00> : vector<8xf32>
    %65 = vector.multi_reduction <add>, %64, %cst_38 [1] : vector<8x8xf32> to vector<8xf32>
    %66 = vector.shape_cast %65 : vector<8xf32> to vector<8x1xf32>
    %67 = tpu.reciprocal %66 {approx = true} : vector<8x1xf32> -> vector<8x1xf32>
    %68 = vector.broadcast %67 : vector<8x1xf32> to vector<8x8xf32>
    %69 = arith.mulf %64, %68 : vector<8x8xf32>
    %70 = arith.truncf %69 : vector<8x8xf32> to vector<8x8xbf16>
    %71 = arith.truncf %55 : vector<8x8xf32> to vector<8x8xbf16>
    %cst_39 = arith.constant dense<0.000000e+00> : vector<8x8xf32>
    %72 = tpu.matmul %70, %71, %cst_39 {dimension_numbers = #tpu.dot_dimension_numbers<[1], [0], [0], [1], [0, 0, 1, 1], [], []>} : vector<8x8xbf16>, vector<8x8xbf16>, vector<8x8xf32> -> vector<8x8xf32>
    %73 = arith.truncf %72 : vector<8x8xf32> to vector<8x8xbf16>
    %c0_40 = arith.constant 0 : index
    %c8 = arith.constant 8 : index
    %c0_41 = arith.constant 0 : index
    %74 = vector.load %arg8[%c0_40, %c8, %c0_41] : memref<1x32x32xbf16, #tpu.memory_space<vmem>>, vector<1x8x32xbf16>
    %75 = vector.shape_cast %74 : vector<1x8x32xbf16> to vector<8x32xbf16>
    %cst_42 = arith.constant dense<0.000000e+00> : vector<8x32xf32>
    %76 = tpu.matmul %73, %75, %cst_42 {dimension_numbers = #tpu.dot_dimension_numbers<[1], [0], [0], [1], [0, 0, 1, 1], [], []>} : vector<8x8xbf16>, vector<8x32xbf16>, vector<8x32xf32> -> vector<8x32xf32>
    %77 = arith.addf %52, %76 : vector<8x32xf32>
    %78 = vector.extract_strided_slice %11 {offsets = [0, 16], sizes = [8, 8], strides = [1, 1]} : vector<8x32xf32> to vector<8x8xf32>
    %79 = vector.extract_strided_slice %20 {offsets = [0, 16], sizes = [8, 8], strides = [1, 1]} : vector<8x32xf32> to vector<8x8xf32>
    %80 = vector.extract_strided_slice %21 {offsets = [0, 16], sizes = [8, 8], strides = [1, 1]} : vector<8x32xf32> to vector<8x8xf32>
    %cst_43 = arith.constant dense<0.000000e+00> : vector<8x8xf32>
    %81 = tpu.matmul %78, %79, %cst_43 {dimension_numbers = #tpu.dot_dimension_numbers<[1], [1], [0], [0], [0, 0, 1, 0], [], []>} : vector<8x8xf32>, vector<8x8xf32>, vector<8x8xf32> -> vector<8x8xf32>
    %cst_44 = arith.constant 0.353553385 : f32
    %82 = vector.broadcast %cst_44 : f32 to vector<8x8xf32>
    %83 = arith.mulf %81, %82 : vector<8x8xf32>
    %84 = arith.addf %83, %26 : vector<8x8xf32>
    %cst_45 = arith.constant dense<0xFF800000> : vector<8xf32>
    %85 = vector.multi_reduction <maximumf>, %84, %cst_45 [1] : vector<8x8xf32> to vector<8xf32>
    %86 = vector.shape_cast %85 : vector<8xf32> to vector<8x1xf32>
    %87 = vector.broadcast %86 : vector<8x1xf32> to vector<8x8xf32>
    %88 = arith.subf %84, %87 : vector<8x8xf32>
    %89 = math.exp %88 : vector<8x8xf32>
    %cst_46 = arith.constant dense<0.000000e+00> : vector<8xf32>
    %90 = vector.multi_reduction <add>, %89, %cst_46 [1] : vector<8x8xf32> to vector<8xf32>
    %91 = vector.shape_cast %90 : vector<8xf32> to vector<8x1xf32>
    %92 = tpu.reciprocal %91 {approx = true} : vector<8x1xf32> -> vector<8x1xf32>
    %93 = vector.broadcast %92 : vector<8x1xf32> to vector<8x8xf32>
    %94 = arith.mulf %89, %93 : vector<8x8xf32>
    %95 = arith.truncf %94 : vector<8x8xf32> to vector<8x8xbf16>
    %96 = arith.truncf %80 : vector<8x8xf32> to vector<8x8xbf16>
    %cst_47 = arith.constant dense<0.000000e+00> : vector<8x8xf32>
    %97 = tpu.matmul %95, %96, %cst_47 {dimension_numbers = #tpu.dot_dimension_numbers<[1], [0], [0], [1], [0, 0, 1, 1], [], []>} : vector<8x8xbf16>, vector<8x8xbf16>, vector<8x8xf32> -> vector<8x8xf32>
    %98 = arith.truncf %97 : vector<8x8xf32> to vector<8x8xbf16>
    %c0_48 = arith.constant 0 : index
    %c16 = arith.constant 16 : index
    %c0_49 = arith.constant 0 : index
    %99 = vector.load %arg8[%c0_48, %c16, %c0_49] : memref<1x32x32xbf16, #tpu.memory_space<vmem>>, vector<1x8x32xbf16>
    %100 = vector.shape_cast %99 : vector<1x8x32xbf16> to vector<8x32xbf16>
    %cst_50 = arith.constant dense<0.000000e+00> : vector<8x32xf32>
    %101 = tpu.matmul %98, %100, %cst_50 {dimension_numbers = #tpu.dot_dimension_numbers<[1], [0], [0], [1], [0, 0, 1, 1], [], []>} : vector<8x8xbf16>, vector<8x32xbf16>, vector<8x32xf32> -> vector<8x32xf32>
    %102 = arith.addf %77, %101 : vector<8x32xf32>
    %103 = vector.extract_strided_slice %11 {offsets = [0, 24], sizes = [8, 8], strides = [1, 1]} : vector<8x32xf32> to vector<8x8xf32>
    %104 = vector.extract_strided_slice %20 {offsets = [0, 24], sizes = [8, 8], strides = [1, 1]} : vector<8x32xf32> to vector<8x8xf32>
    %105 = vector.extract_strided_slice %21 {offsets = [0, 24], sizes = [8, 8], strides = [1, 1]} : vector<8x32xf32> to vector<8x8xf32>
    %cst_51 = arith.constant dense<0.000000e+00> : vector<8x8xf32>
    %106 = tpu.matmul %103, %104, %cst_51 {dimension_numbers = #tpu.dot_dimension_numbers<[1], [1], [0], [0], [0, 0, 1, 0], [], []>} : vector<8x8xf32>, vector<8x8xf32>, vector<8x8xf32> -> vector<8x8xf32>
    %cst_52 = arith.constant 0.353553385 : f32
    %107 = vector.broadcast %cst_52 : f32 to vector<8x8xf32>
    %108 = arith.mulf %106, %107 : vector<8x8xf32>
    %109 = arith.addf %108, %26 : vector<8x8xf32>
    %cst_53 = arith.constant dense<0xFF800000> : vector<8xf32>
    %110 = vector.multi_reduction <maximumf>, %109, %cst_53 [1] : vector<8x8xf32> to vector<8xf32>
    %111 = vector.shape_cast %110 : vector<8xf32> to vector<8x1xf32>
    %112 = vector.broadcast %111 : vector<8x1xf32> to vector<8x8xf32>
    %113 = arith.subf %109, %112 : vector<8x8xf32>
    %114 = math.exp %113 : vector<8x8xf32>
    %cst_54 = arith.constant dense<0.000000e+00> : vector<8xf32>
    %115 = vector.multi_reduction <add>, %114, %cst_54 [1] : vector<8x8xf32> to vector<8xf32>
    %116 = vector.shape_cast %115 : vector<8xf32> to vector<8x1xf32>
    %117 = tpu.reciprocal %116 {approx = true} : vector<8x1xf32> -> vector<8x1xf32>
    %118 = vector.broadcast %117 : vector<8x1xf32> to vector<8x8xf32>
    %119 = arith.mulf %114, %118 : vector<8x8xf32>
    %120 = arith.truncf %119 : vector<8x8xf32> to vector<8x8xbf16>
    %121 = arith.truncf %105 : vector<8x8xf32> to vector<8x8xbf16>
    %cst_55 = arith.constant dense<0.000000e+00> : vector<8x8xf32>
    %122 = tpu.matmul %120, %121, %cst_55 {dimension_numbers = #tpu.dot_dimension_numbers<[1], [0], [0], [1], [0, 0, 1, 1], [], []>} : vector<8x8xbf16>, vector<8x8xbf16>, vector<8x8xf32> -> vector<8x8xf32>
    %123 = arith.truncf %122 : vector<8x8xf32> to vector<8x8xbf16>
    %c0_56 = arith.constant 0 : index
    %c24 = arith.constant 24 : index
    %c0_57 = arith.constant 0 : index
    %124 = vector.load %arg8[%c0_56, %c24, %c0_57] : memref<1x32x32xbf16, #tpu.memory_space<vmem>>, vector<1x8x32xbf16>
    %125 = vector.shape_cast %124 : vector<1x8x32xbf16> to vector<8x32xbf16>
    %cst_58 = arith.constant dense<0.000000e+00> : vector<8x32xf32>
    %126 = tpu.matmul %123, %125, %cst_58 {dimension_numbers = #tpu.dot_dimension_numbers<[1], [0], [0], [1], [0, 0, 1, 1], [], []>} : vector<8x8xbf16>, vector<8x32xbf16>, vector<8x32xf32> -> vector<8x32xf32>
    %127 = arith.addf %102, %126 : vector<8x32xf32>
    %128 = arith.addf %1, %127 : vector<8x32xf32>
    %cst_59 = arith.constant dense<0.000000e+00> : vector<8xf32>
    %129 = vector.multi_reduction <add>, %128, %cst_59 [1] : vector<8x32xf32> to vector<8xf32>
    %130 = vector.shape_cast %129 : vector<8xf32> to vector<8x1xf32>
    %cst_60 = arith.constant 3.200000e+01 : f32
    %131 = vector.broadcast %cst_60 : f32 to vector<8x1xf32>
    %132 = arith.divf %130, %131 : vector<8x1xf32>
    %133 = vector.broadcast %132 : vector<8x1xf32> to vector<8x32xf32>
    %134 = arith.subf %128, %133 : vector<8x32xf32>
    %135 = arith.mulf %134, %134 : vector<8x32xf32>
    %cst_61 = arith.constant dense<0.000000e+00> : vector<8xf32>
    %136 = vector.multi_reduction <add>, %135, %cst_61 [1] : vector<8x32xf32> to vector<8xf32>
    %137 = vector.shape_cast %136 : vector<8xf32> to vector<8x1xf32>
    %cst_62 = arith.constant 3.200000e+01 : f32
    %138 = vector.broadcast %cst_62 : f32 to vector<8x1xf32>
    %139 = arith.divf %137, %138 : vector<8x1xf32>
    %140 = vector.broadcast %132 : vector<8x1xf32> to vector<8x32xf32>
    %141 = arith.subf %128, %140 : vector<8x32xf32>
    %cst_63 = arith.constant 9.99999974E-6 : f32
    %142 = vector.broadcast %cst_63 : f32 to vector<8x1xf32>
    %143 = arith.addf %139, %142 : vector<8x1xf32>
    %144 = math.rsqrt %143 : vector<8x1xf32>
    %145 = vector.broadcast %144 : vector<8x1xf32> to vector<8x32xf32>
    %146 = arith.mulf %141, %145 : vector<8x32xf32>
    %c0_64 = arith.constant 0 : index
    %c0_65 = arith.constant 0 : index
    %c0_66 = arith.constant 0 : index
    %147 = vector.load %arg9[%c0_64, %c0_65, %c0_66] : memref<1x1x32xf32, #tpu.memory_space<vmem>>, vector<1x1x32xf32>
    %148 = vector.shape_cast %147 : vector<1x1x32xf32> to vector<1x32xf32>
    %149 = vector.broadcast %148 : vector<1x32xf32> to vector<8x32xf32>
    %150 = arith.mulf %146, %149 : vector<8x32xf32>
    %c0_67 = arith.constant 0 : index
    %c0_68 = arith.constant 0 : index
    %c0_69 = arith.constant 0 : index
    %151 = vector.load %arg10[%c0_67, %c0_68, %c0_69] : memref<1x1x32xf32, #tpu.memory_space<vmem>>, vector<1x1x32xf32>
    %152 = vector.shape_cast %151 : vector<1x1x32xf32> to vector<1x32xf32>
    %153 = vector.broadcast %152 : vector<1x32xf32> to vector<8x32xf32>
    %154 = arith.addf %150, %153 : vector<8x32xf32>
    %c0_70 = arith.constant 0 : index
    %c0_71 = arith.constant 0 : index
    %c0_72 = arith.constant 0 : index
    %c0_73 = arith.constant 0 : index
    %155 = vector.load %arg13[%c0_70, %c0_71, %c0_72, %c0_73] : memref<1x1x8x32xf32, #tpu.memory_space<vmem>>, vector<1x1x8x32xf32>
    %156 = vector.shape_cast %155 : vector<1x1x8x32xf32> to vector<8x32xf32>
    %157 = vector.shape_cast %154 : vector<8x32xf32> to vector<1x1x8x32xf32>
    tpu.vector_store %arg13[%c0_70, %c0_71, %c0_72, %c0_73], %157 {strides = array<i32>} : memref<1x1x8x32xf32, #tpu.memory_space<vmem>>, vector<1x1x8x32xf32>,
    return
  }
  func.func @transform_0(%arg0: i32, %arg1: i32) -> (i32, i32, i32, i32) {
    %c0_i32 = arith.constant 0 : i32
    %c0_i32_0 = arith.constant 0 : i32
    %c0_i32_1 = arith.constant 0 : i32
    return %arg0, %arg1, %c0_i32, %c0_i32_0 : i32, i32, i32, i32
  }
  func.func @transform_1(%arg0: i32, %arg1: i32) -> (i32, i32, i32, i32) {
    %c0_i32 = arith.constant 0 : i32
    %c0_i32_0 = arith.constant 0 : i32
    %c0_i32_1 = arith.constant 0 : i32
    return %arg0, %arg1, %c0_i32, %c0_i32_0 : i32, i32, i32, i32
  }
  func.func @transform_2(%arg0: i32, %arg1: i32) -> (i32, i32, i32) {
    %c0_i32 = arith.constant 0 : i32
    %c0_i32_0 = arith.constant 0 : i32
    %c0_i32_1 = arith.constant 0 : i32
    return %arg0, %c0_i32, %c0_i32_0 : i32, i32, i32
  }
  func.func @transform_3(%arg0: i32, %arg1: i32) -> (i32, i32, i32) {
    %c0_i32 = arith.constant 0 : i32
    %c0_i32_0 = arith.constant 0 : i32
    %c0_i32_1 = arith.constant 0 : i32
    return %arg0, %c0_i32, %c0_i32_0 : i32, i32, i32
  }
  func.func @transform_4(%arg0: i32, %arg1: i32) -> (i32, i32, i32) {
    %c0_i32 = arith.constant 0 : i32
    %c0_i32_0 = arith.constant 0 : i32
    %c0_i32_1 = arith.constant 0 : i32
    return %arg0, %c0_i32, %c0_i32_0 : i32, i32, i32
  }
  func.func @transform_5(%arg0: i32, %arg1: i32) -> (i32, i32, i32) {
    %c0_i32 = arith.constant 0 : i32
    %c0_i32_0 = arith.constant 0 : i32
    %c0_i32_1 = arith.constant 0 : i32
    return %arg0, %c0_i32, %c0_i32_0 : i32, i32, i32
  }
  func.func @transform_6(%arg0: i32, %arg1: i32) -> (i32, i32, i32) {
    %c0_i32 = arith.constant 0 : i32
    %c0_i32_0 = arith.constant 0 : i32
    %c0_i32_1 = arith.constant 0 : i32
    return %arg0, %c0_i32, %c0_i32_0 : i32, i32, i32
  }
  func.func @transform_7(%arg0: i32, %arg1: i32) -> (i32, i32, i32) {
    %c0_i32 = arith.constant 0 : i32
    %c0_i32_0 = arith.constant 0 : i32
    %c0_i32_1 = arith.constant 0 : i32
    return %arg0, %c0_i32, %c0_i32_0 : i32, i32, i32
  }
  func.func @transform_8(%arg0: i32, %arg1: i32) -> (i32, i32, i32) {
    %c0_i32 = arith.constant 0 : i32
    %c0_i32_0 = arith.constant 0 : i32
    %c0_i32_1 = arith.constant 0 : i32
    return %arg0, %c0_i32, %c0_i32_0 : i32, i32, i32
  }
  func.func @transform_9(%arg0: i32, %arg1: i32) -> (i32, i32) {
    %c0_i32 = arith.constant 0 : i32
    %c0_i32_0 = arith.constant 0 : i32
    %c0_i32_1 = arith.constant 0 : i32
    return %c0_i32, %c0_i32_0 : i32, i32
  }
  func.func @transform_10(%arg0: i32, %arg1: i32) -> (i32, i32, i32) {
    %c0_i32 = arith.constant 0 : i32
    %c0_i32_0 = arith.constant 0 : i32
    %c0_i32_1 = arith.constant 0 : i32
    return %arg1, %c0_i32, %c0_i32_0 : i32, i32, i32
  }
  func.func @transform_11(%arg0: i32, %arg1: i32) -> (i32, i32, i32, i32) {
    %c0_i32 = arith.constant 0 : i32
    %c0_i32_0 = arith.constant 0 : i32
    %c0_i32_1 = arith.constant 0 : i32
    return %arg0, %arg1, %c0_i32, %c0_i32_0 : i32, i32, i32, i32
  }
}

module attributes {stable_mosaic.version = 11 : i64} {
  func.func @_ff_kernel(%arg0: i32, %arg1: i32, %arg2: memref<1x16x32xf32, #tpu.memory_space<vmem>>, %arg3: memref<1x32x64xbf16, #tpu.memory_space<vmem>>, %arg4: memref<1x1x64xf32, #tpu.memory_space<vmem>>, %arg5: memref<1x64x32xbf16, #tpu.memory_space<vmem>>, %arg6: memref<1x1x32xf32, #tpu.memory_space<vmem>>, %arg7: memref<1x16x32xf32, #tpu.memory_space<vmem>>) attributes {dimension_semantics = [#tpu.dimension_semantics<parallel>, #tpu.dimension_semantics<parallel>], iteration_bounds = array<i64: 2, 1>, scalar_prefetch = 0 : i64, scratch_operands = 0 : i64, tpu.core_type = #tpu.core_type<tc>, window_params = [{transform_indices = @transform_0, window_bounds = array<i64: 1, 16, 32>}, {pipeline_mode = #tpu.pipeline_mode<synchronous>, transform_indices = @transform_1, window_bounds = array<i64: 1, 32, 64>}, {pipeline_mode = #tpu.pipeline_mode<synchronous>, transform_indices = @transform_2, window_bounds = array<i64: 1, 1, 64>}, {pipeline_mode = #tpu.pipeline_mode<synchronous>, transform_indices = @transform_3, window_bounds = array<i64: 1, 64, 32>}, {pipeline_mode = #tpu.pipeline_mode<synchronous>, transform_indices = @transform_4, window_bounds = array<i64: 1, 1, 32>}, {transform_indices = @transform_5, window_bounds = array<i64: 1, 16, 32>}]} {
    %c0 = arith.constant 0 : index
    %c0_0 = arith.constant 0 : index
    %c0_1 = arith.constant 0 : index
    %0 = vector.load %arg2[%c0, %c0_0, %c0_1] : memref<1x16x32xf32, #tpu.memory_space<vmem>>, vector<1x16x32xf32>
    %1 = vector.shape_cast %0 : vector<1x16x32xf32> to vector<16x32xf32>
    %2 = arith.truncf %1 : vector<16x32xf32> to vector<16x32xbf16>
    %c0_2 = arith.constant 0 : index
    %c0_3 = arith.constant 0 : index
    %c0_4 = arith.constant 0 : index
    %3 = vector.load %arg3[%c0_2, %c0_3, %c0_4] : memref<1x32x64xbf16, #tpu.memory_space<vmem>>, vector<1x32x64xbf16>
    %4 = vector.shape_cast %3 : vector<1x32x64xbf16> to vector<32x64xbf16>
    %cst = arith.constant dense<0.000000e+00> : vector<16x64xf32>
    %5 = tpu.matmul %2, %4, %cst {dimension_numbers = #tpu.dot_dimension_numbers<[1], [0], [0], [1], [0, 0, 1, 1], [], []>} : vector<16x32xbf16>, vector<32x64xbf16>, vector<16x64xf32> -> vector<16x64xf32>
    %c0_5 = arith.constant 0 : index
    %c0_6 = arith.constant 0 : index
    %c0_7 = arith.constant 0 : index
    %6 = vector.load %arg4[%c0_5, %c0_6, %c0_7] : memref<1x1x64xf32, #tpu.memory_space<vmem>>, vector<1x1x64xf32>
    %7 = vector.shape_cast %6 : vector<1x1x64xf32> to vector<1x64xf32>
    %8 = vector.broadcast %7 : vector<1x64xf32> to vector<16x64xf32>
    %9 = arith.addf %5, %8 : vector<16x64xf32>
    %cst_8 = arith.constant 0.000000e+00 : f32
    %10 = vector.broadcast %cst_8 : f32 to vector<16x64xf32>
    %11 = arith.maximumf %9, %10 : vector<16x64xf32>
    %12 = arith.truncf %11 : vector<16x64xf32> to vector<16x64xbf16>
    %c0_9 = arith.constant 0 : index
    %c0_10 = arith.constant 0 : index
    %c0_11 = arith.constant 0 : index
    %13 = vector.load %arg5[%c0_9, %c0_10, %c0_11] : memref<1x64x32xbf16, #tpu.memory_space<vmem>>, vector<1x64x32xbf16>
    %14 = vector.shape_cast %13 : vector<1x64x32xbf16> to vector<64x32xbf16>
    %cst_12 = arith.constant dense<0.000000e+00> : vector<16x32xf32>
    %15 = tpu.matmul %12, %14, %cst_12 {dimension_numbers = #tpu.dot_dimension_numbers<[1], [0], [0], [1], [0, 0, 1, 1], [], []>} : vector<16x64xbf16>, vector<64x32xbf16>, vector<16x32xf32> -> vector<16x32xf32>
    %c0_13 = arith.constant 0 : index
    %c0_14 = arith.constant 0 : index
    %c0_15 = arith.constant 0 : index
    %16 = vector.load %arg6[%c0_13, %c0_14, %c0_15] : memref<1x1x32xf32, #tpu.memory_space<vmem>>, vector<1x1x32xf32>
    %17 = vector.shape_cast %16 : vector<1x1x32xf32> to vector<1x32xf32>
    %18 = vector.broadcast %17 : vector<1x32xf32> to vector<16x32xf32>
    %19 = arith.addf %15, %18 : vector<16x32xf32>
    %c0_16 = arith.constant 0 : index
    %c0_17 = arith.constant 0 : index
    %c0_18 = arith.constant 0 : index
    %20 = vector.load %arg7[%c0_16, %c0_17, %c0_18] : memref<1x16x32xf32, #tpu.memory_space<vmem>>, vector<1x16x32xf32>
    %21 = vector.shape_cast %20 : vector<1x16x32xf32> to vector<16x32xf32>
    %22 = vector.shape_cast %19 : vector<16x32xf32> to vector<1x16x32xf32>
    tpu.vector_store %arg7[%c0_16, %c0_17, %c0_18], %22 {strides = array<i32>} : memref<1x16x32xf32, #tpu.memory_space<vmem>>, vector<1x16x32xf32>,
    return
  }
  func.func @transform_0(%arg0: i32, %arg1: i32) -> (i32, i32, i32) {
    %c0_i32 = arith.constant 0 : i32
    %c0_i32_0 = arith.constant 0 : i32
    return %arg0, %arg1, %c0_i32 : i32, i32, i32
  }
  func.func @transform_1(%arg0: i32, %arg1: i32) -> (i32, i32, i32) {
    %c0_i32 = arith.constant 0 : i32
    %c0_i32_0 = arith.constant 0 : i32
    %c0_i32_1 = arith.constant 0 : i32
    return %arg0, %c0_i32, %c0_i32_0 : i32, i32, i32
  }
  func.func @transform_2(%arg0: i32, %arg1: i32) -> (i32, i32, i32) {
    %c0_i32 = arith.constant 0 : i32
    %c0_i32_0 = arith.constant 0 : i32
    %c0_i32_1 = arith.constant 0 : i32
    return %arg0, %c0_i32, %c0_i32_0 : i32, i32, i32
  }
  func.func @transform_3(%arg0: i32, %arg1: i32) -> (i32, i32, i32) {
    %c0_i32 = arith.constant 0 : i32
    %c0_i32_0 = arith.constant 0 : i32
    %c0_i32_1 = arith.constant 0 : i32
    return %arg0, %c0_i32, %c0_i32_0 : i32, i32, i32
  }
  func.func @transform_4(%arg0: i32, %arg1: i32) -> (i32, i32, i32) {
    %c0_i32 = arith.constant 0 : i32
    %c0_i32_0 = arith.constant 0 : i32
    %c0_i32_1 = arith.constant 0 : i32
    return %arg0, %c0_i32, %c0_i32_0 : i32, i32, i32
  }
  func.func @transform_5(%arg0: i32, %arg1: i32) -> (i32, i32, i32) {
    %c0_i32 = arith.constant 0 : i32
    %c0_i32_0 = arith.constant 0 : i32
    return %arg0, %arg1, %c0_i32 : i32, i32, i32
  }
}

module attributes {stable_mosaic.version = 11 : i64} {
  func.func @_mha_resid_ln_kernel(%arg0: i32, %arg1: i32, %arg2: memref<1x1x8x32xf32, #tpu.memory_space<vmem>>, %arg3: memref<1x1x8x32xf32, #tpu.memory_space<vmem>>, %arg4: memref<1x32x32xbf16, #tpu.memory_space<vmem>>, %arg5: memref<1x1x32xf32, #tpu.memory_space<vmem>>, %arg6: memref<1x32x64xbf16, #tpu.memory_space<vmem>>, %arg7: memref<1x1x64xf32, #tpu.memory_space<vmem>>, %arg8: memref<1x32x32xbf16, #tpu.memory_space<vmem>>, %arg9: memref<1x1x32xf32, #tpu.memory_space<vmem>>, %arg10: memref<1x1x32xf32, #tpu.memory_space<vmem>>, %arg11: memref<8x8xf32, #tpu.memory_space<vmem>>, %arg12: memref<1x1x8xf32, #tpu.memory_space<vmem>>, %arg13: memref<1x1x8x32xf32, #tpu.memory_space<vmem>>) attributes {dimension_semantics = [#tpu.dimension_semantics<parallel>, #tpu.dimension_semantics<parallel>], iteration_bounds = array<i64: 2, 2>, scalar_prefetch = 0 : i64, scratch_operands = 0 : i64, tpu.core_type = #tpu.core_type<tc>, window_params = [{transform_indices = @transform_0, window_bounds = array<i64: 1, 1, 8, 32>}, {transform_indices = @transform_1, window_bounds = array<i64: 1, 1, 8, 32>}, {transform_indices = @transform_2, window_bounds = array<i64: 1, 32, 32>}, {transform_indices = @transform_3, window_bounds = array<i64: 1, 1, 32>}, {transform_indices = @transform_4, window_bounds = array<i64: 1, 32, 64>}, {transform_indices = @transform_5, window_bounds = array<i64: 1, 1, 64>}, {transform_indices = @transform_6, window_bounds = array<i64: 1, 32, 32>}, {transform_indices = @transform_7, window_bounds = array<i64: 1, 1, 32>}, {transform_indices = @transform_8, window_bounds = array<i64: 1, 1, 32>}, {pipeline_mode = #tpu.pipeline_mode<synchronous>, transform_indices = @transform_9, window_bounds = array<i64: 8, 8>}, {transform_indices = @transform_10, window_bounds = array<i64: 1, 1, 8>}, {transform_indices = @transform_11, window_bounds = array<i64: 1, 1, 8, 32>}]} {
    %c0 = arith.constant 0 : index
    %c0_0 = arith.constant 0 : index
    %c0_1 = arith.constant 0 : index
    %c0_2 = arith.constant 0 : index
    %0 = vector.load %arg2[%c0, %c0_0, %c0_1, %c0_2] : memref<1x1x8x32xf32, #tpu.memory_space<vmem>>, vector<1x1x8x32xf32>
    %1 = vector.shape_cast %0 : vector<1x1x8x32xf32> to vector<8x32xf32>
    %c0_3 = arith.constant 0 : index
    %c0_4 = arith.constant 0 : index
    %c0_5 = arith.constant 0 : index
    %c0_6 = arith.constant 0 : index
    %2 = vector.load %arg3[%c0_3, %c0_4, %c0_5, %c0_6] : memref<1x1x8x32xf32, #tpu.memory_space<vmem>>, vector<1x1x8x32xf32>
    %3 = vector.shape_cast %2 : vector<1x1x8x32xf32> to vector<8x32xf32>
    %4 = arith.truncf %1 : vector<8x32xf32> to vector<8x32xbf16>
    %c0_7 = arith.constant 0 : index
    %c0_8 = arith.constant 0 : index
    %c0_9 = arith.constant 0 : index
    %5 = vector.load %arg4[%c0_7, %c0_8, %c0_9] : memref<1x32x32xbf16, #tpu.memory_space<vmem>>, vector<1x32x32xbf16>
    %6 = vector.shape_cast %5 : vector<1x32x32xbf16> to vector<32x32xbf16>
    %cst = arith.constant dense<0.000000e+00> : vector<8x32xf32>
    %7 = tpu.matmul %4, %6, %cst {dimension_numbers = #tpu.dot_dimension_numbers<[1], [0], [0], [1], [0, 0, 1, 1], [], []>} : vector<8x32xbf16>, vector<32x32xbf16>, vector<8x32xf32> -> vector<8x32xf32>
    %c0_10 = arith.constant 0 : index
    %c0_11 = arith.constant 0 : index
    %c0_12 = arith.constant 0 : index
    %8 = vector.load %arg5[%c0_10, %c0_11, %c0_12] : memref<1x1x32xf32, #tpu.memory_space<vmem>>, vector<1x1x32xf32>
    %9 = vector.shape_cast %8 : vector<1x1x32xf32> to vector<1x32xf32>
    %10 = vector.broadcast %9 : vector<1x32xf32> to vector<8x32xf32>
    %11 = arith.addf %7, %10 : vector<8x32xf32>
    %12 = arith.truncf %3 : vector<8x32xf32> to vector<8x32xbf16>
    %c0_13 = arith.constant 0 : index
    %c0_14 = arith.constant 0 : index
    %c0_15 = arith.constant 0 : index
    %13 = vector.load %arg6[%c0_13, %c0_14, %c0_15] : memref<1x32x64xbf16, #tpu.memory_space<vmem>>, vector<1x32x64xbf16>
    %14 = vector.shape_cast %13 : vector<1x32x64xbf16> to vector<32x64xbf16>
    %cst_16 = arith.constant dense<0.000000e+00> : vector<8x64xf32>
    %15 = tpu.matmul %12, %14, %cst_16 {dimension_numbers = #tpu.dot_dimension_numbers<[1], [0], [0], [1], [0, 0, 1, 1], [], []>} : vector<8x32xbf16>, vector<32x64xbf16>, vector<8x64xf32> -> vector<8x64xf32>
    %c0_17 = arith.constant 0 : index
    %c0_18 = arith.constant 0 : index
    %c0_19 = arith.constant 0 : index
    %16 = vector.load %arg7[%c0_17, %c0_18, %c0_19] : memref<1x1x64xf32, #tpu.memory_space<vmem>>, vector<1x1x64xf32>
    %17 = vector.shape_cast %16 : vector<1x1x64xf32> to vector<1x64xf32>
    %18 = vector.broadcast %17 : vector<1x64xf32> to vector<8x64xf32>
    %19 = arith.addf %15, %18 : vector<8x64xf32>
    %20 = vector.extract_strided_slice %19 {offsets = [0, 0], sizes = [8, 32], strides = [1, 1]} : vector<8x64xf32> to vector<8x32xf32>
    %21 = vector.extract_strided_slice %19 {offsets = [0, 32], sizes = [8, 32], strides = [1, 1]} : vector<8x64xf32> to vector<8x32xf32>
    %c0_20 = arith.constant 0 : index
    %c0_21 = arith.constant 0 : index
    %22 = vector.load %arg11[%c0_20, %c0_21] : memref<8x8xf32, #tpu.memory_space<vmem>>, vector<8x8xf32>
    %c0_22 = arith.constant 0 : index
    %c0_23 = arith.constant 0 : index
    %c0_24 = arith.constant 0 : index
    %23 = vector.load %arg12[%c0_22, %c0_23, %c0_24] : memref<1x1x8xf32, #tpu.memory_space<vmem>>, vector<1x1x8xf32>
    %24 = vector.shape_cast %23 : vector<1x1x8xf32> to vector<1x8xf32>
    %25 = vector.broadcast %24 : vector<1x8xf32> to vector<8x8xf32>
    %26 = arith.addf %22, %25 : vector<8x8xf32>
    %cst_25 = arith.constant 0.000000e+00 : f32
    %27 = vector.broadcast %cst_25 : f32 to vector<8x32xf32>
    %28 = vector.extract_strided_slice %11 {offsets = [0, 0], sizes = [8, 8], strides = [1, 1]} : vector<8x32xf32> to vector<8x8xf32>
    %29 = vector.extract_strided_slice %20 {offsets = [0, 0], sizes = [8, 8], strides = [1, 1]} : vector<8x32xf32> to vector<8x8xf32>
    %30 = vector.extract_strided_slice %21 {offsets = [0, 0], sizes = [8, 8], strides = [1, 1]} : vector<8x32xf32> to vector<8x8xf32>
    %cst_26 = arith.constant dense<0.000000e+00> : vector<8x8xf32>
    %31 = tpu.matmul %28, %29, %cst_26 {dimension_numbers = #tpu.dot_dimension_numbers<[1], [1], [0], [0], [0, 0, 1, 0], [], []>} : vector<8x8xf32>, vector<8x8xf32>, vector<8x8xf32> -> vector<8x8xf32>
    %cst_27 = arith.constant 0.353553385 : f32
    %32 = vector.broadcast %cst_27 : f32 to vector<8x8xf32>
    %33 = arith.mulf %31, %32 : vector<8x8xf32>
    %34 = arith.addf %33, %26 : vector<8x8xf32>
    %cst_28 = arith.constant dense<0xFF800000> : vector<8xf32>
    %35 = vector.multi_reduction <maximumf>, %34, %cst_28 [1] : vector<8x8xf32> to vector<8xf32>
    %36 = vector.shape_cast %35 : vector<8xf32> to vector<8x1xf32>
    %37 = vector.broadcast %36 : vector<8x1xf32> to vector<8x8xf32>
    %38 = arith.subf %34, %37 : vector<8x8xf32>
    %39 = math.exp %38 : vector<8x8xf32>
    %cst_29 = arith.constant dense<0.000000e+00> : vector<8xf32>
    %40 = vector.multi_reduction <add>, %39, %cst_29 [1] : vector<8x8xf32> to vector<8xf32>
    %41 = vector.shape_cast %40 : vector<8xf32> to vector<8x1xf32>
    %42 = tpu.reciprocal %41 {approx = true} : vector<8x1xf32> -> vector<8x1xf32>
    %43 = vector.broadcast %42 : vector<8x1xf32> to vector<8x8xf32>
    %44 = arith.mulf %39, %43 : vector<8x8xf32>
    %45 = arith.truncf %44 : vector<8x8xf32> to vector<8x8xbf16>
    %46 = arith.truncf %30 : vector<8x8xf32> to vector<8x8xbf16>
    %cst_30 = arith.constant dense<0.000000e+00> : vector<8x8xf32>
    %47 = tpu.matmul %45, %46, %cst_30 {dimension_numbers = #tpu.dot_dimension_numbers<[1], [0], [0], [1], [0, 0, 1, 1], [], []>} : vector<8x8xbf16>, vector<8x8xbf16>, vector<8x8xf32> -> vector<8x8xf32>
    %48 = arith.truncf %47 : vector<8x8xf32> to vector<8x8xbf16>
    %c0_31 = arith.constant 0 : index
    %c0_32 = arith.constant 0 : index
    %c0_33 = arith.constant 0 : index
    %49 = vector.load %arg8[%c0_31, %c0_32, %c0_33] : memref<1x32x32xbf16, #tpu.memory_space<vmem>>, vector<1x8x32xbf16>
    %50 = vector.shape_cast %49 : vector<1x8x32xbf16> to vector<8x32xbf16>
    %cst_34 = arith.constant dense<0.000000e+00> : vector<8x32xf32>
    %51 = tpu.matmul %48, %50, %cst_34 {dimension_numbers = #tpu.dot_dimension_numbers<[1], [0], [0], [1], [0, 0, 1, 1], [], []>} : vector<8x8xbf16>, vector<8x32xbf16>, vector<8x32xf32> -> vector<8x32xf32>
    %52 = arith.addf %27, %51 : vector<8x32xf32>
    %53 = vector.extract_strided_slice %11 {offsets = [0, 8], sizes = [8, 8], strides = [1, 1]} : vector<8x32xf32> to vector<8x8xf32>
    %54 = vector.extract_strided_slice %20 {offsets = [0, 8], sizes = [8, 8], strides = [1, 1]} : vector<8x32xf32> to vector<8x8xf32>
    %55 = vector.extract_strided_slice %21 {offsets = [0, 8], sizes = [8, 8], strides = [1, 1]} : vector<8x32xf32> to vector<8x8xf32>
    %cst_35 = arith.constant dense<0.000000e+00> : vector<8x8xf32>
    %56 = tpu.matmul %53, %54, %cst_35 {dimension_numbers = #tpu.dot_dimension_numbers<[1], [1], [0], [0], [0, 0, 1, 0], [], []>} : vector<8x8xf32>, vector<8x8xf32>, vector<8x8xf32> -> vector<8x8xf32>
    %cst_36 = arith.constant 0.353553385 : f32
    %57 = vector.broadcast %cst_36 : f32 to vector<8x8xf32>
    %58 = arith.mulf %56, %57 : vector<8x8xf32>
    %59 = arith.addf %58, %26 : vector<8x8xf32>
    %cst_37 = arith.constant dense<0xFF800000> : vector<8xf32>
    %60 = vector.multi_reduction <maximumf>, %59, %cst_37 [1] : vector<8x8xf32> to vector<8xf32>
    %61 = vector.shape_cast %60 : vector<8xf32> to vector<8x1xf32>
    %62 = vector.broadcast %61 : vector<8x1xf32> to vector<8x8xf32>
    %63 = arith.subf %59, %62 : vector<8x8xf32>
    %64 = math.exp %63 : vector<8x8xf32>
    %cst_38 = arith.constant dense<0.000000e+00> : vector<8xf32>
    %65 = vector.multi_reduction <add>, %64, %cst_38 [1] : vector<8x8xf32> to vector<8xf32>
    %66 = vector.shape_cast %65 : vector<8xf32> to vector<8x1xf32>
    %67 = tpu.reciprocal %66 {approx = true} : vector<8x1xf32> -> vector<8x1xf32>
    %68 = vector.broadcast %67 : vector<8x1xf32> to vector<8x8xf32>
    %69 = arith.mulf %64, %68 : vector<8x8xf32>
    %70 = arith.truncf %69 : vector<8x8xf32> to vector<8x8xbf16>
    %71 = arith.truncf %55 : vector<8x8xf32> to vector<8x8xbf16>
    %cst_39 = arith.constant dense<0.000000e+00> : vector<8x8xf32>
    %72 = tpu.matmul %70, %71, %cst_39 {dimension_numbers = #tpu.dot_dimension_numbers<[1], [0], [0], [1], [0, 0, 1, 1], [], []>} : vector<8x8xbf16>, vector<8x8xbf16>, vector<8x8xf32> -> vector<8x8xf32>
    %73 = arith.truncf %72 : vector<8x8xf32> to vector<8x8xbf16>
    %c0_40 = arith.constant 0 : index
    %c8 = arith.constant 8 : index
    %c0_41 = arith.constant 0 : index
    %74 = vector.load %arg8[%c0_40, %c8, %c0_41] : memref<1x32x32xbf16, #tpu.memory_space<vmem>>, vector<1x8x32xbf16>
    %75 = vector.shape_cast %74 : vector<1x8x32xbf16> to vector<8x32xbf16>
    %cst_42 = arith.constant dense<0.000000e+00> : vector<8x32xf32>
    %76 = tpu.matmul %73, %75, %cst_42 {dimension_numbers = #tpu.dot_dimension_numbers<[1], [0], [0], [1], [0, 0, 1, 1], [], []>} : vector<8x8xbf16>, vector<8x32xbf16>, vector<8x32xf32> -> vector<8x32xf32>
    %77 = arith.addf %52, %76 : vector<8x32xf32>
    %78 = vector.extract_strided_slice %11 {offsets = [0, 16], sizes = [8, 8], strides = [1, 1]} : vector<8x32xf32> to vector<8x8xf32>
    %79 = vector.extract_strided_slice %20 {offsets = [0, 16], sizes = [8, 8], strides = [1, 1]} : vector<8x32xf32> to vector<8x8xf32>
    %80 = vector.extract_strided_slice %21 {offsets = [0, 16], sizes = [8, 8], strides = [1, 1]} : vector<8x32xf32> to vector<8x8xf32>
    %cst_43 = arith.constant dense<0.000000e+00> : vector<8x8xf32>
    %81 = tpu.matmul %78, %79, %cst_43 {dimension_numbers = #tpu.dot_dimension_numbers<[1], [1], [0], [0], [0, 0, 1, 0], [], []>} : vector<8x8xf32>, vector<8x8xf32>, vector<8x8xf32> -> vector<8x8xf32>
    %cst_44 = arith.constant 0.353553385 : f32
    %82 = vector.broadcast %cst_44 : f32 to vector<8x8xf32>
    %83 = arith.mulf %81, %82 : vector<8x8xf32>
    %84 = arith.addf %83, %26 : vector<8x8xf32>
    %cst_45 = arith.constant dense<0xFF800000> : vector<8xf32>
    %85 = vector.multi_reduction <maximumf>, %84, %cst_45 [1] : vector<8x8xf32> to vector<8xf32>
    %86 = vector.shape_cast %85 : vector<8xf32> to vector<8x1xf32>
    %87 = vector.broadcast %86 : vector<8x1xf32> to vector<8x8xf32>
    %88 = arith.subf %84, %87 : vector<8x8xf32>
    %89 = math.exp %88 : vector<8x8xf32>
    %cst_46 = arith.constant dense<0.000000e+00> : vector<8xf32>
    %90 = vector.multi_reduction <add>, %89, %cst_46 [1] : vector<8x8xf32> to vector<8xf32>
    %91 = vector.shape_cast %90 : vector<8xf32> to vector<8x1xf32>
    %92 = tpu.reciprocal %91 {approx = true} : vector<8x1xf32> -> vector<8x1xf32>
    %93 = vector.broadcast %92 : vector<8x1xf32> to vector<8x8xf32>
    %94 = arith.mulf %89, %93 : vector<8x8xf32>
    %95 = arith.truncf %94 : vector<8x8xf32> to vector<8x8xbf16>
    %96 = arith.truncf %80 : vector<8x8xf32> to vector<8x8xbf16>
    %cst_47 = arith.constant dense<0.000000e+00> : vector<8x8xf32>
    %97 = tpu.matmul %95, %96, %cst_47 {dimension_numbers = #tpu.dot_dimension_numbers<[1], [0], [0], [1], [0, 0, 1, 1], [], []>} : vector<8x8xbf16>, vector<8x8xbf16>, vector<8x8xf32> -> vector<8x8xf32>
    %98 = arith.truncf %97 : vector<8x8xf32> to vector<8x8xbf16>
    %c0_48 = arith.constant 0 : index
    %c16 = arith.constant 16 : index
    %c0_49 = arith.constant 0 : index
    %99 = vector.load %arg8[%c0_48, %c16, %c0_49] : memref<1x32x32xbf16, #tpu.memory_space<vmem>>, vector<1x8x32xbf16>
    %100 = vector.shape_cast %99 : vector<1x8x32xbf16> to vector<8x32xbf16>
    %cst_50 = arith.constant dense<0.000000e+00> : vector<8x32xf32>
    %101 = tpu.matmul %98, %100, %cst_50 {dimension_numbers = #tpu.dot_dimension_numbers<[1], [0], [0], [1], [0, 0, 1, 1], [], []>} : vector<8x8xbf16>, vector<8x32xbf16>, vector<8x32xf32> -> vector<8x32xf32>
    %102 = arith.addf %77, %101 : vector<8x32xf32>
    %103 = vector.extract_strided_slice %11 {offsets = [0, 24], sizes = [8, 8], strides = [1, 1]} : vector<8x32xf32> to vector<8x8xf32>
    %104 = vector.extract_strided_slice %20 {offsets = [0, 24], sizes = [8, 8], strides = [1, 1]} : vector<8x32xf32> to vector<8x8xf32>
    %105 = vector.extract_strided_slice %21 {offsets = [0, 24], sizes = [8, 8], strides = [1, 1]} : vector<8x32xf32> to vector<8x8xf32>
    %cst_51 = arith.constant dense<0.000000e+00> : vector<8x8xf32>
    %106 = tpu.matmul %103, %104, %cst_51 {dimension_numbers = #tpu.dot_dimension_numbers<[1], [1], [0], [0], [0, 0, 1, 0], [], []>} : vector<8x8xf32>, vector<8x8xf32>, vector<8x8xf32> -> vector<8x8xf32>
    %cst_52 = arith.constant 0.353553385 : f32
    %107 = vector.broadcast %cst_52 : f32 to vector<8x8xf32>
    %108 = arith.mulf %106, %107 : vector<8x8xf32>
    %109 = arith.addf %108, %26 : vector<8x8xf32>
    %cst_53 = arith.constant dense<0xFF800000> : vector<8xf32>
    %110 = vector.multi_reduction <maximumf>, %109, %cst_53 [1] : vector<8x8xf32> to vector<8xf32>
    %111 = vector.shape_cast %110 : vector<8xf32> to vector<8x1xf32>
    %112 = vector.broadcast %111 : vector<8x1xf32> to vector<8x8xf32>
    %113 = arith.subf %109, %112 : vector<8x8xf32>
    %114 = math.exp %113 : vector<8x8xf32>
    %cst_54 = arith.constant dense<0.000000e+00> : vector<8xf32>
    %115 = vector.multi_reduction <add>, %114, %cst_54 [1] : vector<8x8xf32> to vector<8xf32>
    %116 = vector.shape_cast %115 : vector<8xf32> to vector<8x1xf32>
    %117 = tpu.reciprocal %116 {approx = true} : vector<8x1xf32> -> vector<8x1xf32>
    %118 = vector.broadcast %117 : vector<8x1xf32> to vector<8x8xf32>
    %119 = arith.mulf %114, %118 : vector<8x8xf32>
    %120 = arith.truncf %119 : vector<8x8xf32> to vector<8x8xbf16>
    %121 = arith.truncf %105 : vector<8x8xf32> to vector<8x8xbf16>
    %cst_55 = arith.constant dense<0.000000e+00> : vector<8x8xf32>
    %122 = tpu.matmul %120, %121, %cst_55 {dimension_numbers = #tpu.dot_dimension_numbers<[1], [0], [0], [1], [0, 0, 1, 1], [], []>} : vector<8x8xbf16>, vector<8x8xbf16>, vector<8x8xf32> -> vector<8x8xf32>
    %123 = arith.truncf %122 : vector<8x8xf32> to vector<8x8xbf16>
    %c0_56 = arith.constant 0 : index
    %c24 = arith.constant 24 : index
    %c0_57 = arith.constant 0 : index
    %124 = vector.load %arg8[%c0_56, %c24, %c0_57] : memref<1x32x32xbf16, #tpu.memory_space<vmem>>, vector<1x8x32xbf16>
    %125 = vector.shape_cast %124 : vector<1x8x32xbf16> to vector<8x32xbf16>
    %cst_58 = arith.constant dense<0.000000e+00> : vector<8x32xf32>
    %126 = tpu.matmul %123, %125, %cst_58 {dimension_numbers = #tpu.dot_dimension_numbers<[1], [0], [0], [1], [0, 0, 1, 1], [], []>} : vector<8x8xbf16>, vector<8x32xbf16>, vector<8x32xf32> -> vector<8x32xf32>
    %127 = arith.addf %102, %126 : vector<8x32xf32>
    %128 = arith.addf %1, %127 : vector<8x32xf32>
    %cst_59 = arith.constant dense<0.000000e+00> : vector<8xf32>
    %129 = vector.multi_reduction <add>, %128, %cst_59 [1] : vector<8x32xf32> to vector<8xf32>
    %130 = vector.shape_cast %129 : vector<8xf32> to vector<8x1xf32>
    %cst_60 = arith.constant 3.200000e+01 : f32
    %131 = vector.broadcast %cst_60 : f32 to vector<8x1xf32>
    %132 = arith.divf %130, %131 : vector<8x1xf32>
    %133 = vector.broadcast %132 : vector<8x1xf32> to vector<8x32xf32>
    %134 = arith.subf %128, %133 : vector<8x32xf32>
    %135 = arith.mulf %134, %134 : vector<8x32xf32>
    %cst_61 = arith.constant dense<0.000000e+00> : vector<8xf32>
    %136 = vector.multi_reduction <add>, %135, %cst_61 [1] : vector<8x32xf32> to vector<8xf32>
    %137 = vector.shape_cast %136 : vector<8xf32> to vector<8x1xf32>
    %cst_62 = arith.constant 3.200000e+01 : f32
    %138 = vector.broadcast %cst_62 : f32 to vector<8x1xf32>
    %139 = arith.divf %137, %138 : vector<8x1xf32>
    %140 = vector.broadcast %132 : vector<8x1xf32> to vector<8x32xf32>
    %141 = arith.subf %128, %140 : vector<8x32xf32>
    %cst_63 = arith.constant 9.99999974E-6 : f32
    %142 = vector.broadcast %cst_63 : f32 to vector<8x1xf32>
    %143 = arith.addf %139, %142 : vector<8x1xf32>
    %144 = math.rsqrt %143 : vector<8x1xf32>
    %145 = vector.broadcast %144 : vector<8x1xf32> to vector<8x32xf32>
    %146 = arith.mulf %141, %145 : vector<8x32xf32>
    %c0_64 = arith.constant 0 : index
    %c0_65 = arith.constant 0 : index
    %c0_66 = arith.constant 0 : index
    %147 = vector.load %arg9[%c0_64, %c0_65, %c0_66] : memref<1x1x32xf32, #tpu.memory_space<vmem>>, vector<1x1x32xf32>
    %148 = vector.shape_cast %147 : vector<1x1x32xf32> to vector<1x32xf32>
    %149 = vector.broadcast %148 : vector<1x32xf32> to vector<8x32xf32>
    %150 = arith.mulf %146, %149 : vector<8x32xf32>
    %c0_67 = arith.constant 0 : index
    %c0_68 = arith.constant 0 : index
    %c0_69 = arith.constant 0 : index
    %151 = vector.load %arg10[%c0_67, %c0_68, %c0_69] : memref<1x1x32xf32, #tpu.memory_space<vmem>>, vector<1x1x32xf32>
    %152 = vector.shape_cast %151 : vector<1x1x32xf32> to vector<1x32xf32>
    %153 = vector.broadcast %152 : vector<1x32xf32> to vector<8x32xf32>
    %154 = arith.addf %150, %153 : vector<8x32xf32>
    %c0_70 = arith.constant 0 : index
    %c0_71 = arith.constant 0 : index
    %c0_72 = arith.constant 0 : index
    %c0_73 = arith.constant 0 : index
    %155 = vector.load %arg13[%c0_70, %c0_71, %c0_72, %c0_73] : memref<1x1x8x32xf32, #tpu.memory_space<vmem>>, vector<1x1x8x32xf32>
    %156 = vector.shape_cast %155 : vector<1x1x8x32xf32> to vector<8x32xf32>
    %157 = vector.shape_cast %154 : vector<8x32xf32> to vector<1x1x8x32xf32>
    tpu.vector_store %arg13[%c0_70, %c0_71, %c0_72, %c0_73], %157 {strides = array<i32>} : memref<1x1x8x32xf32, #tpu.memory_space<vmem>>, vector<1x1x8x32xf32>,
    return
  }
  func.func @transform_0(%arg0: i32, %arg1: i32) -> (i32, i32, i32, i32) {
    %c0_i32 = arith.constant 0 : i32
    %c0_i32_0 = arith.constant 0 : i32
    %c0_i32_1 = arith.constant 0 : i32
    return %arg0, %arg1, %c0_i32, %c0_i32_0 : i32, i32, i32, i32
  }
  func.func @transform_1(%arg0: i32, %arg1: i32) -> (i32, i32, i32, i32) {
    %c0_i32 = arith.constant 0 : i32
    %c0_i32_0 = arith.constant 0 : i32
    %c0_i32_1 = arith.constant 0 : i32
    return %arg0, %arg1, %c0_i32, %c0_i32_0 : i32, i32, i32, i32
  }
  func.func @transform_2(%arg0: i32, %arg1: i32) -> (i32, i32, i32) {
    %c0_i32 = arith.constant 0 : i32
    %c0_i32_0 = arith.constant 0 : i32
    %c0_i32_1 = arith.constant 0 : i32
    return %arg0, %c0_i32, %c0_i32_0 : i32, i32, i32
  }
  func.func @transform_3(%arg0: i32, %arg1: i32) -> (i32, i32, i32) {
    %c0_i32 = arith.constant 0 : i32
    %c0_i32_0 = arith.constant 0 : i32
    %c0_i32_1 = arith.constant 0 : i32
    return %arg0, %c0_i32, %c0_i32_0 : i32, i32, i32
  }
  func.func @transform_4(%arg0: i32, %arg1: i32) -> (i32, i32, i32) {
    %c0_i32 = arith.constant 0 : i32
    %c0_i32_0 = arith.constant 0 : i32
    %c0_i32_1 = arith.constant 0 : i32
    return %arg0, %c0_i32, %c0_i32_0 : i32, i32, i32
  }
  func.func @transform_5(%arg0: i32, %arg1: i32) -> (i32, i32, i32) {
    %c0_i32 = arith.constant 0 : i32
    %c0_i32_0 = arith.constant 0 : i32
    %c0_i32_1 = arith.constant 0 : i32
    return %arg0, %c0_i32, %c0_i32_0 : i32, i32, i32
  }
  func.func @transform_6(%arg0: i32, %arg1: i32) -> (i32, i32, i32) {
    %c0_i32 = arith.constant 0 : i32
    %c0_i32_0 = arith.constant 0 : i32
    %c0_i32_1 = arith.constant 0 : i32
    return %arg0, %c0_i32, %c0_i32_0 : i32, i32, i32
  }
  func.func @transform_7(%arg0: i32, %arg1: i32) -> (i32, i32, i32) {
    %c0_i32 = arith.constant 0 : i32
    %c0_i32_0 = arith.constant 0 : i32
    %c0_i32_1 = arith.constant 0 : i32
    return %arg0, %c0_i32, %c0_i32_0 : i32, i32, i32
  }
  func.func @transform_8(%arg0: i32, %arg1: i32) -> (i32, i32, i32) {
    %c0_i32 = arith.constant 0 : i32
    %c0_i32_0 = arith.constant 0 : i32
    %c0_i32_1 = arith.constant 0 : i32
    return %arg0, %c0_i32, %c0_i32_0 : i32, i32, i32
  }
  func.func @transform_9(%arg0: i32, %arg1: i32) -> (i32, i32) {
    %c0_i32 = arith.constant 0 : i32
    %c0_i32_0 = arith.constant 0 : i32
    %c0_i32_1 = arith.constant 0 : i32
    return %c0_i32, %c0_i32_0 : i32, i32
  }
  func.func @transform_10(%arg0: i32, %arg1: i32) -> (i32, i32, i32) {
    %c0_i32 = arith.constant 0 : i32
    %c0_i32_0 = arith.constant 0 : i32
    %c0_i32_1 = arith.constant 0 : i32
    return %arg1, %c0_i32, %c0_i32_0 : i32, i32, i32
  }
  func.func @transform_11(%arg0: i32, %arg1: i32) -> (i32, i32, i32, i32) {
    %c0_i32 = arith.constant 0 : i32
    %c0_i32_0 = arith.constant 0 : i32
    %c0_i32_1 = arith.constant 0 : i32
    return %arg0, %arg1, %c0_i32, %c0_i32_0 : i32, i32, i32, i32
  }
}

module attributes {stable_mosaic.version = 11 : i64} {
  func.func @_mha_resid_ln_kernel(%arg0: i32, %arg1: i32, %arg2: memref<1x1x8x32xf32, #tpu.memory_space<vmem>>, %arg3: memref<1x1x8x32xf32, #tpu.memory_space<vmem>>, %arg4: memref<1x32x32xbf16, #tpu.memory_space<vmem>>, %arg5: memref<1x1x32xf32, #tpu.memory_space<vmem>>, %arg6: memref<1x32x64xbf16, #tpu.memory_space<vmem>>, %arg7: memref<1x1x64xf32, #tpu.memory_space<vmem>>, %arg8: memref<1x32x32xbf16, #tpu.memory_space<vmem>>, %arg9: memref<1x1x32xf32, #tpu.memory_space<vmem>>, %arg10: memref<1x1x32xf32, #tpu.memory_space<vmem>>, %arg11: memref<8x8xf32, #tpu.memory_space<vmem>>, %arg12: memref<1x1x8xf32, #tpu.memory_space<vmem>>, %arg13: memref<1x1x8x32xf32, #tpu.memory_space<vmem>>) attributes {dimension_semantics = [#tpu.dimension_semantics<parallel>, #tpu.dimension_semantics<parallel>], iteration_bounds = array<i64: 1, 2>, scalar_prefetch = 0 : i64, scratch_operands = 0 : i64, tpu.core_type = #tpu.core_type<tc>, window_params = [{transform_indices = @transform_0, window_bounds = array<i64: 1, 1, 8, 32>}, {transform_indices = @transform_1, window_bounds = array<i64: 1, 1, 8, 32>}, {transform_indices = @transform_2, window_bounds = array<i64: 1, 32, 32>}, {transform_indices = @transform_3, window_bounds = array<i64: 1, 1, 32>}, {transform_indices = @transform_4, window_bounds = array<i64: 1, 32, 64>}, {transform_indices = @transform_5, window_bounds = array<i64: 1, 1, 64>}, {transform_indices = @transform_6, window_bounds = array<i64: 1, 32, 32>}, {transform_indices = @transform_7, window_bounds = array<i64: 1, 1, 32>}, {transform_indices = @transform_8, window_bounds = array<i64: 1, 1, 32>}, {pipeline_mode = #tpu.pipeline_mode<synchronous>, transform_indices = @transform_9, window_bounds = array<i64: 8, 8>}, {transform_indices = @transform_10, window_bounds = array<i64: 1, 1, 8>}, {transform_indices = @transform_11, window_bounds = array<i64: 1, 1, 8, 32>}]} {
    %c0 = arith.constant 0 : index
    %c0_0 = arith.constant 0 : index
    %c0_1 = arith.constant 0 : index
    %c0_2 = arith.constant 0 : index
    %0 = vector.load %arg2[%c0, %c0_0, %c0_1, %c0_2] : memref<1x1x8x32xf32, #tpu.memory_space<vmem>>, vector<1x1x8x32xf32>
    %1 = vector.shape_cast %0 : vector<1x1x8x32xf32> to vector<8x32xf32>
    %c0_3 = arith.constant 0 : index
    %c0_4 = arith.constant 0 : index
    %c0_5 = arith.constant 0 : index
    %c0_6 = arith.constant 0 : index
    %2 = vector.load %arg3[%c0_3, %c0_4, %c0_5, %c0_6] : memref<1x1x8x32xf32, #tpu.memory_space<vmem>>, vector<1x1x8x32xf32>
    %3 = vector.shape_cast %2 : vector<1x1x8x32xf32> to vector<8x32xf32>
    %4 = arith.truncf %1 : vector<8x32xf32> to vector<8x32xbf16>
    %c0_7 = arith.constant 0 : index
    %c0_8 = arith.constant 0 : index
    %c0_9 = arith.constant 0 : index
    %5 = vector.load %arg4[%c0_7, %c0_8, %c0_9] : memref<1x32x32xbf16, #tpu.memory_space<vmem>>, vector<1x32x32xbf16>
    %6 = vector.shape_cast %5 : vector<1x32x32xbf16> to vector<32x32xbf16>
    %cst = arith.constant dense<0.000000e+00> : vector<8x32xf32>
    %7 = tpu.matmul %4, %6, %cst {dimension_numbers = #tpu.dot_dimension_numbers<[1], [0], [0], [1], [0, 0, 1, 1], [], []>} : vector<8x32xbf16>, vector<32x32xbf16>, vector<8x32xf32> -> vector<8x32xf32>
    %c0_10 = arith.constant 0 : index
    %c0_11 = arith.constant 0 : index
    %c0_12 = arith.constant 0 : index
    %8 = vector.load %arg5[%c0_10, %c0_11, %c0_12] : memref<1x1x32xf32, #tpu.memory_space<vmem>>, vector<1x1x32xf32>
    %9 = vector.shape_cast %8 : vector<1x1x32xf32> to vector<1x32xf32>
    %10 = vector.broadcast %9 : vector<1x32xf32> to vector<8x32xf32>
    %11 = arith.addf %7, %10 : vector<8x32xf32>
    %12 = arith.truncf %3 : vector<8x32xf32> to vector<8x32xbf16>
    %c0_13 = arith.constant 0 : index
    %c0_14 = arith.constant 0 : index
    %c0_15 = arith.constant 0 : index
    %13 = vector.load %arg6[%c0_13, %c0_14, %c0_15] : memref<1x32x64xbf16, #tpu.memory_space<vmem>>, vector<1x32x64xbf16>
    %14 = vector.shape_cast %13 : vector<1x32x64xbf16> to vector<32x64xbf16>
    %cst_16 = arith.constant dense<0.000000e+00> : vector<8x64xf32>
    %15 = tpu.matmul %12, %14, %cst_16 {dimension_numbers = #tpu.dot_dimension_numbers<[1], [0], [0], [1], [0, 0, 1, 1], [], []>} : vector<8x32xbf16>, vector<32x64xbf16>, vector<8x64xf32> -> vector<8x64xf32>
    %c0_17 = arith.constant 0 : index
    %c0_18 = arith.constant 0 : index
    %c0_19 = arith.constant 0 : index
    %16 = vector.load %arg7[%c0_17, %c0_18, %c0_19] : memref<1x1x64xf32, #tpu.memory_space<vmem>>, vector<1x1x64xf32>
    %17 = vector.shape_cast %16 : vector<1x1x64xf32> to vector<1x64xf32>
    %18 = vector.broadcast %17 : vector<1x64xf32> to vector<8x64xf32>
    %19 = arith.addf %15, %18 : vector<8x64xf32>
    %20 = vector.extract_strided_slice %19 {offsets = [0, 0], sizes = [8, 32], strides = [1, 1]} : vector<8x64xf32> to vector<8x32xf32>
    %21 = vector.extract_strided_slice %19 {offsets = [0, 32], sizes = [8, 32], strides = [1, 1]} : vector<8x64xf32> to vector<8x32xf32>
    %c0_20 = arith.constant 0 : index
    %c0_21 = arith.constant 0 : index
    %22 = vector.load %arg11[%c0_20, %c0_21] : memref<8x8xf32, #tpu.memory_space<vmem>>, vector<8x8xf32>
    %c0_22 = arith.constant 0 : index
    %c0_23 = arith.constant 0 : index
    %c0_24 = arith.constant 0 : index
    %23 = vector.load %arg12[%c0_22, %c0_23, %c0_24] : memref<1x1x8xf32, #tpu.memory_space<vmem>>, vector<1x1x8xf32>
    %24 = vector.shape_cast %23 : vector<1x1x8xf32> to vector<1x8xf32>
    %25 = vector.broadcast %24 : vector<1x8xf32> to vector<8x8xf32>
    %26 = arith.addf %22, %25 : vector<8x8xf32>
    %cst_25 = arith.constant 0.000000e+00 : f32
    %27 = vector.broadcast %cst_25 : f32 to vector<8x32xf32>
    %28 = vector.extract_strided_slice %11 {offsets = [0, 0], sizes = [8, 8], strides = [1, 1]} : vector<8x32xf32> to vector<8x8xf32>
    %29 = vector.extract_strided_slice %20 {offsets = [0, 0], sizes = [8, 8], strides = [1, 1]} : vector<8x32xf32> to vector<8x8xf32>
    %30 = vector.extract_strided_slice %21 {offsets = [0, 0], sizes = [8, 8], strides = [1, 1]} : vector<8x32xf32> to vector<8x8xf32>
    %cst_26 = arith.constant dense<0.000000e+00> : vector<8x8xf32>
    %31 = tpu.matmul %28, %29, %cst_26 {dimension_numbers = #tpu.dot_dimension_numbers<[1], [1], [0], [0], [0, 0, 1, 0], [], []>} : vector<8x8xf32>, vector<8x8xf32>, vector<8x8xf32> -> vector<8x8xf32>
    %cst_27 = arith.constant 0.353553385 : f32
    %32 = vector.broadcast %cst_27 : f32 to vector<8x8xf32>
    %33 = arith.mulf %31, %32 : vector<8x8xf32>
    %34 = arith.addf %33, %26 : vector<8x8xf32>
    %cst_28 = arith.constant dense<0xFF800000> : vector<8xf32>
    %35 = vector.multi_reduction <maximumf>, %34, %cst_28 [1] : vector<8x8xf32> to vector<8xf32>
    %36 = vector.shape_cast %35 : vector<8xf32> to vector<8x1xf32>
    %37 = vector.broadcast %36 : vector<8x1xf32> to vector<8x8xf32>
    %38 = arith.subf %34, %37 : vector<8x8xf32>
    %39 = math.exp %38 : vector<8x8xf32>
    %cst_29 = arith.constant dense<0.000000e+00> : vector<8xf32>
    %40 = vector.multi_reduction <add>, %39, %cst_29 [1] : vector<8x8xf32> to vector<8xf32>
    %41 = vector.shape_cast %40 : vector<8xf32> to vector<8x1xf32>
    %42 = tpu.reciprocal %41 {approx = true} : vector<8x1xf32> -> vector<8x1xf32>
    %43 = vector.broadcast %42 : vector<8x1xf32> to vector<8x8xf32>
    %44 = arith.mulf %39, %43 : vector<8x8xf32>
    %45 = arith.truncf %44 : vector<8x8xf32> to vector<8x8xbf16>
    %46 = arith.truncf %30 : vector<8x8xf32> to vector<8x8xbf16>
    %cst_30 = arith.constant dense<0.000000e+00> : vector<8x8xf32>
    %47 = tpu.matmul %45, %46, %cst_30 {dimension_numbers = #tpu.dot_dimension_numbers<[1], [0], [0], [1], [0, 0, 1, 1], [], []>} : vector<8x8xbf16>, vector<8x8xbf16>, vector<8x8xf32> -> vector<8x8xf32>
    %48 = arith.truncf %47 : vector<8x8xf32> to vector<8x8xbf16>
    %c0_31 = arith.constant 0 : index
    %c0_32 = arith.constant 0 : index
    %c0_33 = arith.constant 0 : index
    %49 = vector.load %arg8[%c0_31, %c0_32, %c0_33] : memref<1x32x32xbf16, #tpu.memory_space<vmem>>, vector<1x8x32xbf16>
    %50 = vector.shape_cast %49 : vector<1x8x32xbf16> to vector<8x32xbf16>
    %cst_34 = arith.constant dense<0.000000e+00> : vector<8x32xf32>
    %51 = tpu.matmul %48, %50, %cst_34 {dimension_numbers = #tpu.dot_dimension_numbers<[1], [0], [0], [1], [0, 0, 1, 1], [], []>} : vector<8x8xbf16>, vector<8x32xbf16>, vector<8x32xf32> -> vector<8x32xf32>
    %52 = arith.addf %27, %51 : vector<8x32xf32>
    %53 = vector.extract_strided_slice %11 {offsets = [0, 8], sizes = [8, 8], strides = [1, 1]} : vector<8x32xf32> to vector<8x8xf32>
    %54 = vector.extract_strided_slice %20 {offsets = [0, 8], sizes = [8, 8], strides = [1, 1]} : vector<8x32xf32> to vector<8x8xf32>
    %55 = vector.extract_strided_slice %21 {offsets = [0, 8], sizes = [8, 8], strides = [1, 1]} : vector<8x32xf32> to vector<8x8xf32>
    %cst_35 = arith.constant dense<0.000000e+00> : vector<8x8xf32>
    %56 = tpu.matmul %53, %54, %cst_35 {dimension_numbers = #tpu.dot_dimension_numbers<[1], [1], [0], [0], [0, 0, 1, 0], [], []>} : vector<8x8xf32>, vector<8x8xf32>, vector<8x8xf32> -> vector<8x8xf32>
    %cst_36 = arith.constant 0.353553385 : f32
    %57 = vector.broadcast %cst_36 : f32 to vector<8x8xf32>
    %58 = arith.mulf %56, %57 : vector<8x8xf32>
    %59 = arith.addf %58, %26 : vector<8x8xf32>
    %cst_37 = arith.constant dense<0xFF800000> : vector<8xf32>
    %60 = vector.multi_reduction <maximumf>, %59, %cst_37 [1] : vector<8x8xf32> to vector<8xf32>
    %61 = vector.shape_cast %60 : vector<8xf32> to vector<8x1xf32>
    %62 = vector.broadcast %61 : vector<8x1xf32> to vector<8x8xf32>
    %63 = arith.subf %59, %62 : vector<8x8xf32>
    %64 = math.exp %63 : vector<8x8xf32>
    %cst_38 = arith.constant dense<0.000000e+00> : vector<8xf32>
    %65 = vector.multi_reduction <add>, %64, %cst_38 [1] : vector<8x8xf32> to vector<8xf32>
    %66 = vector.shape_cast %65 : vector<8xf32> to vector<8x1xf32>
    %67 = tpu.reciprocal %66 {approx = true} : vector<8x1xf32> -> vector<8x1xf32>
    %68 = vector.broadcast %67 : vector<8x1xf32> to vector<8x8xf32>
    %69 = arith.mulf %64, %68 : vector<8x8xf32>
    %70 = arith.truncf %69 : vector<8x8xf32> to vector<8x8xbf16>
    %71 = arith.truncf %55 : vector<8x8xf32> to vector<8x8xbf16>
    %cst_39 = arith.constant dense<0.000000e+00> : vector<8x8xf32>
    %72 = tpu.matmul %70, %71, %cst_39 {dimension_numbers = #tpu.dot_dimension_numbers<[1], [0], [0], [1], [0, 0, 1, 1], [], []>} : vector<8x8xbf16>, vector<8x8xbf16>, vector<8x8xf32> -> vector<8x8xf32>
    %73 = arith.truncf %72 : vector<8x8xf32> to vector<8x8xbf16>
    %c0_40 = arith.constant 0 : index
    %c8 = arith.constant 8 : index
    %c0_41 = arith.constant 0 : index
    %74 = vector.load %arg8[%c0_40, %c8, %c0_41] : memref<1x32x32xbf16, #tpu.memory_space<vmem>>, vector<1x8x32xbf16>
    %75 = vector.shape_cast %74 : vector<1x8x32xbf16> to vector<8x32xbf16>
    %cst_42 = arith.constant dense<0.000000e+00> : vector<8x32xf32>
    %76 = tpu.matmul %73, %75, %cst_42 {dimension_numbers = #tpu.dot_dimension_numbers<[1], [0], [0], [1], [0, 0, 1, 1], [], []>} : vector<8x8xbf16>, vector<8x32xbf16>, vector<8x32xf32> -> vector<8x32xf32>
    %77 = arith.addf %52, %76 : vector<8x32xf32>
    %78 = vector.extract_strided_slice %11 {offsets = [0, 16], sizes = [8, 8], strides = [1, 1]} : vector<8x32xf32> to vector<8x8xf32>
    %79 = vector.extract_strided_slice %20 {offsets = [0, 16], sizes = [8, 8], strides = [1, 1]} : vector<8x32xf32> to vector<8x8xf32>
    %80 = vector.extract_strided_slice %21 {offsets = [0, 16], sizes = [8, 8], strides = [1, 1]} : vector<8x32xf32> to vector<8x8xf32>
    %cst_43 = arith.constant dense<0.000000e+00> : vector<8x8xf32>
    %81 = tpu.matmul %78, %79, %cst_43 {dimension_numbers = #tpu.dot_dimension_numbers<[1], [1], [0], [0], [0, 0, 1, 0], [], []>} : vector<8x8xf32>, vector<8x8xf32>, vector<8x8xf32> -> vector<8x8xf32>
    %cst_44 = arith.constant 0.353553385 : f32
    %82 = vector.broadcast %cst_44 : f32 to vector<8x8xf32>
    %83 = arith.mulf %81, %82 : vector<8x8xf32>
    %84 = arith.addf %83, %26 : vector<8x8xf32>
    %cst_45 = arith.constant dense<0xFF800000> : vector<8xf32>
    %85 = vector.multi_reduction <maximumf>, %84, %cst_45 [1] : vector<8x8xf32> to vector<8xf32>
    %86 = vector.shape_cast %85 : vector<8xf32> to vector<8x1xf32>
    %87 = vector.broadcast %86 : vector<8x1xf32> to vector<8x8xf32>
    %88 = arith.subf %84, %87 : vector<8x8xf32>
    %89 = math.exp %88 : vector<8x8xf32>
    %cst_46 = arith.constant dense<0.000000e+00> : vector<8xf32>
    %90 = vector.multi_reduction <add>, %89, %cst_46 [1] : vector<8x8xf32> to vector<8xf32>
    %91 = vector.shape_cast %90 : vector<8xf32> to vector<8x1xf32>
    %92 = tpu.reciprocal %91 {approx = true} : vector<8x1xf32> -> vector<8x1xf32>
    %93 = vector.broadcast %92 : vector<8x1xf32> to vector<8x8xf32>
    %94 = arith.mulf %89, %93 : vector<8x8xf32>
    %95 = arith.truncf %94 : vector<8x8xf32> to vector<8x8xbf16>
    %96 = arith.truncf %80 : vector<8x8xf32> to vector<8x8xbf16>
    %cst_47 = arith.constant dense<0.000000e+00> : vector<8x8xf32>
    %97 = tpu.matmul %95, %96, %cst_47 {dimension_numbers = #tpu.dot_dimension_numbers<[1], [0], [0], [1], [0, 0, 1, 1], [], []>} : vector<8x8xbf16>, vector<8x8xbf16>, vector<8x8xf32> -> vector<8x8xf32>
    %98 = arith.truncf %97 : vector<8x8xf32> to vector<8x8xbf16>
    %c0_48 = arith.constant 0 : index
    %c16 = arith.constant 16 : index
    %c0_49 = arith.constant 0 : index
    %99 = vector.load %arg8[%c0_48, %c16, %c0_49] : memref<1x32x32xbf16, #tpu.memory_space<vmem>>, vector<1x8x32xbf16>
    %100 = vector.shape_cast %99 : vector<1x8x32xbf16> to vector<8x32xbf16>
    %cst_50 = arith.constant dense<0.000000e+00> : vector<8x32xf32>
    %101 = tpu.matmul %98, %100, %cst_50 {dimension_numbers = #tpu.dot_dimension_numbers<[1], [0], [0], [1], [0, 0, 1, 1], [], []>} : vector<8x8xbf16>, vector<8x32xbf16>, vector<8x32xf32> -> vector<8x32xf32>
    %102 = arith.addf %77, %101 : vector<8x32xf32>
    %103 = vector.extract_strided_slice %11 {offsets = [0, 24], sizes = [8, 8], strides = [1, 1]} : vector<8x32xf32> to vector<8x8xf32>
    %104 = vector.extract_strided_slice %20 {offsets = [0, 24], sizes = [8, 8], strides = [1, 1]} : vector<8x32xf32> to vector<8x8xf32>
    %105 = vector.extract_strided_slice %21 {offsets = [0, 24], sizes = [8, 8], strides = [1, 1]} : vector<8x32xf32> to vector<8x8xf32>
    %cst_51 = arith.constant dense<0.000000e+00> : vector<8x8xf32>
    %106 = tpu.matmul %103, %104, %cst_51 {dimension_numbers = #tpu.dot_dimension_numbers<[1], [1], [0], [0], [0, 0, 1, 0], [], []>} : vector<8x8xf32>, vector<8x8xf32>, vector<8x8xf32> -> vector<8x8xf32>
    %cst_52 = arith.constant 0.353553385 : f32
    %107 = vector.broadcast %cst_52 : f32 to vector<8x8xf32>
    %108 = arith.mulf %106, %107 : vector<8x8xf32>
    %109 = arith.addf %108, %26 : vector<8x8xf32>
    %cst_53 = arith.constant dense<0xFF800000> : vector<8xf32>
    %110 = vector.multi_reduction <maximumf>, %109, %cst_53 [1] : vector<8x8xf32> to vector<8xf32>
    %111 = vector.shape_cast %110 : vector<8xf32> to vector<8x1xf32>
    %112 = vector.broadcast %111 : vector<8x1xf32> to vector<8x8xf32>
    %113 = arith.subf %109, %112 : vector<8x8xf32>
    %114 = math.exp %113 : vector<8x8xf32>
    %cst_54 = arith.constant dense<0.000000e+00> : vector<8xf32>
    %115 = vector.multi_reduction <add>, %114, %cst_54 [1] : vector<8x8xf32> to vector<8xf32>
    %116 = vector.shape_cast %115 : vector<8xf32> to vector<8x1xf32>
    %117 = tpu.reciprocal %116 {approx = true} : vector<8x1xf32> -> vector<8x1xf32>
    %118 = vector.broadcast %117 : vector<8x1xf32> to vector<8x8xf32>
    %119 = arith.mulf %114, %118 : vector<8x8xf32>
    %120 = arith.truncf %119 : vector<8x8xf32> to vector<8x8xbf16>
    %121 = arith.truncf %105 : vector<8x8xf32> to vector<8x8xbf16>
    %cst_55 = arith.constant dense<0.000000e+00> : vector<8x8xf32>
    %122 = tpu.matmul %120, %121, %cst_55 {dimension_numbers = #tpu.dot_dimension_numbers<[1], [0], [0], [1], [0, 0, 1, 1], [], []>} : vector<8x8xbf16>, vector<8x8xbf16>, vector<8x8xf32> -> vector<8x8xf32>
    %123 = arith.truncf %122 : vector<8x8xf32> to vector<8x8xbf16>
    %c0_56 = arith.constant 0 : index
    %c24 = arith.constant 24 : index
    %c0_57 = arith.constant 0 : index
    %124 = vector.load %arg8[%c0_56, %c24, %c0_57] : memref<1x32x32xbf16, #tpu.memory_space<vmem>>, vector<1x8x32xbf16>
    %125 = vector.shape_cast %124 : vector<1x8x32xbf16> to vector<8x32xbf16>
    %cst_58 = arith.constant dense<0.000000e+00> : vector<8x32xf32>
    %126 = tpu.matmul %123, %125, %cst_58 {dimension_numbers = #tpu.dot_dimension_numbers<[1], [0], [0], [1], [0, 0, 1, 1], [], []>} : vector<8x8xbf16>, vector<8x32xbf16>, vector<8x32xf32> -> vector<8x32xf32>
    %127 = arith.addf %102, %126 : vector<8x32xf32>
    %128 = arith.addf %1, %127 : vector<8x32xf32>
    %cst_59 = arith.constant dense<0.000000e+00> : vector<8xf32>
    %129 = vector.multi_reduction <add>, %128, %cst_59 [1] : vector<8x32xf32> to vector<8xf32>
    %130 = vector.shape_cast %129 : vector<8xf32> to vector<8x1xf32>
    %cst_60 = arith.constant 3.200000e+01 : f32
    %131 = vector.broadcast %cst_60 : f32 to vector<8x1xf32>
    %132 = arith.divf %130, %131 : vector<8x1xf32>
    %133 = vector.broadcast %132 : vector<8x1xf32> to vector<8x32xf32>
    %134 = arith.subf %128, %133 : vector<8x32xf32>
    %135 = arith.mulf %134, %134 : vector<8x32xf32>
    %cst_61 = arith.constant dense<0.000000e+00> : vector<8xf32>
    %136 = vector.multi_reduction <add>, %135, %cst_61 [1] : vector<8x32xf32> to vector<8xf32>
    %137 = vector.shape_cast %136 : vector<8xf32> to vector<8x1xf32>
    %cst_62 = arith.constant 3.200000e+01 : f32
    %138 = vector.broadcast %cst_62 : f32 to vector<8x1xf32>
    %139 = arith.divf %137, %138 : vector<8x1xf32>
    %140 = vector.broadcast %132 : vector<8x1xf32> to vector<8x32xf32>
    %141 = arith.subf %128, %140 : vector<8x32xf32>
    %cst_63 = arith.constant 9.99999974E-6 : f32
    %142 = vector.broadcast %cst_63 : f32 to vector<8x1xf32>
    %143 = arith.addf %139, %142 : vector<8x1xf32>
    %144 = math.rsqrt %143 : vector<8x1xf32>
    %145 = vector.broadcast %144 : vector<8x1xf32> to vector<8x32xf32>
    %146 = arith.mulf %141, %145 : vector<8x32xf32>
    %c0_64 = arith.constant 0 : index
    %c0_65 = arith.constant 0 : index
    %c0_66 = arith.constant 0 : index
    %147 = vector.load %arg9[%c0_64, %c0_65, %c0_66] : memref<1x1x32xf32, #tpu.memory_space<vmem>>, vector<1x1x32xf32>
    %148 = vector.shape_cast %147 : vector<1x1x32xf32> to vector<1x32xf32>
    %149 = vector.broadcast %148 : vector<1x32xf32> to vector<8x32xf32>
    %150 = arith.mulf %146, %149 : vector<8x32xf32>
    %c0_67 = arith.constant 0 : index
    %c0_68 = arith.constant 0 : index
    %c0_69 = arith.constant 0 : index
    %151 = vector.load %arg10[%c0_67, %c0_68, %c0_69] : memref<1x1x32xf32, #tpu.memory_space<vmem>>, vector<1x1x32xf32>
    %152 = vector.shape_cast %151 : vector<1x1x32xf32> to vector<1x32xf32>
    %153 = vector.broadcast %152 : vector<1x32xf32> to vector<8x32xf32>
    %154 = arith.addf %150, %153 : vector<8x32xf32>
    %c0_70 = arith.constant 0 : index
    %c0_71 = arith.constant 0 : index
    %c0_72 = arith.constant 0 : index
    %c0_73 = arith.constant 0 : index
    %155 = vector.load %arg13[%c0_70, %c0_71, %c0_72, %c0_73] : memref<1x1x8x32xf32, #tpu.memory_space<vmem>>, vector<1x1x8x32xf32>
    %156 = vector.shape_cast %155 : vector<1x1x8x32xf32> to vector<8x32xf32>
    %157 = vector.shape_cast %154 : vector<8x32xf32> to vector<1x1x8x32xf32>
    tpu.vector_store %arg13[%c0_70, %c0_71, %c0_72, %c0_73], %157 {strides = array<i32>} : memref<1x1x8x32xf32, #tpu.memory_space<vmem>>, vector<1x1x8x32xf32>,
    return
  }
  func.func @transform_0(%arg0: i32, %arg1: i32) -> (i32, i32, i32, i32) {
    %c0_i32 = arith.constant 0 : i32
    %c0_i32_0 = arith.constant 0 : i32
    %c0_i32_1 = arith.constant 0 : i32
    return %arg0, %arg1, %c0_i32, %c0_i32_0 : i32, i32, i32, i32
  }
  func.func @transform_1(%arg0: i32, %arg1: i32) -> (i32, i32, i32, i32) {
    %c0_i32 = arith.constant 0 : i32
    %c0_i32_0 = arith.constant 0 : i32
    %c0_i32_1 = arith.constant 0 : i32
    return %arg0, %arg1, %c0_i32, %c0_i32_0 : i32, i32, i32, i32
  }
  func.func @transform_2(%arg0: i32, %arg1: i32) -> (i32, i32, i32) {
    %c0_i32 = arith.constant 0 : i32
    %c0_i32_0 = arith.constant 0 : i32
    %c0_i32_1 = arith.constant 0 : i32
    return %arg0, %c0_i32, %c0_i32_0 : i32, i32, i32
  }
  func.func @transform_3(%arg0: i32, %arg1: i32) -> (i32, i32, i32) {
    %c0_i32 = arith.constant 0 : i32
    %c0_i32_0 = arith.constant 0 : i32
    %c0_i32_1 = arith.constant 0 : i32
    return %arg0, %c0_i32, %c0_i32_0 : i32, i32, i32
  }
  func.func @transform_4(%arg0: i32, %arg1: i32) -> (i32, i32, i32) {
    %c0_i32 = arith.constant 0 : i32
    %c0_i32_0 = arith.constant 0 : i32
    %c0_i32_1 = arith.constant 0 : i32
    return %arg0, %c0_i32, %c0_i32_0 : i32, i32, i32
  }
  func.func @transform_5(%arg0: i32, %arg1: i32) -> (i32, i32, i32) {
    %c0_i32 = arith.constant 0 : i32
    %c0_i32_0 = arith.constant 0 : i32
    %c0_i32_1 = arith.constant 0 : i32
    return %arg0, %c0_i32, %c0_i32_0 : i32, i32, i32
  }
  func.func @transform_6(%arg0: i32, %arg1: i32) -> (i32, i32, i32) {
    %c0_i32 = arith.constant 0 : i32
    %c0_i32_0 = arith.constant 0 : i32
    %c0_i32_1 = arith.constant 0 : i32
    return %arg0, %c0_i32, %c0_i32_0 : i32, i32, i32
  }
  func.func @transform_7(%arg0: i32, %arg1: i32) -> (i32, i32, i32) {
    %c0_i32 = arith.constant 0 : i32
    %c0_i32_0 = arith.constant 0 : i32
    %c0_i32_1 = arith.constant 0 : i32
    return %arg0, %c0_i32, %c0_i32_0 : i32, i32, i32
  }
  func.func @transform_8(%arg0: i32, %arg1: i32) -> (i32, i32, i32) {
    %c0_i32 = arith.constant 0 : i32
    %c0_i32_0 = arith.constant 0 : i32
    %c0_i32_1 = arith.constant 0 : i32
    return %arg0, %c0_i32, %c0_i32_0 : i32, i32, i32
  }
  func.func @transform_9(%arg0: i32, %arg1: i32) -> (i32, i32) {
    %c0_i32 = arith.constant 0 : i32
    %c0_i32_0 = arith.constant 0 : i32
    %c0_i32_1 = arith.constant 0 : i32
    return %c0_i32, %c0_i32_0 : i32, i32
  }
  func.func @transform_10(%arg0: i32, %arg1: i32) -> (i32, i32, i32) {
    %c0_i32 = arith.constant 0 : i32
    %c0_i32_0 = arith.constant 0 : i32
    %c0_i32_1 = arith.constant 0 : i32
    return %arg1, %c0_i32, %c0_i32_0 : i32, i32, i32
  }
  func.func @transform_11(%arg0: i32, %arg1: i32) -> (i32, i32, i32, i32) {
    %c0_i32 = arith.constant 0 : i32
    %c0_i32_0 = arith.constant 0 : i32
    %c0_i32_1 = arith.constant 0 : i32
    return %arg0, %arg1, %c0_i32, %c0_i32_0 : i32, i32, i32, i32
  }
}

module attributes {stable_mosaic.version = 11 : i64} {
  func.func @_mha_resid_ln_kernel(%arg0: i32, %arg1: i32, %arg2: memref<1x1x8x32xf32, #tpu.memory_space<vmem>>, %arg3: memref<1x1x8x32xf32, #tpu.memory_space<vmem>>, %arg4: memref<1x32x32xbf16, #tpu.memory_space<vmem>>, %arg5: memref<1x1x32xf32, #tpu.memory_space<vmem>>, %arg6: memref<1x32x64xbf16, #tpu.memory_space<vmem>>, %arg7: memref<1x1x64xf32, #tpu.memory_space<vmem>>, %arg8: memref<1x32x32xbf16, #tpu.memory_space<vmem>>, %arg9: memref<1x1x32xf32, #tpu.memory_space<vmem>>, %arg10: memref<1x1x32xf32, #tpu.memory_space<vmem>>, %arg11: memref<8x8xf32, #tpu.memory_space<vmem>>, %arg12: memref<1x1x8xf32, #tpu.memory_space<vmem>>, %arg13: memref<1x1x8x32xf32, #tpu.memory_space<vmem>>) attributes {dimension_semantics = [#tpu.dimension_semantics<parallel>, #tpu.dimension_semantics<parallel>], iteration_bounds = array<i64: 1, 2>, scalar_prefetch = 0 : i64, scratch_operands = 0 : i64, tpu.core_type = #tpu.core_type<tc>, window_params = [{transform_indices = @transform_0, window_bounds = array<i64: 1, 1, 8, 32>}, {transform_indices = @transform_1, window_bounds = array<i64: 1, 1, 8, 32>}, {transform_indices = @transform_2, window_bounds = array<i64: 1, 32, 32>}, {transform_indices = @transform_3, window_bounds = array<i64: 1, 1, 32>}, {transform_indices = @transform_4, window_bounds = array<i64: 1, 32, 64>}, {transform_indices = @transform_5, window_bounds = array<i64: 1, 1, 64>}, {transform_indices = @transform_6, window_bounds = array<i64: 1, 32, 32>}, {transform_indices = @transform_7, window_bounds = array<i64: 1, 1, 32>}, {transform_indices = @transform_8, window_bounds = array<i64: 1, 1, 32>}, {pipeline_mode = #tpu.pipeline_mode<synchronous>, transform_indices = @transform_9, window_bounds = array<i64: 8, 8>}, {transform_indices = @transform_10, window_bounds = array<i64: 1, 1, 8>}, {transform_indices = @transform_11, window_bounds = array<i64: 1, 1, 8, 32>}]} {
    %c0 = arith.constant 0 : index
    %c0_0 = arith.constant 0 : index
    %c0_1 = arith.constant 0 : index
    %c0_2 = arith.constant 0 : index
    %0 = vector.load %arg2[%c0, %c0_0, %c0_1, %c0_2] : memref<1x1x8x32xf32, #tpu.memory_space<vmem>>, vector<1x1x8x32xf32>
    %1 = vector.shape_cast %0 : vector<1x1x8x32xf32> to vector<8x32xf32>
    %c0_3 = arith.constant 0 : index
    %c0_4 = arith.constant 0 : index
    %c0_5 = arith.constant 0 : index
    %c0_6 = arith.constant 0 : index
    %2 = vector.load %arg3[%c0_3, %c0_4, %c0_5, %c0_6] : memref<1x1x8x32xf32, #tpu.memory_space<vmem>>, vector<1x1x8x32xf32>
    %3 = vector.shape_cast %2 : vector<1x1x8x32xf32> to vector<8x32xf32>
    %4 = arith.truncf %1 : vector<8x32xf32> to vector<8x32xbf16>
    %c0_7 = arith.constant 0 : index
    %c0_8 = arith.constant 0 : index
    %c0_9 = arith.constant 0 : index
    %5 = vector.load %arg4[%c0_7, %c0_8, %c0_9] : memref<1x32x32xbf16, #tpu.memory_space<vmem>>, vector<1x32x32xbf16>
    %6 = vector.shape_cast %5 : vector<1x32x32xbf16> to vector<32x32xbf16>
    %cst = arith.constant dense<0.000000e+00> : vector<8x32xf32>
    %7 = tpu.matmul %4, %6, %cst {dimension_numbers = #tpu.dot_dimension_numbers<[1], [0], [0], [1], [0, 0, 1, 1], [], []>} : vector<8x32xbf16>, vector<32x32xbf16>, vector<8x32xf32> -> vector<8x32xf32>
    %c0_10 = arith.constant 0 : index
    %c0_11 = arith.constant 0 : index
    %c0_12 = arith.constant 0 : index
    %8 = vector.load %arg5[%c0_10, %c0_11, %c0_12] : memref<1x1x32xf32, #tpu.memory_space<vmem>>, vector<1x1x32xf32>
    %9 = vector.shape_cast %8 : vector<1x1x32xf32> to vector<1x32xf32>
    %10 = vector.broadcast %9 : vector<1x32xf32> to vector<8x32xf32>
    %11 = arith.addf %7, %10 : vector<8x32xf32>
    %12 = arith.truncf %3 : vector<8x32xf32> to vector<8x32xbf16>
    %c0_13 = arith.constant 0 : index
    %c0_14 = arith.constant 0 : index
    %c0_15 = arith.constant 0 : index
    %13 = vector.load %arg6[%c0_13, %c0_14, %c0_15] : memref<1x32x64xbf16, #tpu.memory_space<vmem>>, vector<1x32x64xbf16>
    %14 = vector.shape_cast %13 : vector<1x32x64xbf16> to vector<32x64xbf16>
    %cst_16 = arith.constant dense<0.000000e+00> : vector<8x64xf32>
    %15 = tpu.matmul %12, %14, %cst_16 {dimension_numbers = #tpu.dot_dimension_numbers<[1], [0], [0], [1], [0, 0, 1, 1], [], []>} : vector<8x32xbf16>, vector<32x64xbf16>, vector<8x64xf32> -> vector<8x64xf32>
    %c0_17 = arith.constant 0 : index
    %c0_18 = arith.constant 0 : index
    %c0_19 = arith.constant 0 : index
    %16 = vector.load %arg7[%c0_17, %c0_18, %c0_19] : memref<1x1x64xf32, #tpu.memory_space<vmem>>, vector<1x1x64xf32>
    %17 = vector.shape_cast %16 : vector<1x1x64xf32> to vector<1x64xf32>
    %18 = vector.broadcast %17 : vector<1x64xf32> to vector<8x64xf32>
    %19 = arith.addf %15, %18 : vector<8x64xf32>
    %20 = vector.extract_strided_slice %19 {offsets = [0, 0], sizes = [8, 32], strides = [1, 1]} : vector<8x64xf32> to vector<8x32xf32>
    %21 = vector.extract_strided_slice %19 {offsets = [0, 32], sizes = [8, 32], strides = [1, 1]} : vector<8x64xf32> to vector<8x32xf32>
    %c0_20 = arith.constant 0 : index
    %c0_21 = arith.constant 0 : index
    %22 = vector.load %arg11[%c0_20, %c0_21] : memref<8x8xf32, #tpu.memory_space<vmem>>, vector<8x8xf32>
    %c0_22 = arith.constant 0 : index
    %c0_23 = arith.constant 0 : index
    %c0_24 = arith.constant 0 : index
    %23 = vector.load %arg12[%c0_22, %c0_23, %c0_24] : memref<1x1x8xf32, #tpu.memory_space<vmem>>, vector<1x1x8xf32>
    %24 = vector.shape_cast %23 : vector<1x1x8xf32> to vector<1x8xf32>
    %25 = vector.broadcast %24 : vector<1x8xf32> to vector<8x8xf32>
    %26 = arith.addf %22, %25 : vector<8x8xf32>
    %cst_25 = arith.constant 0.000000e+00 : f32
    %27 = vector.broadcast %cst_25 : f32 to vector<8x32xf32>
    %28 = vector.extract_strided_slice %11 {offsets = [0, 0], sizes = [8, 8], strides = [1, 1]} : vector<8x32xf32> to vector<8x8xf32>
    %29 = vector.extract_strided_slice %20 {offsets = [0, 0], sizes = [8, 8], strides = [1, 1]} : vector<8x32xf32> to vector<8x8xf32>
    %30 = vector.extract_strided_slice %21 {offsets = [0, 0], sizes = [8, 8], strides = [1, 1]} : vector<8x32xf32> to vector<8x8xf32>
    %cst_26 = arith.constant dense<0.000000e+00> : vector<8x8xf32>
    %31 = tpu.matmul %28, %29, %cst_26 {dimension_numbers = #tpu.dot_dimension_numbers<[1], [1], [0], [0], [0, 0, 1, 0], [], []>} : vector<8x8xf32>, vector<8x8xf32>, vector<8x8xf32> -> vector<8x8xf32>
    %cst_27 = arith.constant 0.353553385 : f32
    %32 = vector.broadcast %cst_27 : f32 to vector<8x8xf32>
    %33 = arith.mulf %31, %32 : vector<8x8xf32>
    %34 = arith.addf %33, %26 : vector<8x8xf32>
    %cst_28 = arith.constant dense<0xFF800000> : vector<8xf32>
    %35 = vector.multi_reduction <maximumf>, %34, %cst_28 [1] : vector<8x8xf32> to vector<8xf32>
    %36 = vector.shape_cast %35 : vector<8xf32> to vector<8x1xf32>
    %37 = vector.broadcast %36 : vector<8x1xf32> to vector<8x8xf32>
    %38 = arith.subf %34, %37 : vector<8x8xf32>
    %39 = math.exp %38 : vector<8x8xf32>
    %cst_29 = arith.constant dense<0.000000e+00> : vector<8xf32>
    %40 = vector.multi_reduction <add>, %39, %cst_29 [1] : vector<8x8xf32> to vector<8xf32>
    %41 = vector.shape_cast %40 : vector<8xf32> to vector<8x1xf32>
    %42 = tpu.reciprocal %41 {approx = true} : vector<8x1xf32> -> vector<8x1xf32>
    %43 = vector.broadcast %42 : vector<8x1xf32> to vector<8x8xf32>
    %44 = arith.mulf %39, %43 : vector<8x8xf32>
    %45 = arith.truncf %44 : vector<8x8xf32> to vector<8x8xbf16>
    %46 = arith.truncf %30 : vector<8x8xf32> to vector<8x8xbf16>
    %cst_30 = arith.constant dense<0.000000e+00> : vector<8x8xf32>
    %47 = tpu.matmul %45, %46, %cst_30 {dimension_numbers = #tpu.dot_dimension_numbers<[1], [0], [0], [1], [0, 0, 1, 1], [], []>} : vector<8x8xbf16>, vector<8x8xbf16>, vector<8x8xf32> -> vector<8x8xf32>
    %48 = arith.truncf %47 : vector<8x8xf32> to vector<8x8xbf16>
    %c0_31 = arith.constant 0 : index
    %c0_32 = arith.constant 0 : index
    %c0_33 = arith.constant 0 : index
    %49 = vector.load %arg8[%c0_31, %c0_32, %c0_33] : memref<1x32x32xbf16, #tpu.memory_space<vmem>>, vector<1x8x32xbf16>
    %50 = vector.shape_cast %49 : vector<1x8x32xbf16> to vector<8x32xbf16>
    %cst_34 = arith.constant dense<0.000000e+00> : vector<8x32xf32>
    %51 = tpu.matmul %48, %50, %cst_34 {dimension_numbers = #tpu.dot_dimension_numbers<[1], [0], [0], [1], [0, 0, 1, 1], [], []>} : vector<8x8xbf16>, vector<8x32xbf16>, vector<8x32xf32> -> vector<8x32xf32>
    %52 = arith.addf %27, %51 : vector<8x32xf32>
    %53 = vector.extract_strided_slice %11 {offsets = [0, 8], sizes = [8, 8], strides = [1, 1]} : vector<8x32xf32> to vector<8x8xf32>
    %54 = vector.extract_strided_slice %20 {offsets = [0, 8], sizes = [8, 8], strides = [1, 1]} : vector<8x32xf32> to vector<8x8xf32>
    %55 = vector.extract_strided_slice %21 {offsets = [0, 8], sizes = [8, 8], strides = [1, 1]} : vector<8x32xf32> to vector<8x8xf32>
    %cst_35 = arith.constant dense<0.000000e+00> : vector<8x8xf32>
    %56 = tpu.matmul %53, %54, %cst_35 {dimension_numbers = #tpu.dot_dimension_numbers<[1], [1], [0], [0], [0, 0, 1, 0], [], []>} : vector<8x8xf32>, vector<8x8xf32>, vector<8x8xf32> -> vector<8x8xf32>
    %cst_36 = arith.constant 0.353553385 : f32
    %57 = vector.broadcast %cst_36 : f32 to vector<8x8xf32>
    %58 = arith.mulf %56, %57 : vector<8x8xf32>
    %59 = arith.addf %58, %26 : vector<8x8xf32>
    %cst_37 = arith.constant dense<0xFF800000> : vector<8xf32>
    %60 = vector.multi_reduction <maximumf>, %59, %cst_37 [1] : vector<8x8xf32> to vector<8xf32>
    %61 = vector.shape_cast %60 : vector<8xf32> to vector<8x1xf32>
    %62 = vector.broadcast %61 : vector<8x1xf32> to vector<8x8xf32>
    %63 = arith.subf %59, %62 : vector<8x8xf32>
    %64 = math.exp %63 : vector<8x8xf32>
    %cst_38 = arith.constant dense<0.000000e+00> : vector<8xf32>
    %65 = vector.multi_reduction <add>, %64, %cst_38 [1] : vector<8x8xf32> to vector<8xf32>
    %66 = vector.shape_cast %65 : vector<8xf32> to vector<8x1xf32>
    %67 = tpu.reciprocal %66 {approx = true} : vector<8x1xf32> -> vector<8x1xf32>
    %68 = vector.broadcast %67 : vector<8x1xf32> to vector<8x8xf32>
    %69 = arith.mulf %64, %68 : vector<8x8xf32>
    %70 = arith.truncf %69 : vector<8x8xf32> to vector<8x8xbf16>
    %71 = arith.truncf %55 : vector<8x8xf32> to vector<8x8xbf16>
    %cst_39 = arith.constant dense<0.000000e+00> : vector<8x8xf32>
    %72 = tpu.matmul %70, %71, %cst_39 {dimension_numbers = #tpu.dot_dimension_numbers<[1], [0], [0], [1], [0, 0, 1, 1], [], []>} : vector<8x8xbf16>, vector<8x8xbf16>, vector<8x8xf32> -> vector<8x8xf32>
    %73 = arith.truncf %72 : vector<8x8xf32> to vector<8x8xbf16>
    %c0_40 = arith.constant 0 : index
    %c8 = arith.constant 8 : index
    %c0_41 = arith.constant 0 : index
    %74 = vector.load %arg8[%c0_40, %c8, %c0_41] : memref<1x32x32xbf16, #tpu.memory_space<vmem>>, vector<1x8x32xbf16>
    %75 = vector.shape_cast %74 : vector<1x8x32xbf16> to vector<8x32xbf16>
    %cst_42 = arith.constant dense<0.000000e+00> : vector<8x32xf32>
    %76 = tpu.matmul %73, %75, %cst_42 {dimension_numbers = #tpu.dot_dimension_numbers<[1], [0], [0], [1], [0, 0, 1, 1], [], []>} : vector<8x8xbf16>, vector<8x32xbf16>, vector<8x32xf32> -> vector<8x32xf32>
    %77 = arith.addf %52, %76 : vector<8x32xf32>
    %78 = vector.extract_strided_slice %11 {offsets = [0, 16], sizes = [8, 8], strides = [1, 1]} : vector<8x32xf32> to vector<8x8xf32>
    %79 = vector.extract_strided_slice %20 {offsets = [0, 16], sizes = [8, 8], strides = [1, 1]} : vector<8x32xf32> to vector<8x8xf32>
    %80 = vector.extract_strided_slice %21 {offsets = [0, 16], sizes = [8, 8], strides = [1, 1]} : vector<8x32xf32> to vector<8x8xf32>
    %cst_43 = arith.constant dense<0.000000e+00> : vector<8x8xf32>
    %81 = tpu.matmul %78, %79, %cst_43 {dimension_numbers = #tpu.dot_dimension_numbers<[1], [1], [0], [0], [0, 0, 1, 0], [], []>} : vector<8x8xf32>, vector<8x8xf32>, vector<8x8xf32> -> vector<8x8xf32>
    %cst_44 = arith.constant 0.353553385 : f32
    %82 = vector.broadcast %cst_44 : f32 to vector<8x8xf32>
    %83 = arith.mulf %81, %82 : vector<8x8xf32>
    %84 = arith.addf %83, %26 : vector<8x8xf32>
    %cst_45 = arith.constant dense<0xFF800000> : vector<8xf32>
    %85 = vector.multi_reduction <maximumf>, %84, %cst_45 [1] : vector<8x8xf32> to vector<8xf32>
    %86 = vector.shape_cast %85 : vector<8xf32> to vector<8x1xf32>
    %87 = vector.broadcast %86 : vector<8x1xf32> to vector<8x8xf32>
    %88 = arith.subf %84, %87 : vector<8x8xf32>
    %89 = math.exp %88 : vector<8x8xf32>
    %cst_46 = arith.constant dense<0.000000e+00> : vector<8xf32>
    %90 = vector.multi_reduction <add>, %89, %cst_46 [1] : vector<8x8xf32> to vector<8xf32>
    %91 = vector.shape_cast %90 : vector<8xf32> to vector<8x1xf32>
    %92 = tpu.reciprocal %91 {approx = true} : vector<8x1xf32> -> vector<8x1xf32>
    %93 = vector.broadcast %92 : vector<8x1xf32> to vector<8x8xf32>
    %94 = arith.mulf %89, %93 : vector<8x8xf32>
    %95 = arith.truncf %94 : vector<8x8xf32> to vector<8x8xbf16>
    %96 = arith.truncf %80 : vector<8x8xf32> to vector<8x8xbf16>
    %cst_47 = arith.constant dense<0.000000e+00> : vector<8x8xf32>
    %97 = tpu.matmul %95, %96, %cst_47 {dimension_numbers = #tpu.dot_dimension_numbers<[1], [0], [0], [1], [0, 0, 1, 1], [], []>} : vector<8x8xbf16>, vector<8x8xbf16>, vector<8x8xf32> -> vector<8x8xf32>
    %98 = arith.truncf %97 : vector<8x8xf32> to vector<8x8xbf16>
    %c0_48 = arith.constant 0 : index
    %c16 = arith.constant 16 : index
    %c0_49 = arith.constant 0 : index
    %99 = vector.load %arg8[%c0_48, %c16, %c0_49] : memref<1x32x32xbf16, #tpu.memory_space<vmem>>, vector<1x8x32xbf16>
    %100 = vector.shape_cast %99 : vector<1x8x32xbf16> to vector<8x32xbf16>
    %cst_50 = arith.constant dense<0.000000e+00> : vector<8x32xf32>
    %101 = tpu.matmul %98, %100, %cst_50 {dimension_numbers = #tpu.dot_dimension_numbers<[1], [0], [0], [1], [0, 0, 1, 1], [], []>} : vector<8x8xbf16>, vector<8x32xbf16>, vector<8x32xf32> -> vector<8x32xf32>
    %102 = arith.addf %77, %101 : vector<8x32xf32>
    %103 = vector.extract_strided_slice %11 {offsets = [0, 24], sizes = [8, 8], strides = [1, 1]} : vector<8x32xf32> to vector<8x8xf32>
    %104 = vector.extract_strided_slice %20 {offsets = [0, 24], sizes = [8, 8], strides = [1, 1]} : vector<8x32xf32> to vector<8x8xf32>
    %105 = vector.extract_strided_slice %21 {offsets = [0, 24], sizes = [8, 8], strides = [1, 1]} : vector<8x32xf32> to vector<8x8xf32>
    %cst_51 = arith.constant dense<0.000000e+00> : vector<8x8xf32>
    %106 = tpu.matmul %103, %104, %cst_51 {dimension_numbers = #tpu.dot_dimension_numbers<[1], [1], [0], [0], [0, 0, 1, 0], [], []>} : vector<8x8xf32>, vector<8x8xf32>, vector<8x8xf32> -> vector<8x8xf32>
    %cst_52 = arith.constant 0.353553385 : f32
    %107 = vector.broadcast %cst_52 : f32 to vector<8x8xf32>
    %108 = arith.mulf %106, %107 : vector<8x8xf32>
    %109 = arith.addf %108, %26 : vector<8x8xf32>
    %cst_53 = arith.constant dense<0xFF800000> : vector<8xf32>
    %110 = vector.multi_reduction <maximumf>, %109, %cst_53 [1] : vector<8x8xf32> to vector<8xf32>
    %111 = vector.shape_cast %110 : vector<8xf32> to vector<8x1xf32>
    %112 = vector.broadcast %111 : vector<8x1xf32> to vector<8x8xf32>
    %113 = arith.subf %109, %112 : vector<8x8xf32>
    %114 = math.exp %113 : vector<8x8xf32>
    %cst_54 = arith.constant dense<0.000000e+00> : vector<8xf32>
    %115 = vector.multi_reduction <add>, %114, %cst_54 [1] : vector<8x8xf32> to vector<8xf32>
    %116 = vector.shape_cast %115 : vector<8xf32> to vector<8x1xf32>
    %117 = tpu.reciprocal %116 {approx = true} : vector<8x1xf32> -> vector<8x1xf32>
    %118 = vector.broadcast %117 : vector<8x1xf32> to vector<8x8xf32>
    %119 = arith.mulf %114, %118 : vector<8x8xf32>
    %120 = arith.truncf %119 : vector<8x8xf32> to vector<8x8xbf16>
    %121 = arith.truncf %105 : vector<8x8xf32> to vector<8x8xbf16>
    %cst_55 = arith.constant dense<0.000000e+00> : vector<8x8xf32>
    %122 = tpu.matmul %120, %121, %cst_55 {dimension_numbers = #tpu.dot_dimension_numbers<[1], [0], [0], [1], [0, 0, 1, 1], [], []>} : vector<8x8xbf16>, vector<8x8xbf16>, vector<8x8xf32> -> vector<8x8xf32>
    %123 = arith.truncf %122 : vector<8x8xf32> to vector<8x8xbf16>
    %c0_56 = arith.constant 0 : index
    %c24 = arith.constant 24 : index
    %c0_57 = arith.constant 0 : index
    %124 = vector.load %arg8[%c0_56, %c24, %c0_57] : memref<1x32x32xbf16, #tpu.memory_space<vmem>>, vector<1x8x32xbf16>
    %125 = vector.shape_cast %124 : vector<1x8x32xbf16> to vector<8x32xbf16>
    %cst_58 = arith.constant dense<0.000000e+00> : vector<8x32xf32>
    %126 = tpu.matmul %123, %125, %cst_58 {dimension_numbers = #tpu.dot_dimension_numbers<[1], [0], [0], [1], [0, 0, 1, 1], [], []>} : vector<8x8xbf16>, vector<8x32xbf16>, vector<8x32xf32> -> vector<8x32xf32>
    %127 = arith.addf %102, %126 : vector<8x32xf32>
    %128 = arith.addf %1, %127 : vector<8x32xf32>
    %cst_59 = arith.constant dense<0.000000e+00> : vector<8xf32>
    %129 = vector.multi_reduction <add>, %128, %cst_59 [1] : vector<8x32xf32> to vector<8xf32>
    %130 = vector.shape_cast %129 : vector<8xf32> to vector<8x1xf32>
    %cst_60 = arith.constant 3.200000e+01 : f32
    %131 = vector.broadcast %cst_60 : f32 to vector<8x1xf32>
    %132 = arith.divf %130, %131 : vector<8x1xf32>
    %133 = vector.broadcast %132 : vector<8x1xf32> to vector<8x32xf32>
    %134 = arith.subf %128, %133 : vector<8x32xf32>
    %135 = arith.mulf %134, %134 : vector<8x32xf32>
    %cst_61 = arith.constant dense<0.000000e+00> : vector<8xf32>
    %136 = vector.multi_reduction <add>, %135, %cst_61 [1] : vector<8x32xf32> to vector<8xf32>
    %137 = vector.shape_cast %136 : vector<8xf32> to vector<8x1xf32>
    %cst_62 = arith.constant 3.200000e+01 : f32
    %138 = vector.broadcast %cst_62 : f32 to vector<8x1xf32>
    %139 = arith.divf %137, %138 : vector<8x1xf32>
    %140 = vector.broadcast %132 : vector<8x1xf32> to vector<8x32xf32>
    %141 = arith.subf %128, %140 : vector<8x32xf32>
    %cst_63 = arith.constant 9.99999974E-6 : f32
    %142 = vector.broadcast %cst_63 : f32 to vector<8x1xf32>
    %143 = arith.addf %139, %142 : vector<8x1xf32>
    %144 = math.rsqrt %143 : vector<8x1xf32>
    %145 = vector.broadcast %144 : vector<8x1xf32> to vector<8x32xf32>
    %146 = arith.mulf %141, %145 : vector<8x32xf32>
    %c0_64 = arith.constant 0 : index
    %c0_65 = arith.constant 0 : index
    %c0_66 = arith.constant 0 : index
    %147 = vector.load %arg9[%c0_64, %c0_65, %c0_66] : memref<1x1x32xf32, #tpu.memory_space<vmem>>, vector<1x1x32xf32>
    %148 = vector.shape_cast %147 : vector<1x1x32xf32> to vector<1x32xf32>
    %149 = vector.broadcast %148 : vector<1x32xf32> to vector<8x32xf32>
    %150 = arith.mulf %146, %149 : vector<8x32xf32>
    %c0_67 = arith.constant 0 : index
    %c0_68 = arith.constant 0 : index
    %c0_69 = arith.constant 0 : index
    %151 = vector.load %arg10[%c0_67, %c0_68, %c0_69] : memref<1x1x32xf32, #tpu.memory_space<vmem>>, vector<1x1x32xf32>
    %152 = vector.shape_cast %151 : vector<1x1x32xf32> to vector<1x32xf32>
    %153 = vector.broadcast %152 : vector<1x32xf32> to vector<8x32xf32>
    %154 = arith.addf %150, %153 : vector<8x32xf32>
    %c0_70 = arith.constant 0 : index
    %c0_71 = arith.constant 0 : index
    %c0_72 = arith.constant 0 : index
    %c0_73 = arith.constant 0 : index
    %155 = vector.load %arg13[%c0_70, %c0_71, %c0_72, %c0_73] : memref<1x1x8x32xf32, #tpu.memory_space<vmem>>, vector<1x1x8x32xf32>
    %156 = vector.shape_cast %155 : vector<1x1x8x32xf32> to vector<8x32xf32>
    %157 = vector.shape_cast %154 : vector<8x32xf32> to vector<1x1x8x32xf32>
    tpu.vector_store %arg13[%c0_70, %c0_71, %c0_72, %c0_73], %157 {strides = array<i32>} : memref<1x1x8x32xf32, #tpu.memory_space<vmem>>, vector<1x1x8x32xf32>,
    return
  }
  func.func @transform_0(%arg0: i32, %arg1: i32) -> (i32, i32, i32, i32) {
    %c0_i32 = arith.constant 0 : i32
    %c0_i32_0 = arith.constant 0 : i32
    %c0_i32_1 = arith.constant 0 : i32
    return %arg0, %arg1, %c0_i32, %c0_i32_0 : i32, i32, i32, i32
  }
  func.func @transform_1(%arg0: i32, %arg1: i32) -> (i32, i32, i32, i32) {
    %c0_i32 = arith.constant 0 : i32
    %c0_i32_0 = arith.constant 0 : i32
    %c0_i32_1 = arith.constant 0 : i32
    return %arg0, %arg1, %c0_i32, %c0_i32_0 : i32, i32, i32, i32
  }
  func.func @transform_2(%arg0: i32, %arg1: i32) -> (i32, i32, i32) {
    %c0_i32 = arith.constant 0 : i32
    %c0_i32_0 = arith.constant 0 : i32
    %c0_i32_1 = arith.constant 0 : i32
    return %arg0, %c0_i32, %c0_i32_0 : i32, i32, i32
  }
  func.func @transform_3(%arg0: i32, %arg1: i32) -> (i32, i32, i32) {
    %c0_i32 = arith.constant 0 : i32
    %c0_i32_0 = arith.constant 0 : i32
    %c0_i32_1 = arith.constant 0 : i32
    return %arg0, %c0_i32, %c0_i32_0 : i32, i32, i32
  }
  func.func @transform_4(%arg0: i32, %arg1: i32) -> (i32, i32, i32) {
    %c0_i32 = arith.constant 0 : i32
    %c0_i32_0 = arith.constant 0 : i32
    %c0_i32_1 = arith.constant 0 : i32
    return %arg0, %c0_i32, %c0_i32_0 : i32, i32, i32
  }
  func.func @transform_5(%arg0: i32, %arg1: i32) -> (i32, i32, i32) {
    %c0_i32 = arith.constant 0 : i32
    %c0_i32_0 = arith.constant 0 : i32
    %c0_i32_1 = arith.constant 0 : i32
    return %arg0, %c0_i32, %c0_i32_0 : i32, i32, i32
  }
  func.func @transform_6(%arg0: i32, %arg1: i32) -> (i32, i32, i32) {
    %c0_i32 = arith.constant 0 : i32
    %c0_i32_0 = arith.constant 0 : i32
    %c0_i32_1 = arith.constant 0 : i32
    return %arg0, %c0_i32, %c0_i32_0 : i32, i32, i32
  }
  func.func @transform_7(%arg0: i32, %arg1: i32) -> (i32, i32, i32) {
    %c0_i32 = arith.constant 0 : i32
    %c0_i32_0 = arith.constant 0 : i32
    %c0_i32_1 = arith.constant 0 : i32
    return %arg0, %c0_i32, %c0_i32_0 : i32, i32, i32
  }
  func.func @transform_8(%arg0: i32, %arg1: i32) -> (i32, i32, i32) {
    %c0_i32 = arith.constant 0 : i32
    %c0_i32_0 = arith.constant 0 : i32
    %c0_i32_1 = arith.constant 0 : i32
    return %arg0, %c0_i32, %c0_i32_0 : i32, i32, i32
  }
  func.func @transform_9(%arg0: i32, %arg1: i32) -> (i32, i32) {
    %c0_i32 = arith.constant 0 : i32
    %c0_i32_0 = arith.constant 0 : i32
    %c0_i32_1 = arith.constant 0 : i32
    return %c0_i32, %c0_i32_0 : i32, i32
  }
  func.func @transform_10(%arg0: i32, %arg1: i32) -> (i32, i32, i32) {
    %c0_i32 = arith.constant 0 : i32
    %c0_i32_0 = arith.constant 0 : i32
    %c0_i32_1 = arith.constant 0 : i32
    return %arg1, %c0_i32, %c0_i32_0 : i32, i32, i32
  }
  func.func @transform_11(%arg0: i32, %arg1: i32) -> (i32, i32, i32, i32) {
    %c0_i32 = arith.constant 0 : i32
    %c0_i32_0 = arith.constant 0 : i32
    %c0_i32_1 = arith.constant 0 : i32
    return %arg0, %arg1, %c0_i32, %c0_i32_0 : i32, i32, i32, i32
  }
}

module attributes {stable_mosaic.version = 11 : i64} {
  func.func @_ff_kernel(%arg0: i32, %arg1: i32, %arg2: memref<1x16x32xf32, #tpu.memory_space<vmem>>, %arg3: memref<1x32x64xbf16, #tpu.memory_space<vmem>>, %arg4: memref<1x1x64xf32, #tpu.memory_space<vmem>>, %arg5: memref<1x64x32xbf16, #tpu.memory_space<vmem>>, %arg6: memref<1x1x32xf32, #tpu.memory_space<vmem>>, %arg7: memref<1x16x32xf32, #tpu.memory_space<vmem>>) attributes {dimension_semantics = [#tpu.dimension_semantics<parallel>, #tpu.dimension_semantics<parallel>], iteration_bounds = array<i64: 2, 1>, scalar_prefetch = 0 : i64, scratch_operands = 0 : i64, tpu.core_type = #tpu.core_type<tc>, window_params = [{transform_indices = @transform_0, window_bounds = array<i64: 1, 16, 32>}, {transform_indices = @transform_1, window_bounds = array<i64: 1, 32, 64>}, {transform_indices = @transform_2, window_bounds = array<i64: 1, 1, 64>}, {transform_indices = @transform_3, window_bounds = array<i64: 1, 64, 32>}, {transform_indices = @transform_4, window_bounds = array<i64: 1, 1, 32>}, {transform_indices = @transform_5, window_bounds = array<i64: 1, 16, 32>}]} {
    %c0 = arith.constant 0 : index
    %c0_0 = arith.constant 0 : index
    %c0_1 = arith.constant 0 : index
    %0 = vector.load %arg2[%c0, %c0_0, %c0_1] : memref<1x16x32xf32, #tpu.memory_space<vmem>>, vector<1x16x32xf32>
    %1 = vector.shape_cast %0 : vector<1x16x32xf32> to vector<16x32xf32>
    %2 = arith.truncf %1 : vector<16x32xf32> to vector<16x32xbf16>
    %c0_2 = arith.constant 0 : index
    %c0_3 = arith.constant 0 : index
    %c0_4 = arith.constant 0 : index
    %3 = vector.load %arg3[%c0_2, %c0_3, %c0_4] : memref<1x32x64xbf16, #tpu.memory_space<vmem>>, vector<1x32x64xbf16>
    %4 = vector.shape_cast %3 : vector<1x32x64xbf16> to vector<32x64xbf16>
    %cst = arith.constant dense<0.000000e+00> : vector<16x64xf32>
    %5 = tpu.matmul %2, %4, %cst {dimension_numbers = #tpu.dot_dimension_numbers<[1], [0], [0], [1], [0, 0, 1, 1], [], []>} : vector<16x32xbf16>, vector<32x64xbf16>, vector<16x64xf32> -> vector<16x64xf32>
    %c0_5 = arith.constant 0 : index
    %c0_6 = arith.constant 0 : index
    %c0_7 = arith.constant 0 : index
    %6 = vector.load %arg4[%c0_5, %c0_6, %c0_7] : memref<1x1x64xf32, #tpu.memory_space<vmem>>, vector<1x1x64xf32>
    %7 = vector.shape_cast %6 : vector<1x1x64xf32> to vector<1x64xf32>
    %8 = vector.broadcast %7 : vector<1x64xf32> to vector<16x64xf32>
    %9 = arith.addf %5, %8 : vector<16x64xf32>
    %cst_8 = arith.constant 0.000000e+00 : f32
    %10 = vector.broadcast %cst_8 : f32 to vector<16x64xf32>
    %11 = arith.maximumf %9, %10 : vector<16x64xf32>
    %12 = arith.truncf %11 : vector<16x64xf32> to vector<16x64xbf16>
    %c0_9 = arith.constant 0 : index
    %c0_10 = arith.constant 0 : index
    %c0_11 = arith.constant 0 : index
    %13 = vector.load %arg5[%c0_9, %c0_10, %c0_11] : memref<1x64x32xbf16, #tpu.memory_space<vmem>>, vector<1x64x32xbf16>
    %14 = vector.shape_cast %13 : vector<1x64x32xbf16> to vector<64x32xbf16>
    %cst_12 = arith.constant dense<0.000000e+00> : vector<16x32xf32>
    %15 = tpu.matmul %12, %14, %cst_12 {dimension_numbers = #tpu.dot_dimension_numbers<[1], [0], [0], [1], [0, 0, 1, 1], [], []>} : vector<16x64xbf16>, vector<64x32xbf16>, vector<16x32xf32> -> vector<16x32xf32>
    %c0_13 = arith.constant 0 : index
    %c0_14 = arith.constant 0 : index
    %c0_15 = arith.constant 0 : index
    %16 = vector.load %arg6[%c0_13, %c0_14, %c0_15] : memref<1x1x32xf32, #tpu.memory_space<vmem>>, vector<1x1x32xf32>
    %17 = vector.shape_cast %16 : vector<1x1x32xf32> to vector<1x32xf32>
    %18 = vector.broadcast %17 : vector<1x32xf32> to vector<16x32xf32>
    %19 = arith.addf %15, %18 : vector<16x32xf32>
    %c0_16 = arith.constant 0 : index
    %c0_17 = arith.constant 0 : index
    %c0_18 = arith.constant 0 : index
    %20 = vector.load %arg7[%c0_16, %c0_17, %c0_18] : memref<1x16x32xf32, #tpu.memory_space<vmem>>, vector<1x16x32xf32>
    %21 = vector.shape_cast %20 : vector<1x16x32xf32> to vector<16x32xf32>
    %22 = vector.shape_cast %19 : vector<16x32xf32> to vector<1x16x32xf32>
    tpu.vector_store %arg7[%c0_16, %c0_17, %c0_18], %22 {strides = array<i32>} : memref<1x16x32xf32, #tpu.memory_space<vmem>>, vector<1x16x32xf32>,
    return
  }
  func.func @transform_0(%arg0: i32, %arg1: i32) -> (i32, i32, i32) {
    %c0_i32 = arith.constant 0 : i32
    %c0_i32_0 = arith.constant 0 : i32
    return %arg0, %arg1, %c0_i32 : i32, i32, i32
  }
  func.func @transform_1(%arg0: i32, %arg1: i32) -> (i32, i32, i32) {
    %c0_i32 = arith.constant 0 : i32
    %c0_i32_0 = arith.constant 0 : i32
    %c0_i32_1 = arith.constant 0 : i32
    return %arg0, %c0_i32, %c0_i32_0 : i32, i32, i32
  }
  func.func @transform_2(%arg0: i32, %arg1: i32) -> (i32, i32, i32) {
    %c0_i32 = arith.constant 0 : i32
    %c0_i32_0 = arith.constant 0 : i32
    %c0_i32_1 = arith.constant 0 : i32
    return %arg0, %c0_i32, %c0_i32_0 : i32, i32, i32
  }
  func.func @transform_3(%arg0: i32, %arg1: i32) -> (i32, i32, i32) {
    %c0_i32 = arith.constant 0 : i32
    %c0_i32_0 = arith.constant 0 : i32
    %c0_i32_1 = arith.constant 0 : i32
    return %arg0, %c0_i32, %c0_i32_0 : i32, i32, i32
  }
  func.func @transform_4(%arg0: i32, %arg1: i32) -> (i32, i32, i32) {
    %c0_i32 = arith.constant 0 : i32
    %c0_i32_0 = arith.constant 0 : i32
    %c0_i32_1 = arith.constant 0 : i32
    return %arg0, %c0_i32, %c0_i32_0 : i32, i32, i32
  }
  func.func @transform_5(%arg0: i32, %arg1: i32) -> (i32, i32, i32) {
    %c0_i32 = arith.constant 0 : i32
    %c0_i32_0 = arith.constant 0 : i32
    return %arg0, %arg1, %c0_i32 : i32, i32, i32
  }
}

</mosaic_0001>

<bundles_post_ra>
// kernel: trimodal_block_forward.4
= control target key start
LH: loop header
LB: loop body
LE: loop exit
PB: predicated region body
PF: predicated region fallthrough
CT: control target
= control target key end

     0   :  { %s1940_s0 = inlined_call_operand.vmem [shape: f32[2,2,8,32], index: 0, kind: input, shape index: {}, may-alias: {0,1}]   ;;  %s1941_s1 = inlined_call_operand.vmem [shape: f32[2,2,8,32], index: 1, kind: input, shape index: {}, may-alias: {0,1}]   ;;  %s1942_s2 = inlined_call_operand.vmem [shape: bf16[2,32,32], index: 2, kind: input, shape index: {}]   ;;  %s1943_s3 = inlined_call_operand.vmem [shape: f32[2,1,32], index: 3, kind: input, shape index: {}]   ;;  %s1944_s4 = inlined_call_operand.vmem [shape: bf16[2,32,64], index: 4, kind: input, shape index: {}]   ;;  %s1945_s5 = inlined_call_operand.vmem [shape: f32[2,1,64], index: 5, kind: input, shape index: {}]   ;;  %s1946_s6 = inlined_call_operand.hbm [shape: bf16[2,32,32], index: 6, kind: input, shape index: {}]   ;;  %s1947_s7 = inlined_call_operand.hbm [shape: f32[2,1,32], index: 7, kind: input, shape index: {}]   ;;  %s1948_s8 = inlined_call_operand.hbm [shape: f32[2,1,32], index: 8, kind: input, shape index: {}]   ;;  %s1949_s9 = inlined_call_operand.vmem [shape: f32[8,8], index: 9, kind: input, shape index: {}]   ;;  %s1950_s10 = inlined_call_operand.vmem [shape: f32[2,1,8], index: 10, kind: input, shape index: {}]   ;;  %s1951_s11 = inlined_call_operand.vmem [shape: f32[2,2,8,32], index: 11, kind: output, shape index: {}]  }
   0x1   :  { %1956 = sst [smem:[#allocation14_spill]] %s1946_s6 }
   0x2   :  { %1957 = sst [smem:[#allocation15_spill]] %s1947_s7 }
   0x3   :  { %16 = vsyncpa [#allocation3], 0 }
   0x4   :  { %17 = vsyncpa [#allocation5], 0  ;;  %s1678_s17 = smov 0   ;;  %s1680_s18 = smov 0  }
   0x5   :  { %s1682_s19 = smov 0   ;;  %s1684_s20 = smov 0  }
   0x6   :  { %s1686_s21 = smov 0   ;;  %s1688_s22 = smov 0  }
   0x7   :  { %s1690_s23 = smov 0   ;;  %s1692_s24 = smov 0  }
   0x8 LB: > { %1958 = sst [smem:[#allocation9_spill]] %s1579_s18  ;;  %s1265_s25 = sadd.s32 4294967295, %s1603_s24   ;;  %s1603_s24 = sphi %s1692_s24, %s23_s24   ;;  %s1599_s23 = sphi %s1690_s23, %s1978_s23   ;;  %s1595_s22 = sphi %s1688_s22, %s1973_s22   ;;  %s1591_s21 = sphi %s1686_s21, %s1977_s21   ;;  %s1587_s20 = sphi %s1684_s20, %s1972_s20   ;;  %s1583_s19 = sphi %s1682_s19, %s1976_s19   ;;  %s1579_s18 = sphi %s1680_s18, %s1975_s18   ;;  %s1575_s17 = sphi %s1678_s17, %s1971_s17  }
   0x9   : > { %1959 = sst [smem:[#allocation10_spill]] %s1595_s22  ;;  %p215_p0 = scmp.ne.s32.totalorder %s1579_s18, %s1575_s17 }
   0xa   : > { %1960 = sst [smem:[#allocation11_spill]] %s1603_s24  ;;  %p216_p1 = scmp.eq.s32.totalorder %s1265_s25, 0 }
   0xb   : > { %p1267_p2 = scmp.ge.s32.totalorder %s1603_s24, 1  ;;  %p353_p3 = scmp.lt.s32.totalorder %s1603_s24, 5 }
   0xc   : > { %s1961_s7 = sld [smem:[#allocation15_spill]]  ;;  %p1724_p4 = por %p216_p1, %p215_p0 }
   0xd   : > { %p1728_p5 = pnand %p1267_p2, %p353_p3  ;;  %s1605_s13 = smov [#allocation4]  }
   0xe   : > { %s413_s14 = sshll.u32 %s1605_s13, 4  ;;  %s414_s14 = int_to_ptr.vmem [resolvable:$true] %s413_s14 }
   0xf   : > { %p1331_p6 = pneg %p1728_p5 }
  0x11   : > { %p1736_p7 = pnand %p1331_p6, %p1724_p4 }
  0x12   : > { %s409_s28 = scalar_lea.hbm %s1961_s7, %s1591_s21  ;;  %s1450_s27 = scalar_lea.hbm %s1961_s7, 2 }
  0x13   : > { %s411_s30 = sshll.u32 %s409_s28, 4  ;;  %p1447_p9 = pneg %p1736_p7  ;;  %s412_s30 = int_to_ptr.hbm [resolvable:$true] %s411_s30 }
  0x14   : > { %s1443_s16 = sshra.s32 %s412_s30, 4  ;;  %s1444_s16 = int_to_ptr.hbm [resolvable:$true] %s1443_s16 }
  0x15   : > { %s1445_s17 = scalar_lea.hbm %s1444_s16, 1  ;;  %p1451_p12 = scmp.lt.s32.totalorder %s1444_s16, %s1961_s7 }
  0x16   : > { %p1446_p8 = scmp.ne.s32.totalorder %s1444_s16, %s1445_s17  ;;  %p1452_p13 = scmp.lt.s32.totalorder %s1450_s27, %s1445_s17 }
  0x18   : > { %p1448_p10 = pnand %p1447_p9, %p1446_p8  ;;  %p1453_p0 = por %p1452_p13, %p1451_p12 }
  0x1a   : > { %p1449_p11 = pneg %p1448_p10 }
  0x1c   : > { %p1454_p1 = pnand %p1453_p0, %p1449_p11 }
  0x1e   : > { %1457 = shalt.err (!%p1454_p1)
}
  0x1f   : > { %1337 = dma.hbm_to_vmem [thread:$0]  (!%p1736_p7), %s412_s30, 16, %s414_s14, [#allocation5]  }
  0x20   : > { %s32_s18 = sadd.s32 1, %s1595_s22  ;;  %s35_s25 = sadd.s32 1, %s1599_s23 }
  0x21   : > { %p33_p2 = scmp.ge.s32.totalorder %s32_s18, 2  ;;  %s1318_s28 = sshll.u32 %s1591_s21, 4 }
  0x22   : > { %s1966_s6 = sld [smem:[#allocation14_spill]]  ;;  %s1606_s13 = smov [#allocation2]  }
  0x23   : > { %s1980_s18 = smov (%p33_p2, %s32_s18), 0  ;;  %s1982_s25 = smov (!%p33_p2, %s35_s25), %s1599_s23 }
  0x24   : > { %1965 = sst [smem:[#allocation12_spill]] %s1980_s18  ;;  %s397_s7 = sshll.u32 %s1606_s13, 4  ;;  %s398_s7 = int_to_ptr.vmem [resolvable:$true] %s397_s7 }
  0x25   : > { %p37_p3 = scmp.ge.s32.totalorder %s1982_s25, 2  ;;  %s422_s18 = scalar_lea.hbm %s1948_s8, %s1591_s21 }
  0x27   : > { %s1984_s25 = smov (%p37_p3, %s1982_s25), 0 }
  0x28   : > { %s394_s27 = scalar_lea.hbm %s1966_s6, %s1318_s28  ;;  %1967 = sst [smem:[#allocation13_spill]] %s1984_s25 }
  0x29   : > { %s395_s24 = sshll.u32 %s394_s27, 4  ;;  %s199_s30 = ssub.s32 %s1599_s23, %s1984_s25  ;;  %s396_s24 = int_to_ptr.hbm [resolvable:$true] %s395_s24 }
  0x2a   : > { %p1771_p6 = scmp.eq.s32.totalorder %s199_s30, 0  ;;  %s1775_s28 = sshll.u32 %s422_s18, 4  ;;  %s425_s28 = int_to_ptr.hbm [resolvable:$true] %s1775_s28 }
  0x2b   : > { %s1473_s16 = sshra.s32 %s396_s24, 4  ;;  %s1480_s25 = scalar_lea.hbm %s1966_s6, 32  ;;  %s1474_s16 = int_to_ptr.hbm [resolvable:$true] %s1473_s16 }
  0x2c   : > { %s1475_s17 = scalar_lea.hbm %s1474_s16, 16  ;;  %p1481_p12 = scmp.lt.s32.totalorder %s1474_s16, %s1966_s6 }
  0x2d   : > { %p1476_p8 = scmp.ne.s32.totalorder %s1474_s16, %s1475_s17  ;;  %p1482_p13 = scmp.lt.s32.totalorder %s1480_s25, %s1475_s17 }
  0x2f   : > { %p1478_p10 = pnand %p1476_p8, %p1447_p9  ;;  %p1483_p0 = por %p1482_p13, %p1481_p12 }
  0x31   : > { %p1479_p11 = pneg %p1478_p10 }
  0x33   : > { %p1484_p1 = pnand %p1483_p0, %p1479_p11 }
  0x35   : > { %1487 = shalt.err (!%p1484_p1)
}
  0x36   : > { %s1607_s18 = smov 64   ;;  %s1608_s30 = smov 4  }
  0x37   : > { %1334 = dma.hbm_to_vmem [thread:$0]  (!%p1736_p7), %s396_s24, 256, %s398_s7, [#allocation3], %s1607_s18, %s1607_s18, %s1608_s30  }
  0x38   : > { %s1969_s27 = sadd.s32 1, %s1583_s19  ;;  %s1609_s16 = smov [#allocation6]  }
  0x39   : > { %s1793_s13 = scalar_select %p1771_p6, %s1583_s19, %s1969_s27  }
  0x3a   : > { %s426_s25 = sshll.u32 %s1609_s16, 4  ;;  %s1503_s17 = sshra.s32 %s425_s28, 4  ;;  %s427_s25 = int_to_ptr.vmem [resolvable:$true] %s426_s25  ;;  %s1504_s17 = int_to_ptr.hbm [resolvable:$true] %s1503_s17 }
  0x3b   : > { %s1505_s26 = scalar_lea.hbm %s1504_s17, 1  ;;  %s1510_s7 = scalar_lea.hbm %s1948_s8, 2 }
  0x3c   : > { %p1506_p2 = scmp.ne.s32.totalorder %s1504_s17, %s1505_s26  ;;  %p1511_p6 = scmp.lt.s32.totalorder %s1504_s17, %s1948_s8 }
  0x3d   : > { %p1512_p10 = scmp.lt.s32.totalorder %s1510_s7, %s1505_s26 }
  0x3e   : > { %p1508_p3 = pnand %p1506_p2, %p1447_p9 }
  0x3f   : > { %p1513_p11 = por %p1512_p10, %p1511_p6 }
  0x40   : > { %p1509_p8 = pneg %p1508_p3 }
  0x42   : > { %p1514_p12 = pnand %p1513_p11, %p1509_p8 }
  0x44   : > { %1517 = shalt.err (!%p1514_p12)
}
  0x45   : > { %1340 = dma.hbm_to_vmem [thread:$0]  (!%p1736_p7), %s425_s28, 16, %s427_s25, [#allocation5]  }
  0x46   : > { %470 = sbr.rel (%p1728_p5) target bundleno = 1676 (0x68c), region = 64 }
  0x4b   : > { %1566 = dma.done.wait (%p1724_p4), [#allocation3], 256  }
  0x4c   : > { %1568 = vsyncadd (%p1724_p4), [#allocation3], 4294967040 }
  0x4d   : > { %1570 = dma.done.wait (%p1724_p4), [#allocation5], 32  }
  0x4e   : > { %1572 = vsyncadd (%p1724_p4), [#allocation5], 4294967264  ;;  %p554_p7 = scmp.lt.s32.totalorder %s1591_s21, 1  ;;  %p556_p9 = scmp.lt.s32.totalorder %s1587_s20, 1  ;;  %vm621_vm0 = vcmask 261120   ;;  %vm681_vm1 = vcmask 64512  }
  0x4f   : > { %s1610_s17 = smov 112   ;;  %s1612_s26 = smov 80   ;;  %vm729_vm2 = vcmask 1043456   ;;  %v675_v23 = vld [vmem:[%s1949_s9] sm:$0xff] }
  0x50   : > { %s1986_s21 = smov (!%p554_p7, %s1591_s21), 1  ;;  %s1988_s20 = smov (!%p556_p9, %s1587_s20), 1 }
  0x51   : > { %s1319_s6 = sshll.u32 %s1986_s21, 4  ;;  %s1272_s12 = sshll.u32 %s1986_s21, 1 }
  0x52   : > { %s574_s28 = scalar_lea.vmem %s1942_s2, %s1319_s6  ;;  %s582_s27 = scalar_lea.vmem %s1944_s4, %s1319_s6 }
  0x53   : > { %s559_s16 = sadd.s32 %s1272_s12, %s1988_s20  ;;  %v1322_v0 = vld [vmem:[%s574_s28 + $0x8] sm:$0xff]  ;;  %s577_s14 = scalar_lea.vmem %s1943_s3, %s1986_s21  ;;  %v1321_v2 = vld [vmem:[%s574_s28] sm:$0xff] }
  0x54   : > { %v1324_v1 = vld [vmem:[%s582_s27 + $0x8] sm:$0xff]  ;;  %s1834_s25 = sshll.u32 %s559_s16, 3  ;;  %v1323_v3 = vld [vmem:[%s582_s27] sm:$0xff]  ;;  %s588_s6 = scalar_lea.vmem %s1950_s10, %s1988_s20  ;;  %631 = vmatpush.bf16.msra.mxu0 %v1322_v0 }
  0x55   : > { %s561_s22 = scalar_lea.vmem %s1940_s0, %s1834_s25  ;;  %668 = vmatpush.bf16.msra.mxu1 %v1324_v1  ;;  %s569_s30 = scalar_lea.vmem %s1941_s1, %s1834_s25  ;;  %v1418_v8 = vld [vmem:[%s577_s14] ss:$0 sm:$0xff] }
  0x56   : > { %v1848_v4 = vld [vmem:[%s561_s22] sm:$0xff]  ;;  %s585_s27 = scalar_lea.vmem %s1945_s5, %s1986_s21  ;;  %s1611_s21 = smov 120  }
  0x57   : > { %v599_v5 = vld [vmem:[%s569_s30] sm:$0xff]  ;;  %v600_v6 = vpack.c.bf16 %v1848_v4, %v1848_v4  ;;  %s1613_s14 = smov 104   ;;  %s1614_s20 = smov 96  }
  0x58   : > { %v638_v7 = vpack.c.bf16 %v599_v5, %v599_v5  ;;  %632 = vmatpush.bf16.msra.mxu0 %v1321_v2  ;;  %v1419_v9 = vld [vmem:[%s585_s27] ss:$0 sm:$0xff]  ;;  %s1615_s29 = smov 88   ;;  %s596_s30 = scalar_lea.vmem %s1951_s11, %s1834_s25 }
  0x59   : > { %669 = vmatpush.bf16.msra.mxu1 %v1323_v3  ;;  %v1420_v22 = vld [vmem:[%s588_s6] ss:$0 sm:$0xff]  ;;  %s1616_s6 = smov 72  }
  0x5a   : > { %v680_v26 = vadd.f32 %v1420_v22, %v675_v23 }
  0x5b   : > { %1290 = vmatmul.msk.bf16.vlgmr.msra.gmra.mxu0 %vm621_vm0, %v600_v6 }
  0x5c   : > { %1299 = vmatmul.msk.bf16.vlgmr.msra.gmra.mxu1 %vm621_vm0, %v638_v7 }
  0xd8   : > { %v634_v10 = vpop.f32.mrf.mxu0 }
  0xd9   : > { %v671_v11 = vpop.f32.mrf.mxu1  ;;  %v635_v12 = vadd.f32 %v1418_v8, %v634_v10  ;;  %v747_v8 = vld [vmem:[#allocation2] sm:$0xf] }
  0xda   : > { %v672_v13 = vadd.f32 %v1419_v9, %v671_v11  ;;  %v836_v9 = vsel %vm729_vm2, %v747_v8, 0 }
  0xdb   : > { %748 = vrot.lane.b32.xlu2 %v635_v12, %s1611_s21  ;;  %845 = vmatpush.bf16.msrb.mxu0 %v836_v9 }
  0xdc   : > { %853 = vrot.lane.b32.xlu0 %v672_v13, %s1610_s17  ;;  %1300 = vmatpush.xpose.msk.msra.mxu2 %vm681_vm1, %v672_v13  ;;  %v1864_v16 = vpack.c.bf16 %v672_v13, %v672_v13 }
  0xdf   : > { %1301 = vmatmul.msk.f32.vlgmr.msra.gmra.mxu2 %vm681_vm1, %v635_v12 }
  0xe0   : > { %v636_v14 = vpop.f32.mrf.mxu0 }
  0xe1   : > { %v673_v15 = vpop.f32.mrf.mxu1 }
  0xe4   : > { %851 = vrot.lane.b32.xlu0 %v635_v12, %s1610_s17 }
  0xec   : > { %893 = vrot.lane.b32.xlu0 %v1864_v16, %s1612_s26 }
  0xf4   : > { %938 = vrot.lane.b32.xlu0 %v672_v13, %s1613_s14 }
  0xfc   : > { %936 = vrot.lane.b32.xlu0 %v635_v12, %s1613_s14 }
 0x135   : > { %v749_v39 = vpop.permute.xlu2 %748 }
 0x14e   : > { %v854_v17 = vpop.permute.xlu0 %853 }
 0x14f   : > { %1308 = vmatpush.xpose.msk.msrb.mxu1 %vm681_vm1, %v854_v17 }
 0x156   : > { %v852_v18 = vpop.permute.xlu0 %851 }
 0x157   : > { %1309 = vmatmul.msk.f32.vlgmr.msrb.gmra.mxu1 %vm681_vm1, %v852_v18 }
 0x15e   : > { %v894_v19 = vpop.permute.xlu0 %893 }
 0x15f   : > { %v899_v20 = vsel %vm729_vm2, %v894_v19, 0 }
 0x160   : > { %908 = vmatpush.bf16.msra.mxu1 %v899_v20 }
 0x162   : > { %v705_v29 = vpop.f32.mrf.mxu2 }
 0x163   : > { %v708_v30 = vmul.f32 0.35355338, %v705_v29 }
 0x165   : > { %v709_v31 = vadd.f32 %v708_v30, %v680_v26  ;;  %v812_v30 = vld [vmem:[#allocation2 + $0x4] sm:$0xf] }
 0x166   : > { %v939_v21 = vpop.permute.xlu0 %938 }
 0x167   : > { %1312 = vmatpush.xpose.msk.msrb.mxu1 %vm681_vm1, %v939_v21  ;;  %v710_v32 = vsel %vm681_vm1, %v709_v31, -inf  ;;  %v915_v21 = vld [vmem:[#allocation2 + $0x8] sm:$0xf] }
 0x16e   : > { %v937_v51 = vpop.permute.xlu0 %936 }
 0x1d4   : > { %v876_v24 = vpop.f32.mrf.mxu1 }
 0x1d5   : > { %v879_v25 = vmul.f32 0.35355338, %v876_v24  ;;  %v920_v24 = vsel %vm729_vm2, %v915_v21, 0 }
 0x1d7   : > { %v880_v27 = vadd.f32 %v879_v25, %v680_v26 }
 0x1d9   : > { %v881_v28 = vsel %vm681_vm1, %v880_v27, -inf }
 0x1da   : > { %882 = vmax.xlane.f32.xlu1 %v881_v28 }
 0x1f3   : > { %750 = vrot.lane.b32.xlu1 %v672_v13, %s1611_s21 }
 0x21d   : > { %711 = vmax.xlane.f32.xlu1 %v710_v32 }
 0x24d   : > { %v883_v33 = vpop.xlane.xlu1 %882 }
 0x24e   : > { %v884_v34 = vsub.f32 %v880_v27, %v883_v33 }
 0x250   : > { %v885_v35 = vmul.f32 1.442695, %v884_v34 }
 0x252   : > { %1423 = vpow2.f32 %v885_v35 }
 0x258   : > { %v1424_v36 = vpop.eup %1423 }
 0x259   : > { %v887_v37 = vsel %vm681_vm1, %v1424_v36, 0.0 }
 0x25a   : > { %888 = vadd.xlane.f32.xlu2 %v887_v37 }
 0x265   : > { %v751_v38 = vpop.permute.xlu1 %750 }
 0x266   : > { %1303 = vmatpush.xpose.msk.msrb.mxu2 %vm681_vm1, %v751_v38 }
 0x269   : > { %1304 = vmatmul.msk.f32.vlgmr.msrb.gmra.mxu2 %vm681_vm1, %v749_v39 }
 0x272   : > { %724 = vrot.lane.b32.xlu2 %v1864_v16, %s1614_s20 }
 0x290   : > { %v712_v40 = vpop.xlane.xlu1 %711 }
 0x291   : > { %v713_v41 = vsub.f32 %v709_v31, %v712_v40  ;;  %v817_v31 = vsel %vm729_vm2, %v812_v30, 0 }
 0x293   : > { %v714_v42 = vmul.f32 1.442695, %v713_v41 }
 0x295   : > { %1425 = vpow2.f32 %v714_v42  ;;  %v1000_v42 = vld [vmem:[#allocation2 + $0xc] sm:$0xf] }
 0x29b   : > { %v1426_v43 = vpop.eup %1425 }
 0x29c   : > { %v716_v44 = vsel %vm681_vm1, %v1426_v43, 0.0 }
 0x29d   : > { %717 = vadd.xlane.f32.xlu0 %v716_v44 }
 0x2cd   : > { %v889_v45 = vpop.xlane.xlu2 %888 }
 0x2ce   : > { %1427 = vrcp.f32 %v889_v45 }
 0x2d4   : > { %v1428_v46 = vpop.eup %1427 }
 0x2d5   : > { %v891_v47 = vmul.f32 %v1428_v46, %v1424_v36  ;;  %v725_v48 = vpop.permute.xlu2 %724 }
 0x2d6   : > { %v731_v49 = vsel %vm729_vm2, %v725_v48, 0 }
 0x2d7   : > { %v892_v50 = vpack.c.bf16 %v891_v47, %v891_v47  ;;  %740 = vmatpush.bf16.msra.mxu3 %v731_v49 }
 0x2d9   : > { %1310 = vmatmul.msk.bf16.vlgmr.msra.gmra.mxu1 %vm681_vm1, %v892_v50 }
 0x2db   : > { %826 = vmatpush.bf16.msrb.mxu3 %v817_v31 }
 0x2e9   : > { %1313 = vmatmul.msk.f32.vlgmr.msrb.gmra.mxu1 %vm681_vm1, %v937_v51 }
 0x2ec   : > { %v773_v52 = vpop.f32.mrf.mxu2 }
 0x2ed   : > { %v776_v53 = vmul.f32 0.35355338, %v773_v52 }
 0x2ef   : > { %v777_v54 = vadd.f32 %v776_v53, %v680_v26 }
 0x2f1   : > { %v778_v55 = vsel %vm681_vm1, %v777_v54, -inf }
 0x2f2   : > { %779 = vmax.xlane.f32.xlu2 %v778_v55 }
 0x310   : > { %v718_v56 = vpop.xlane.xlu0 %717 }
 0x311   : > { %1429 = vrcp.f32 %v718_v56  ;;  %v1617_v56 = vmov 32.0  }
 0x317   : > { %v1430_v57 = vpop.eup %1429 }
 0x318   : > { %v720_v58 = vmul.f32 %v1430_v57, %v1426_v43  ;;  %v1005_v43 = vsel %vm729_vm2, %v1000_v42, 0 }
 0x31a   : > { %v721_v59 = vpack.c.bf16 %v720_v58, %v720_v58 }
 0x31c   : > { %1302 = vmatmul.msk.bf16.vlgmr.msra.gmra.mxu3 %vm681_vm1, %v721_v59 }
 0x31d   : > { %1014 = vmatpush.bf16.msra.mxu3 %v1005_v43 }
 0x356   : > { %v910_v60 = vpop.f32.mrf.mxu1 }
 0x357   : > { %v914_v27 = vpack.c.bf16 %v910_v60, %v910_v60 }
 0x35e   : > { %v912_v61 = vpop.f32.mrf.mxu1 }
 0x365   : > { %v780_v62 = vpop.xlane.xlu2 %779 }
 0x366   : > { %v781_v63 = vsub.f32 %v777_v54, %v780_v62  ;;  %v961_v0 = vpop.f32.mrf.mxu1 }
 0x367   : > { %v964_v1 = vmul.f32 0.35355338, %v961_v0 }
 0x368   : > { %v782_v2 = vmul.f32 1.442695, %v781_v63 }
 0x369   : > { %v965_v3 = vadd.f32 %v964_v1, %v680_v26 }
 0x36a   : > { %1431 = vpow2.f32 %v782_v2 }
 0x36b   : > { %v966_v5 = vsel %vm681_vm1, %v965_v3, -inf }
 0x36c   : > { %967 = vmax.xlane.f32.xlu1 %v966_v5 }
 0x370   : > { %v1432_v6 = vpop.eup %1431 }
 0x371   : > { %v784_v7 = vsel %vm681_vm1, %v1432_v6, 0.0 }
 0x372   : > { %785 = vadd.xlane.f32.xlu0 %v784_v7 }
 0x385   : > { %790 = vrot.lane.b32.xlu1 %v1864_v16, %s1615_s29 }
 0x39f   : > { %v742_v10 = vpop.f32.mrf.mxu3 }
 0x3a0   : > { %v746_v11 = vpack.c.bf16 %v742_v10, %v742_v10 }
 0x3a2   : > { %1307 = vmatmul.msk.bf16.vlgmr.msrb.gmra.mxu0 %vm681_vm1, %v746_v11 }
 0x3a7   : > { %v744_v12 = vpop.f32.mrf.mxu3 }
 0x3df   : > { %v968_v13 = vpop.xlane.xlu1 %967 }
 0x3e0   : > { %v969_v14 = vsub.f32 %v965_v3, %v968_v13  ;;  %v1421_v13 = vld [vmem:[#allocation4] ss:$0 sm:$0xff] }
 0x3e2   : > { %v970_v15 = vmul.f32 1.442695, %v969_v14 }
 0x3e4   : > { %1433 = vpow2.f32 %v970_v15  ;;  %v1422_v15 = vld [vmem:[#allocation6] ss:$0 sm:$0xff] }
 0x3e5   : > { %v786_v18 = vpop.xlane.xlu0 %785 }
 0x3e6   : > { %1435 = vrcp.f32 %v786_v18 }
 0x3ea   : > { %v1434_v17 = vpop.eup %1433 }
 0x3eb   : > { %v972_v19 = vsel %vm681_vm1, %v1434_v17, 0.0 }
 0x3ec   : > { %973 = vadd.xlane.f32.xlu0 %v972_v19  ;;  %v1436_v20 = vpop.eup %1435 }
 0x3ed   : > { %v788_v22 = vmul.f32 %v1436_v20, %v1432_v6 }
 0x3ef   : > { %v789_v26 = vpack.c.bf16 %v788_v22, %v788_v22 }
 0x3f7   : > { %v791_v23 = vpop.permute.xlu1 %790 }
 0x3f8   : > { %v796_v25 = vsel %vm729_vm2, %v791_v23, 0 }
 0x3f9   : > { %805 = vmatpush.bf16.msra.mxu2 %v796_v25 }
 0x3fc   : > { %1305 = vmatmul.msk.bf16.vlgmr.msra.gmra.mxu2 %vm681_vm1, %v789_v26 }
 0x3fd   : > { %929 = vmatpush.bf16.msrb.mxu2 %v920_v24 }
 0x400   : > { %978 = vrot.lane.b32.xlu0 %v1864_v16, %s1616_s6 }
 0x40c   : > { %1311 = vmatmul.msk.bf16.vlgmr.msrb.gmra.mxu2 %vm681_vm1, %v914_v27 }
 0x41f   : > { %v847_v28 = vpop.f32.mrf.mxu0 }
 0x427   : > { %v849_v29 = vpop.f32.mrf.mxu0 }
 0x45f   : > { %v974_v32 = vpop.xlane.xlu0 %973 }
 0x460   : > { %1437 = vrcp.f32 %v974_v32 }
 0x461   : > { %1439 = vrcp.f32 %v1617_v56 }
 0x466   : > { %v1438_v33 = vpop.eup %1437 }
 0x467   : > { %v976_v34 = vmul.f32 %v1438_v33, %v1434_v17  ;;  %v1440_v57 = vpop.eup %1439 }
 0x468   : > { %v1026_v58 = vmul.f32 32.0, %v1440_v57  ;;  %vm1030_vm3 = vweird.f32 %v1440_v57 }
 0x469   : > { %v977_v37 = vpack.c.bf16 %v976_v34, %v976_v34 }
 0x46a   : > { %v1027_v59 = vsub.f32 1.0, %v1026_v58 }
 0x46c   : > { %v1028_v60 = vmul.f32 %v1440_v57, %v1027_v59 }
 0x46e   : > { %v1029_v61 = vadd.f32 %v1440_v57, %v1028_v60 }
 0x470   : > { %v1031_v62 = vsel %vm1030_vm3, %v1440_v57, %v1029_v61 }
 0x472   : > { %v979_v35 = vpop.permute.xlu0 %978 }
 0x473   : > { %v984_v36 = vsel %vm729_vm2, %v979_v35, 0 }
 0x474   : > { %993 = vmatpush.bf16.msra.mxu0 %v984_v36 }
 0x477   : > { %1314 = vmatmul.msk.bf16.vlgmr.msra.gmra.mxu0 %vm681_vm1, %v977_v37 }
 0x47f   : > { %v807_v16 = vpop.f32.mrf.mxu2 }
 0x480   : > { %v811_v38 = vpack.c.bf16 %v807_v16, %v807_v16 }
 0x482   : > { %1306 = vmatmul.msk.bf16.vlgmr.msrb.gmra.mxu3 %vm681_vm1, %v811_v38 }
 0x487   : > { %v809_v39 = vpop.f32.mrf.mxu2 }
 0x48f   : > { %v931_v40 = vpop.f32.mrf.mxu2 }
 0x497   : > { %v933_v41 = vpop.f32.mrf.mxu2 }
 0x4f4   : > { %v995_v44 = vpop.f32.mrf.mxu0 }
 0x4f5   : > { %v999_v45 = vpack.c.bf16 %v995_v44, %v995_v44 }
 0x4f7   : > { %1315 = vmatmul.msk.bf16.vlgmr.msra.gmra.mxu3 %vm681_vm1, %v999_v45 }
 0x4fc   : > { %v997_v46 = vpop.f32.mrf.mxu0 }
 0x505   : > { %v828_v47 = vpop.f32.mrf.mxu3 }
 0x506   : > { %v848_v49 = vadd.f32 %v847_v28, %v828_v47 }
 0x508   : > { %v935_v50 = vadd.f32 %v931_v40, %v848_v49 }
 0x50d   : > { %v830_v48 = vpop.f32.mrf.mxu3 }
 0x57a   : > { %v1016_v51 = vpop.f32.mrf.mxu3 }
 0x57b   : > { %v1020_v52 = vadd.f32 %v1016_v51, %v935_v50 }
 0x57d   : > { %v1021_v53 = vadd.f32 %v1020_v52, %v1848_v4 }
 0x57f   : > { %v1022_v54 = vsel %vm621_vm0, %v1021_v53, 0.0 }
 0x580   : > { %1023 = vadd.xlane.f32.xlu1 %v1022_v54 }
 0x582   : > { %v1018_v55 = vpop.f32.mrf.mxu3 }
 0x5f3   : > { %v1024_v63 = vpop.xlane.xlu1 %1023 }
 0x5f4   : > { %v1032_v0 = vmul.f32 %v1031_v62, %v1024_v63 }
 0x5f6   : > { %v1033_v1 = vsub.f32 %v1021_v53, %v1032_v0 }
 0x5f8   : > { %v1034_v2 = vmul.f32 %v1033_v1, %v1033_v1 }
 0x5fa   : > { %v1035_v3 = vsel %vm621_vm0, %v1034_v2, 0.0 }
 0x5fb   : > { %1036 = vadd.xlane.f32.xlu2 %v1035_v3 }
 0x66e   : > { %v1037_v4 = vpop.xlane.xlu2 %1036 }
 0x66f   : > { %v1038_v5 = vmul.f32 %v1037_v4, %v1031_v62 }
 0x671   : > { %v1039_v6 = vadd.f32 1e-05, %v1038_v5 }
 0x673   : > { %1441 = vrsqrt.f32 %v1039_v6  ;;  %vm1046_vm5 = vweird.f32 %v1039_v6 }
 0x679   : > { %v1442_v7 = vpop.eup %1441 }
 0x67a   : > { %v1041_v8 = vmul.f32 %v1442_v7, %v1039_v6  ;;  %vm1047_vm4 = vweird.f32 %v1442_v7 }
 0x67b   : > { %vm1048_vm6 = vmor %vm1046_vm5, %vm1047_vm4 }
 0x67c   : > { %v1042_v9 = vmul.f32 %v1442_v7, %v1041_v8 }
 0x67e   : > { %v1043_v10 = vmul.f32 0.5, %v1042_v9 }
 0x680   : > { %v1044_v11 = vsub.f32 1.5, %v1043_v10 }
 0x682   : > { %v1045_v12 = vmul.f32 %v1442_v7, %v1044_v11 }
 0x684   : > { %v1049_v14 = vsel %vm1048_vm6, %v1442_v7, %v1045_v12 }
 0x685   : > { %v1050_v17 = vmul.f32 %v1049_v14, %v1033_v1 }
 0x687   : > { %v1055_v18 = vmul.f32 %v1421_v13, %v1050_v17 }
 0x689   : > { %v1060_v19 = vadd.f32 %v1422_v15, %v1055_v18 }
 0x68b   : > { %1061 = vst.msk [vmem:[%s596_s30] sm:$0xff] %vm621_vm0, %v1060_v19 }
 0x68c PF: > { %s1970_s16 = sld [smem:[#allocation11_spill]]  ;;  %s1975_s18 = smov %s1583_s19 }
 0x68d   : > { %s1971_s17 = sld [smem:[#allocation9_spill]]  ;;  %s1976_s19 = smov %s1793_s13 }
 0x68e   : > { %s1972_s20 = sld [smem:[#allocation10_spill]]  ;;  %s1977_s21 = smov %s1599_s23 }
 0x68f   : > { %s1973_s22 = sld [smem:[#allocation12_spill]] }
 0x690   : > { %s1974_s28 = sld [smem:[#allocation13_spill]] }
 0x692   : > { %s23_s24 = sadd.s32 1, %s1970_s16  }
 0x693   : > { %p20_p4 = scmp.ge.s32.totalorder %s23_s24, 6  }
 0x695   :  { %22 = sbr.rel (!%p20_p4) target bundleno = 8 (0x8), region = 128 }
 0x696   : > { %s1978_s23 = smov %s1974_s28 }
 0x69a   :  { %1089 = vsyncpa [#allocation3], 1 }
 0x69b   :  { %1091 = vsyncpa [#allocation3 + $0x1], 1 }
 0x69c   :  { %1092 = vsyncpa [#allocation5], 1 }

// kernel: trimodal_block_forward.7
= control target key start
LH: loop header
LB: loop body
LE: loop exit
PB: predicated region body
PF: predicated region fallthrough
CT: control target
= control target key end

     0   :  { %s705_s18 = smov 0   ;;  %s707_s19 = smov 0   ;;  %s764_s0 = inlined_call_operand.vmem [shape: f32[2,16,32], index: 0, kind: input, shape index: {}]   ;;  %s765_s1 = inlined_call_operand.vmem [shape: bf16[2,32,64], index: 1, kind: input, shape index: {}]   ;;  %s766_s2 = inlined_call_operand.vmem [shape: f32[2,1,64], index: 2, kind: input, shape index: {}]   ;;  %s767_s3 = inlined_call_operand.vmem [shape: bf16[2,64,32], index: 3, kind: input, shape index: {}]   ;;  %s768_s4 = inlined_call_operand.vmem [shape: f32[2,1,32], index: 4, kind: input, shape index: {}]   ;;  %s769_s5 = inlined_call_operand.vmem [shape: f32[2,16,32], index: 5, kind: output, shape index: {}]  }
   0x1   :  { %s709_s20 = smov 0  }
   0x2 LB: > { %s27_s21 = sadd.s32 1, %s669_s19  ;;  %p578_p0 = scmp.ge.s32.totalorder %s673_s20, 1  ;;  %s673_s20 = sphi %s709_s20, %s15_s20   ;;  %s669_s19 = sphi %s707_s19, %s771_s19   ;;  %s665_s18 = sphi %s705_s18, %s770_s18  }
   0x3   : > { %p29_p1 = scmp.ge.s32.totalorder %s27_s21, 2  ;;  %p244_p2 = scmp.lt.s32.totalorder %s673_s20, 3 }
   0x5   : > { %s773_s21 = smov (%p29_p1, %s27_s21), 0  ;;  %p245_p3 = pnand %p578_p0, %p244_p2 }
   0x6   : > { %p297_p4 = scmp.lt.s32.totalorder (!%p245_p3), %s665_s18, 1 }
   0x7   : > { %248 = sbr.rel (%p245_p3) target bundleno = 300 (0x12c), region = 40 }
   0xc   : > { %s775_s18 = smov (!%p297_p4, %s665_s18), 1  ;;  %vm356_vm0 = vcmask 261120   ;;  %vm413_vm1 = vcmask 523264  }
   0xd   : > { %s726_s22 = sshll.u32 %s775_s18, 4  ;;  %s313_s25 = scalar_lea.vmem %s766_s2, %s775_s18 }
   0xe   : > { %s310_s28 = scalar_lea.vmem %s765_s1, %s726_s22  ;;  %s304_s6 = scalar_lea.vmem %s764_s0, %s726_s22  ;;  %v649_v10 = vld [vmem:[%s313_s25] ss:$0 sm:$0xff] }
   0xf   : > { %v620_v0 = vld [vmem:[%s310_s28 + $0x8] sm:$0xff]  ;;  %v619_v1 = vld [vmem:[%s310_s28] sm:$0xff]  ;;  %s321_s9 = scalar_lea.vmem %s768_s4, %s775_s18  ;;  %s617_s10 = sshll.u32 %s775_s18, 5 }
  0x10   : > { %366 = vmatpush.bf16.msra.mxu0 %v620_v0  ;;  %v333_v2 = vld [vmem:[%s304_s6] sm:$0xff]  ;;  %v334_v3 = vld [vmem:[%s304_s6 + $0x8] sm:$0xff]  ;;  %s318_s13 = scalar_lea.vmem %s767_s3, %s617_s10  ;;  %s330_s16 = scalar_lea.vmem %s769_s5, %s726_s22 }
  0x11   : > { %v335_v4 = vpack.c.bf16 %v334_v3, %v333_v2  ;;  %v624_v5 = vld [vmem:[%s318_s13 + $0x18] sm:$0xff]  ;;  %v623_v6 = vld [vmem:[%s318_s13 + $0x10] sm:$0xff]  ;;  %v622_v7 = vld [vmem:[%s318_s13 + $0x8] sm:$0xff] }
  0x12   : > { %421 = vmatpush.bf16.msra.mxu1 %v624_v5  ;;  %v621_v8 = vld [vmem:[%s318_s13] sm:$0xff] }
  0x13   : > { %v650_v17 = vld [vmem:[%s321_s9] ss:$0 sm:$0xff] }
  0x14   : > { %367 = vmatpush.bf16.msra.mxu0 %v619_v1 }
  0x16   : > { %422 = vmatpush.bf16.msra.mxu1 %v623_v6 }
  0x17   : > { %595 = vmatmul.msk.bf16.vlgmr.msra.gmra.mxu0 %vm356_vm0, %v335_v4 }
  0x1a   : > { %423 = vmatpush.bf16.msra.mxu1 %v622_v7 }
  0x1e   : > { %424 = vmatpush.bf16.msra.mxu1 %v621_v8 }
  0x94   : > { %v369_v9 = vpop.f32.mrf.mxu0 }
  0x95   : > { %v370_v11 = vadd.f32 %v649_v10, %v369_v9 }
  0x97   : > { %v374_v14 = vmax.f32 %v370_v11, 0.0 }
  0x9c   : > { %v371_v12 = vpop.f32.mrf.mxu0 }
  0x9d   : > { %v372_v13 = vadd.f32 %v649_v10, %v371_v12 }
  0x9f   : > { %v375_v15 = vmax.f32 %v372_v13, 0.0 }
  0xa1   : > { %v376_v16 = vpack.c.bf16 %v375_v15, %v374_v14 }
  0xa3   : > { %612 = vmatmul.msk.bf16.vlgmr.msra.gmra.mxu1 %vm413_vm1, %v376_v16 }
 0x120   : > { %v426_v18 = vpop.f32.mrf.mxu1 }
 0x121   : > { %v427_v19 = vadd.f32 %v650_v17, %v426_v18 }
 0x123   : > { %431 = vst.msk [vmem:[%s330_s16] sm:$0xff] %vm356_vm0, %v427_v19 }
 0x128   : > { %v428_v20 = vpop.f32.mrf.mxu1 }
 0x129   : > { %v429_v21 = vadd.f32 %v650_v17, %v428_v20 }
 0x12b   : > { %432 = vst.msk [vmem:[%s330_s16 + $0x8] sm:$0xff] %vm356_vm0, %v429_v21 }
 0x12c PF: > { %s15_s20 = sadd.s32 1, %s673_s20   ;;  %s770_s18 = smov %s669_s19 }
 0x12d   : > { %p12_p5 = scmp.ge.s32.totalorder %s15_s20, 4   ;;  %s771_s19 = smov %s773_s21 }
 0x12f   :  { %14 = sbr.rel (!%p12_p5) target bundleno = 2 (0x2), region = 82 }

// kernel: trimodal_block_forward.6
= control target key start
LH: loop header
LB: loop body
LE: loop exit
PB: predicated region body
PF: predicated region fallthrough
CT: control target
= control target key end

     0   :  { %s1872_s0 = inlined_call_operand.vmem [shape: f32[1,2,8,32], index: 0, kind: input, shape index: {}]   ;;  %s1873_s1 = inlined_call_operand.vmem [shape: f32[1,2,8,32], index: 1, kind: input, shape index: {}]   ;;  %s1874_s2 = inlined_call_operand.vmem [shape: bf16[1,32,32], index: 2, kind: input, shape index: {}]   ;;  %s1875_s3 = inlined_call_operand.vmem [shape: f32[1,1,32], index: 3, kind: input, shape index: {}]   ;;  %s1876_s4 = inlined_call_operand.hbm [shape: bf16[1,32,64], index: 4, kind: input, shape index: {}]   ;;  %s1877_s5 = inlined_call_operand.hbm [shape: f32[1,1,64], index: 5, kind: input, shape index: {}]   ;;  %s1878_s6 = inlined_call_operand.hbm [shape: bf16[1,32,32], index: 6, kind: input, shape index: {}]   ;;  %s1879_s7 = inlined_call_operand.hbm [shape: f32[1,1,32], index: 7, kind: input, shape index: {}]   ;;  %s1880_s8 = inlined_call_operand.hbm [shape: f32[1,1,32], index: 8, kind: input, shape index: {}]   ;;  %s1881_s9 = inlined_call_operand.vmem [shape: f32[8,8], index: 9, kind: input, shape index: {}]   ;;  %s1882_s10 = inlined_call_operand.vmem [shape: f32[2,1,8], index: 10, kind: input, shape index: {}]   ;;  %s1883_s11 = inlined_call_operand.vmem [shape: f32[1,2,8,32], index: 11, kind: output, shape index: {}]  }
   0x1   :  { %1884 = sst [smem:[#allocation13_spill]] %s1876_s4 }
   0x2   :  { %1885 = sst [smem:[#allocation14_spill]] %s1877_s5 }
   0x3   :  { %16 = vsyncpa [#allocation3], 0 }
   0x4   :  { %17 = vsyncpa [#allocation5], 0 }
   0x5   :  { %18 = vsyncpa [#allocation8], 0  ;;  %s1699_s17 = smov 0   ;;  %s1701_s18 = smov 0  }
   0x6   :  { %s1703_s19 = smov 0  }
   0x7 LB: > { %s1886_s5 = sld [smem:[#allocation14_spill]]  ;;  %s1268_s23 = sadd.s32 4294967295, %s1622_s19   ;;  %s1622_s19 = sphi %s1703_s19, %s24_s19   ;;  %s1618_s18 = sphi %s1701_s18, %s1892_s18   ;;  %s1614_s17 = sphi %s1699_s17, %s1891_s17  }
   0x8   : > { %p1270_p0 = scmp.ge.s32.totalorder %s1622_s19, 1  ;;  %p354_p1 = scmp.lt.s32.totalorder %s1622_s19, 3 }
   0x9   : > { %p1720_p2 = scmp.eq.s32.totalorder %s1268_s23, 0  ;;  %s1624_s26 = smov [#allocation4]  }
   0xa   : > { %p1724_p3 = pnand %p1270_p0, %p354_p1  ;;  %s400_s27 = sshll.u32 %s1624_s26, 4  ;;  %s401_s27 = int_to_ptr.vmem [resolvable:$true] %s400_s27 }
   0xb   : > { %s428_s30 = sshll.u32 %s1879_s7, 4  ;;  %s1625_s13 = smov [#allocation7]   ;;  %s429_s30 = int_to_ptr.hbm [resolvable:$true] %s428_s30 }
   0xc   : > { %p1348_p4 = pneg %p1724_p3  ;;  %s430_s14 = sshll.u32 %s1625_s13, 4  ;;  %s431_s14 = int_to_ptr.vmem [resolvable:$true] %s430_s14 }
   0xd   : > { %s398_s22 = sshll.u32 %s1886_s5, 4  ;;  %s33_s15 = sadd.s32 1, %s1618_s18  ;;  %s399_s22 = int_to_ptr.hbm [resolvable:$true] %s398_s22 }
   0xe   : > { %p1735_p5 = pnand %p1720_p2, %p1348_p4  ;;  %p34_p6 = scmp.ge.s32.totalorder %s33_s15, 2 }
   0xf   : > { %s1890_s4 = sld [smem:[#allocation13_spill]]  ;;  %s1626_s23 = smov [#allocation2]  }
  0x10   : > { %1354 = dma.hbm_to_vmem [thread:$0]  (!%p1735_p5), %s399_s22, 16, %s401_s27, [#allocation5]  }
  0x11   : > { %1360 = dma.hbm_to_vmem [thread:$0]  (!%p1735_p5), %s429_s30, 16, %s431_s14, [#allocation8]  }
  0x12   : > { %s1894_s15 = smov (%p34_p6, %s33_s15), 0  ;;  %s384_s26 = sshll.u32 %s1626_s23, 4  ;;  %s385_s26 = int_to_ptr.vmem [resolvable:$true] %s384_s26 }
  0x13   : > { %s1627_s28 = smov 64   ;;  %s1628_s29 = smov 4  }
  0x14   : > { %s412_s30 = sshll.u32 %s1878_s6, 4  ;;  %s1629_s13 = smov [#allocation6]   ;;  %s413_s30 = int_to_ptr.hbm [resolvable:$true] %s412_s30 }
  0x15   : > { %s382_s21 = sshll.u32 %s1890_s4, 4  ;;  %s414_s14 = sshll.u32 %s1629_s13, 4  ;;  %s383_s21 = int_to_ptr.hbm [resolvable:$true] %s382_s21  ;;  %s415_s14 = int_to_ptr.vmem [resolvable:$true] %s414_s14 }
  0x16   : > { %1351 = dma.hbm_to_vmem [thread:$0]  (!%p1735_p5), %s383_s21, 256, %s385_s26, [#allocation3], %s1627_s28, %s1627_s28, %s1628_s29  }
  0x17   : > { %s441_s4 = sshll.u32 %s1880_s8, 4  ;;  %s1630_s23 = smov [#allocation9]   ;;  %s442_s4 = int_to_ptr.hbm [resolvable:$true] %s441_s4 }
  0x18   : > { %1357 = dma.hbm_to_vmem [thread:$0]  (!%p1735_p5), %s413_s30, 256, %s415_s14, [#allocation5], %s1627_s28, %s1627_s28, %s1628_s29  }
  0x19   : > { %s443_s5 = sshll.u32 %s1630_s23, 4  ;;  %487 = sbr.rel (%p1724_p3) target bundleno = 1628 (0x65c), region = 64  ;;  %s444_s5 = int_to_ptr.vmem [resolvable:$true] %s443_s5 }
  0x1a   : > { %1363 = dma.hbm_to_vmem [thread:$0]  (!%p1735_p5), %s442_s4, 16, %s444_s5, [#allocation8]  }
  0x1e   : > { %1601 = dma.done.wait (%p1720_p2), [#allocation3], 256  }
  0x1f   : > { %1603 = vsyncadd (%p1720_p2), [#allocation3], 4294967040 }
  0x20   : > { %1605 = dma.done.wait (%p1720_p2), [#allocation5], 272  }
  0x21   : > { %1607 = vsyncadd (%p1720_p2), [#allocation5], 4294967024 }
  0x22   : > { %1609 = dma.done.wait (%p1720_p2), [#allocation8], 32  }
  0x23   : > { %1611 = vsyncadd (%p1720_p2), [#allocation8], 4294967264  ;;  %p575_p7 = scmp.lt.s32.totalorder %s1614_s17, 1  ;;  %v1325_v0 = vld [vmem:[%s1874_s2 + $0x8] sm:$0xff]  ;;  %v1324_v2 = vld [vmem:[%s1874_s2] sm:$0xff]  ;;  %vm632_vm0 = vcmask 261120  }
  0x24   : > { %v1327_v1 = vld [vmem:[#allocation2 + $0x8] sm:$0xff]  ;;  %v1326_v3 = vld [vmem:[#allocation2] sm:$0xff]  ;;  %642 = vmatpush.bf16.msra.mxu0 %v1325_v0  ;;  %v1414_v9 = vld [vmem:[#allocation4] ss:$0 sm:$0xff]  ;;  %vm692_vm1 = vcmask 64512   ;;  %s1631_s23 = smov 112  }
  0x25   : > { %s1896_s17 = smov (!%p575_p7, %s1614_s17), 1  ;;  %679 = vmatpush.bf16.msra.mxu1 %v1327_v1  ;;  %v1413_v8 = vld [vmem:[%s1875_s3] ss:$0 sm:$0xff]  ;;  %s1632_s5 = smov 120   ;;  %vm740_vm2 = vcmask 1043456  }
  0x26   : > { %s1780_s4 = sshll.u32 %s1896_s17, 3  ;;  %s599_s14 = scalar_lea.vmem %s1882_s10, %s1896_s17  ;;  %v686_v23 = vld [vmem:[%s1881_s9] sm:$0xff] }
  0x27   : > { %s580_s12 = scalar_lea.vmem %s1872_s0, %s1780_s4  ;;  %s588_s24 = scalar_lea.vmem %s1873_s1, %s1780_s4  ;;  %v1415_v22 = vld [vmem:[%s599_s14] ss:$0 sm:$0xff] }
  0x28   : > { %v1796_v4 = vld [vmem:[%s580_s12] sm:$0xff]  ;;  %643 = vmatpush.bf16.msra.mxu0 %v1324_v2  ;;  %s1633_s25 = smov 80   ;;  %s1634_s12 = smov 104   ;;  %v691_v26 = vadd.f32 %v1415_v22, %v686_v23 }
  0x29   : > { %v610_v5 = vld [vmem:[%s588_s24] sm:$0xff]  ;;  %v611_v6 = vpack.c.bf16 %v1796_v4, %v1796_v4  ;;  %680 = vmatpush.bf16.msra.mxu1 %v1326_v3  ;;  %s1635_s17 = smov 96   ;;  %s1636_s29 = smov 88  }
  0x2a   : > { %v649_v7 = vpack.c.bf16 %v610_v5, %v610_v5  ;;  %s1637_s22 = smov 72   ;;  %s607_s13 = scalar_lea.vmem %s1883_s11, %s1780_s4 }
  0x2b   : > { %1296 = vmatmul.msk.bf16.vlgmr.msra.gmra.mxu0 %vm632_vm0, %v611_v6 }
  0x2c   : > { %1305 = vmatmul.msk.bf16.vlgmr.msra.gmra.mxu1 %vm632_vm0, %v649_v7 }
  0xa8   : > { %v645_v10 = vpop.f32.mrf.mxu0 }
  0xa9   : > { %v682_v11 = vpop.f32.mrf.mxu1  ;;  %v646_v12 = vadd.f32 %v1413_v8, %v645_v10  ;;  %v758_v8 = vld [vmem:[#allocation6] sm:$0xf] }
  0xaa   : > { %v683_v13 = vadd.f32 %v1414_v9, %v682_v11  ;;  %v847_v9 = vsel %vm740_vm2, %v758_v8, 0 }
  0xab   : > { %759 = vrot.lane.b32.xlu2 %v646_v12, %s1632_s5  ;;  %856 = vmatpush.bf16.msrb.mxu0 %v847_v9 }
  0xac   : > { %864 = vrot.lane.b32.xlu0 %v683_v13, %s1631_s23  ;;  %1306 = vmatpush.xpose.msk.msra.mxu2 %vm692_vm1, %v683_v13  ;;  %v1811_v16 = vpack.c.bf16 %v683_v13, %v683_v13 }
  0xaf   : > { %1307 = vmatmul.msk.f32.vlgmr.msra.gmra.mxu2 %vm692_vm1, %v646_v12 }
  0xb0   : > { %v647_v14 = vpop.f32.mrf.mxu0 }
  0xb1   : > { %v684_v15 = vpop.f32.mrf.mxu1 }
  0xb4   : > { %862 = vrot.lane.b32.xlu0 %v646_v12, %s1631_s23 }
  0xbc   : > { %904 = vrot.lane.b32.xlu0 %v1811_v16, %s1633_s25 }
  0xc4   : > { %949 = vrot.lane.b32.xlu0 %v683_v13, %s1634_s12 }
  0xcc   : > { %947 = vrot.lane.b32.xlu0 %v646_v12, %s1634_s12 }
 0x105   : > { %v760_v39 = vpop.permute.xlu2 %759 }
 0x11e   : > { %v865_v17 = vpop.permute.xlu0 %864 }
 0x11f   : > { %1314 = vmatpush.xpose.msk.msrb.mxu1 %vm692_vm1, %v865_v17 }
 0x126   : > { %v863_v18 = vpop.permute.xlu0 %862 }
 0x127   : > { %1315 = vmatmul.msk.f32.vlgmr.msrb.gmra.mxu1 %vm692_vm1, %v863_v18 }
 0x12e   : > { %v905_v19 = vpop.permute.xlu0 %904 }
 0x12f   : > { %v910_v20 = vsel %vm740_vm2, %v905_v19, 0 }
 0x130   : > { %919 = vmatpush.bf16.msra.mxu1 %v910_v20 }
 0x132   : > { %v716_v29 = vpop.f32.mrf.mxu2 }
 0x133   : > { %v719_v30 = vmul.f32 0.35355338, %v716_v29 }
 0x135   : > { %v720_v31 = vadd.f32 %v719_v30, %v691_v26  ;;  %v823_v30 = vld [vmem:[#allocation6 + $0x4] sm:$0xf] }
 0x136   : > { %v950_v21 = vpop.permute.xlu0 %949 }
 0x137   : > { %1318 = vmatpush.xpose.msk.msrb.mxu1 %vm692_vm1, %v950_v21  ;;  %v721_v32 = vsel %vm692_vm1, %v720_v31, -inf  ;;  %v926_v21 = vld [vmem:[#allocation6 + $0x8] sm:$0xf] }
 0x13e   : > { %v948_v51 = vpop.permute.xlu0 %947 }
 0x1a4   : > { %v887_v24 = vpop.f32.mrf.mxu1 }
 0x1a5   : > { %v890_v25 = vmul.f32 0.35355338, %v887_v24  ;;  %v931_v24 = vsel %vm740_vm2, %v926_v21, 0 }
 0x1a7   : > { %v891_v27 = vadd.f32 %v890_v25, %v691_v26 }
 0x1a9   : > { %v892_v28 = vsel %vm692_vm1, %v891_v27, -inf }
 0x1aa   : > { %893 = vmax.xlane.f32.xlu1 %v892_v28 }
 0x1c3   : > { %761 = vrot.lane.b32.xlu1 %v683_v13, %s1632_s5 }
 0x1ed   : > { %722 = vmax.xlane.f32.xlu1 %v721_v32 }
 0x21d   : > { %v894_v33 = vpop.xlane.xlu1 %893 }
 0x21e   : > { %v895_v34 = vsub.f32 %v891_v27, %v894_v33 }
 0x220   : > { %v896_v35 = vmul.f32 1.442695, %v895_v34 }
 0x222   : > { %1418 = vpow2.f32 %v896_v35 }
 0x228   : > { %v1419_v36 = vpop.eup %1418 }
 0x229   : > { %v898_v37 = vsel %vm692_vm1, %v1419_v36, 0.0 }
 0x22a   : > { %899 = vadd.xlane.f32.xlu2 %v898_v37 }
 0x235   : > { %v762_v38 = vpop.permute.xlu1 %761 }
 0x236   : > { %1309 = vmatpush.xpose.msk.msrb.mxu2 %vm692_vm1, %v762_v38 }
 0x239   : > { %1310 = vmatmul.msk.f32.vlgmr.msrb.gmra.mxu2 %vm692_vm1, %v760_v39 }
 0x242   : > { %735 = vrot.lane.b32.xlu2 %v1811_v16, %s1635_s17 }
 0x260   : > { %v723_v40 = vpop.xlane.xlu1 %722 }
 0x261   : > { %v724_v41 = vsub.f32 %v720_v31, %v723_v40  ;;  %v828_v31 = vsel %vm740_vm2, %v823_v30, 0 }
 0x263   : > { %v725_v42 = vmul.f32 1.442695, %v724_v41 }
 0x265   : > { %1420 = vpow2.f32 %v725_v42  ;;  %v1011_v42 = vld [vmem:[#allocation6 + $0xc] sm:$0xf] }
 0x26b   : > { %v1421_v43 = vpop.eup %1420 }
 0x26c   : > { %v727_v44 = vsel %vm692_vm1, %v1421_v43, 0.0 }
 0x26d   : > { %728 = vadd.xlane.f32.xlu0 %v727_v44 }
 0x29d   : > { %v900_v45 = vpop.xlane.xlu2 %899 }
 0x29e   : > { %1422 = vrcp.f32 %v900_v45 }
 0x2a4   : > { %v1423_v46 = vpop.eup %1422 }
 0x2a5   : > { %v902_v47 = vmul.f32 %v1423_v46, %v1419_v36  ;;  %v736_v48 = vpop.permute.xlu2 %735 }
 0x2a6   : > { %v742_v49 = vsel %vm740_vm2, %v736_v48, 0 }
 0x2a7   : > { %v903_v50 = vpack.c.bf16 %v902_v47, %v902_v47  ;;  %751 = vmatpush.bf16.msra.mxu3 %v742_v49 }
 0x2a9   : > { %1316 = vmatmul.msk.bf16.vlgmr.msra.gmra.mxu1 %vm692_vm1, %v903_v50 }
 0x2ab   : > { %837 = vmatpush.bf16.msrb.mxu3 %v828_v31 }
 0x2b9   : > { %1319 = vmatmul.msk.f32.vlgmr.msrb.gmra.mxu1 %vm692_vm1, %v948_v51 }
 0x2bc   : > { %v784_v52 = vpop.f32.mrf.mxu2 }
 0x2bd   : > { %v787_v53 = vmul.f32 0.35355338, %v784_v52 }
 0x2bf   : > { %v788_v54 = vadd.f32 %v787_v53, %v691_v26 }
 0x2c1   : > { %v789_v55 = vsel %vm692_vm1, %v788_v54, -inf }
 0x2c2   : > { %790 = vmax.xlane.f32.xlu2 %v789_v55 }
 0x2e0   : > { %v729_v56 = vpop.xlane.xlu0 %728 }
 0x2e1   : > { %1424 = vrcp.f32 %v729_v56  ;;  %v1638_v56 = vmov 32.0  }
 0x2e7   : > { %v1425_v57 = vpop.eup %1424 }
 0x2e8   : > { %v731_v58 = vmul.f32 %v1425_v57, %v1421_v43  ;;  %v1016_v43 = vsel %vm740_vm2, %v1011_v42, 0 }
 0x2ea   : > { %v732_v59 = vpack.c.bf16 %v731_v58, %v731_v58 }
 0x2ec   : > { %1308 = vmatmul.msk.bf16.vlgmr.msra.gmra.mxu3 %vm692_vm1, %v732_v59 }
 0x2ed   : > { %1025 = vmatpush.bf16.msra.mxu3 %v1016_v43 }
 0x326   : > { %v921_v60 = vpop.f32.mrf.mxu1 }
 0x327   : > { %v925_v27 = vpack.c.bf16 %v921_v60, %v921_v60 }
 0x32e   : > { %v923_v61 = vpop.f32.mrf.mxu1 }
 0x335   : > { %v791_v62 = vpop.xlane.xlu2 %790 }
 0x336   : > { %v792_v63 = vsub.f32 %v788_v54, %v791_v62  ;;  %v972_v0 = vpop.f32.mrf.mxu1 }
 0x337   : > { %v975_v1 = vmul.f32 0.35355338, %v972_v0 }
 0x338   : > { %v793_v2 = vmul.f32 1.442695, %v792_v63 }
 0x339   : > { %v976_v3 = vadd.f32 %v975_v1, %v691_v26 }
 0x33a   : > { %1426 = vpow2.f32 %v793_v2 }
 0x33b   : > { %v977_v5 = vsel %vm692_vm1, %v976_v3, -inf }
 0x33c   : > { %978 = vmax.xlane.f32.xlu1 %v977_v5 }
 0x340   : > { %v1427_v6 = vpop.eup %1426 }
 0x341   : > { %v795_v7 = vsel %vm692_vm1, %v1427_v6, 0.0 }
 0x342   : > { %796 = vadd.xlane.f32.xlu0 %v795_v7 }
 0x355   : > { %801 = vrot.lane.b32.xlu1 %v1811_v16, %s1636_s29 }
 0x36f   : > { %v753_v10 = vpop.f32.mrf.mxu3 }
 0x370   : > { %v757_v11 = vpack.c.bf16 %v753_v10, %v753_v10 }
 0x372   : > { %1313 = vmatmul.msk.bf16.vlgmr.msrb.gmra.mxu0 %vm692_vm1, %v757_v11 }
 0x377   : > { %v755_v12 = vpop.f32.mrf.mxu3 }
 0x3af   : > { %v979_v13 = vpop.xlane.xlu1 %978 }
 0x3b0   : > { %v980_v14 = vsub.f32 %v976_v3, %v979_v13  ;;  %v1416_v13 = vld [vmem:[#allocation7] ss:$0 sm:$0xff] }
 0x3b2   : > { %v981_v15 = vmul.f32 1.442695, %v980_v14 }
 0x3b4   : > { %1428 = vpow2.f32 %v981_v15  ;;  %v1417_v15 = vld [vmem:[#allocation9] ss:$0 sm:$0xff] }
 0x3b5   : > { %v797_v18 = vpop.xlane.xlu0 %796 }
 0x3b6   : > { %1430 = vrcp.f32 %v797_v18 }
 0x3ba   : > { %v1429_v17 = vpop.eup %1428 }
 0x3bb   : > { %v983_v19 = vsel %vm692_vm1, %v1429_v17, 0.0 }
 0x3bc   : > { %984 = vadd.xlane.f32.xlu0 %v983_v19  ;;  %v1431_v20 = vpop.eup %1430 }
 0x3bd   : > { %v799_v22 = vmul.f32 %v1431_v20, %v1427_v6 }
 0x3bf   : > { %v800_v26 = vpack.c.bf16 %v799_v22, %v799_v22 }
 0x3c7   : > { %v802_v23 = vpop.permute.xlu1 %801 }
 0x3c8   : > { %v807_v25 = vsel %vm740_vm2, %v802_v23, 0 }
 0x3c9   : > { %816 = vmatpush.bf16.msra.mxu2 %v807_v25 }
 0x3cc   : > { %1311 = vmatmul.msk.bf16.vlgmr.msra.gmra.mxu2 %vm692_vm1, %v800_v26 }
 0x3cd   : > { %940 = vmatpush.bf16.msrb.mxu2 %v931_v24 }
 0x3d0   : > { %989 = vrot.lane.b32.xlu0 %v1811_v16, %s1637_s22 }
 0x3dc   : > { %1317 = vmatmul.msk.bf16.vlgmr.msrb.gmra.mxu2 %vm692_vm1, %v925_v27 }
 0x3ef   : > { %v858_v28 = vpop.f32.mrf.mxu0 }
 0x3f7   : > { %v860_v29 = vpop.f32.mrf.mxu0 }
 0x42f   : > { %v985_v32 = vpop.xlane.xlu0 %984 }
 0x430   : > { %1432 = vrcp.f32 %v985_v32 }
 0x431   : > { %1434 = vrcp.f32 %v1638_v56 }
 0x436   : > { %v1433_v33 = vpop.eup %1432 }
 0x437   : > { %v987_v34 = vmul.f32 %v1433_v33, %v1429_v17  ;;  %v1435_v57 = vpop.eup %1434 }
 0x438   : > { %v1037_v58 = vmul.f32 32.0, %v1435_v57  ;;  %vm1041_vm3 = vweird.f32 %v1435_v57 }
 0x439   : > { %v988_v37 = vpack.c.bf16 %v987_v34, %v987_v34 }
 0x43a   : > { %v1038_v59 = vsub.f32 1.0, %v1037_v58 }
 0x43c   : > { %v1039_v60 = vmul.f32 %v1435_v57, %v1038_v59 }
 0x43e   : > { %v1040_v61 = vadd.f32 %v1435_v57, %v1039_v60 }
 0x440   : > { %v1042_v62 = vsel %vm1041_vm3, %v1435_v57, %v1040_v61 }
 0x442   : > { %v990_v35 = vpop.permute.xlu0 %989 }
 0x443   : > { %v995_v36 = vsel %vm740_vm2, %v990_v35, 0 }
 0x444   : > { %1004 = vmatpush.bf16.msra.mxu0 %v995_v36 }
 0x447   : > { %1320 = vmatmul.msk.bf16.vlgmr.msra.gmra.mxu0 %vm692_vm1, %v988_v37 }
 0x44f   : > { %v818_v16 = vpop.f32.mrf.mxu2 }
 0x450   : > { %v822_v38 = vpack.c.bf16 %v818_v16, %v818_v16 }
 0x452   : > { %1312 = vmatmul.msk.bf16.vlgmr.msrb.gmra.mxu3 %vm692_vm1, %v822_v38 }
 0x457   : > { %v820_v39 = vpop.f32.mrf.mxu2 }
 0x45f   : > { %v942_v40 = vpop.f32.mrf.mxu2 }
 0x467   : > { %v944_v41 = vpop.f32.mrf.mxu2 }
 0x4c4   : > { %v1006_v44 = vpop.f32.mrf.mxu0 }
 0x4c5   : > { %v1010_v45 = vpack.c.bf16 %v1006_v44, %v1006_v44 }
 0x4c7   : > { %1321 = vmatmul.msk.bf16.vlgmr.msra.gmra.mxu3 %vm692_vm1, %v1010_v45 }
 0x4cc   : > { %v1008_v46 = vpop.f32.mrf.mxu0 }
 0x4d5   : > { %v839_v47 = vpop.f32.mrf.mxu3 }
 0x4d6   : > { %v859_v49 = vadd.f32 %v858_v28, %v839_v47 }
 0x4d8   : > { %v946_v50 = vadd.f32 %v942_v40, %v859_v49 }
 0x4dd   : > { %v841_v48 = vpop.f32.mrf.mxu3 }
 0x54a   : > { %v1027_v51 = vpop.f32.mrf.mxu3 }
 0x54b   : > { %v1031_v52 = vadd.f32 %v1027_v51, %v946_v50 }
 0x54d   : > { %v1032_v53 = vadd.f32 %v1031_v52, %v1796_v4 }
 0x54f   : > { %v1033_v54 = vsel %vm632_vm0, %v1032_v53, 0.0 }
 0x550   : > { %1034 = vadd.xlane.f32.xlu1 %v1033_v54 }
 0x552   : > { %v1029_v55 = vpop.f32.mrf.mxu3 }
 0x5c3   : > { %v1035_v63 = vpop.xlane.xlu1 %1034 }
 0x5c4   : > { %v1043_v0 = vmul.f32 %v1042_v62, %v1035_v63 }
 0x5c6   : > { %v1044_v1 = vsub.f32 %v1032_v53, %v1043_v0 }
 0x5c8   : > { %v1045_v2 = vmul.f32 %v1044_v1, %v1044_v1 }
 0x5ca   : > { %v1046_v3 = vsel %vm632_vm0, %v1045_v2, 0.0 }
 0x5cb   : > { %1047 = vadd.xlane.f32.xlu2 %v1046_v3 }
 0x63e   : > { %v1048_v4 = vpop.xlane.xlu2 %1047 }
 0x63f   : > { %v1049_v5 = vmul.f32 %v1048_v4, %v1042_v62 }
 0x641   : > { %v1050_v6 = vadd.f32 1e-05, %v1049_v5 }
 0x643   : > { %1436 = vrsqrt.f32 %v1050_v6  ;;  %vm1057_vm5 = vweird.f32 %v1050_v6 }
 0x649   : > { %v1437_v7 = vpop.eup %1436 }
 0x64a   : > { %v1052_v8 = vmul.f32 %v1437_v7, %v1050_v6  ;;  %vm1058_vm4 = vweird.f32 %v1437_v7 }
 0x64b   : > { %vm1059_vm6 = vmor %vm1057_vm5, %vm1058_vm4 }
 0x64c   : > { %v1053_v9 = vmul.f32 %v1437_v7, %v1052_v8 }
 0x64e   : > { %v1054_v10 = vmul.f32 0.5, %v1053_v9 }
 0x650   : > { %v1055_v11 = vsub.f32 1.5, %v1054_v10 }
 0x652   : > { %v1056_v12 = vmul.f32 %v1437_v7, %v1055_v11 }
 0x654   : > { %v1060_v14 = vsel %vm1059_vm6, %v1437_v7, %v1056_v12 }
 0x655   : > { %v1061_v17 = vmul.f32 %v1060_v14, %v1044_v1 }
 0x657   : > { %v1066_v18 = vmul.f32 %v1416_v13, %v1061_v17 }
 0x659   : > { %v1071_v19 = vadd.f32 %v1417_v15, %v1066_v18 }
 0x65b   : > { %1072 = vst.msk [vmem:[%s607_s13] sm:$0xff] %vm632_vm0, %v1071_v19 }
 0x65c PF: > { %s24_s19 = sadd.s32 1, %s1622_s19   ;;  %s1891_s17 = smov %s1618_s18 }
 0x65d   : > { %p21_p8 = scmp.ge.s32.totalorder %s24_s19, 4   ;;  %s1892_s18 = smov %s1894_s15 }
 0x65f   :  { %23 = sbr.rel (!%p21_p8) target bundleno = 7 (0x7), region = 132 }
 0x664   :  { %1100 = vsyncpa [#allocation3], 1 }
 0x665   :  { %1102 = vsyncpa [#allocation3 + $0x1], 1 }
 0x666   :  { %1103 = vsyncpa [#allocation5], 1 }
 0x667   :  { %1104 = vsyncpa [#allocation8], 1 }

// kernel: trimodal_block_forward.5
= control target key start
LH: loop header
LB: loop body
LE: loop exit
PB: predicated region body
PF: predicated region fallthrough
CT: control target
= control target key end

     0   :  { %16 = vsyncpa [#allocation3], 0  ;;  %s1507_s17 = smov 0   ;;  %s1509_s18 = smov 0   ;;  %s1648_s0 = inlined_call_operand.vmem [shape: f32[1,2,8,32], index: 0, kind: input, shape index: {}]   ;;  %s1649_s1 = inlined_call_operand.vmem [shape: f32[1,2,8,32], index: 1, kind: input, shape index: {}]   ;;  %s1650_s2 = inlined_call_operand.vmem [shape: bf16[1,32,32], index: 2, kind: input, shape index: {}]   ;;  %s1651_s3 = inlined_call_operand.vmem [shape: f32[1,1,32], index: 3, kind: input, shape index: {}]   ;;  %s1652_s4 = inlined_call_operand.vmem [shape: bf16[1,32,64], index: 4, kind: input, shape index: {}]   ;;  %s1653_s5 = inlined_call_operand.vmem [shape: f32[1,1,64], index: 5, kind: input, shape index: {}]   ;;  %s1654_s6 = inlined_call_operand.vmem [shape: bf16[1,32,32], index: 6, kind: input, shape index: {}]   ;;  %s1655_s7 = inlined_call_operand.vmem [shape: f32[1,1,32], index: 7, kind: input, shape index: {}]   ;;  %s1656_s8 = inlined_call_operand.hbm [shape: f32[1,1,32], index: 8, kind: input, shape index: {}]   ;;  %s1657_s9 = inlined_call_operand.vmem [shape: f32[8,8], index: 9, kind: input, shape index: {}]   ;;  %s1658_s10 = inlined_call_operand.vmem [shape: f32[2,1,8], index: 10, kind: input, shape index: {}]   ;;  %s1659_s11 = inlined_call_operand.vmem [shape: f32[1,2,8,32], index: 11, kind: output, shape index: {}]  }
   0x1   :  { %s1511_s19 = smov 0  }
   0x2 LB: > { %s1256_s20 = sadd.s32 4294967295, %s1436_s19   ;;  %s31_s21 = sadd.s32 1, %s1432_s18  ;;  %s1436_s19 = sphi %s1511_s19, %s22_s19   ;;  %s1432_s18 = sphi %s1509_s18, %s1661_s18   ;;  %s1428_s17 = sphi %s1507_s17, %s1660_s17  }
   0x3   : > { %p32_p0 = scmp.ge.s32.totalorder %s31_s21, 2  ;;  %p1258_p1 = scmp.ge.s32.totalorder %s1436_s19, 1 }
   0x4   : > { %p352_p2 = scmp.lt.s32.totalorder %s1436_s19, 3  ;;  %p1320_p4 = scmp.eq.s32.totalorder %s1256_s20, 0 }
   0x5   : > { %s1663_s21 = smov (%p32_p0, %s31_s21), 0  ;;  %s407_s24 = sshll.u32 %s1656_s8, 4  ;;  %s408_s24 = int_to_ptr.hbm [resolvable:$true] %s407_s24 }
   0x6   : > { %p353_p3 = pnand %p1258_p1, %p352_p2  ;;  %s1438_s25 = smov [#allocation2]  }
   0x7   : > { %s409_s26 = sshll.u32 %s1438_s25, 4  ;;  %s410_s26 = int_to_ptr.vmem [resolvable:$true] %s409_s26 }
   0x8   : > { %p1316_p5 = pneg %p353_p3  ;;  %453 = sbr.rel (%p353_p3) target bundleno = 1607 (0x647), region = 64 }
   0xa   : > { %p1317_p6 = pnand %p1320_p4, %p1316_p5 }
   0xc   : > { %1319 = dma.hbm_to_vmem [thread:$0]  (!%p1317_p6), %s408_s24, 16, %s410_s26, [#allocation3]  }
   0xd   : > { %1423 = dma.done.wait (%p1320_p4), [#allocation3], 16  }
   0xe   : > { %1425 = vsyncadd (%p1320_p4), [#allocation3], 4294967280  ;;  %p537_p7 = scmp.lt.s32.totalorder %s1428_s17, 1  ;;  %v1309_v0 = vld [vmem:[%s1650_s2 + $0x8] sm:$0xff]  ;;  %v1308_v2 = vld [vmem:[%s1650_s2] sm:$0xff]  ;;  %vm610_vm0 = vcmask 261120  }
   0xf   : > { %v1311_v1 = vld [vmem:[%s1652_s4 + $0x8] sm:$0xff]  ;;  %v1310_v3 = vld [vmem:[%s1652_s4] sm:$0xff]  ;;  %620 = vmatpush.bf16.msra.mxu0 %v1309_v0  ;;  %vm670_vm1 = vcmask 64512   ;;  %s1440_s20 = smov 120   ;;  %s1441_s22 = smov 80   ;;  %vm718_vm2 = vcmask 1043456  }
  0x10   : > { %s1665_s17 = smov (!%p537_p7, %s1428_s17), 1  ;;  %657 = vmatpush.bf16.msra.mxu1 %v1311_v1  ;;  %v1355_v8 = vld [vmem:[%s1651_s3] ss:$0 sm:$0xff]  ;;  %s1442_s23 = smov 104  }
  0x11   : > { %s1532_s27 = sshll.u32 %s1665_s17, 3  ;;  %s577_s12 = scalar_lea.vmem %s1658_s10, %s1665_s17  ;;  %v1356_v9 = vld [vmem:[%s1653_s5] ss:$0 sm:$0xff] }
  0x12   : > { %s542_s30 = scalar_lea.vmem %s1648_s0, %s1532_s27  ;;  %s550_s14 = scalar_lea.vmem %s1649_s1, %s1532_s27  ;;  %v1357_v22 = vld [vmem:[%s577_s12] ss:$0 sm:$0xff] }
  0x13   : > { %v1554_v4 = vld [vmem:[%s542_s30] sm:$0xff]  ;;  %621 = vmatpush.bf16.msra.mxu0 %v1308_v2  ;;  %s1443_s17 = smov 96   ;;  %s1444_s30 = smov 88  }
  0x14   : > { %v588_v5 = vld [vmem:[%s550_s14] sm:$0xff]  ;;  %v589_v6 = vpack.c.bf16 %v1554_v4, %v1554_v4  ;;  %658 = vmatpush.bf16.msra.mxu1 %v1310_v3  ;;  %s1439_s14 = smov 112   ;;  %s1445_s16 = smov 72  }
  0x15   : > { %v627_v7 = vpack.c.bf16 %v588_v5, %v588_v5  ;;  %v664_v23 = vld [vmem:[%s1657_s9] sm:$0xff] }
  0x16   : > { %1280 = vmatmul.msk.bf16.vlgmr.msra.gmra.mxu0 %vm610_vm0, %v589_v6  ;;  %v669_v26 = vadd.f32 %v1357_v22, %v664_v23 }
  0x17   : > { %1289 = vmatmul.msk.bf16.vlgmr.msra.gmra.mxu1 %vm610_vm0, %v627_v7 }
  0x93   : > { %v623_v10 = vpop.f32.mrf.mxu0 }
  0x94   : > { %v660_v11 = vpop.f32.mrf.mxu1  ;;  %v624_v12 = vadd.f32 %v1355_v8, %v623_v10  ;;  %v736_v8 = vld [vmem:[%s1654_s6] sm:$0xf] }
  0x95   : > { %v661_v13 = vadd.f32 %v1356_v9, %v660_v11  ;;  %v825_v9 = vsel %vm718_vm2, %v736_v8, 0 }
  0x96   : > { %737 = vrot.lane.b32.xlu2 %v624_v12, %s1440_s20  ;;  %834 = vmatpush.bf16.msrb.mxu0 %v825_v9 }
  0x97   : > { %842 = vrot.lane.b32.xlu0 %v661_v13, %s1439_s14  ;;  %1290 = vmatpush.xpose.msk.msra.mxu2 %vm670_vm1, %v661_v13  ;;  %v1572_v16 = vpack.c.bf16 %v661_v13, %v661_v13 }
  0x9a   : > { %1291 = vmatmul.msk.f32.vlgmr.msra.gmra.mxu2 %vm670_vm1, %v624_v12 }
  0x9b   : > { %v625_v14 = vpop.f32.mrf.mxu0 }
  0x9c   : > { %v662_v15 = vpop.f32.mrf.mxu1 }
  0x9f   : > { %840 = vrot.lane.b32.xlu0 %v624_v12, %s1439_s14 }
  0xa7   : > { %882 = vrot.lane.b32.xlu0 %v1572_v16, %s1441_s22 }
  0xaf   : > { %927 = vrot.lane.b32.xlu0 %v661_v13, %s1442_s23 }
  0xb7   : > { %925 = vrot.lane.b32.xlu0 %v624_v12, %s1442_s23 }
  0xf0   : > { %v738_v39 = vpop.permute.xlu2 %737 }
 0x109   : > { %v843_v17 = vpop.permute.xlu0 %842 }
 0x10a   : > { %1298 = vmatpush.xpose.msk.msrb.mxu1 %vm670_vm1, %v843_v17 }
 0x111   : > { %v841_v18 = vpop.permute.xlu0 %840 }
 0x112   : > { %1299 = vmatmul.msk.f32.vlgmr.msrb.gmra.mxu1 %vm670_vm1, %v841_v18 }
 0x119   : > { %v883_v19 = vpop.permute.xlu0 %882 }
 0x11a   : > { %v888_v20 = vsel %vm718_vm2, %v883_v19, 0 }
 0x11b   : > { %897 = vmatpush.bf16.msra.mxu1 %v888_v20 }
 0x11d   : > { %v694_v29 = vpop.f32.mrf.mxu2 }
 0x11e   : > { %v697_v30 = vmul.f32 0.35355338, %v694_v29 }
 0x120   : > { %v698_v31 = vadd.f32 %v697_v30, %v669_v26  ;;  %v801_v30 = vld [vmem:[%s1654_s6 + $0x4] sm:$0xf] }
 0x121   : > { %v928_v21 = vpop.permute.xlu0 %927 }
 0x122   : > { %1302 = vmatpush.xpose.msk.msrb.mxu1 %vm670_vm1, %v928_v21  ;;  %v699_v32 = vsel %vm670_vm1, %v698_v31, -inf  ;;  %v904_v21 = vld [vmem:[%s1654_s6 + $0x8] sm:$0xf] }
 0x129   : > { %v926_v51 = vpop.permute.xlu0 %925 }
 0x18f   : > { %v865_v24 = vpop.f32.mrf.mxu1 }
 0x190   : > { %v868_v25 = vmul.f32 0.35355338, %v865_v24  ;;  %v909_v24 = vsel %vm718_vm2, %v904_v21, 0 }
 0x192   : > { %v869_v27 = vadd.f32 %v868_v25, %v669_v26 }
 0x194   : > { %v870_v28 = vsel %vm670_vm1, %v869_v27, -inf }
 0x195   : > { %871 = vmax.xlane.f32.xlu1 %v870_v28 }
 0x1ae   : > { %739 = vrot.lane.b32.xlu1 %v661_v13, %s1440_s20 }
 0x1d8   : > { %700 = vmax.xlane.f32.xlu1 %v699_v32 }
 0x208   : > { %v872_v33 = vpop.xlane.xlu1 %871 }
 0x209   : > { %v873_v34 = vsub.f32 %v869_v27, %v872_v33 }
 0x20b   : > { %v874_v35 = vmul.f32 1.442695, %v873_v34 }
 0x20d   : > { %1360 = vpow2.f32 %v874_v35 }
 0x213   : > { %v1361_v36 = vpop.eup %1360 }
 0x214   : > { %v876_v37 = vsel %vm670_vm1, %v1361_v36, 0.0 }
 0x215   : > { %877 = vadd.xlane.f32.xlu2 %v876_v37 }
 0x220   : > { %v740_v38 = vpop.permute.xlu1 %739 }
 0x221   : > { %1293 = vmatpush.xpose.msk.msrb.mxu2 %vm670_vm1, %v740_v38 }
 0x224   : > { %1294 = vmatmul.msk.f32.vlgmr.msrb.gmra.mxu2 %vm670_vm1, %v738_v39 }
 0x22d   : > { %713 = vrot.lane.b32.xlu2 %v1572_v16, %s1443_s17  ;;  %s585_s17 = scalar_lea.vmem %s1659_s11, %s1532_s27 }
 0x24b   : > { %v701_v40 = vpop.xlane.xlu1 %700 }
 0x24c   : > { %v702_v41 = vsub.f32 %v698_v31, %v701_v40  ;;  %v806_v31 = vsel %vm718_vm2, %v801_v30, 0 }
 0x24e   : > { %v703_v42 = vmul.f32 1.442695, %v702_v41 }
 0x250   : > { %1362 = vpow2.f32 %v703_v42  ;;  %v989_v42 = vld [vmem:[%s1654_s6 + $0xc] sm:$0xf] }
 0x256   : > { %v1363_v43 = vpop.eup %1362 }
 0x257   : > { %v705_v44 = vsel %vm670_vm1, %v1363_v43, 0.0 }
 0x258   : > { %706 = vadd.xlane.f32.xlu0 %v705_v44 }
 0x288   : > { %v878_v45 = vpop.xlane.xlu2 %877 }
 0x289   : > { %1364 = vrcp.f32 %v878_v45 }
 0x28f   : > { %v1365_v46 = vpop.eup %1364 }
 0x290   : > { %v880_v47 = vmul.f32 %v1365_v46, %v1361_v36  ;;  %v714_v48 = vpop.permute.xlu2 %713 }
 0x291   : > { %v720_v49 = vsel %vm718_vm2, %v714_v48, 0 }
 0x292   : > { %v881_v50 = vpack.c.bf16 %v880_v47, %v880_v47  ;;  %729 = vmatpush.bf16.msra.mxu3 %v720_v49 }
 0x294   : > { %1300 = vmatmul.msk.bf16.vlgmr.msra.gmra.mxu1 %vm670_vm1, %v881_v50 }
 0x296   : > { %815 = vmatpush.bf16.msrb.mxu3 %v806_v31 }
 0x2a4   : > { %1303 = vmatmul.msk.f32.vlgmr.msrb.gmra.mxu1 %vm670_vm1, %v926_v51 }
 0x2a7   : > { %v762_v52 = vpop.f32.mrf.mxu2 }
 0x2a8   : > { %v765_v53 = vmul.f32 0.35355338, %v762_v52 }
 0x2aa   : > { %v766_v54 = vadd.f32 %v765_v53, %v669_v26 }
 0x2ac   : > { %v767_v55 = vsel %vm670_vm1, %v766_v54, -inf }
 0x2ad   : > { %768 = vmax.xlane.f32.xlu2 %v767_v55 }
 0x2cb   : > { %v707_v56 = vpop.xlane.xlu0 %706 }
 0x2cc   : > { %1366 = vrcp.f32 %v707_v56  ;;  %v1446_v56 = vmov 32.0  }
 0x2d2   : > { %v1367_v57 = vpop.eup %1366 }
 0x2d3   : > { %v709_v58 = vmul.f32 %v1367_v57, %v1363_v43  ;;  %v994_v43 = vsel %vm718_vm2, %v989_v42, 0 }
 0x2d5   : > { %v710_v59 = vpack.c.bf16 %v709_v58, %v709_v58 }
 0x2d7   : > { %1292 = vmatmul.msk.bf16.vlgmr.msra.gmra.mxu3 %vm670_vm1, %v710_v59 }
 0x2d8   : > { %1003 = vmatpush.bf16.msra.mxu3 %v994_v43 }
 0x311   : > { %v899_v60 = vpop.f32.mrf.mxu1 }
 0x312   : > { %v903_v27 = vpack.c.bf16 %v899_v60, %v899_v60 }
 0x319   : > { %v901_v61 = vpop.f32.mrf.mxu1 }
 0x320   : > { %v769_v62 = vpop.xlane.xlu2 %768 }
 0x321   : > { %v770_v63 = vsub.f32 %v766_v54, %v769_v62  ;;  %v950_v0 = vpop.f32.mrf.mxu1 }
 0x322   : > { %v953_v1 = vmul.f32 0.35355338, %v950_v0 }
 0x323   : > { %v771_v2 = vmul.f32 1.442695, %v770_v63 }
 0x324   : > { %v954_v3 = vadd.f32 %v953_v1, %v669_v26 }
 0x325   : > { %1368 = vpow2.f32 %v771_v2 }
 0x326   : > { %v955_v5 = vsel %vm670_vm1, %v954_v3, -inf }
 0x327   : > { %956 = vmax.xlane.f32.xlu1 %v955_v5 }
 0x32b   : > { %v1369_v6 = vpop.eup %1368 }
 0x32c   : > { %v773_v7 = vsel %vm670_vm1, %v1369_v6, 0.0 }
 0x32d   : > { %774 = vadd.xlane.f32.xlu0 %v773_v7 }
 0x340   : > { %779 = vrot.lane.b32.xlu1 %v1572_v16, %s1444_s30 }
 0x35a   : > { %v731_v10 = vpop.f32.mrf.mxu3 }
 0x35b   : > { %v735_v11 = vpack.c.bf16 %v731_v10, %v731_v10 }
 0x35d   : > { %1297 = vmatmul.msk.bf16.vlgmr.msrb.gmra.mxu0 %vm670_vm1, %v735_v11 }
 0x362   : > { %v733_v12 = vpop.f32.mrf.mxu3 }
 0x39a   : > { %v957_v13 = vpop.xlane.xlu1 %956 }
 0x39b   : > { %v958_v14 = vsub.f32 %v954_v3, %v957_v13  ;;  %v1358_v13 = vld [vmem:[%s1655_s7] ss:$0 sm:$0xff] }
 0x39d   : > { %v959_v15 = vmul.f32 1.442695, %v958_v14 }
 0x39f   : > { %1370 = vpow2.f32 %v959_v15  ;;  %v1359_v15 = vld [vmem:[#allocation2] ss:$0 sm:$0xff] }
 0x3a0   : > { %v775_v18 = vpop.xlane.xlu0 %774 }
 0x3a1   : > { %1372 = vrcp.f32 %v775_v18 }
 0x3a5   : > { %v1371_v17 = vpop.eup %1370 }
 0x3a6   : > { %v961_v19 = vsel %vm670_vm1, %v1371_v17, 0.0 }
 0x3a7   : > { %962 = vadd.xlane.f32.xlu0 %v961_v19  ;;  %v1373_v20 = vpop.eup %1372 }
 0x3a8   : > { %v777_v22 = vmul.f32 %v1373_v20, %v1369_v6 }
 0x3aa   : > { %v778_v26 = vpack.c.bf16 %v777_v22, %v777_v22 }
 0x3b2   : > { %v780_v23 = vpop.permute.xlu1 %779 }
 0x3b3   : > { %v785_v25 = vsel %vm718_vm2, %v780_v23, 0 }
 0x3b4   : > { %794 = vmatpush.bf16.msra.mxu2 %v785_v25 }
 0x3b7   : > { %1295 = vmatmul.msk.bf16.vlgmr.msra.gmra.mxu2 %vm670_vm1, %v778_v26 }
 0x3b8   : > { %918 = vmatpush.bf16.msrb.mxu2 %v909_v24 }
 0x3bb   : > { %967 = vrot.lane.b32.xlu0 %v1572_v16, %s1445_s16 }
 0x3c7   : > { %1301 = vmatmul.msk.bf16.vlgmr.msrb.gmra.mxu2 %vm670_vm1, %v903_v27 }
 0x3da   : > { %v836_v28 = vpop.f32.mrf.mxu0 }
 0x3e2   : > { %v838_v29 = vpop.f32.mrf.mxu0 }
 0x41a   : > { %v963_v32 = vpop.xlane.xlu0 %962 }
 0x41b   : > { %1374 = vrcp.f32 %v963_v32 }
 0x41c   : > { %1376 = vrcp.f32 %v1446_v56 }
 0x421   : > { %v1375_v33 = vpop.eup %1374 }
 0x422   : > { %v965_v34 = vmul.f32 %v1375_v33, %v1371_v17  ;;  %v1377_v57 = vpop.eup %1376 }
 0x423   : > { %v1015_v58 = vmul.f32 32.0, %v1377_v57  ;;  %vm1019_vm3 = vweird.f32 %v1377_v57 }
 0x424   : > { %v966_v16 = vpack.c.bf16 %v965_v34, %v965_v34 }
 0x425   : > { %v1016_v59 = vsub.f32 1.0, %v1015_v58 }
 0x427   : > { %v1017_v60 = vmul.f32 %v1377_v57, %v1016_v59 }
 0x429   : > { %v1018_v61 = vadd.f32 %v1377_v57, %v1017_v60 }
 0x42b   : > { %v1020_v62 = vsel %vm1019_vm3, %v1377_v57, %v1018_v61 }
 0x42d   : > { %v968_v35 = vpop.permute.xlu0 %967 }
 0x42e   : > { %v973_v36 = vsel %vm718_vm2, %v968_v35, 0 }
 0x42f   : > { %982 = vmatpush.bf16.msra.mxu0 %v973_v36 }
 0x432   : > { %1304 = vmatmul.msk.bf16.vlgmr.msra.gmra.mxu0 %vm670_vm1, %v966_v16 }
 0x43a   : > { %v796_v37 = vpop.f32.mrf.mxu2 }
 0x43b   : > { %v800_v38 = vpack.c.bf16 %v796_v37, %v796_v37 }
 0x43d   : > { %1296 = vmatmul.msk.bf16.vlgmr.msrb.gmra.mxu3 %vm670_vm1, %v800_v38 }
 0x442   : > { %v798_v39 = vpop.f32.mrf.mxu2 }
 0x44a   : > { %v920_v40 = vpop.f32.mrf.mxu2 }
 0x452   : > { %v922_v41 = vpop.f32.mrf.mxu2 }
 0x4af   : > { %v984_v44 = vpop.f32.mrf.mxu0 }
 0x4b0   : > { %v988_v45 = vpack.c.bf16 %v984_v44, %v984_v44 }
 0x4b2   : > { %1305 = vmatmul.msk.bf16.vlgmr.msra.gmra.mxu3 %vm670_vm1, %v988_v45 }
 0x4b7   : > { %v986_v46 = vpop.f32.mrf.mxu0 }
 0x4c0   : > { %v817_v47 = vpop.f32.mrf.mxu3 }
 0x4c1   : > { %v837_v49 = vadd.f32 %v836_v28, %v817_v47 }
 0x4c3   : > { %v924_v50 = vadd.f32 %v920_v40, %v837_v49 }
 0x4c8   : > { %v819_v48 = vpop.f32.mrf.mxu3 }
 0x535   : > { %v1005_v51 = vpop.f32.mrf.mxu3 }
 0x536   : > { %v1009_v52 = vadd.f32 %v1005_v51, %v924_v50 }
 0x538   : > { %v1010_v53 = vadd.f32 %v1009_v52, %v1554_v4 }
 0x53a   : > { %v1011_v54 = vsel %vm610_vm0, %v1010_v53, 0.0 }
 0x53b   : > { %1012 = vadd.xlane.f32.xlu1 %v1011_v54 }
 0x53d   : > { %v1007_v55 = vpop.f32.mrf.mxu3 }
 0x5ae   : > { %v1013_v63 = vpop.xlane.xlu1 %1012 }
 0x5af   : > { %v1021_v0 = vmul.f32 %v1020_v62, %v1013_v63 }
 0x5b1   : > { %v1022_v1 = vsub.f32 %v1010_v53, %v1021_v0 }
 0x5b3   : > { %v1023_v2 = vmul.f32 %v1022_v1, %v1022_v1 }
 0x5b5   : > { %v1024_v3 = vsel %vm610_vm0, %v1023_v2, 0.0 }
 0x5b6   : > { %1025 = vadd.xlane.f32.xlu2 %v1024_v3 }
 0x629   : > { %v1026_v4 = vpop.xlane.xlu2 %1025 }
 0x62a   : > { %v1027_v5 = vmul.f32 %v1026_v4, %v1020_v62 }
 0x62c   : > { %v1028_v6 = vadd.f32 1e-05, %v1027_v5 }
 0x62e   : > { %1378 = vrsqrt.f32 %v1028_v6  ;;  %vm1035_vm5 = vweird.f32 %v1028_v6 }
 0x634   : > { %v1379_v7 = vpop.eup %1378 }
 0x635   : > { %v1030_v8 = vmul.f32 %v1379_v7, %v1028_v6  ;;  %vm1036_vm4 = vweird.f32 %v1379_v7 }
 0x636   : > { %vm1037_vm6 = vmor %vm1035_vm5, %vm1036_vm4 }
 0x637   : > { %v1031_v9 = vmul.f32 %v1379_v7, %v1030_v8 }
 0x639   : > { %v1032_v10 = vmul.f32 0.5, %v1031_v9 }
 0x63b   : > { %v1033_v11 = vsub.f32 1.5, %v1032_v10 }
 0x63d   : > { %v1034_v12 = vmul.f32 %v1379_v7, %v1033_v11 }
 0x63f   : > { %v1038_v14 = vsel %vm1037_vm6, %v1379_v7, %v1034_v12 }
 0x640   : > { %v1039_v17 = vmul.f32 %v1038_v14, %v1022_v1 }
 0x642   : > { %v1044_v18 = vmul.f32 %v1358_v13, %v1039_v17 }
 0x644   : > { %v1049_v19 = vadd.f32 %v1359_v15, %v1044_v18 }
 0x646   : > { %1050 = vst.msk [vmem:[%s585_s17] sm:$0xff] %vm610_vm0, %v1049_v19 }
 0x647 PF: > { %s22_s19 = sadd.s32 1, %s1436_s19   ;;  %s1660_s17 = smov %s1432_s18 }
 0x648   : > { %p19_p8 = scmp.ge.s32.totalorder %s22_s19, 4   ;;  %s1661_s18 = smov %s1663_s21 }
 0x64a   :  { %21 = sbr.rel (!%p19_p8) target bundleno = 2 (0x2), region = 124 }
 0x64f   :  { %1078 = vsyncpa [#allocation3], 1 }
 0x650   :  { %1080 = vsyncpa [#allocation3 + $0x1], 1 }

// kernel: trimodal_block_forward.4
= control target key start
LH: loop header
LB: loop body
LE: loop exit
PB: predicated region body
PF: predicated region fallthrough
CT: control target
= control target key end

     0   :  { %s1980_s0 = inlined_call_operand.vmem [shape: f32[2,2,8,32], index: 0, kind: input, shape index: {}, may-alias: {0,1}]   ;;  %s1981_s1 = inlined_call_operand.vmem [shape: f32[2,2,8,32], index: 1, kind: input, shape index: {}, may-alias: {0,1}]   ;;  %s1982_s2 = inlined_call_operand.vmem [shape: bf16[2,32,32], index: 2, kind: input, shape index: {}]   ;;  %s1983_s3 = inlined_call_operand.vmem [shape: f32[2,1,32], index: 3, kind: input, shape index: {}]   ;;  %s1984_s4 = inlined_call_operand.vmem [shape: bf16[2,32,64], index: 4, kind: input, shape index: {}]   ;;  %s1985_s5 = inlined_call_operand.vmem [shape: f32[2,1,64], index: 5, kind: input, shape index: {}]   ;;  %s1986_s6 = inlined_call_operand.hbm [shape: bf16[2,32,32], index: 6, kind: input, shape index: {}]   ;;  %s1987_s7 = inlined_call_operand.hbm [shape: f32[2,1,32], index: 7, kind: input, shape index: {}]   ;;  %s1988_s8 = inlined_call_operand.hbm [shape: f32[2,1,32], index: 8, kind: input, shape index: {}]   ;;  %s1989_s9 = inlined_call_operand.vmem [shape: f32[8,8], index: 9, kind: input, shape index: {}]   ;;  %s1990_s10 = inlined_call_operand.vmem [shape: f32[2,1,8], index: 10, kind: input, shape index: {}]   ;;  %s1991_s11 = inlined_call_operand.vmem [shape: f32[2,2,8,32], index: 11, kind: output, shape index: {}]  }
   0x1   :  { %1997 = sst [smem:[#allocation14_spill]] %s1980_s0 }
   0x2   :  { %1998 = sst [smem:[#allocation15_spill]] %s1981_s1 }
   0x3   :  { %1999 = sst [smem:[#allocation16_spill]] %s1983_s3 }
   0x4   :  { %2000 = sst [smem:[#allocation17_spill]] %s1985_s5 }
   0x5   :  { %2001 = sst [smem:[#allocation18_spill]] %s1987_s7 }
   0x6   :  { %2002 = sst [smem:[#allocation19_spill]] %s1989_s9 }
   0x7   :  { %2003 = sst [smem:[#allocation20_spill]] %s1990_s10 }
   0x8   :  { %2004 = sst [smem:[#allocation21_spill]] %s1991_s11 }
   0x9   :  { %16 = vsyncpa [#allocation3], 0 }
   0xa   :  { %18 = vsyncpa [#allocation3 + $0x1], 0 }
   0xb   :  { %19 = vsyncpa [#allocation5], 0 }
   0xc   :  { %21 = vsyncpa [#allocation5 + $0x1], 0  ;;  %s1729_s17 = smov 0   ;;  %s1731_s18 = smov 0  }
   0xd   :  { %s1733_s19 = smov 0   ;;  %s1735_s20 = smov 0  }
   0xe   :  { %s1737_s21 = smov 0   ;;  %s1739_s22 = smov 0  }
   0xf   :  { %s1741_s23 = smov 0   ;;  %s1743_s24 = smov 0  }
  0x10 LB: > { %2005 = sst [smem:[#allocation9_spill]] %s1637_s19  ;;  %s1992_s25 = sadd.s32 4294967295, %s1657_s24   ;;  %s1657_s24 = sphi %s1743_s24, %s27_s24   ;;  %s1653_s23 = sphi %s1741_s23, %s2030_s23   ;;  %s1649_s22 = sphi %s1739_s22, %s2025_s22   ;;  %s1645_s21 = sphi %s1737_s21, %s2029_s21   ;;  %s1641_s20 = sphi %s1735_s20, %s2024_s20   ;;  %s1637_s19 = sphi %s1733_s19, %s2023_s19   ;;  %s1633_s18 = sphi %s1731_s18, %s2028_s18   ;;  %s1629_s17 = sphi %s1729_s17, %s2027_s17  }
  0x11   : > { %2006 = sst [smem:[#allocation10_spill]] %s1649_s22  ;;  %s36_s26 = sadd.s32 1, %s1649_s22 }
  0x12   : > { %p37_p0 = scmp.ge.s32.totalorder %s36_s26, 2  ;;  %s39_s27 = sadd.s32 1, %s1653_s23 }
  0x13   : > { %s206_s28 = sadd.s32 1, %s1637_s19  ;;  %p213_p1 = scmp.ne.s32.totalorder %s1637_s19, %s1633_s18 }
  0x14   : > { %s2032_s26 = smov (%p37_p0, %s36_s26), 0  ;;  %s2034_s27 = smov (!%p37_p0, %s39_s27), %s1653_s23 }
  0x15   : > { %2007 = sst [smem:[#allocation11_spill]] %s2032_s26  ;;  %p214_p2 = scmp.eq.s32.totalorder %s1657_s24, 0 }
  0x16   : > { %p219_p3 = scmp.ne.s32.totalorder %s1633_s18, %s1629_s17  ;;  %p41_p4 = scmp.ge.s32.totalorder %s2034_s27, 2 }
  0x17   : > { %p220_p5 = scmp.eq.s32.totalorder %s1992_s25, 0  ;;  %p215_p6 = por %p214_p2, %p213_p1 }
  0x18   : > { %s2036_s27 = smov (%p41_p4, %s2034_s27), 0  ;;  %p1397_p8 = scmp.lt.s32.totalorder %s1657_s24, 4 }
  0x19   : > { %2008 = sst [smem:[#allocation12_spill]] %s2036_s27  ;;  %p1782_p7 = por %p220_p5, %p219_p3 }
  0x1a   : > { %s203_s30 = ssub.s32 %s1653_s23, %s2036_s27  ;;  %s1790_s12 = sand.u32 1, %s1637_s19  }
  0x1b   : > { %p204_p9 = scmp.eq.s32.totalorder %s203_s30, 0  ;;  %p1792_p10 = pnand %p1397_p8, %p215_p6 }
  0x1c   : > { %s445_s14 = sand.u32 1, %s1657_s24   ;;  %s2012_s7 = sld [smem:[#allocation18_spill]] }
  0x1d   : > { %s1798_s15 = scalar_select %p204_p9, %s1637_s19, %s206_s28  }
  0x1e   : > { %s448_s26 = scalar_lea.vmem [#allocation4], %s1790_s12  ;;  %p1326_p11 = scmp.ge.s32.totalorder %s1657_s24, 1 }
  0x1f   : > { %2011 = sst [smem:[#allocation13_spill]] %s1798_s15  ;;  %s455_s27 = sshll.u32 %s448_s26, 4  ;;  %s456_s27 = int_to_ptr.vmem [resolvable:$true] %s455_s27 }
  0x20   : > { %s446_s30 = scalar_lea.sflag [#allocation5], %s445_s14  ;;  %p483_p12 = scmp.lt.s32.totalorder %s1657_s24, 5 }
  0x21   : > { %s1323_s16 = sshll.u32 %s1790_s12, 4  ;;  %s1374_s17 = sshll.u32 %s1653_s23, 4 }
  0x22   : > { %s451_s25 = scalar_lea.hbm %s2012_s7, %s1653_s23  ;;  %p1809_p13 = pnand %p1326_p11, %p483_p12 }
  0x23   : > { %s453_s22 = sshll.u32 %s451_s25, 4  ;;  %s432_s25 = scalar_lea.hbm %s1986_s6, %s1374_s17  ;;  %s454_s22 = int_to_ptr.hbm [resolvable:$true] %s453_s22 }
  0x24   : > { %1393 = dma.hbm_to_vmem [thread:$0]  (!%p1792_p10), %s454_s22, 16, %s456_s27, %s446_s30  }
  0x25   : > { %s427_s15 = scalar_lea.vmem [#allocation2], %s1323_s16  ;;  %s433_s11 = sshll.u32 %s432_s25, 4  ;;  %s434_s11 = int_to_ptr.hbm [resolvable:$true] %s433_s11 }
  0x26   : > { %s435_s19 = sshll.u32 %s427_s15, 4  ;;  %s424_s14 = scalar_lea.sflag [#allocation3], %s1790_s12  ;;  %s436_s19 = int_to_ptr.vmem [resolvable:$true] %s435_s19 }
  0x27   : > { %s1659_s22 = smov 64   ;;  %s1660_s27 = smov 4  }
  0x28   : > { %1390 = dma.hbm_to_vmem [thread:$0]  (!%p1792_p10), %s434_s11, 256, %s436_s19, %s424_s14, %s1659_s22, %s1659_s22, %s1660_s27  }
  0x29   : > { %s468_s1 = scalar_lea.hbm %s1988_s8, %s1653_s23  ;;  %s465_s10 = scalar_lea.vmem [#allocation6], %s1790_s12 }
  0x2a   : > { %s472_s0 = sshll.u32 %s465_s10, 4  ;;  %s470_s3 = sshll.u32 %s468_s1, 4  ;;  %s473_s0 = int_to_ptr.vmem [resolvable:$true] %s472_s0  ;;  %s471_s3 = int_to_ptr.hbm [resolvable:$true] %s470_s3 }
  0x2b   : > { %1396 = dma.hbm_to_vmem [thread:$0]  (!%p1792_p10), %s471_s3, 16, %s473_s0, %s446_s30  }
  0x2c   : > { %487 = sbr.rel (%p1809_p13) target bundleno = 1655 (0x677), region = 64  ;;  %s1831_s7 = sand.u32 (!%p1809_p13), 1, %s1633_s18  }
  0x2d   : > { %s1327_s11 = sshll.u32 (!%p1809_p13), %s1831_s7, 4  ;;  %s490_s19 = scalar_lea.sflag (!%p1809_p13), [#allocation3], %s1831_s7 }
  0x2e   : > { %s1835_s5 = scalar_lea.vmem (!%p1809_p13), [#allocation2], %s1327_s11 }
  0x31   : > { %1620 = dma.done.wait (%p1782_p7), %s490_s19, 256  }
  0x32   : > { %1622 = vsyncadd (%p1782_p7), %s490_s19, 4294967040  ;;  %s2014_s0 = sadd.s32 4294967295, %s1657_s24   ;;  %s502_s9 = scalar_lea.vmem [#allocation4], %s1831_s7 }
  0x33   : > { %s499_s1 = sand.u32 1, %s2014_s0  }
  0x34   : > { %s500_s3 = scalar_lea.sflag [#allocation5], %s499_s1 }
  0x35   : > { %1624 = dma.done.wait (%p1782_p7), %s500_s3, 32  }
  0x36   : > { %1626 = vsyncadd (%p1782_p7), %s500_s3, 4294967264  ;;  %p597_p0 = scmp.lt.s32.totalorder %s1645_s21, 1  ;;  %p599_p1 = scmp.lt.s32.totalorder %s1641_s20, 1  ;;  %vm664_vm0 = vcmask 261120   ;;  %vm724_vm1 = vcmask 64512   ;;  %vm772_vm2 = vcmask 1043456  }
  0x37   : > { %s2015_s22 = sld [smem:[#allocation16_spill]]  ;;  %s1664_s11 = smov 104  }
  0x38   : > { %s2038_s21 = smov (!%p597_p0, %s1645_s21), 1  ;;  %s2040_s20 = smov (!%p599_p1, %s1641_s20), 1 }
  0x39   : > { %s1375_s10 = sshll.u32 %s2038_s21, 4  ;;  %s1328_s12 = sshll.u32 %s2038_s21, 1 }
  0x3a   : > { %s617_s15 = scalar_lea.vmem %s1982_s2, %s1375_s10  ;;  %s625_s16 = scalar_lea.vmem %s1984_s4, %s1375_s10 }
  0x3b   : > { %s602_s17 = sadd.s32 %s1328_s12, %s2040_s20  ;;  %v1378_v0 = vld [vmem:[%s617_s15 + $0x8] sm:$0xff]  ;;  %v1377_v2 = vld [vmem:[%s617_s15] sm:$0xff]  ;;  %s2016_s0 = sld [smem:[#allocation14_spill]] }
  0x3c   : > { %v1380_v1 = vld [vmem:[%s625_s16 + $0x8] sm:$0xff]  ;;  %s1865_s26 = sshll.u32 %s602_s17, 3  ;;  %v1379_v3 = vld [vmem:[%s625_s16] sm:$0xff]  ;;  %s2017_s10 = sld [smem:[#allocation20_spill]]  ;;  %674 = vmatpush.bf16.msra.mxu0 %v1378_v0 }
  0x3d   : > { %s620_s27 = scalar_lea.vmem %s2015_s22, %s2038_s21  ;;  %711 = vmatpush.bf16.msra.mxu1 %v1380_v1  ;;  %s2018_s28 = sld [smem:[#allocation15_spill]] }
  0x3e   : > { %s2019_s16 = sld [smem:[#allocation17_spill]]  ;;  %v1472_v8 = vld [vmem:[%s620_s27] ss:$0 sm:$0xff]  ;;  %s1661_s22 = smov 112  }
  0x3f   : > { %s1663_s27 = smov 80   ;;  %s2020_s13 = sld [smem:[#allocation19_spill]] }
  0x40   : > { %675 = vmatpush.bf16.msra.mxu0 %v1377_v2  ;;  %s1667_s29 = smov 72   ;;  %s511_s30 = scalar_lea.vmem [#allocation6], %s1831_s7 }
  0x41   : > { %s604_s1 = scalar_lea.vmem %s2016_s0, %s1865_s26  ;;  %712 = vmatpush.bf16.msra.mxu1 %v1379_v3 }
  0x42   : > { %s631_s12 = scalar_lea.vmem %s2017_s10, %s2040_s20  ;;  %v1879_v4 = vld [vmem:[%s604_s1] sm:$0xff]  ;;  %s1665_s20 = smov 96  }
  0x43   : > { %s612_s17 = scalar_lea.vmem %s2018_s28, %s1865_s26  ;;  %v643_v6 = vpack.c.bf16 %v1879_v4, %v1879_v4  ;;  %v1474_v22 = vld [vmem:[%s631_s12] ss:$0 sm:$0xff]  ;;  %s1666_s12 = smov 88  }
  0x44   : > { %v642_v5 = vld [vmem:[%s612_s17] sm:$0xff]  ;;  %s628_s14 = scalar_lea.vmem %s2019_s16, %s2038_s21  ;;  %s1662_s21 = smov 120  }
  0x45   : > { %v681_v7 = vpack.c.bf16 %v642_v5, %v642_v5  ;;  %1346 = vmatmul.msk.bf16.vlgmr.msra.gmra.mxu0 %vm664_vm0, %v643_v6  ;;  %v1473_v9 = vld [vmem:[%s628_s14] ss:$0 sm:$0xff]  ;;  %s2021_s17 = sld [smem:[#allocation21_spill]] }
  0x46   : > { %v718_v23 = vld [vmem:[%s2020_s13] sm:$0xff] }
  0x47   : > { %1355 = vmatmul.msk.bf16.vlgmr.msra.gmra.mxu1 %vm664_vm0, %v681_v7  ;;  %v723_v26 = vadd.f32 %v1474_v22, %v718_v23 }
  0x4b   : > { %s639_s25 = scalar_lea.vmem %s2021_s17, %s1865_s26 }
  0xc2   : > { %v677_v10 = vpop.f32.mrf.mxu0 }
  0xc3   : > { %v678_v12 = vadd.f32 %v1472_v8, %v677_v10  ;;  %v790_v8 = vld [vmem:[%s1835_s5] sm:$0xf] }
  0xc4   : > { %v714_v11 = vpop.f32.mrf.mxu1 }
  0xc5   : > { %v715_v13 = vadd.f32 %v1473_v9, %v714_v11  ;;  %791 = vrot.lane.b32.xlu2 %v678_v12, %s1662_s21  ;;  %v879_v9 = vsel %vm772_vm2, %v790_v8, 0 }
  0xc6   : > { %888 = vmatpush.bf16.msrb.mxu0 %v879_v9 }
  0xc7   : > { %896 = vrot.lane.b32.xlu0 %v715_v13, %s1661_s22  ;;  %1356 = vmatpush.xpose.msk.msra.mxu2 %vm724_vm1, %v715_v13  ;;  %v1895_v16 = vpack.c.bf16 %v715_v13, %v715_v13 }
  0xca   : > { %1357 = vmatmul.msk.f32.vlgmr.msra.gmra.mxu2 %vm724_vm1, %v678_v12  ;;  %v679_v14 = vpop.f32.mrf.mxu0 }
  0xcc   : > { %v716_v15 = vpop.f32.mrf.mxu1 }
  0xcf   : > { %894 = vrot.lane.b32.xlu0 %v678_v12, %s1661_s22 }
  0xd7   : > { %936 = vrot.lane.b32.xlu0 %v1895_v16, %s1663_s27 }
  0xdf   : > { %981 = vrot.lane.b32.xlu0 %v715_v13, %s1664_s11 }
  0xe7   : > { %979 = vrot.lane.b32.xlu0 %v678_v12, %s1664_s11 }
 0x11f   : > { %v792_v39 = vpop.permute.xlu2 %791 }
 0x139   : > { %v897_v17 = vpop.permute.xlu0 %896 }
 0x13a   : > { %1364 = vmatpush.xpose.msk.msrb.mxu1 %vm724_vm1, %v897_v17 }
 0x141   : > { %v895_v18 = vpop.permute.xlu0 %894 }
 0x142   : > { %1365 = vmatmul.msk.f32.vlgmr.msrb.gmra.mxu1 %vm724_vm1, %v895_v18 }
 0x149   : > { %v937_v19 = vpop.permute.xlu0 %936 }
 0x14a   : > { %v942_v20 = vsel %vm772_vm2, %v937_v19, 0 }
 0x14b   : > { %951 = vmatpush.bf16.msra.mxu1 %v942_v20 }
 0x14d   : > { %v748_v29 = vpop.f32.mrf.mxu2 }
 0x14e   : > { %v751_v30 = vmul.f32 0.35355338, %v748_v29 }
 0x150   : > { %v752_v31 = vadd.f32 %v751_v30, %v723_v26  ;;  %v855_v30 = vld [vmem:[%s1835_s5 + $0x4] sm:$0xf] }
 0x151   : > { %v982_v21 = vpop.permute.xlu0 %981 }
 0x152   : > { %1368 = vmatpush.xpose.msk.msrb.mxu1 %vm724_vm1, %v982_v21  ;;  %v753_v32 = vsel %vm724_vm1, %v752_v31, -inf  ;;  %v958_v21 = vld [vmem:[%s1835_s5 + $0x8] sm:$0xf] }
 0x159   : > { %v980_v51 = vpop.permute.xlu0 %979 }
 0x1bf   : > { %v919_v24 = vpop.f32.mrf.mxu1 }
 0x1c0   : > { %v922_v25 = vmul.f32 0.35355338, %v919_v24  ;;  %v963_v24 = vsel %vm772_vm2, %v958_v21, 0 }
 0x1c2   : > { %v923_v27 = vadd.f32 %v922_v25, %v723_v26 }
 0x1c4   : > { %v924_v28 = vsel %vm724_vm1, %v923_v27, -inf }
 0x1c5   : > { %925 = vmax.xlane.f32.xlu1 %v924_v28 }
 0x1de   : > { %793 = vrot.lane.b32.xlu1 %v715_v13, %s1662_s21 }
 0x208   : > { %754 = vmax.xlane.f32.xlu1 %v753_v32 }
 0x238   : > { %v926_v33 = vpop.xlane.xlu1 %925 }
 0x239   : > { %v927_v34 = vsub.f32 %v923_v27, %v926_v33 }
 0x23b   : > { %v928_v35 = vmul.f32 1.442695, %v927_v34 }
 0x23d   : > { %1477 = vpow2.f32 %v928_v35 }
 0x243   : > { %v1478_v36 = vpop.eup %1477 }
 0x244   : > { %v930_v37 = vsel %vm724_vm1, %v1478_v36, 0.0 }
 0x245   : > { %931 = vadd.xlane.f32.xlu2 %v930_v37 }
 0x250   : > { %v794_v38 = vpop.permute.xlu1 %793 }
 0x251   : > { %1359 = vmatpush.xpose.msk.msrb.mxu2 %vm724_vm1, %v794_v38 }
 0x254   : > { %1360 = vmatmul.msk.f32.vlgmr.msrb.gmra.mxu2 %vm724_vm1, %v792_v39 }
 0x25d   : > { %767 = vrot.lane.b32.xlu2 %v1895_v16, %s1665_s20 }
 0x27b   : > { %v755_v40 = vpop.xlane.xlu1 %754 }
 0x27c   : > { %v756_v41 = vsub.f32 %v752_v31, %v755_v40  ;;  %v860_v31 = vsel %vm772_vm2, %v855_v30, 0 }
 0x27e   : > { %v757_v42 = vmul.f32 1.442695, %v756_v41 }
 0x280   : > { %1479 = vpow2.f32 %v757_v42  ;;  %v1043_v42 = vld [vmem:[%s1835_s5 + $0xc] sm:$0xf] }
 0x286   : > { %v1480_v43 = vpop.eup %1479 }
 0x287   : > { %v759_v44 = vsel %vm724_vm1, %v1480_v43, 0.0 }
 0x288   : > { %760 = vadd.xlane.f32.xlu0 %v759_v44 }
 0x2b8   : > { %v932_v45 = vpop.xlane.xlu2 %931 }
 0x2b9   : > { %1481 = vrcp.f32 %v932_v45 }
 0x2bf   : > { %v1482_v46 = vpop.eup %1481 }
 0x2c0   : > { %v934_v47 = vmul.f32 %v1482_v46, %v1478_v36  ;;  %v768_v48 = vpop.permute.xlu2 %767 }
 0x2c1   : > { %v774_v49 = vsel %vm772_vm2, %v768_v48, 0 }
 0x2c2   : > { %v935_v50 = vpack.c.bf16 %v934_v47, %v934_v47  ;;  %783 = vmatpush.bf16.msra.mxu3 %v774_v49 }
 0x2c4   : > { %1366 = vmatmul.msk.bf16.vlgmr.msra.gmra.mxu1 %vm724_vm1, %v935_v50 }
 0x2c6   : > { %869 = vmatpush.bf16.msrb.mxu3 %v860_v31 }
 0x2d4   : > { %1369 = vmatmul.msk.f32.vlgmr.msrb.gmra.mxu1 %vm724_vm1, %v980_v51 }
 0x2d7   : > { %v816_v52 = vpop.f32.mrf.mxu2 }
 0x2d8   : > { %v819_v53 = vmul.f32 0.35355338, %v816_v52 }
 0x2da   : > { %v820_v54 = vadd.f32 %v819_v53, %v723_v26 }
 0x2dc   : > { %v821_v55 = vsel %vm724_vm1, %v820_v54, -inf }
 0x2dd   : > { %822 = vmax.xlane.f32.xlu2 %v821_v55 }
 0x2fb   : > { %v761_v56 = vpop.xlane.xlu0 %760 }
 0x2fc   : > { %1483 = vrcp.f32 %v761_v56  ;;  %v1668_v56 = vmov 32.0  }
 0x302   : > { %v1484_v57 = vpop.eup %1483 }
 0x303   : > { %v763_v58 = vmul.f32 %v1484_v57, %v1480_v43  ;;  %v1048_v43 = vsel %vm772_vm2, %v1043_v42, 0 }
 0x305   : > { %v764_v59 = vpack.c.bf16 %v763_v58, %v763_v58 }
 0x307   : > { %1358 = vmatmul.msk.bf16.vlgmr.msra.gmra.mxu3 %vm724_vm1, %v764_v59 }
 0x308   : > { %1057 = vmatpush.bf16.msra.mxu3 %v1048_v43 }
 0x341   : > { %v953_v60 = vpop.f32.mrf.mxu1 }
 0x342   : > { %v957_v27 = vpack.c.bf16 %v953_v60, %v953_v60 }
 0x349   : > { %v955_v61 = vpop.f32.mrf.mxu1 }
 0x350   : > { %v823_v62 = vpop.xlane.xlu2 %822 }
 0x351   : > { %v824_v63 = vsub.f32 %v820_v54, %v823_v62  ;;  %v1004_v0 = vpop.f32.mrf.mxu1 }
 0x352   : > { %v1007_v1 = vmul.f32 0.35355338, %v1004_v0 }
 0x353   : > { %v825_v2 = vmul.f32 1.442695, %v824_v63 }
 0x354   : > { %v1008_v3 = vadd.f32 %v1007_v1, %v723_v26 }
 0x355   : > { %1485 = vpow2.f32 %v825_v2 }
 0x356   : > { %v1009_v5 = vsel %vm724_vm1, %v1008_v3, -inf }
 0x357   : > { %1010 = vmax.xlane.f32.xlu1 %v1009_v5 }
 0x35b   : > { %v1486_v6 = vpop.eup %1485 }
 0x35c   : > { %v827_v7 = vsel %vm724_vm1, %v1486_v6, 0.0 }
 0x35d   : > { %828 = vadd.xlane.f32.xlu0 %v827_v7 }
 0x370   : > { %833 = vrot.lane.b32.xlu1 %v1895_v16, %s1666_s12 }
 0x38a   : > { %v785_v10 = vpop.f32.mrf.mxu3 }
 0x38b   : > { %v789_v11 = vpack.c.bf16 %v785_v10, %v785_v10 }
 0x38d   : > { %1363 = vmatmul.msk.bf16.vlgmr.msrb.gmra.mxu0 %vm724_vm1, %v789_v11 }
 0x392   : > { %v787_v12 = vpop.f32.mrf.mxu3 }
 0x3ca   : > { %v1011_v13 = vpop.xlane.xlu1 %1010 }
 0x3cb   : > { %v1012_v14 = vsub.f32 %v1008_v3, %v1011_v13  ;;  %v1475_v13 = vld [vmem:[%s502_s9] ss:$0 sm:$0xff] }
 0x3cd   : > { %v1013_v15 = vmul.f32 1.442695, %v1012_v14 }
 0x3cf   : > { %1487 = vpow2.f32 %v1013_v15  ;;  %v1476_v15 = vld [vmem:[%s511_s30] ss:$0 sm:$0xff] }
 0x3d0   : > { %v829_v18 = vpop.xlane.xlu0 %828 }
 0x3d1   : > { %1489 = vrcp.f32 %v829_v18 }
 0x3d5   : > { %v1488_v17 = vpop.eup %1487 }
 0x3d6   : > { %v1015_v19 = vsel %vm724_vm1, %v1488_v17, 0.0 }
 0x3d7   : > { %1016 = vadd.xlane.f32.xlu0 %v1015_v19  ;;  %v1490_v20 = vpop.eup %1489 }
 0x3d8   : > { %v831_v22 = vmul.f32 %v1490_v20, %v1486_v6 }
 0x3da   : > { %v832_v26 = vpack.c.bf16 %v831_v22, %v831_v22 }
 0x3e2   : > { %v834_v23 = vpop.permute.xlu1 %833 }
 0x3e3   : > { %v839_v25 = vsel %vm772_vm2, %v834_v23, 0 }
 0x3e4   : > { %848 = vmatpush.bf16.msra.mxu2 %v839_v25 }
 0x3e7   : > { %1361 = vmatmul.msk.bf16.vlgmr.msra.gmra.mxu2 %vm724_vm1, %v832_v26 }
 0x3e8   : > { %972 = vmatpush.bf16.msrb.mxu2 %v963_v24 }
 0x3eb   : > { %1021 = vrot.lane.b32.xlu0 %v1895_v16, %s1667_s29 }
 0x3f7   : > { %1367 = vmatmul.msk.bf16.vlgmr.msrb.gmra.mxu2 %vm724_vm1, %v957_v27 }
 0x40a   : > { %v890_v28 = vpop.f32.mrf.mxu0 }
 0x412   : > { %v892_v29 = vpop.f32.mrf.mxu0 }
 0x44a   : > { %v1017_v32 = vpop.xlane.xlu0 %1016 }
 0x44b   : > { %1491 = vrcp.f32 %v1017_v32 }
 0x44c   : > { %1493 = vrcp.f32 %v1668_v56 }
 0x451   : > { %v1492_v33 = vpop.eup %1491 }
 0x452   : > { %v1019_v34 = vmul.f32 %v1492_v33, %v1488_v17  ;;  %v1494_v57 = vpop.eup %1493 }
 0x453   : > { %v1069_v58 = vmul.f32 32.0, %v1494_v57  ;;  %vm1073_vm3 = vweird.f32 %v1494_v57 }
 0x454   : > { %v1020_v37 = vpack.c.bf16 %v1019_v34, %v1019_v34 }
 0x455   : > { %v1070_v59 = vsub.f32 1.0, %v1069_v58 }
 0x457   : > { %v1071_v60 = vmul.f32 %v1494_v57, %v1070_v59 }
 0x459   : > { %v1072_v61 = vadd.f32 %v1494_v57, %v1071_v60 }
 0x45b   : > { %v1074_v62 = vsel %vm1073_vm3, %v1494_v57, %v1072_v61 }
 0x45d   : > { %v1022_v35 = vpop.permute.xlu0 %1021 }
 0x45e   : > { %v1027_v36 = vsel %vm772_vm2, %v1022_v35, 0 }
 0x45f   : > { %1036 = vmatpush.bf16.msra.mxu0 %v1027_v36 }
 0x462   : > { %1370 = vmatmul.msk.bf16.vlgmr.msra.gmra.mxu0 %vm724_vm1, %v1020_v37 }
 0x46a   : > { %v850_v16 = vpop.f32.mrf.mxu2 }
 0x46b   : > { %v854_v38 = vpack.c.bf16 %v850_v16, %v850_v16 }
 0x46d   : > { %1362 = vmatmul.msk.bf16.vlgmr.msrb.gmra.mxu3 %vm724_vm1, %v854_v38 }
 0x472   : > { %v852_v39 = vpop.f32.mrf.mxu2 }
 0x47a   : > { %v974_v40 = vpop.f32.mrf.mxu2 }
 0x482   : > { %v976_v41 = vpop.f32.mrf.mxu2 }
 0x4df   : > { %v1038_v44 = vpop.f32.mrf.mxu0 }
 0x4e0   : > { %v1042_v45 = vpack.c.bf16 %v1038_v44, %v1038_v44 }
 0x4e2   : > { %1371 = vmatmul.msk.bf16.vlgmr.msra.gmra.mxu3 %vm724_vm1, %v1042_v45 }
 0x4e7   : > { %v1040_v46 = vpop.f32.mrf.mxu0 }
 0x4f0   : > { %v871_v47 = vpop.f32.mrf.mxu3 }
 0x4f1   : > { %v891_v49 = vadd.f32 %v890_v28, %v871_v47 }
 0x4f3   : > { %v978_v50 = vadd.f32 %v974_v40, %v891_v49 }
 0x4f8   : > { %v873_v48 = vpop.f32.mrf.mxu3 }
 0x565   : > { %v1059_v51 = vpop.f32.mrf.mxu3 }
 0x566   : > { %v1063_v52 = vadd.f32 %v1059_v51, %v978_v50 }
 0x568   : > { %v1064_v53 = vadd.f32 %v1063_v52, %v1879_v4 }
 0x56a   : > { %v1065_v54 = vsel %vm664_vm0, %v1064_v53, 0.0 }
 0x56b   : > { %1066 = vadd.xlane.f32.xlu1 %v1065_v54 }
 0x56d   : > { %v1061_v55 = vpop.f32.mrf.mxu3 }
 0x5de   : > { %v1067_v63 = vpop.xlane.xlu1 %1066 }
 0x5df   : > { %v1075_v0 = vmul.f32 %v1074_v62, %v1067_v63 }
 0x5e1   : > { %v1076_v1 = vsub.f32 %v1064_v53, %v1075_v0 }
 0x5e3   : > { %v1077_v2 = vmul.f32 %v1076_v1, %v1076_v1 }
 0x5e5   : > { %v1078_v4 = vsel %vm664_vm0, %v1077_v2, 0.0 }
 0x5e6   : > { %1079 = vadd.xlane.f32.xlu2 %v1078_v4 }
 0x659   : > { %v1080_v3 = vpop.xlane.xlu2 %1079 }
 0x65a   : > { %v1081_v5 = vmul.f32 %v1080_v3, %v1074_v62 }
 0x65c   : > { %v1082_v6 = vadd.f32 1e-05, %v1081_v5 }
 0x65e   : > { %1495 = vrsqrt.f32 %v1082_v6  ;;  %vm1089_vm5 = vweird.f32 %v1082_v6 }
 0x664   : > { %v1496_v7 = vpop.eup %1495 }
 0x665   : > { %v1084_v8 = vmul.f32 %v1496_v7, %v1082_v6  ;;  %vm1090_vm4 = vweird.f32 %v1496_v7 }
 0x666   : > { %vm1091_vm6 = vmor %vm1089_vm5, %vm1090_vm4 }
 0x667   : > { %v1085_v9 = vmul.f32 %v1496_v7, %v1084_v8 }
 0x669   : > { %v1086_v10 = vmul.f32 0.5, %v1085_v9 }
 0x66b   : > { %v1087_v11 = vsub.f32 1.5, %v1086_v10 }
 0x66d   : > { %v1088_v12 = vmul.f32 %v1496_v7, %v1087_v11 }
 0x66f   : > { %v1092_v14 = vsel %vm1091_vm6, %v1496_v7, %v1088_v12 }
 0x670   : > { %v1093_v17 = vmul.f32 %v1092_v14, %v1076_v1 }
 0x672   : > { %v1098_v18 = vmul.f32 %v1475_v13, %v1093_v17 }
 0x674   : > { %v1103_v19 = vadd.f32 %v1476_v15, %v1098_v18 }
 0x676   : > { %1104 = vst.msk [vmem:[%s639_s25] sm:$0xff] %vm664_vm0, %v1103_v19 }
 0x677 PF: > { %s27_s24 = sadd.s32 1, %s1657_s24   ;;  %s2022_s15 = sld [smem:[#allocation9_spill]] }
 0x678   : > { %p24_p2 = scmp.ge.s32.totalorder %s27_s24, 6   ;;  %s2023_s19 = sld [smem:[#allocation13_spill]] }
 0x679   : > { %s2024_s20 = sld [smem:[#allocation10_spill]]  ;;  %s2027_s17 = smov %s1633_s18 }
 0x67a   : > { %s2025_s22 = sld [smem:[#allocation11_spill]]  ;;  %s2029_s21 = smov %s1653_s23 }
 0x67b   : > { %s2026_s7 = sld [smem:[#allocation12_spill]] }
 0x67d   : > { %s2028_s18 = smov %s2022_s15  ;;  %26 = sbr.rel (!%p24_p2) target bundleno = 16 (0x10), region = 149 }
 0x681   : > { %s2030_s23 = smov %s2026_s7 }
 0x682   :  { %1132 = vsyncpa [#allocation3], 1 }
 0x683   :  { %1134 = vsyncpa [#allocation3 + $0x1], 1 }
 0x684   :  { %1135 = vsyncpa [#allocation5], 1 }
 0x685   :  { %1137 = vsyncpa [#allocation5 + $0x1], 1 }

// kernel: trimodal_block_forward.6
= control target key start
LH: loop header
LB: loop body
LE: loop exit
PB: predicated region body
PF: predicated region fallthrough
CT: control target
= control target key end

     0   :  { %s1872_s0 = inlined_call_operand.vmem [shape: f32[1,2,8,32], index: 0, kind: input, shape index: {}]   ;;  %s1873_s1 = inlined_call_operand.vmem [shape: f32[1,2,8,32], index: 1, kind: input, shape index: {}]   ;;  %s1874_s2 = inlined_call_operand.vmem [shape: bf16[1,32,32], index: 2, kind: input, shape index: {}]   ;;  %s1875_s3 = inlined_call_operand.vmem [shape: f32[1,1,32], index: 3, kind: input, shape index: {}]   ;;  %s1876_s4 = inlined_call_operand.hbm [shape: bf16[1,32,64], index: 4, kind: input, shape index: {}]   ;;  %s1877_s5 = inlined_call_operand.hbm [shape: f32[1,1,64], index: 5, kind: input, shape index: {}]   ;;  %s1878_s6 = inlined_call_operand.hbm [shape: bf16[1,32,32], index: 6, kind: input, shape index: {}]   ;;  %s1879_s7 = inlined_call_operand.hbm [shape: f32[1,1,32], index: 7, kind: input, shape index: {}]   ;;  %s1880_s8 = inlined_call_operand.hbm [shape: f32[1,1,32], index: 8, kind: input, shape index: {}]   ;;  %s1881_s9 = inlined_call_operand.vmem [shape: f32[8,8], index: 9, kind: input, shape index: {}]   ;;  %s1882_s10 = inlined_call_operand.vmem [shape: f32[2,1,8], index: 10, kind: input, shape index: {}]   ;;  %s1883_s11 = inlined_call_operand.vmem [shape: f32[1,2,8,32], index: 11, kind: output, shape index: {}]  }
   0x1   :  { %1884 = sst [smem:[#allocation13_spill]] %s1876_s4 }
   0x2   :  { %1885 = sst [smem:[#allocation14_spill]] %s1877_s5 }
   0x3   :  { %16 = vsyncpa [#allocation3], 0 }
   0x4   :  { %17 = vsyncpa [#allocation5], 0 }
   0x5   :  { %18 = vsyncpa [#allocation8], 0  ;;  %s1699_s17 = smov 0   ;;  %s1701_s18 = smov 0  }
   0x6   :  { %s1703_s19 = smov 0  }
   0x7 LB: > { %s1886_s5 = sld [smem:[#allocation14_spill]]  ;;  %s1268_s23 = sadd.s32 4294967295, %s1622_s19   ;;  %s1622_s19 = sphi %s1703_s19, %s24_s19   ;;  %s1618_s18 = sphi %s1701_s18, %s1892_s18   ;;  %s1614_s17 = sphi %s1699_s17, %s1891_s17  }
   0x8   : > { %p1270_p0 = scmp.ge.s32.totalorder %s1622_s19, 1  ;;  %p354_p1 = scmp.lt.s32.totalorder %s1622_s19, 3 }
   0x9   : > { %p1720_p2 = scmp.eq.s32.totalorder %s1268_s23, 0  ;;  %s1624_s26 = smov [#allocation4]  }
   0xa   : > { %p1724_p3 = pnand %p1270_p0, %p354_p1  ;;  %s400_s27 = sshll.u32 %s1624_s26, 4  ;;  %s401_s27 = int_to_ptr.vmem [resolvable:$true] %s400_s27 }
   0xb   : > { %s428_s30 = sshll.u32 %s1879_s7, 4  ;;  %s1625_s13 = smov [#allocation7]   ;;  %s429_s30 = int_to_ptr.hbm [resolvable:$true] %s428_s30 }
   0xc   : > { %p1348_p4 = pneg %p1724_p3  ;;  %s430_s14 = sshll.u32 %s1625_s13, 4  ;;  %s431_s14 = int_to_ptr.vmem [resolvable:$true] %s430_s14 }
   0xd   : > { %s398_s22 = sshll.u32 %s1886_s5, 4  ;;  %s33_s15 = sadd.s32 1, %s1618_s18  ;;  %s399_s22 = int_to_ptr.hbm [resolvable:$true] %s398_s22 }
   0xe   : > { %p1735_p5 = pnand %p1720_p2, %p1348_p4  ;;  %p34_p6 = scmp.ge.s32.totalorder %s33_s15, 2 }
   0xf   : > { %s1890_s4 = sld [smem:[#allocation13_spill]]  ;;  %s1626_s23 = smov [#allocation2]  }
  0x10   : > { %1354 = dma.hbm_to_vmem [thread:$0]  (!%p1735_p5), %s399_s22, 16, %s401_s27, [#allocation5]  }
  0x11   : > { %1360 = dma.hbm_to_vmem [thread:$0]  (!%p1735_p5), %s429_s30, 16, %s431_s14, [#allocation8]  }
  0x12   : > { %s1894_s15 = smov (%p34_p6, %s33_s15), 0  ;;  %s384_s26 = sshll.u32 %s1626_s23, 4  ;;  %s385_s26 = int_to_ptr.vmem [resolvable:$true] %s384_s26 }
  0x13   : > { %s1627_s28 = smov 64   ;;  %s1628_s29 = smov 4  }
  0x14   : > { %s412_s30 = sshll.u32 %s1878_s6, 4  ;;  %s1629_s13 = smov [#allocation6]   ;;  %s413_s30 = int_to_ptr.hbm [resolvable:$true] %s412_s30 }
  0x15   : > { %s382_s21 = sshll.u32 %s1890_s4, 4  ;;  %s414_s14 = sshll.u32 %s1629_s13, 4  ;;  %s383_s21 = int_to_ptr.hbm [resolvable:$true] %s382_s21  ;;  %s415_s14 = int_to_ptr.vmem [resolvable:$true] %s414_s14 }
  0x16   : > { %1351 = dma.hbm_to_vmem [thread:$0]  (!%p1735_p5), %s383_s21, 256, %s385_s26, [#allocation3], %s1627_s28, %s1627_s28, %s1628_s29  }
  0x17   : > { %s441_s4 = sshll.u32 %s1880_s8, 4  ;;  %s1630_s23 = smov [#allocation9]   ;;  %s442_s4 = int_to_ptr.hbm [resolvable:$true] %s441_s4 }
  0x18   : > { %1357 = dma.hbm_to_vmem [thread:$0]  (!%p1735_p5), %s413_s30, 256, %s415_s14, [#allocation5], %s1627_s28, %s1627_s28, %s1628_s29  }
  0x19   : > { %s443_s5 = sshll.u32 %s1630_s23, 4  ;;  %487 = sbr.rel (%p1724_p3) target bundleno = 1628 (0x65c), region = 64  ;;  %s444_s5 = int_to_ptr.vmem [resolvable:$true] %s443_s5 }
  0x1a   : > { %1363 = dma.hbm_to_vmem [thread:$0]  (!%p1735_p5), %s442_s4, 16, %s444_s5, [#allocation8]  }
  0x1e   : > { %1601 = dma.done.wait (%p1720_p2), [#allocation3], 256  }
  0x1f   : > { %1603 = vsyncadd (%p1720_p2), [#allocation3], 4294967040 }
  0x20   : > { %1605 = dma.done.wait (%p1720_p2), [#allocation5], 272  }
  0x21   : > { %1607 = vsyncadd (%p1720_p2), [#allocation5], 4294967024 }
  0x22   : > { %1609 = dma.done.wait (%p1720_p2), [#allocation8], 32  }
  0x23   : > { %1611 = vsyncadd (%p1720_p2), [#allocation8], 4294967264  ;;  %p575_p7 = scmp.lt.s32.totalorder %s1614_s17, 1  ;;  %v1325_v0 = vld [vmem:[%s1874_s2 + $0x8] sm:$0xff]  ;;  %v1324_v2 = vld [vmem:[%s1874_s2] sm:$0xff]  ;;  %vm632_vm0 = vcmask 261120  }
  0x24   : > { %v1327_v1 = vld [vmem:[#allocation2 + $0x8] sm:$0xff]  ;;  %v1326_v3 = vld [vmem:[#allocation2] sm:$0xff]  ;;  %642 = vmatpush.bf16.msra.mxu0 %v1325_v0  ;;  %v1414_v9 = vld [vmem:[#allocation4] ss:$0 sm:$0xff]  ;;  %vm692_vm1 = vcmask 64512   ;;  %s1631_s23 = smov 112  }
  0x25   : > { %s1896_s17 = smov (!%p575_p7, %s1614_s17), 1  ;;  %679 = vmatpush.bf16.msra.mxu1 %v1327_v1  ;;  %v1413_v8 = vld [vmem:[%s1875_s3] ss:$0 sm:$0xff]  ;;  %s1632_s5 = smov 120   ;;  %vm740_vm2 = vcmask 1043456  }
  0x26   : > { %s1780_s4 = sshll.u32 %s1896_s17, 3  ;;  %s599_s14 = scalar_lea.vmem %s1882_s10, %s1896_s17  ;;  %v686_v23 = vld [vmem:[%s1881_s9] sm:$0xff] }
  0x27   : > { %s580_s12 = scalar_lea.vmem %s1872_s0, %s1780_s4  ;;  %s588_s24 = scalar_lea.vmem %s1873_s1, %s1780_s4  ;;  %v1415_v22 = vld [vmem:[%s599_s14] ss:$0 sm:$0xff] }
  0x28   : > { %v1796_v4 = vld [vmem:[%s580_s12] sm:$0xff]  ;;  %643 = vmatpush.bf16.msra.mxu0 %v1324_v2  ;;  %s1633_s25 = smov 80   ;;  %s1634_s12 = smov 104   ;;  %v691_v26 = vadd.f32 %v1415_v22, %v686_v23 }
  0x29   : > { %v610_v5 = vld [vmem:[%s588_s24] sm:$0xff]  ;;  %v611_v6 = vpack.c.bf16 %v1796_v4, %v1796_v4  ;;  %680 = vmatpush.bf16.msra.mxu1 %v1326_v3  ;;  %s1635_s17 = smov 96   ;;  %s1636_s29 = smov 88  }
  0x2a   : > { %v649_v7 = vpack.c.bf16 %v610_v5, %v610_v5  ;;  %s1637_s22 = smov 72   ;;  %s607_s13 = scalar_lea.vmem %s1883_s11, %s1780_s4 }
  0x2b   : > { %1296 = vmatmul.msk.bf16.vlgmr.msra.gmra.mxu0 %vm632_vm0, %v611_v6 }
  0x2c   : > { %1305 = vmatmul.msk.bf16.vlgmr.msra.gmra.mxu1 %vm632_vm0, %v649_v7 }
  0xa8   : > { %v645_v10 = vpop.f32.mrf.mxu0 }
  0xa9   : > { %v682_v11 = vpop.f32.mrf.mxu1  ;;  %v646_v12 = vadd.f32 %v1413_v8, %v645_v10  ;;  %v758_v8 = vld [vmem:[#allocation6] sm:$0xf] }
  0xaa   : > { %v683_v13 = vadd.f32 %v1414_v9, %v682_v11  ;;  %v847_v9 = vsel %vm740_vm2, %v758_v8, 0 }
  0xab   : > { %759 = vrot.lane.b32.xlu2 %v646_v12, %s1632_s5  ;;  %856 = vmatpush.bf16.msrb.mxu0 %v847_v9 }
  0xac   : > { %864 = vrot.lane.b32.xlu0 %v683_v13, %s1631_s23  ;;  %1306 = vmatpush.xpose.msk.msra.mxu2 %vm692_vm1, %v683_v13  ;;  %v1811_v16 = vpack.c.bf16 %v683_v13, %v683_v13 }
  0xaf   : > { %1307 = vmatmul.msk.f32.vlgmr.msra.gmra.mxu2 %vm692_vm1, %v646_v12 }
  0xb0   : > { %v647_v14 = vpop.f32.mrf.mxu0 }
  0xb1   : > { %v684_v15 = vpop.f32.mrf.mxu1 }
  0xb4   : > { %862 = vrot.lane.b32.xlu0 %v646_v12, %s1631_s23 }
  0xbc   : > { %904 = vrot.lane.b32.xlu0 %v1811_v16, %s1633_s25 }
  0xc4   : > { %949 = vrot.lane.b32.xlu0 %v683_v13, %s1634_s12 }
  0xcc   : > { %947 = vrot.lane.b32.xlu0 %v646_v12, %s1634_s12 }
 0x105   : > { %v760_v39 = vpop.permute.xlu2 %759 }
 0x11e   : > { %v865_v17 = vpop.permute.xlu0 %864 }
 0x11f   : > { %1314 = vmatpush.xpose.msk.msrb.mxu1 %vm692_vm1, %v865_v17 }
 0x126   : > { %v863_v18 = vpop.permute.xlu0 %862 }
 0x127   : > { %1315 = vmatmul.msk.f32.vlgmr.msrb.gmra.mxu1 %vm692_vm1, %v863_v18 }
 0x12e   : > { %v905_v19 = vpop.permute.xlu0 %904 }
 0x12f   : > { %v910_v20 = vsel %vm740_vm2, %v905_v19, 0 }
 0x130   : > { %919 = vmatpush.bf16.msra.mxu1 %v910_v20 }
 0x132   : > { %v716_v29 = vpop.f32.mrf.mxu2 }
 0x133   : > { %v719_v30 = vmul.f32 0.35355338, %v716_v29 }
 0x135   : > { %v720_v31 = vadd.f32 %v719_v30, %v691_v26  ;;  %v823_v30 = vld [vmem:[#allocation6 + $0x4] sm:$0xf] }
 0x136   : > { %v950_v21 = vpop.permute.xlu0 %949 }
 0x137   : > { %1318 = vmatpush.xpose.msk.msrb.mxu1 %vm692_vm1, %v950_v21  ;;  %v721_v32 = vsel %vm692_vm1, %v720_v31, -inf  ;;  %v926_v21 = vld [vmem:[#allocation6 + $0x8] sm:$0xf] }
 0x13e   : > { %v948_v51 = vpop.permute.xlu0 %947 }
 0x1a4   : > { %v887_v24 = vpop.f32.mrf.mxu1 }
 0x1a5   : > { %v890_v25 = vmul.f32 0.35355338, %v887_v24  ;;  %v931_v24 = vsel %vm740_vm2, %v926_v21, 0 }
 0x1a7   : > { %v891_v27 = vadd.f32 %v890_v25, %v691_v26 }
 0x1a9   : > { %v892_v28 = vsel %vm692_vm1, %v891_v27, -inf }
 0x1aa   : > { %893 = vmax.xlane.f32.xlu1 %v892_v28 }
 0x1c3   : > { %761 = vrot.lane.b32.xlu1 %v683_v13, %s1632_s5 }
 0x1ed   : > { %722 = vmax.xlane.f32.xlu1 %v721_v32 }
 0x21d   : > { %v894_v33 = vpop.xlane.xlu1 %893 }
 0x21e   : > { %v895_v34 = vsub.f32 %v891_v27, %v894_v33 }
 0x220   : > { %v896_v35 = vmul.f32 1.442695, %v895_v34 }
 0x222   : > { %1418 = vpow2.f32 %v896_v35 }
 0x228   : > { %v1419_v36 = vpop.eup %1418 }
 0x229   : > { %v898_v37 = vsel %vm692_vm1, %v1419_v36, 0.0 }
 0x22a   : > { %899 = vadd.xlane.f32.xlu2 %v898_v37 }
 0x235   : > { %v762_v38 = vpop.permute.xlu1 %761 }
 0x236   : > { %1309 = vmatpush.xpose.msk.msrb.mxu2 %vm692_vm1, %v762_v38 }
 0x239   : > { %1310 = vmatmul.msk.f32.vlgmr.msrb.gmra.mxu2 %vm692_vm1, %v760_v39 }
 0x242   : > { %735 = vrot.lane.b32.xlu2 %v1811_v16, %s1635_s17 }
 0x260   : > { %v723_v40 = vpop.xlane.xlu1 %722 }
 0x261   : > { %v724_v41 = vsub.f32 %v720_v31, %v723_v40  ;;  %v828_v31 = vsel %vm740_vm2, %v823_v30, 0 }
 0x263   : > { %v725_v42 = vmul.f32 1.442695, %v724_v41 }
 0x265   : > { %1420 = vpow2.f32 %v725_v42  ;;  %v1011_v42 = vld [vmem:[#allocation6 + $0xc] sm:$0xf] }
 0x26b   : > { %v1421_v43 = vpop.eup %1420 }
 0x26c   : > { %v727_v44 = vsel %vm692_vm1, %v1421_v43, 0.0 }
 0x26d   : > { %728 = vadd.xlane.f32.xlu0 %v727_v44 }
 0x29d   : > { %v900_v45 = vpop.xlane.xlu2 %899 }
 0x29e   : > { %1422 = vrcp.f32 %v900_v45 }
 0x2a4   : > { %v1423_v46 = vpop.eup %1422 }
 0x2a5   : > { %v902_v47 = vmul.f32 %v1423_v46, %v1419_v36  ;;  %v736_v48 = vpop.permute.xlu2 %735 }
 0x2a6   : > { %v742_v49 = vsel %vm740_vm2, %v736_v48, 0 }
 0x2a7   : > { %v903_v50 = vpack.c.bf16 %v902_v47, %v902_v47  ;;  %751 = vmatpush.bf16.msra.mxu3 %v742_v49 }
 0x2a9   : > { %1316 = vmatmul.msk.bf16.vlgmr.msra.gmra.mxu1 %vm692_vm1, %v903_v50 }
 0x2ab   : > { %837 = vmatpush.bf16.msrb.mxu3 %v828_v31 }
 0x2b9   : > { %1319 = vmatmul.msk.f32.vlgmr.msrb.gmra.mxu1 %vm692_vm1, %v948_v51 }
 0x2bc   : > { %v784_v52 = vpop.f32.mrf.mxu2 }
 0x2bd   : > { %v787_v53 = vmul.f32 0.35355338, %v784_v52 }
 0x2bf   : > { %v788_v54 = vadd.f32 %v787_v53, %v691_v26 }
 0x2c1   : > { %v789_v55 = vsel %vm692_vm1, %v788_v54, -inf }
 0x2c2   : > { %790 = vmax.xlane.f32.xlu2 %v789_v55 }
 0x2e0   : > { %v729_v56 = vpop.xlane.xlu0 %728 }
 0x2e1   : > { %1424 = vrcp.f32 %v729_v56  ;;  %v1638_v56 = vmov 32.0  }
 0x2e7   : > { %v1425_v57 = vpop.eup %1424 }
 0x2e8   : > { %v731_v58 = vmul.f32 %v1425_v57, %v1421_v43  ;;  %v1016_v43 = vsel %vm740_vm2, %v1011_v42, 0 }
 0x2ea   : > { %v732_v59 = vpack.c.bf16 %v731_v58, %v731_v58 }
 0x2ec   : > { %1308 = vmatmul.msk.bf16.vlgmr.msra.gmra.mxu3 %vm692_vm1, %v732_v59 }
 0x2ed   : > { %1025 = vmatpush.bf16.msra.mxu3 %v1016_v43 }
 0x326   : > { %v921_v60 = vpop.f32.mrf.mxu1 }
 0x327   : > { %v925_v27 = vpack.c.bf16 %v921_v60, %v921_v60 }
 0x32e   : > { %v923_v61 = vpop.f32.mrf.mxu1 }
 0x335   : > { %v791_v62 = vpop.xlane.xlu2 %790 }
 0x336   : > { %v792_v63 = vsub.f32 %v788_v54, %v791_v62  ;;  %v972_v0 = vpop.f32.mrf.mxu1 }
 0x337   : > { %v975_v1 = vmul.f32 0.35355338, %v972_v0 }
 0x338   : > { %v793_v2 = vmul.f32 1.442695, %v792_v63 }
 0x339   : > { %v976_v3 = vadd.f32 %v975_v1, %v691_v26 }
 0x33a   : > { %1426 = vpow2.f32 %v793_v2 }
 0x33b   : > { %v977_v5 = vsel %vm692_vm1, %v976_v3, -inf }
 0x33c   : > { %978 = vmax.xlane.f32.xlu1 %v977_v5 }
 0x340   : > { %v1427_v6 = vpop.eup %1426 }
 0x341   : > { %v795_v7 = vsel %vm692_vm1, %v1427_v6, 0.0 }
 0x342   : > { %796 = vadd.xlane.f32.xlu0 %v795_v7 }
 0x355   : > { %801 = vrot.lane.b32.xlu1 %v1811_v16, %s1636_s29 }
 0x36f   : > { %v753_v10 = vpop.f32.mrf.mxu3 }
 0x370   : > { %v757_v11 = vpack.c.bf16 %v753_v10, %v753_v10 }
 0x372   : > { %1313 = vmatmul.msk.bf16.vlgmr.msrb.gmra.mxu0 %vm692_vm1, %v757_v11 }
 0x377   : > { %v755_v12 = vpop.f32.mrf.mxu3 }
 0x3af   : > { %v979_v13 = vpop.xlane.xlu1 %978 }
 0x3b0   : > { %v980_v14 = vsub.f32 %v976_v3, %v979_v13  ;;  %v1416_v13 = vld [vmem:[#allocation7] ss:$0 sm:$0xff] }
 0x3b2   : > { %v981_v15 = vmul.f32 1.442695, %v980_v14 }
 0x3b4   : > { %1428 = vpow2.f32 %v981_v15  ;;  %v1417_v15 = vld [vmem:[#allocation9] ss:$0 sm:$0xff] }
 0x3b5   : > { %v797_v18 = vpop.xlane.xlu0 %796 }
 0x3b6   : > { %1430 = vrcp.f32 %v797_v18 }
 0x3ba   : > { %v1429_v17 = vpop.eup %1428 }
 0x3bb   : > { %v983_v19 = vsel %vm692_vm1, %v1429_v17, 0.0 }
 0x3bc   : > { %984 = vadd.xlane.f32.xlu0 %v983_v19  ;;  %v1431_v20 = vpop.eup %1430 }
 0x3bd   : > { %v799_v22 = vmul.f32 %v1431_v20, %v1427_v6 }
 0x3bf   : > { %v800_v26 = vpack.c.bf16 %v799_v22, %v799_v22 }
 0x3c7   : > { %v802_v23 = vpop.permute.xlu1 %801 }
 0x3c8   : > { %v807_v25 = vsel %vm740_vm2, %v802_v23, 0 }
 0x3c9   : > { %816 = vmatpush.bf16.msra.mxu2 %v807_v25 }
 0x3cc   : > { %1311 = vmatmul.msk.bf16.vlgmr.msra.gmra.mxu2 %vm692_vm1, %v800_v26 }
 0x3cd   : > { %940 = vmatpush.bf16.msrb.mxu2 %v931_v24 }
 0x3d0   : > { %989 = vrot.lane.b32.xlu0 %v1811_v16, %s1637_s22 }
 0x3dc   : > { %1317 = vmatmul.msk.bf16.vlgmr.msrb.gmra.mxu2 %vm692_vm1, %v925_v27 }
 0x3ef   : > { %v858_v28 = vpop.f32.mrf.mxu0 }
 0x3f7   : > { %v860_v29 = vpop.f32.mrf.mxu0 }
 0x42f   : > { %v985_v32 = vpop.xlane.xlu0 %984 }
 0x430   : > { %1432 = vrcp.f32 %v985_v32 }
 0x431   : > { %1434 = vrcp.f32 %v1638_v56 }
 0x436   : > { %v1433_v33 = vpop.eup %1432 }
 0x437   : > { %v987_v34 = vmul.f32 %v1433_v33, %v1429_v17  ;;  %v1435_v57 = vpop.eup %1434 }
 0x438   : > { %v1037_v58 = vmul.f32 32.0, %v1435_v57  ;;  %vm1041_vm3 = vweird.f32 %v1435_v57 }
 0x439   : > { %v988_v37 = vpack.c.bf16 %v987_v34, %v987_v34 }
 0x43a   : > { %v1038_v59 = vsub.f32 1.0, %v1037_v58 }
 0x43c   : > { %v1039_v60 = vmul.f32 %v1435_v57, %v1038_v59 }
 0x43e   : > { %v1040_v61 = vadd.f32 %v1435_v57, %v1039_v60 }
 0x440   : > { %v1042_v62 = vsel %vm1041_vm3, %v1435_v57, %v1040_v61 }
 0x442   : > { %v990_v35 = vpop.permute.xlu0 %989 }
 0x443   : > { %v995_v36 = vsel %vm740_vm2, %v990_v35, 0 }
 0x444   : > { %1004 = vmatpush.bf16.msra.mxu0 %v995_v36 }
 0x447   : > { %1320 = vmatmul.msk.bf16.vlgmr.msra.gmra.mxu0 %vm692_vm1, %v988_v37 }
 0x44f   : > { %v818_v16 = vpop.f32.mrf.mxu2 }
 0x450   : > { %v822_v38 = vpack.c.bf16 %v818_v16, %v818_v16 }
 0x452   : > { %1312 = vmatmul.msk.bf16.vlgmr.msrb.gmra.mxu3 %vm692_vm1, %v822_v38 }
 0x457   : > { %v820_v39 = vpop.f32.mrf.mxu2 }
 0x45f   : > { %v942_v40 = vpop.f32.mrf.mxu2 }
 0x467   : > { %v944_v41 = vpop.f32.mrf.mxu2 }
 0x4c4   : > { %v1006_v44 = vpop.f32.mrf.mxu0 }
 0x4c5   : > { %v1010_v45 = vpack.c.bf16 %v1006_v44, %v1006_v44 }
 0x4c7   : > { %1321 = vmatmul.msk.bf16.vlgmr.msra.gmra.mxu3 %vm692_vm1, %v1010_v45 }
 0x4cc   : > { %v1008_v46 = vpop.f32.mrf.mxu0 }
 0x4d5   : > { %v839_v47 = vpop.f32.mrf.mxu3 }
 0x4d6   : > { %v859_v49 = vadd.f32 %v858_v28, %v839_v47 }
 0x4d8   : > { %v946_v50 = vadd.f32 %v942_v40, %v859_v49 }
 0x4dd   : > { %v841_v48 = vpop.f32.mrf.mxu3 }
 0x54a   : > { %v1027_v51 = vpop.f32.mrf.mxu3 }
 0x54b   : > { %v1031_v52 = vadd.f32 %v1027_v51, %v946_v50 }
 0x54d   : > { %v1032_v53 = vadd.f32 %v1031_v52, %v1796_v4 }
 0x54f   : > { %v1033_v54 = vsel %vm632_vm0, %v1032_v53, 0.0 }
 0x550   : > { %1034 = vadd.xlane.f32.xlu1 %v1033_v54 }
 0x552   : > { %v1029_v55 = vpop.f32.mrf.mxu3 }
 0x5c3   : > { %v1035_v63 = vpop.xlane.xlu1 %1034 }
 0x5c4   : > { %v1043_v0 = vmul.f32 %v1042_v62, %v1035_v63 }
 0x5c6   : > { %v1044_v1 = vsub.f32 %v1032_v53, %v1043_v0 }
 0x5c8   : > { %v1045_v2 = vmul.f32 %v1044_v1, %v1044_v1 }
 0x5ca   : > { %v1046_v3 = vsel %vm632_vm0, %v1045_v2, 0.0 }
 0x5cb   : > { %1047 = vadd.xlane.f32.xlu2 %v1046_v3 }
 0x63e   : > { %v1048_v4 = vpop.xlane.xlu2 %1047 }
 0x63f   : > { %v1049_v5 = vmul.f32 %v1048_v4, %v1042_v62 }
 0x641   : > { %v1050_v6 = vadd.f32 1e-05, %v1049_v5 }
 0x643   : > { %1436 = vrsqrt.f32 %v1050_v6  ;;  %vm1057_vm5 = vweird.f32 %v1050_v6 }
 0x649   : > { %v1437_v7 = vpop.eup %1436 }
 0x64a   : > { %v1052_v8 = vmul.f32 %v1437_v7, %v1050_v6  ;;  %vm1058_vm4 = vweird.f32 %v1437_v7 }
 0x64b   : > { %vm1059_vm6 = vmor %vm1057_vm5, %vm1058_vm4 }
 0x64c   : > { %v1053_v9 = vmul.f32 %v1437_v7, %v1052_v8 }
 0x64e   : > { %v1054_v10 = vmul.f32 0.5, %v1053_v9 }
 0x650   : > { %v1055_v11 = vsub.f32 1.5, %v1054_v10 }
 0x652   : > { %v1056_v12 = vmul.f32 %v1437_v7, %v1055_v11 }
 0x654   : > { %v1060_v14 = vsel %vm1059_vm6, %v1437_v7, %v1056_v12 }
 0x655   : > { %v1061_v17 = vmul.f32 %v1060_v14, %v1044_v1 }
 0x657   : > { %v1066_v18 = vmul.f32 %v1416_v13, %v1061_v17 }
 0x659   : > { %v1071_v19 = vadd.f32 %v1417_v15, %v1066_v18 }
 0x65b   : > { %1072 = vst.msk [vmem:[%s607_s13] sm:$0xff] %vm632_vm0, %v1071_v19 }
 0x65c PF: > { %s24_s19 = sadd.s32 1, %s1622_s19   ;;  %s1891_s17 = smov %s1618_s18 }
 0x65d   : > { %p21_p8 = scmp.ge.s32.totalorder %s24_s19, 4   ;;  %s1892_s18 = smov %s1894_s15 }
 0x65f   :  { %23 = sbr.rel (!%p21_p8) target bundleno = 7 (0x7), region = 132 }
 0x664   :  { %1100 = vsyncpa [#allocation3], 1 }
 0x665   :  { %1102 = vsyncpa [#allocation3 + $0x1], 1 }
 0x666   :  { %1103 = vsyncpa [#allocation5], 1 }
 0x667   :  { %1104 = vsyncpa [#allocation8], 1 }

// kernel: trimodal_block_forward.7
= control target key start
LH: loop header
LB: loop body
LE: loop exit
PB: predicated region body
PF: predicated region fallthrough
CT: control target
= control target key end

     0   :  { %s693_s18 = smov 0   ;;  %s695_s19 = smov 0   ;;  %s752_s0 = inlined_call_operand.vmem [shape: f32[2,16,32], index: 0, kind: input, shape index: {}]   ;;  %s753_s1 = inlined_call_operand.vmem [shape: bf16[2,32,64], index: 1, kind: input, shape index: {}]   ;;  %s754_s2 = inlined_call_operand.vmem [shape: f32[2,1,64], index: 2, kind: input, shape index: {}]   ;;  %s755_s3 = inlined_call_operand.vmem [shape: bf16[2,64,32], index: 3, kind: input, shape index: {}]   ;;  %s756_s4 = inlined_call_operand.vmem [shape: f32[2,1,32], index: 4, kind: input, shape index: {}]   ;;  %s757_s5 = inlined_call_operand.vmem [shape: f32[2,16,32], index: 5, kind: output, shape index: {}]  }
   0x1   :  { %s697_s20 = smov 0  }
   0x2 LB: > { %s27_s21 = sadd.s32 1, %s657_s19  ;;  %p566_p0 = scmp.ge.s32.totalorder %s661_s20, 1  ;;  %s661_s20 = sphi %s697_s20, %s15_s20   ;;  %s657_s19 = sphi %s695_s19, %s759_s19   ;;  %s653_s18 = sphi %s693_s18, %s758_s18  }
   0x3   : > { %p29_p1 = scmp.ge.s32.totalorder %s27_s21, 2  ;;  %p244_p2 = scmp.lt.s32.totalorder %s661_s20, 3 }
   0x5   : > { %s761_s21 = smov (%p29_p1, %s27_s21), 0  ;;  %p245_p3 = pnand %p566_p0, %p244_p2 }
   0x6   : > { %p297_p4 = scmp.lt.s32.totalorder (!%p245_p3), %s653_s18, 1 }
   0x7   : > { %248 = sbr.rel (%p245_p3) target bundleno = 300 (0x12c), region = 40 }
   0xc   : > { %s763_s18 = smov (!%p297_p4, %s653_s18), 1  ;;  %vm356_vm0 = vcmask 261120   ;;  %vm413_vm1 = vcmask 523264  }
   0xd   : > { %s714_s22 = sshll.u32 %s763_s18, 4  ;;  %s313_s25 = scalar_lea.vmem %s754_s2, %s763_s18 }
   0xe   : > { %s310_s28 = scalar_lea.vmem %s753_s1, %s714_s22  ;;  %s304_s6 = scalar_lea.vmem %s752_s0, %s714_s22  ;;  %v637_v10 = vld [vmem:[%s313_s25] ss:$0 sm:$0xff] }
   0xf   : > { %v608_v0 = vld [vmem:[%s310_s28 + $0x8] sm:$0xff]  ;;  %v607_v1 = vld [vmem:[%s310_s28] sm:$0xff]  ;;  %s321_s9 = scalar_lea.vmem %s756_s4, %s763_s18  ;;  %s605_s10 = sshll.u32 %s763_s18, 5 }
  0x10   : > { %366 = vmatpush.bf16.msra.mxu0 %v608_v0  ;;  %v333_v2 = vld [vmem:[%s304_s6] sm:$0xff]  ;;  %v334_v3 = vld [vmem:[%s304_s6 + $0x8] sm:$0xff]  ;;  %s318_s13 = scalar_lea.vmem %s755_s3, %s605_s10  ;;  %s330_s16 = scalar_lea.vmem %s757_s5, %s714_s22 }
  0x11   : > { %v335_v4 = vpack.c.bf16 %v334_v3, %v333_v2  ;;  %v612_v5 = vld [vmem:[%s318_s13 + $0x18] sm:$0xff]  ;;  %v611_v6 = vld [vmem:[%s318_s13 + $0x10] sm:$0xff]  ;;  %v610_v7 = vld [vmem:[%s318_s13 + $0x8] sm:$0xff] }
  0x12   : > { %421 = vmatpush.bf16.msra.mxu1 %v612_v5  ;;  %v609_v8 = vld [vmem:[%s318_s13] sm:$0xff] }
  0x13   : > { %v638_v17 = vld [vmem:[%s321_s9] ss:$0 sm:$0xff] }
  0x14   : > { %367 = vmatpush.bf16.msra.mxu0 %v607_v1 }
  0x16   : > { %422 = vmatpush.bf16.msra.mxu1 %v611_v6 }
  0x17   : > { %583 = vmatmul.msk.bf16.vlgmr.msra.gmra.mxu0 %vm356_vm0, %v335_v4 }
  0x1a   : > { %423 = vmatpush.bf16.msra.mxu1 %v610_v7 }
  0x1e   : > { %424 = vmatpush.bf16.msra.mxu1 %v609_v8 }
  0x94   : > { %v369_v9 = vpop.f32.mrf.mxu0 }
  0x95   : > { %v370_v11 = vadd.f32 %v637_v10, %v369_v9 }
  0x97   : > { %v374_v14 = vmax.f32 %v370_v11, 0.0 }
  0x9c   : > { %v371_v12 = vpop.f32.mrf.mxu0 }
  0x9d   : > { %v372_v13 = vadd.f32 %v637_v10, %v371_v12 }
  0x9f   : > { %v375_v15 = vmax.f32 %v372_v13, 0.0 }
  0xa1   : > { %v376_v16 = vpack.c.bf16 %v375_v15, %v374_v14 }
  0xa3   : > { %600 = vmatmul.msk.bf16.vlgmr.msra.gmra.mxu1 %vm413_vm1, %v376_v16 }
 0x120   : > { %v426_v18 = vpop.f32.mrf.mxu1 }
 0x121   : > { %v427_v19 = vadd.f32 %v638_v17, %v426_v18 }
 0x123   : > { %431 = vst.msk [vmem:[%s330_s16] sm:$0xff] %vm356_vm0, %v427_v19 }
 0x128   : > { %v428_v20 = vpop.f32.mrf.mxu1 }
 0x129   : > { %v429_v21 = vadd.f32 %v638_v17, %v428_v20 }
 0x12b   : > { %432 = vst.msk [vmem:[%s330_s16 + $0x8] sm:$0xff] %vm356_vm0, %v429_v21 }
 0x12c PF: > { %s15_s20 = sadd.s32 1, %s661_s20   ;;  %s758_s18 = smov %s657_s19 }
 0x12d   : > { %p12_p5 = scmp.ge.s32.totalorder %s15_s20, 4   ;;  %s759_s19 = smov %s761_s21 }
 0x12f   :  { %14 = sbr.rel (!%p12_p5) target bundleno = 2 (0x2), region = 82 }

// kernel: trimodal_block_forward.5
= control target key start
LH: loop header
LB: loop body
LE: loop exit
PB: predicated region body
PF: predicated region fallthrough
CT: control target
= control target key end

     0   :  { %16 = vsyncpa [#allocation3], 0  ;;  %s1507_s17 = smov 0   ;;  %s1509_s18 = smov 0   ;;  %s1648_s0 = inlined_call_operand.vmem [shape: f32[1,2,8,32], index: 0, kind: input, shape index: {}]   ;;  %s1649_s1 = inlined_call_operand.vmem [shape: f32[1,2,8,32], index: 1, kind: input, shape index: {}]   ;;  %s1650_s2 = inlined_call_operand.vmem [shape: bf16[1,32,32], index: 2, kind: input, shape index: {}]   ;;  %s1651_s3 = inlined_call_operand.vmem [shape: f32[1,1,32], index: 3, kind: input, shape index: {}]   ;;  %s1652_s4 = inlined_call_operand.vmem [shape: bf16[1,32,64], index: 4, kind: input, shape index: {}]   ;;  %s1653_s5 = inlined_call_operand.vmem [shape: f32[1,1,64], index: 5, kind: input, shape index: {}]   ;;  %s1654_s6 = inlined_call_operand.vmem [shape: bf16[1,32,32], index: 6, kind: input, shape index: {}]   ;;  %s1655_s7 = inlined_call_operand.vmem [shape: f32[1,1,32], index: 7, kind: input, shape index: {}]   ;;  %s1656_s8 = inlined_call_operand.hbm [shape: f32[1,1,32], index: 8, kind: input, shape index: {}]   ;;  %s1657_s9 = inlined_call_operand.vmem [shape: f32[8,8], index: 9, kind: input, shape index: {}]   ;;  %s1658_s10 = inlined_call_operand.vmem [shape: f32[2,1,8], index: 10, kind: input, shape index: {}]   ;;  %s1659_s11 = inlined_call_operand.vmem [shape: f32[1,2,8,32], index: 11, kind: output, shape index: {}]  }
   0x1   :  { %s1511_s19 = smov 0  }
   0x2 LB: > { %s1256_s20 = sadd.s32 4294967295, %s1436_s19   ;;  %s31_s21 = sadd.s32 1, %s1432_s18  ;;  %s1436_s19 = sphi %s1511_s19, %s22_s19   ;;  %s1432_s18 = sphi %s1509_s18, %s1661_s18   ;;  %s1428_s17 = sphi %s1507_s17, %s1660_s17  }
   0x3   : > { %p32_p0 = scmp.ge.s32.totalorder %s31_s21, 2  ;;  %p1258_p1 = scmp.ge.s32.totalorder %s1436_s19, 1 }
   0x4   : > { %p352_p2 = scmp.lt.s32.totalorder %s1436_s19, 3  ;;  %p1320_p4 = scmp.eq.s32.totalorder %s1256_s20, 0 }
   0x5   : > { %s1663_s21 = smov (%p32_p0, %s31_s21), 0  ;;  %s407_s24 = sshll.u32 %s1656_s8, 4  ;;  %s408_s24 = int_to_ptr.hbm [resolvable:$true] %s407_s24 }
   0x6   : > { %p353_p3 = pnand %p1258_p1, %p352_p2  ;;  %s1438_s25 = smov [#allocation2]  }
   0x7   : > { %s409_s26 = sshll.u32 %s1438_s25, 4  ;;  %s410_s26 = int_to_ptr.vmem [resolvable:$true] %s409_s26 }
   0x8   : > { %p1316_p5 = pneg %p353_p3  ;;  %453 = sbr.rel (%p353_p3) target bundleno = 1607 (0x647), region = 64 }
   0xa   : > { %p1317_p6 = pnand %p1320_p4, %p1316_p5 }
   0xc   : > { %1319 = dma.hbm_to_vmem [thread:$0]  (!%p1317_p6), %s408_s24, 16, %s410_s26, [#allocation3]  }
   0xd   : > { %1423 = dma.done.wait (%p1320_p4), [#allocation3], 16  }
   0xe   : > { %1425 = vsyncadd (%p1320_p4), [#allocation3], 4294967280  ;;  %p537_p7 = scmp.lt.s32.totalorder %s1428_s17, 1  ;;  %v1309_v0 = vld [vmem:[%s1650_s2 + $0x8] sm:$0xff]  ;;  %v1308_v2 = vld [vmem:[%s1650_s2] sm:$0xff]  ;;  %vm610_vm0 = vcmask 261120  }
   0xf   : > { %v1311_v1 = vld [vmem:[%s1652_s4 + $0x8] sm:$0xff]  ;;  %v1310_v3 = vld [vmem:[%s1652_s4] sm:$0xff]  ;;  %620 = vmatpush.bf16.msra.mxu0 %v1309_v0  ;;  %vm670_vm1 = vcmask 64512   ;;  %s1440_s20 = smov 120   ;;  %s1441_s22 = smov 80   ;;  %vm718_vm2 = vcmask 1043456  }
  0x10   : > { %s1665_s17 = smov (!%p537_p7, %s1428_s17), 1  ;;  %657 = vmatpush.bf16.msra.mxu1 %v1311_v1  ;;  %v1355_v8 = vld [vmem:[%s1651_s3] ss:$0 sm:$0xff]  ;;  %s1442_s23 = smov 104  }
  0x11   : > { %s1532_s27 = sshll.u32 %s1665_s17, 3  ;;  %s577_s12 = scalar_lea.vmem %s1658_s10, %s1665_s17  ;;  %v1356_v9 = vld [vmem:[%s1653_s5] ss:$0 sm:$0xff] }
  0x12   : > { %s542_s30 = scalar_lea.vmem %s1648_s0, %s1532_s27  ;;  %s550_s14 = scalar_lea.vmem %s1649_s1, %s1532_s27  ;;  %v1357_v22 = vld [vmem:[%s577_s12] ss:$0 sm:$0xff] }
  0x13   : > { %v1554_v4 = vld [vmem:[%s542_s30] sm:$0xff]  ;;  %621 = vmatpush.bf16.msra.mxu0 %v1308_v2  ;;  %s1443_s17 = smov 96   ;;  %s1444_s30 = smov 88  }
  0x14   : > { %v588_v5 = vld [vmem:[%s550_s14] sm:$0xff]  ;;  %v589_v6 = vpack.c.bf16 %v1554_v4, %v1554_v4  ;;  %658 = vmatpush.bf16.msra.mxu1 %v1310_v3  ;;  %s1439_s14 = smov 112   ;;  %s1445_s16 = smov 72  }
  0x15   : > { %v627_v7 = vpack.c.bf16 %v588_v5, %v588_v5  ;;  %v664_v23 = vld [vmem:[%s1657_s9] sm:$0xff] }
  0x16   : > { %1280 = vmatmul.msk.bf16.vlgmr.msra.gmra.mxu0 %vm610_vm0, %v589_v6  ;;  %v669_v26 = vadd.f32 %v1357_v22, %v664_v23 }
  0x17   : > { %1289 = vmatmul.msk.bf16.vlgmr.msra.gmra.mxu1 %vm610_vm0, %v627_v7 }
  0x93   : > { %v623_v10 = vpop.f32.mrf.mxu0 }
  0x94   : > { %v660_v11 = vpop.f32.mrf.mxu1  ;;  %v624_v12 = vadd.f32 %v1355_v8, %v623_v10  ;;  %v736_v8 = vld [vmem:[%s1654_s6] sm:$0xf] }
  0x95   : > { %v661_v13 = vadd.f32 %v1356_v9, %v660_v11  ;;  %v825_v9 = vsel %vm718_vm2, %v736_v8, 0 }
  0x96   : > { %737 = vrot.lane.b32.xlu2 %v624_v12, %s1440_s20  ;;  %834 = vmatpush.bf16.msrb.mxu0 %v825_v9 }
  0x97   : > { %842 = vrot.lane.b32.xlu0 %v661_v13, %s1439_s14  ;;  %1290 = vmatpush.xpose.msk.msra.mxu2 %vm670_vm1, %v661_v13  ;;  %v1572_v16 = vpack.c.bf16 %v661_v13, %v661_v13 }
  0x9a   : > { %1291 = vmatmul.msk.f32.vlgmr.msra.gmra.mxu2 %vm670_vm1, %v624_v12 }
  0x9b   : > { %v625_v14 = vpop.f32.mrf.mxu0 }
  0x9c   : > { %v662_v15 = vpop.f32.mrf.mxu1 }
  0x9f   : > { %840 = vrot.lane.b32.xlu0 %v624_v12, %s1439_s14 }
  0xa7   : > { %882 = vrot.lane.b32.xlu0 %v1572_v16, %s1441_s22 }
  0xaf   : > { %927 = vrot.lane.b32.xlu0 %v661_v13, %s1442_s23 }
  0xb7   : > { %925 = vrot.lane.b32.xlu0 %v624_v12, %s1442_s23 }
  0xf0   : > { %v738_v39 = vpop.permute.xlu2 %737 }
 0x109   : > { %v843_v17 = vpop.permute.xlu0 %842 }
 0x10a   : > { %1298 = vmatpush.xpose.msk.msrb.mxu1 %vm670_vm1, %v843_v17 }
 0x111   : > { %v841_v18 = vpop.permute.xlu0 %840 }
 0x112   : > { %1299 = vmatmul.msk.f32.vlgmr.msrb.gmra.mxu1 %vm670_vm1, %v841_v18 }
 0x119   : > { %v883_v19 = vpop.permute.xlu0 %882 }
 0x11a   : > { %v888_v20 = vsel %vm718_vm2, %v883_v19, 0 }
 0x11b   : > { %897 = vmatpush.bf16.msra.mxu1 %v888_v20 }
 0x11d   : > { %v694_v29 = vpop.f32.mrf.mxu2 }
 0x11e   : > { %v697_v30 = vmul.f32 0.35355338, %v694_v29 }
 0x120   : > { %v698_v31 = vadd.f32 %v697_v30, %v669_v26  ;;  %v801_v30 = vld [vmem:[%s1654_s6 + $0x4] sm:$0xf] }
 0x121   : > { %v928_v21 = vpop.permute.xlu0 %927 }
 0x122   : > { %1302 = vmatpush.xpose.msk.msrb.mxu1 %vm670_vm1, %v928_v21  ;;  %v699_v32 = vsel %vm670_vm1, %v698_v31, -inf  ;;  %v904_v21 = vld [vmem:[%s1654_s6 + $0x8] sm:$0xf] }
 0x129   : > { %v926_v51 = vpop.permute.xlu0 %925 }
 0x18f   : > { %v865_v24 = vpop.f32.mrf.mxu1 }
 0x190   : > { %v868_v25 = vmul.f32 0.35355338, %v865_v24  ;;  %v909_v24 = vsel %vm718_vm2, %v904_v21, 0 }
 0x192   : > { %v869_v27 = vadd.f32 %v868_v25, %v669_v26 }
 0x194   : > { %v870_v28 = vsel %vm670_vm1, %v869_v27, -inf }
 0x195   : > { %871 = vmax.xlane.f32.xlu1 %v870_v28 }
 0x1ae   : > { %739 = vrot.lane.b32.xlu1 %v661_v13, %s1440_s20 }
 0x1d8   : > { %700 = vmax.xlane.f32.xlu1 %v699_v32 }
 0x208   : > { %v872_v33 = vpop.xlane.xlu1 %871 }
 0x209   : > { %v873_v34 = vsub.f32 %v869_v27, %v872_v33 }
 0x20b   : > { %v874_v35 = vmul.f32 1.442695, %v873_v34 }
 0x20d   : > { %1360 = vpow2.f32 %v874_v35 }
 0x213   : > { %v1361_v36 = vpop.eup %1360 }
 0x214   : > { %v876_v37 = vsel %vm670_vm1, %v1361_v36, 0.0 }
 0x215   : > { %877 = vadd.xlane.f32.xlu2 %v876_v37 }
 0x220   : > { %v740_v38 = vpop.permute.xlu1 %739 }
 0x221   : > { %1293 = vmatpush.xpose.msk.msrb.mxu2 %vm670_vm1, %v740_v38 }
 0x224   : > { %1294 = vmatmul.msk.f32.vlgmr.msrb.gmra.mxu2 %vm670_vm1, %v738_v39 }
 0x22d   : > { %713 = vrot.lane.b32.xlu2 %v1572_v16, %s1443_s17  ;;  %s585_s17 = scalar_lea.vmem %s1659_s11, %s1532_s27 }
 0x24b   : > { %v701_v40 = vpop.xlane.xlu1 %700 }
 0x24c   : > { %v702_v41 = vsub.f32 %v698_v31, %v701_v40  ;;  %v806_v31 = vsel %vm718_vm2, %v801_v30, 0 }
 0x24e   : > { %v703_v42 = vmul.f32 1.442695, %v702_v41 }
 0x250   : > { %1362 = vpow2.f32 %v703_v42  ;;  %v989_v42 = vld [vmem:[%s1654_s6 + $0xc] sm:$0xf] }
 0x256   : > { %v1363_v43 = vpop.eup %1362 }
 0x257   : > { %v705_v44 = vsel %vm670_vm1, %v1363_v43, 0.0 }
 0x258   : > { %706 = vadd.xlane.f32.xlu0 %v705_v44 }
 0x288   : > { %v878_v45 = vpop.xlane.xlu2 %877 }
 0x289   : > { %1364 = vrcp.f32 %v878_v45 }
 0x28f   : > { %v1365_v46 = vpop.eup %1364 }
 0x290   : > { %v880_v47 = vmul.f32 %v1365_v46, %v1361_v36  ;;  %v714_v48 = vpop.permute.xlu2 %713 }
 0x291   : > { %v720_v49 = vsel %vm718_vm2, %v714_v48, 0 }
 0x292   : > { %v881_v50 = vpack.c.bf16 %v880_v47, %v880_v47  ;;  %729 = vmatpush.bf16.msra.mxu3 %v720_v49 }
 0x294   : > { %1300 = vmatmul.msk.bf16.vlgmr.msra.gmra.mxu1 %vm670_vm1, %v881_v50 }
 0x296   : > { %815 = vmatpush.bf16.msrb.mxu3 %v806_v31 }
 0x2a4   : > { %1303 = vmatmul.msk.f32.vlgmr.msrb.gmra.mxu1 %vm670_vm1, %v926_v51 }
 0x2a7   : > { %v762_v52 = vpop.f32.mrf.mxu2 }
 0x2a8   : > { %v765_v53 = vmul.f32 0.35355338, %v762_v52 }
 0x2aa   : > { %v766_v54 = vadd.f32 %v765_v53, %v669_v26 }
 0x2ac   : > { %v767_v55 = vsel %vm670_vm1, %v766_v54, -inf }
 0x2ad   : > { %768 = vmax.xlane.f32.xlu2 %v767_v55 }
 0x2cb   : > { %v707_v56 = vpop.xlane.xlu0 %706 }
 0x2cc   : > { %1366 = vrcp.f32 %v707_v56  ;;  %v1446_v56 = vmov 32.0  }
 0x2d2   : > { %v1367_v57 = vpop.eup %1366 }
 0x2d3   : > { %v709_v58 = vmul.f32 %v1367_v57, %v1363_v43  ;;  %v994_v43 = vsel %vm718_vm2, %v989_v42, 0 }
 0x2d5   : > { %v710_v59 = vpack.c.bf16 %v709_v58, %v709_v58 }
 0x2d7   : > { %1292 = vmatmul.msk.bf16.vlgmr.msra.gmra.mxu3 %vm670_vm1, %v710_v59 }
 0x2d8   : > { %1003 = vmatpush.bf16.msra.mxu3 %v994_v43 }
 0x311   : > { %v899_v60 = vpop.f32.mrf.mxu1 }
 0x312   : > { %v903_v27 = vpack.c.bf16 %v899_v60, %v899_v60 }
 0x319   : > { %v901_v61 = vpop.f32.mrf.mxu1 }
 0x320   : > { %v769_v62 = vpop.xlane.xlu2 %768 }
 0x321   : > { %v770_v63 = vsub.f32 %v766_v54, %v769_v62  ;;  %v950_v0 = vpop.f32.mrf.mxu1 }
 0x322   : > { %v953_v1 = vmul.f32 0.35355338, %v950_v0 }
 0x323   : > { %v771_v2 = vmul.f32 1.442695, %v770_v63 }
 0x324   : > { %v954_v3 = vadd.f32 %v953_v1, %v669_v26 }
 0x325   : > { %1368 = vpow2.f32 %v771_v2 }
 0x326   : > { %v955_v5 = vsel %vm670_vm1, %v954_v3, -inf }
 0x327   : > { %956 = vmax.xlane.f32.xlu1 %v955_v5 }
 0x32b   : > { %v1369_v6 = vpop.eup %1368 }
 0x32c   : > { %v773_v7 = vsel %vm670_vm1, %v1369_v6, 0.0 }
 0x32d   : > { %774 = vadd.xlane.f32.xlu0 %v773_v7 }
 0x340   : > { %779 = vrot.lane.b32.xlu1 %v1572_v16, %s1444_s30 }
 0x35a   : > { %v731_v10 = vpop.f32.mrf.mxu3 }
 0x35b   : > { %v735_v11 = vpack.c.bf16 %v731_v10, %v731_v10 }
 0x35d   : > { %1297 = vmatmul.msk.bf16.vlgmr.msrb.gmra.mxu0 %vm670_vm1, %v735_v11 }
 0x362   : > { %v733_v12 = vpop.f32.mrf.mxu3 }
 0x39a   : > { %v957_v13 = vpop.xlane.xlu1 %956 }
 0x39b   : > { %v958_v14 = vsub.f32 %v954_v3, %v957_v13  ;;  %v1358_v13 = vld [vmem:[%s1655_s7] ss:$0 sm:$0xff] }
 0x39d   : > { %v959_v15 = vmul.f32 1.442695, %v958_v14 }
 0x39f   : > { %1370 = vpow2.f32 %v959_v15  ;;  %v1359_v15 = vld [vmem:[#allocation2] ss:$0 sm:$0xff] }
 0x3a0   : > { %v775_v18 = vpop.xlane.xlu0 %774 }
 0x3a1   : > { %1372 = vrcp.f32 %v775_v18 }
 0x3a5   : > { %v1371_v17 = vpop.eup %1370 }
 0x3a6   : > { %v961_v19 = vsel %vm670_vm1, %v1371_v17, 0.0 }
 0x3a7   : > { %962 = vadd.xlane.f32.xlu0 %v961_v19  ;;  %v1373_v20 = vpop.eup %1372 }
 0x3a8   : > { %v777_v22 = vmul.f32 %v1373_v20, %v1369_v6 }
 0x3aa   : > { %v778_v26 = vpack.c.bf16 %v777_v22, %v777_v22 }
 0x3b2   : > { %v780_v23 = vpop.permute.xlu1 %779 }
 0x3b3   : > { %v785_v25 = vsel %vm718_vm2, %v780_v23, 0 }
 0x3b4   : > { %794 = vmatpush.bf16.msra.mxu2 %v785_v25 }
 0x3b7   : > { %1295 = vmatmul.msk.bf16.vlgmr.msra.gmra.mxu2 %vm670_vm1, %v778_v26 }
 0x3b8   : > { %918 = vmatpush.bf16.msrb.mxu2 %v909_v24 }
 0x3bb   : > { %967 = vrot.lane.b32.xlu0 %v1572_v16, %s1445_s16 }
 0x3c7   : > { %1301 = vmatmul.msk.bf16.vlgmr.msrb.gmra.mxu2 %vm670_vm1, %v903_v27 }
 0x3da   : > { %v836_v28 = vpop.f32.mrf.mxu0 }
 0x3e2   : > { %v838_v29 = vpop.f32.mrf.mxu0 }
 0x41a   : > { %v963_v32 = vpop.xlane.xlu0 %962 }
 0x41b   : > { %1374 = vrcp.f32 %v963_v32 }
 0x41c   : > { %1376 = vrcp.f32 %v1446_v56 }
 0x421   : > { %v1375_v33 = vpop.eup %1374 }
 0x422   : > { %v965_v34 = vmul.f32 %v1375_v33, %v1371_v17  ;;  %v1377_v57 = vpop.eup %1376 }
 0x423   : > { %v1015_v58 = vmul.f32 32.0, %v1377_v57  ;;  %vm1019_vm3 = vweird.f32 %v1377_v57 }
 0x424   : > { %v966_v16 = vpack.c.bf16 %v965_v34, %v965_v34 }
 0x425   : > { %v1016_v59 = vsub.f32 1.0, %v1015_v58 }
 0x427   : > { %v1017_v60 = vmul.f32 %v1377_v57, %v1016_v59 }
 0x429   : > { %v1018_v61 = vadd.f32 %v1377_v57, %v1017_v60 }
 0x42b   : > { %v1020_v62 = vsel %vm1019_vm3, %v1377_v57, %v1018_v61 }
 0x42d   : > { %v968_v35 = vpop.permute.xlu0 %967 }
 0x42e   : > { %v973_v36 = vsel %vm718_vm2, %v968_v35, 0 }
 0x42f   : > { %982 = vmatpush.bf16.msra.mxu0 %v973_v36 }
 0x432   : > { %1304 = vmatmul.msk.bf16.vlgmr.msra.gmra.mxu0 %vm670_vm1, %v966_v16 }
 0x43a   : > { %v796_v37 = vpop.f32.mrf.mxu2 }
 0x43b   : > { %v800_v38 = vpack.c.bf16 %v796_v37, %v796_v37 }
 0x43d   : > { %1296 = vmatmul.msk.bf16.vlgmr.msrb.gmra.mxu3 %vm670_vm1, %v800_v38 }
 0x442   : > { %v798_v39 = vpop.f32.mrf.mxu2 }
 0x44a   : > { %v920_v40 = vpop.f32.mrf.mxu2 }
 0x452   : > { %v922_v41 = vpop.f32.mrf.mxu2 }
 0x4af   : > { %v984_v44 = vpop.f32.mrf.mxu0 }
 0x4b0   : > { %v988_v45 = vpack.c.bf16 %v984_v44, %v984_v44 }
 0x4b2   : > { %1305 = vmatmul.msk.bf16.vlgmr.msra.gmra.mxu3 %vm670_vm1, %v988_v45 }
 0x4b7   : > { %v986_v46 = vpop.f32.mrf.mxu0 }
 0x4c0   : > { %v817_v47 = vpop.f32.mrf.mxu3 }
 0x4c1   : > { %v837_v49 = vadd.f32 %v836_v28, %v817_v47 }
 0x4c3   : > { %v924_v50 = vadd.f32 %v920_v40, %v837_v49 }
 0x4c8   : > { %v819_v48 = vpop.f32.mrf.mxu3 }
 0x535   : > { %v1005_v51 = vpop.f32.mrf.mxu3 }
 0x536   : > { %v1009_v52 = vadd.f32 %v1005_v51, %v924_v50 }
 0x538   : > { %v1010_v53 = vadd.f32 %v1009_v52, %v1554_v4 }
 0x53a   : > { %v1011_v54 = vsel %vm610_vm0, %v1010_v53, 0.0 }
 0x53b   : > { %1012 = vadd.xlane.f32.xlu1 %v1011_v54 }
 0x53d   : > { %v1007_v55 = vpop.f32.mrf.mxu3 }
 0x5ae   : > { %v1013_v63 = vpop.xlane.xlu1 %1012 }
 0x5af   : > { %v1021_v0 = vmul.f32 %v1020_v62, %v1013_v63 }
 0x5b1   : > { %v1022_v1 = vsub.f32 %v1010_v53, %v1021_v0 }
 0x5b3   : > { %v1023_v2 = vmul.f32 %v1022_v1, %v1022_v1 }
 0x5b5   : > { %v1024_v3 = vsel %vm610_vm0, %v1023_v2, 0.0 }
 0x5b6   : > { %1025 = vadd.xlane.f32.xlu2 %v1024_v3 }
 0x629   : > { %v1026_v4 = vpop.xlane.xlu2 %1025 }
 0x62a   : > { %v1027_v5 = vmul.f32 %v1026_v4, %v1020_v62 }
 0x62c   : > { %v1028_v6 = vadd.f32 1e-05, %v1027_v5 }
 0x62e   : > { %1378 = vrsqrt.f32 %v1028_v6  ;;  %vm1035_vm5 = vweird.f32 %v1028_v6 }
 0x634   : > { %v1379_v7 = vpop.eup %1378 }
 0x635   : > { %v1030_v8 = vmul.f32 %v1379_v7, %v1028_v6  ;;  %vm1036_vm4 = vweird.f32 %v1379_v7 }
 0x636   : > { %vm1037_vm6 = vmor %vm1035_vm5, %vm1036_vm4 }
 0x637   : > { %v1031_v9 = vmul.f32 %v1379_v7, %v1030_v8 }
 0x639   : > { %v1032_v10 = vmul.f32 0.5, %v1031_v9 }
 0x63b   : > { %v1033_v11 = vsub.f32 1.5, %v1032_v10 }
 0x63d   : > { %v1034_v12 = vmul.f32 %v1379_v7, %v1033_v11 }
 0x63f   : > { %v1038_v14 = vsel %vm1037_vm6, %v1379_v7, %v1034_v12 }
 0x640   : > { %v1039_v17 = vmul.f32 %v1038_v14, %v1022_v1 }
 0x642   : > { %v1044_v18 = vmul.f32 %v1358_v13, %v1039_v17 }
 0x644   : > { %v1049_v19 = vadd.f32 %v1359_v15, %v1044_v18 }
 0x646   : > { %1050 = vst.msk [vmem:[%s585_s17] sm:$0xff] %vm610_vm0, %v1049_v19 }
 0x647 PF: > { %s22_s19 = sadd.s32 1, %s1436_s19   ;;  %s1660_s17 = smov %s1432_s18 }
 0x648   : > { %p19_p8 = scmp.ge.s32.totalorder %s22_s19, 4   ;;  %s1661_s18 = smov %s1663_s21 }
 0x64a   :  { %21 = sbr.rel (!%p19_p8) target bundleno = 2 (0x2), region = 124 }
 0x64f   :  { %1078 = vsyncpa [#allocation3], 1 }
 0x650   :  { %1080 = vsyncpa [#allocation3 + $0x1], 1 }

</bundles_post_ra>
